<compile_context>
chip_gen: v7x
topology: tpu7x:2x2x1
jax: 0.10.0
libtpu: 0.0.40
codegen_flags: <defaults>
</compile_context>

<pallas_src>
import functools

import jax
import jax.numpy as jnp
from jax.experimental import pallas as pl
from jax.experimental.pallas import tpu as pltpu

EPS = 1e-5


# ---------------------------------------------------------------------------
# Activation record
# ---------------------------------------------------------------------------
# act = dict(
#   x     : (B, D, C, H, W) array                         if junk == False
#           (B, D, C, H*(W+2)) array, 2 junk cols per row  if junk == True
#   dims  : python ints (B, D, C, H, W)
#   scale, shift : None or (C, 1) f32 — pending BN+ReLU: y = relu(x*scale+shift)
# )

def _finalize(act, dtype=jnp.float32):
    B, D, C, H, W = act["dims"]
    x = act["x"]
    if act["junk"]:
        x = x.reshape(B, D, C, H, W + 2)[..., :W]
    x = x.astype(jnp.float32)
    if act["scale"] is not None:
        x = jnp.maximum(x * act["scale"][..., None] + act["shift"][..., None], 0.0)
    return x.astype(dtype)                                  # (B, D, C, H, W)


def _pad_for_conv(act):
    """Apply pending BN+ReLU, zero-pad, flatten plane: (B, D+2, C, (H+3)*(W+2))."""
    B, D, C, H, W = act["dims"]
    x = _finalize(act, jnp.float32)
    x = jnp.pad(x, ((0, 0), (1, 1), (0, 0), (1, 2), (1, 1)))
    return x.reshape(B, D + 2, C, (H + 3) * (W + 2)).astype(jnp.bfloat16)


# ---------------------------------------------------------------------------
# Kernels
# ---------------------------------------------------------------------------

def _conv3x3_kernel(x0_ref, x1_ref, x2_ref, w_ref, mask_ref,
                    o_ref, sum_ref, sq_ref, *, cin, cout, H, W):
    # x*_ref: (1, 1, cin, Np) bf16 padded planes at depth d, d+1, d+2
    # w_ref : (27, cout, cin) bf16, mask_ref: (1, L) f32 valid-lane mask
    # o_ref : (1, 1, cout, L) bf16 raw conv output (junk lanes kept)
    Wp = W + 2
    L = H * Wp
    acc = jnp.zeros((cout, L), jnp.float32)
    xrefs = (x0_ref, x1_ref, x2_ref)
    for kd in range(3):
        xk = xrefs[kd][0, 0]                                # (cin, Np) bf16
        for kh in range(3):
            for kw in range(3):
                off = kh * Wp + kw
                tap = xk[:, off:off + L]                    # (cin, L)
                k = kd * 9 + kh * 3 + kw
                if cin >= 8:
                    acc = acc + jnp.dot(w_ref[k], tap,
                                        preferred_element_type=jnp.float32)
                else:
                    wk = w_ref[k].astype(jnp.float32)       # (cout, cin)
                    tp = tap.astype(jnp.float32)
                    for ci in range(cin):                   # tiny-K: use VPU
                        acc = acc + wk[:, ci:ci + 1] * tp[ci:ci + 1, :]
    mask = mask_ref[...]                                    # (1, L) f32
    am = acc * mask
    sum_ref[0, 0] = jnp.sum(am, axis=1, keepdims=True)      # (cout, 1)
    sq_ref[0, 0] = jnp.sum(am * acc, axis=1, keepdims=True)
    o_ref[0, 0] = acc.astype(o_ref.dtype)


def _deup_kernel(z_ref, w_ref, c_ref, o_ref):
    # z_ref: (1, 1, K, M) bf16 = [deinterleaved skip ; x];  one merged matmul.
    o_ref[0, 0] = (jnp.dot(w_ref[...], z_ref[0, 0],
                           preferred_element_type=jnp.float32)
                   + c_ref[...]).astype(o_ref.dtype)


def _endconv_kernel(x_ref, scale_ref, shift_ref, w_ref, b_ref, o_ref, *, cin, cout):
    # Applies the pending BN+ReLU of the previous block in-kernel, then 1x1 conv.
    a = jnp.maximum(x_ref[0, 0].astype(jnp.float32) * scale_ref[...]
                    + shift_ref[...], 0.0)                  # (cin, L)
    w = w_ref[...].astype(jnp.float32)                      # (cout, cin)
    if cin >= 8:
        acc = jnp.dot(w, a, preferred_element_type=jnp.float32)
    else:
        acc = jnp.zeros((cout, a.shape[1]), jnp.float32)
        for ci in range(cin):
            acc = acc + w[:, ci:ci + 1] * a[ci:ci + 1, :]
    o_ref[0, 0] = acc + b_ref[...]


# ---------------------------------------------------------------------------
# Layer wrappers
# ---------------------------------------------------------------------------

def conv3x3_bn(act, w, g, beta):
    """Conv3d(3,3,3,pad=1) (bias dropped, cancelled by BN) + batch stats.

    Returns an activation record in junk layout with pending BN+ReLU
    (scale/shift folded from the batch statistics)."""
    B, D, C, H, W = act["dims"]
    cout = w.shape[1]
    Wp = W + 2
    L = H * Wp
    Np = (H + 3) * Wp
    n = B * D * H * W

    xp = _pad_for_conv(act)                                 # (B, D+2, C, Np) bf16
    wb = w.astype(jnp.bfloat16)                             # (27, cout, C)
    mask = (jnp.arange(L, dtype=jnp.int32) % Wp < W).astype(jnp.float32)
    mask = mask.reshape(1, L)

    kern = functools.partial(_conv3x3_kernel, cin=C, cout=cout, H=H, W=W)

    def slab(kd):
        return pl.BlockSpec((1, 1, C, Np), lambda b, d, kd=kd: (b, d + kd, 0, 0))

    out, s, sq = pl.pallas_call(
        kern,
        out_shape=(jax.ShapeDtypeStruct((B, D, cout, L), jnp.bfloat16),
                   jax.ShapeDtypeStruct((B, D, cout, 1), jnp.float32),
                   jax.ShapeDtypeStruct((B, D, cout, 1), jnp.float32)),
        grid=(B, D),
        in_specs=[slab(0), slab(1), slab(2),
                  pl.BlockSpec((27, cout, C), lambda b, d: (0, 0, 0)),
                  pl.BlockSpec((1, L), lambda b, d: (0, 0))],
        out_specs=(pl.BlockSpec((1, 1, cout, L), lambda b, d: (b, d, 0, 0)),
                   pl.BlockSpec((1, 1, cout, 1), lambda b, d: (b, d, 0, 0)),
                   pl.BlockSpec((1, 1, cout, 1), lambda b, d: (b, d, 0, 0))),
        compiler_params=pltpu.CompilerParams(
            dimension_semantics=("parallel", "parallel")),
    )(xp, xp, xp, wb, mask)

    # Fold batch statistics (biased variance) into an affine scale/shift; the
    # consumer applies relu(x*scale+shift).  E[x^2]-E[x]^2 in f32 is adequate
    # for this random-weight test (flagged: Welford would be safer in prod).
    tot = jnp.sum(s, axis=(0, 1))                           # (cout, 1)
    totq = jnp.sum(sq, axis=(0, 1))
    mean = tot / n
    var = jnp.maximum(totq / n - mean * mean, 0.0)
    scale = g * jax.lax.rsqrt(var + EPS)
    shift = beta - mean * scale
    return dict(x=out, dims=(B, D, cout, H, W), junk=True, scale=scale, shift=shift)


def deblock_bn(act, p):
    # Conv biases p["b1"]/p["b2"] intentionally unused: cancelled by BatchNorm.
    act = conv3x3_bn(act, p["w1"], p["g1"], p["beta1"])
    act = conv3x3_bn(act, p["w2"], p["g2"], p["beta2"])
    return act


def deup_cat(act, prev, p):
    """Fused DeUpCat: out_k = (W3b@W2k@W1)@x + W3a@prev_k + c_k, single matmul."""
    B, D, Cin, H, W = act["dims"]
    cout = p["w1"].shape[0]
    cprev = prev.shape[1]
    M = H * W

    x = _finalize(act, jnp.float32).reshape(B, D, Cin, M)
    # De-interleave the skip into its 8 (kd,kh,kw) sub-grids aligned with x.
    pk = prev.reshape(B, cprev, D, 2, H, 2, W, 2)
    pk = pk.transpose(0, 2, 3, 5, 7, 1, 4, 6).reshape(B, D, 8 * cprev, M)
    z = jnp.concatenate([pk, x], axis=2).astype(jnp.bfloat16)   # (B, D, K, M)
    K = 8 * cprev + Cin

    w1, b1, w2, b2, w3, b3 = p["w1"], p["b1"], p["w2"], p["b2"], p["w3"], p["b3"]
    w3a = w3[:, :cprev]                                     # skip branch
    w3b = w3[:, cprev:]                                     # upsample branch
    A = jnp.einsum("oc,kcd,de->koe", w3b, w2, w1).reshape(8 * cout, Cin)
    c = (jnp.einsum("oc,kcd->kod", w3b, w2) @ b1
         + (w3b @ b2)[None] + b3[None]).reshape(8 * cout, 1)
    wp = jnp.kron(jnp.eye(8, dtype=w3a.dtype), w3a)         # (8cout, 8cprev)
    wall = jnp.concatenate([wp, A], axis=1).astype(jnp.bfloat16)   # (8cout, K)

    out = pl.pallas_call(
        _deup_kernel,
        out_shape=jax.ShapeDtypeStruct((B, D, 8 * cout, M), jnp.bfloat16),
        grid=(B, D),
        in_specs=[pl.BlockSpec((1, 1, K, M), lambda b, d: (b, d, 0, 0)),
                  pl.BlockSpec((8 * cout, K), lambda b, d: (0, 0)),
                  pl.BlockSpec((8 * cout, 1), lambda b, d: (0, 0))],
        out_specs=pl.BlockSpec((1, 1, 8 * cout, M), lambda b, d: (b, d, 0, 0)),
        compiler_params=pltpu.CompilerParams(
            dimension_semantics=("parallel", "parallel")),
    )(z, wall, c)

    # Re-interleave the 8 sub-grids into the full-resolution activation.
    # TODO(synk): fold this transpose (and the pk de-interleave above) into the
    # neighbouring kernels with strided gathers to save two full HBM passes.
    y = out.reshape(B, D, 2, 2, 2, cout, H, W)
    y = y.transpose(0, 1, 2, 5, 6, 3, 7, 4).reshape(B, 2 * D, cout, 2 * H, 2 * W)
    return dict(x=y, dims=(B, 2 * D, cout, 2 * H, 2 * W), junk=False,
                scale=None, shift=None)


def end_conv(act, w, b):
    """Final 1x1 conv; applies the pending BN+ReLU of DeBlock2 in-kernel."""
    B, D, C, H, W = act["dims"]
    cout = w.shape[0]
    Wp = W + 2
    L = H * Wp
    scale = act["scale"] if act["scale"] is not None else jnp.ones((C, 1), jnp.float32)
    shift = act["shift"] if act["shift"] is not None else jnp.zeros((C, 1), jnp.float32)

    kern = functools.partial(_endconv_kernel, cin=C, cout=cout)
    out = pl.pallas_call(
        kern,
        out_shape=jax.ShapeDtypeStruct((B, D, cout, L), jnp.float32),
        grid=(B, D),
        in_specs=[pl.BlockSpec((1, 1, C, L), lambda b, d: (b, d, 0, 0)),
                  pl.BlockSpec((C, 1), lambda b, d: (0, 0)),
                  pl.BlockSpec((C, 1), lambda b, d: (0, 0)),
                  pl.BlockSpec((cout, C), lambda b, d: (0, 0)),
                  pl.BlockSpec((cout, 1), lambda b, d: (0, 0))],
        out_specs=pl.BlockSpec((1, 1, cout, L), lambda b, d: (b, d, 0, 0)),
        compiler_params=pltpu.CompilerParams(
            dimension_semantics=("parallel", "parallel")),
    )(act["x"], scale, shift, w, b)

    y = out.reshape(B, D, cout, H, Wp)[..., :W]             # drop junk lanes
    return jnp.transpose(y, (0, 2, 1, 3, 4))                # NCDHW


# ---------------------------------------------------------------------------
# Decoder
# ---------------------------------------------------------------------------

def unet3d_decoder(x1, x2, x3, x4, trans_out, params, embed_dim):
    B = x4.shape[0]
    D4, H4, W4 = x4.shape[2], x4.shape[3], x4.shape[4]
    # torch: view(B, D4, H4, W4, E).permute(0, 4, 1, 2, 3); here layout (B,D,C,H,W)
    x = trans_out.reshape(B, D4, H4, W4, embed_dim).transpose(0, 1, 4, 2, 3)
    act = dict(x=x, dims=(B, D4, embed_dim, H4, W4), junk=False,
               scale=None, shift=None)
    act = deblock_bn(act, params["EnBlock1"])
    act = deblock_bn(act, params["EnBlock2"])
    act = deup_cat(act, x3, params["DeUp4"])
    act = deblock_bn(act, params["DeBlock4"])
    act = deup_cat(act, x2, params["DeUp3"])
    act = deblock_bn(act, params["DeBlock3"])
    act = deup_cat(act, x1, params["DeUp2"])
    act = deblock_bn(act, params["DeBlock2"])
    return end_conv(act, params["EndConv"]["w"], params["EndConv"]["b"])


# ---------------------------------------------------------------------------
# Parameters
# ---------------------------------------------------------------------------

def _init_deblock(key, cin, ratio=1):
    cmid = cin // ratio
    ks = jax.random.split(key, 8)
    s1, s2 = 0.2 / cin ** 0.5, 0.2 / cmid ** 0.5
    return dict(
        w1=jax.random.normal(ks[0], (27, cmid, cin), jnp.float32) * s1,
        b1=0.05 * jax.random.normal(ks[1], (cmid, 1), jnp.float32),
        g1=1.0 + 0.05 * jax.random.normal(ks[2], (cmid, 1), jnp.float32),
        beta1=0.05 * jax.random.normal(ks[3], (cmid, 1), jnp.float32),
        w2=jax.random.normal(ks[4], (27, cmid, cmid), jnp.float32) * s2,
        b2=0.05 * jax.random.normal(ks[5], (cmid, 1), jnp.float32),
        g2=1.0 + 0.05 * jax.random.normal(ks[6], (cmid, 1), jnp.float32),
        beta2=0.05 * jax.random.normal(ks[7], (cmid, 1), jnp.float32),
    )


def _init_deup(key, cin, cout):
    ks = jax.random.split(key, 6)
    return dict(
        w1=jax.random.normal(ks[0], (cout, cin), jnp.float32) / cin ** 0.5,
        b1=0.05 * jax.random.normal(ks[1], (cout, 1), jnp.float32),
        w2=jax.random.normal(ks[2], (8, cout, cout), jnp.float32) / cout ** 0.5,
        b2=0.05 * jax.random.normal(ks[3], (cout, 1), jnp.float32),
        w3=jax.random.normal(ks[4], (cout, 2 * cout), jnp.float32) / (2 * cout) ** 0.5,
        b3=0.05 * jax.random.normal(ks[5], (cout, 1), jnp.float32),
    )


def init_params(key, in_channels, out_channels):
    ks = jax.random.split(key, 10)
    c = in_channels
    return dict(
        EnBlock1=_init_deblock(ks[0], c, ratio=4),
        EnBlock2=_init_deblock(ks[1], c // 4),
        DeUp4=_init_deup(ks[2], c // 4, c // 8),
        DeBlock4=_init_deblock(ks[3], c // 8),
        DeUp3=_init_deup(ks[4], c // 8, c // 16),
        DeBlock3=_init_deblock(ks[5], c // 16),
        DeUp2=_init_deup(ks[6], c // 16, c // 32),
        DeBlock2=_init_deblock(ks[7], c // 32),
        EndConv=dict(
            w=jax.random.normal(ks[8], (out_channels, c // 32), jnp.float32),
            b=0.05 * jax.random.normal(ks[9], (out_channels, 1), jnp.float32),
        ),
    )


# ---------------------------------------------------------------------------
# Main
# ---------------------------------------------------------------------------

if __name__ == "__main__":
    in_channels = embed_dim = 32
    out_channels = 4
    img_dim = 16            # full-resolution spatial size
    patch_dim = 8           # bottleneck reduction factor -> x4 spatial = 2
    B = 2

    key = jax.random.PRNGKey(0)
    kx = jax.random.split(key, 6)
    d4 = img_dim // patch_dim                               # 2

    x1 = jax.random.normal(kx[0], (B, in_channels // 32, img_dim, img_dim, img_dim), jnp.float32)
    x2 = jax.random.normal(kx[1], (B, in_channels // 16, img_dim // 2, img_dim // 2, img_dim // 2), jnp.float32)
    x3 = jax.random.normal(kx[2], (B, in_channels // 8, img_dim // 4, img_dim // 4, img_dim // 4), jnp.float32)
    x4 = jax.random.normal(kx[3], (B, in_channels // 4, d4, d4, d4), jnp.float32)
    trans_out = jax.random.normal(kx[4], (B, d4 * d4 * d4, embed_dim), jnp.float32)

    params = init_params(kx[5], in_channels, out_channels)

    fwd = jax.jit(lambda a, b, c, d, t: unet3d_decoder(a, b, c, d, t, params, embed_dim))
    y = fwd(x1, x2, x3, x4, trans_out)
    jax.block_until_ready(y)
    assert y.shape == (B, out_channels, img_dim, img_dim, img_dim), y.shape
    assert bool(jnp.all(jnp.isfinite(y)))
    print("KERNEL_OK")
</pallas_src>

<mosaic_0001>
module attributes {stable_mosaic.version = 11 : i64} {
  func.func @_conv3x3_kernel(%arg0: i32, %arg1: i32, %arg2: memref<1x1x32x20xbf16, #tpu.memory_space<vmem>>, %arg3: memref<1x1x32x20xbf16, #tpu.memory_space<vmem>>, %arg4: memref<1x1x32x20xbf16, #tpu.memory_space<vmem>>, %arg5: memref<27x8x32xbf16, #tpu.memory_space<vmem>>, %arg6: memref<1x8xf32, #tpu.memory_space<vmem>>, %arg7: memref<1x1x8x8xbf16, #tpu.memory_space<vmem>>, %arg8: memref<1x1x8x1xf32, #tpu.memory_space<vmem>>, %arg9: memref<1x1x8x1xf32, #tpu.memory_space<vmem>>) attributes {dimension_semantics = [#tpu.dimension_semantics<parallel>, #tpu.dimension_semantics<parallel>], iteration_bounds = array<i64: 2, 2>, scalar_prefetch = 0 : i64, scratch_operands = 0 : i64, tpu.core_type = #tpu.core_type<tc>, window_params = [{transform_indices = @transform_0, window_bounds = array<i64: 1, 1, 32, 20>}, {transform_indices = @transform_1, window_bounds = array<i64: 1, 1, 32, 20>}, {transform_indices = @transform_2, window_bounds = array<i64: 1, 1, 32, 20>}, {pipeline_mode = #tpu.pipeline_mode<synchronous>, transform_indices = @transform_3, window_bounds = array<i64: 27, 8, 32>}, {pipeline_mode = #tpu.pipeline_mode<synchronous>, transform_indices = @transform_4, window_bounds = array<i64: 1, 8>}, {transform_indices = @transform_5, window_bounds = array<i64: 1, 1, 8, 8>}, {transform_indices = @transform_6, window_bounds = array<i64: 1, 1, 8, 1>}, {transform_indices = @transform_7, window_bounds = array<i64: 1, 1, 8, 1>}]} {
    %cst = arith.constant 0.000000e+00 : f32
    %0 = vector.broadcast %cst : f32 to vector<8x8xf32>
    %c0 = arith.constant 0 : index
    %c0_0 = arith.constant 0 : index
    %c0_1 = arith.constant 0 : index
    %c0_2 = arith.constant 0 : index
    %1 = vector.load %arg2[%c0, %c0_0, %c0_1, %c0_2] : memref<1x1x32x20xbf16, #tpu.memory_space<vmem>>, vector<1x1x32x20xbf16>
    %2 = vector.shape_cast %1 : vector<1x1x32x20xbf16> to vector<32x20xbf16>
    %3 = vector.extract_strided_slice %2 {offsets = [0, 0], sizes = [32, 8], strides = [1, 1]} : vector<32x20xbf16> to vector<32x8xbf16>
    %c0_3 = arith.constant 0 : index
    %c0_4 = arith.constant 0 : index
    %c0_5 = arith.constant 0 : index
    %4 = vector.load %arg5[%c0_3, %c0_4, %c0_5] : memref<27x8x32xbf16, #tpu.memory_space<vmem>>, vector<1x8x32xbf16>
    %5 = vector.shape_cast %4 : vector<1x8x32xbf16> to vector<8x32xbf16>
    %cst_6 = arith.constant dense<0.000000e+00> : vector<8x8xf32>
    %6 = tpu.matmul %5, %3, %cst_6 {dimension_numbers = #tpu.dot_dimension_numbers<[1], [0], [0], [1], [0, 0, 1, 1], [], []>} : vector<8x32xbf16>, vector<32x8xbf16>, vector<8x8xf32> -> vector<8x8xf32>
    %7 = arith.addf %0, %6 : vector<8x8xf32>
    %8 = vector.extract_strided_slice %2 {offsets = [0, 1], sizes = [32, 8], strides = [1, 1]} : vector<32x20xbf16> to vector<32x8xbf16>
    %c1 = arith.constant 1 : index
    %c0_7 = arith.constant 0 : index
    %c0_8 = arith.constant 0 : index
    %9 = vector.load %arg5[%c1, %c0_7, %c0_8] : memref<27x8x32xbf16, #tpu.memory_space<vmem>>, vector<1x8x32xbf16>
    %10 = vector.shape_cast %9 : vector<1x8x32xbf16> to vector<8x32xbf16>
    %cst_9 = arith.constant dense<0.000000e+00> : vector<8x8xf32>
    %11 = tpu.matmul %10, %8, %cst_9 {dimension_numbers = #tpu.dot_dimension_numbers<[1], [0], [0], [1], [0, 0, 1, 1], [], []>} : vector<8x32xbf16>, vector<32x8xbf16>, vector<8x8xf32> -> vector<8x8xf32>
    %12 = arith.addf %7, %11 : vector<8x8xf32>
    %13 = vector.extract_strided_slice %2 {offsets = [0, 2], sizes = [32, 8], strides = [1, 1]} : vector<32x20xbf16> to vector<32x8xbf16>
    %c2 = arith.constant 2 : index
    %c0_10 = arith.constant 0 : index
    %c0_11 = arith.constant 0 : index
    %14 = vector.load %arg5[%c2, %c0_10, %c0_11] : memref<27x8x32xbf16, #tpu.memory_space<vmem>>, vector<1x8x32xbf16>
    %15 = vector.shape_cast %14 : vector<1x8x32xbf16> to vector<8x32xbf16>
    %cst_12 = arith.constant dense<0.000000e+00> : vector<8x8xf32>
    %16 = tpu.matmul %15, %13, %cst_12 {dimension_numbers = #tpu.dot_dimension_numbers<[1], [0], [0], [1], [0, 0, 1, 1], [], []>} : vector<8x32xbf16>, vector<32x8xbf16>, vector<8x8xf32> -> vector<8x8xf32>
    %17 = arith.addf %12, %16 : vector<8x8xf32>
    %18 = vector.extract_strided_slice %2 {offsets = [0, 4], sizes = [32, 8], strides = [1, 1]} : vector<32x20xbf16> to vector<32x8xbf16>
    %c3 = arith.constant 3 : index
    %c0_13 = arith.constant 0 : index
    %c0_14 = arith.constant 0 : index
    %19 = vector.load %arg5[%c3, %c0_13, %c0_14] : memref<27x8x32xbf16, #tpu.memory_space<vmem>>, vector<1x8x32xbf16>
    %20 = vector.shape_cast %19 : vector<1x8x32xbf16> to vector<8x32xbf16>
    %cst_15 = arith.constant dense<0.000000e+00> : vector<8x8xf32>
    %21 = tpu.matmul %20, %18, %cst_15 {dimension_numbers = #tpu.dot_dimension_numbers<[1], [0], [0], [1], [0, 0, 1, 1], [], []>} : vector<8x32xbf16>, vector<32x8xbf16>, vector<8x8xf32> -> vector<8x8xf32>
    %22 = arith.addf %17, %21 : vector<8x8xf32>
    %23 = vector.extract_strided_slice %2 {offsets = [0, 5], sizes = [32, 8], strides = [1, 1]} : vector<32x20xbf16> to vector<32x8xbf16>
    %c4 = arith.constant 4 : index
    %c0_16 = arith.constant 0 : index
    %c0_17 = arith.constant 0 : index
    %24 = vector.load %arg5[%c4, %c0_16, %c0_17] : memref<27x8x32xbf16, #tpu.memory_space<vmem>>, vector<1x8x32xbf16>
    %25 = vector.shape_cast %24 : vector<1x8x32xbf16> to vector<8x32xbf16>
    %cst_18 = arith.constant dense<0.000000e+00> : vector<8x8xf32>
    %26 = tpu.matmul %25, %23, %cst_18 {dimension_numbers = #tpu.dot_dimension_numbers<[1], [0], [0], [1], [0, 0, 1, 1], [], []>} : vector<8x32xbf16>, vector<32x8xbf16>, vector<8x8xf32> -> vector<8x8xf32>
    %27 = arith.addf %22, %26 : vector<8x8xf32>
    %28 = vector.extract_strided_slice %2 {offsets = [0, 6], sizes = [32, 8], strides = [1, 1]} : vector<32x20xbf16> to vector<32x8xbf16>
    %c5 = arith.constant 5 : index
    %c0_19 = arith.constant 0 : index
    %c0_20 = arith.constant 0 : index
    %29 = vector.load %arg5[%c5, %c0_19, %c0_20] : memref<27x8x32xbf16, #tpu.memory_space<vmem>>, vector<1x8x32xbf16>
    %30 = vector.shape_cast %29 : vector<1x8x32xbf16> to vector<8x32xbf16>
    %cst_21 = arith.constant dense<0.000000e+00> : vector<8x8xf32>
    %31 = tpu.matmul %30, %28, %cst_21 {dimension_numbers = #tpu.dot_dimension_numbers<[1], [0], [0], [1], [0, 0, 1, 1], [], []>} : vector<8x32xbf16>, vector<32x8xbf16>, vector<8x8xf32> -> vector<8x8xf32>
    %32 = arith.addf %27, %31 : vector<8x8xf32>
    %33 = vector.extract_strided_slice %2 {offsets = [0, 8], sizes = [32, 8], strides = [1, 1]} : vector<32x20xbf16> to vector<32x8xbf16>
    %c6 = arith.constant 6 : index
    %c0_22 = arith.constant 0 : index
    %c0_23 = arith.constant 0 : index
    %34 = vector.load %arg5[%c6, %c0_22, %c0_23] : memref<27x8x32xbf16, #tpu.memory_space<vmem>>, vector<1x8x32xbf16>
    %35 = vector.shape_cast %34 : vector<1x8x32xbf16> to vector<8x32xbf16>
    %cst_24 = arith.constant dense<0.000000e+00> : vector<8x8xf32>
    %36 = tpu.matmul %35, %33, %cst_24 {dimension_numbers = #tpu.dot_dimension_numbers<[1], [0], [0], [1], [0, 0, 1, 1], [], []>} : vector<8x32xbf16>, vector<32x8xbf16>, vector<8x8xf32> -> vector<8x8xf32>
    %37 = arith.addf %32, %36 : vector<8x8xf32>
    %38 = vector.extract_strided_slice %2 {offsets = [0, 9], sizes = [32, 8], strides = [1, 1]} : vector<32x20xbf16> to vector<32x8xbf16>
    %c7 = arith.constant 7 : index
    %c0_25 = arith.constant 0 : index
    %c0_26 = arith.constant 0 : index
    %39 = vector.load %arg5[%c7, %c0_25, %c0_26] : memref<27x8x32xbf16, #tpu.memory_space<vmem>>, vector<1x8x32xbf16>
    %40 = vector.shape_cast %39 : vector<1x8x32xbf16> to vector<8x32xbf16>
    %cst_27 = arith.constant dense<0.000000e+00> : vector<8x8xf32>
    %41 = tpu.matmul %40, %38, %cst_27 {dimension_numbers = #tpu.dot_dimension_numbers<[1], [0], [0], [1], [0, 0, 1, 1], [], []>} : vector<8x32xbf16>, vector<32x8xbf16>, vector<8x8xf32> -> vector<8x8xf32>
    %42 = arith.addf %37, %41 : vector<8x8xf32>
    %43 = vector.extract_strided_slice %2 {offsets = [0, 10], sizes = [32, 8], strides = [1, 1]} : vector<32x20xbf16> to vector<32x8xbf16>
    %c8 = arith.constant 8 : index
    %c0_28 = arith.constant 0 : index
    %c0_29 = arith.constant 0 : index
    %44 = vector.load %arg5[%c8, %c0_28, %c0_29] : memref<27x8x32xbf16, #tpu.memory_space<vmem>>, vector<1x8x32xbf16>
    %45 = vector.shape_cast %44 : vector<1x8x32xbf16> to vector<8x32xbf16>
    %cst_30 = arith.constant dense<0.000000e+00> : vector<8x8xf32>
    %46 = tpu.matmul %45, %43, %cst_30 {dimension_numbers = #tpu.dot_dimension_numbers<[1], [0], [0], [1], [0, 0, 1, 1], [], []>} : vector<8x32xbf16>, vector<32x8xbf16>, vector<8x8xf32> -> vector<8x8xf32>
    %47 = arith.addf %42, %46 : vector<8x8xf32>
    %c0_31 = arith.constant 0 : index
    %c0_32 = arith.constant 0 : index
    %c0_33 = arith.constant 0 : index
    %c0_34 = arith.constant 0 : index
    %48 = vector.load %arg3[%c0_31, %c0_32, %c0_33, %c0_34] : memref<1x1x32x20xbf16, #tpu.memory_space<vmem>>, vector<1x1x32x20xbf16>
    %49 = vector.shape_cast %48 : vector<1x1x32x20xbf16> to vector<32x20xbf16>
    %50 = vector.extract_strided_slice %49 {offsets = [0, 0], sizes = [32, 8], strides = [1, 1]} : vector<32x20xbf16> to vector<32x8xbf16>
    %c9 = arith.constant 9 : index
    %c0_35 = arith.constant 0 : index
    %c0_36 = arith.constant 0 : index
    %51 = vector.load %arg5[%c9, %c0_35, %c0_36] : memref<27x8x32xbf16, #tpu.memory_space<vmem>>, vector<1x8x32xbf16>
    %52 = vector.shape_cast %51 : vector<1x8x32xbf16> to vector<8x32xbf16>
    %cst_37 = arith.constant dense<0.000000e+00> : vector<8x8xf32>
    %53 = tpu.matmul %52, %50, %cst_37 {dimension_numbers = #tpu.dot_dimension_numbers<[1], [0], [0], [1], [0, 0, 1, 1], [], []>} : vector<8x32xbf16>, vector<32x8xbf16>, vector<8x8xf32> -> vector<8x8xf32>
    %54 = arith.addf %47, %53 : vector<8x8xf32>
    %55 = vector.extract_strided_slice %49 {offsets = [0, 1], sizes = [32, 8], strides = [1, 1]} : vector<32x20xbf16> to vector<32x8xbf16>
    %c10 = arith.constant 10 : index
    %c0_38 = arith.constant 0 : index
    %c0_39 = arith.constant 0 : index
    %56 = vector.load %arg5[%c10, %c0_38, %c0_39] : memref<27x8x32xbf16, #tpu.memory_space<vmem>>, vector<1x8x32xbf16>
    %57 = vector.shape_cast %56 : vector<1x8x32xbf16> to vector<8x32xbf16>
    %cst_40 = arith.constant dense<0.000000e+00> : vector<8x8xf32>
    %58 = tpu.matmul %57, %55, %cst_40 {dimension_numbers = #tpu.dot_dimension_numbers<[1], [0], [0], [1], [0, 0, 1, 1], [], []>} : vector<8x32xbf16>, vector<32x8xbf16>, vector<8x8xf32> -> vector<8x8xf32>
    %59 = arith.addf %54, %58 : vector<8x8xf32>
    %60 = vector.extract_strided_slice %49 {offsets = [0, 2], sizes = [32, 8], strides = [1, 1]} : vector<32x20xbf16> to vector<32x8xbf16>
    %c11 = arith.constant 11 : index
    %c0_41 = arith.constant 0 : index
    %c0_42 = arith.constant 0 : index
    %61 = vector.load %arg5[%c11, %c0_41, %c0_42] : memref<27x8x32xbf16, #tpu.memory_space<vmem>>, vector<1x8x32xbf16>
    %62 = vector.shape_cast %61 : vector<1x8x32xbf16> to vector<8x32xbf16>
    %cst_43 = arith.constant dense<0.000000e+00> : vector<8x8xf32>
    %63 = tpu.matmul %62, %60, %cst_43 {dimension_numbers = #tpu.dot_dimension_numbers<[1], [0], [0], [1], [0, 0, 1, 1], [], []>} : vector<8x32xbf16>, vector<32x8xbf16>, vector<8x8xf32> -> vector<8x8xf32>
    %64 = arith.addf %59, %63 : vector<8x8xf32>
    %65 = vector.extract_strided_slice %49 {offsets = [0, 4], sizes = [32, 8], strides = [1, 1]} : vector<32x20xbf16> to vector<32x8xbf16>
    %c12 = arith.constant 12 : index
    %c0_44 = arith.constant 0 : index
    %c0_45 = arith.constant 0 : index
    %66 = vector.load %arg5[%c12, %c0_44, %c0_45] : memref<27x8x32xbf16, #tpu.memory_space<vmem>>, vector<1x8x32xbf16>
    %67 = vector.shape_cast %66 : vector<1x8x32xbf16> to vector<8x32xbf16>
    %cst_46 = arith.constant dense<0.000000e+00> : vector<8x8xf32>
    %68 = tpu.matmul %67, %65, %cst_46 {dimension_numbers = #tpu.dot_dimension_numbers<[1], [0], [0], [1], [0, 0, 1, 1], [], []>} : vector<8x32xbf16>, vector<32x8xbf16>, vector<8x8xf32> -> vector<8x8xf32>
    %69 = arith.addf %64, %68 : vector<8x8xf32>
    %70 = vector.extract_strided_slice %49 {offsets = [0, 5], sizes = [32, 8], strides = [1, 1]} : vector<32x20xbf16> to vector<32x8xbf16>
    %c13 = arith.constant 13 : index
    %c0_47 = arith.constant 0 : index
    %c0_48 = arith.constant 0 : index
    %71 = vector.load %arg5[%c13, %c0_47, %c0_48] : memref<27x8x32xbf16, #tpu.memory_space<vmem>>, vector<1x8x32xbf16>
    %72 = vector.shape_cast %71 : vector<1x8x32xbf16> to vector<8x32xbf16>
    %cst_49 = arith.constant dense<0.000000e+00> : vector<8x8xf32>
    %73 = tpu.matmul %72, %70, %cst_49 {dimension_numbers = #tpu.dot_dimension_numbers<[1], [0], [0], [1], [0, 0, 1, 1], [], []>} : vector<8x32xbf16>, vector<32x8xbf16>, vector<8x8xf32> -> vector<8x8xf32>
    %74 = arith.addf %69, %73 : vector<8x8xf32>
    %75 = vector.extract_strided_slice %49 {offsets = [0, 6], sizes = [32, 8], strides = [1, 1]} : vector<32x20xbf16> to vector<32x8xbf16>
    %c14 = arith.constant 14 : index
    %c0_50 = arith.constant 0 : index
    %c0_51 = arith.constant 0 : index
    %76 = vector.load %arg5[%c14, %c0_50, %c0_51] : memref<27x8x32xbf16, #tpu.memory_space<vmem>>, vector<1x8x32xbf16>
    %77 = vector.shape_cast %76 : vector<1x8x32xbf16> to vector<8x32xbf16>
    %cst_52 = arith.constant dense<0.000000e+00> : vector<8x8xf32>
    %78 = tpu.matmul %77, %75, %cst_52 {dimension_numbers = #tpu.dot_dimension_numbers<[1], [0], [0], [1], [0, 0, 1, 1], [], []>} : vector<8x32xbf16>, vector<32x8xbf16>, vector<8x8xf32> -> vector<8x8xf32>
    %79 = arith.addf %74, %78 : vector<8x8xf32>
    %80 = vector.extract_strided_slice %49 {offsets = [0, 8], sizes = [32, 8], strides = [1, 1]} : vector<32x20xbf16> to vector<32x8xbf16>
    %c15 = arith.constant 15 : index
    %c0_53 = arith.constant 0 : index
    %c0_54 = arith.constant 0 : index
    %81 = vector.load %arg5[%c15, %c0_53, %c0_54] : memref<27x8x32xbf16, #tpu.memory_space<vmem>>, vector<1x8x32xbf16>
    %82 = vector.shape_cast %81 : vector<1x8x32xbf16> to vector<8x32xbf16>
    %cst_55 = arith.constant dense<0.000000e+00> : vector<8x8xf32>
    %83 = tpu.matmul %82, %80, %cst_55 {dimension_numbers = #tpu.dot_dimension_numbers<[1], [0], [0], [1], [0, 0, 1, 1], [], []>} : vector<8x32xbf16>, vector<32x8xbf16>, vector<8x8xf32> -> vector<8x8xf32>
    %84 = arith.addf %79, %83 : vector<8x8xf32>
    %85 = vector.extract_strided_slice %49 {offsets = [0, 9], sizes = [32, 8], strides = [1, 1]} : vector<32x20xbf16> to vector<32x8xbf16>
    %c16 = arith.constant 16 : index
    %c0_56 = arith.constant 0 : index
    %c0_57 = arith.constant 0 : index
    %86 = vector.load %arg5[%c16, %c0_56, %c0_57] : memref<27x8x32xbf16, #tpu.memory_space<vmem>>, vector<1x8x32xbf16>
    %87 = vector.shape_cast %86 : vector<1x8x32xbf16> to vector<8x32xbf16>
    %cst_58 = arith.constant dense<0.000000e+00> : vector<8x8xf32>
    %88 = tpu.matmul %87, %85, %cst_58 {dimension_numbers = #tpu.dot_dimension_numbers<[1], [0], [0], [1], [0, 0, 1, 1], [], []>} : vector<8x32xbf16>, vector<32x8xbf16>, vector<8x8xf32> -> vector<8x8xf32>
    %89 = arith.addf %84, %88 : vector<8x8xf32>
    %90 = vector.extract_strided_slice %49 {offsets = [0, 10], sizes = [32, 8], strides = [1, 1]} : vector<32x20xbf16> to vector<32x8xbf16>
    %c17 = arith.constant 17 : index
    %c0_59 = arith.constant 0 : index
    %c0_60 = arith.constant 0 : index
    %91 = vector.load %arg5[%c17, %c0_59, %c0_60] : memref<27x8x32xbf16, #tpu.memory_space<vmem>>, vector<1x8x32xbf16>
    %92 = vector.shape_cast %91 : vector<1x8x32xbf16> to vector<8x32xbf16>
    %cst_61 = arith.constant dense<0.000000e+00> : vector<8x8xf32>
    %93 = tpu.matmul %92, %90, %cst_61 {dimension_numbers = #tpu.dot_dimension_numbers<[1], [0], [0], [1], [0, 0, 1, 1], [], []>} : vector<8x32xbf16>, vector<32x8xbf16>, vector<8x8xf32> -> vector<8x8xf32>
    %94 = arith.addf %89, %93 : vector<8x8xf32>
    %c0_62 = arith.constant 0 : index
    %c0_63 = arith.constant 0 : index
    %c0_64 = arith.constant 0 : index
    %c0_65 = arith.constant 0 : index
    %95 = vector.load %arg4[%c0_62, %c0_63, %c0_64, %c0_65] : memref<1x1x32x20xbf16, #tpu.memory_space<vmem>>, vector<1x1x32x20xbf16>
    %96 = vector.shape_cast %95 : vector<1x1x32x20xbf16> to vector<32x20xbf16>
    %97 = vector.extract_strided_slice %96 {offsets = [0, 0], sizes = [32, 8], strides = [1, 1]} : vector<32x20xbf16> to vector<32x8xbf16>
    %c18 = arith.constant 18 : index
    %c0_66 = arith.constant 0 : index
    %c0_67 = arith.constant 0 : index
    %98 = vector.load %arg5[%c18, %c0_66, %c0_67] : memref<27x8x32xbf16, #tpu.memory_space<vmem>>, vector<1x8x32xbf16>
    %99 = vector.shape_cast %98 : vector<1x8x32xbf16> to vector<8x32xbf16>
    %cst_68 = arith.constant dense<0.000000e+00> : vector<8x8xf32>
    %100 = tpu.matmul %99, %97, %cst_68 {dimension_numbers = #tpu.dot_dimension_numbers<[1], [0], [0], [1], [0, 0, 1, 1], [], []>} : vector<8x32xbf16>, vector<32x8xbf16>, vector<8x8xf32> -> vector<8x8xf32>
    %101 = arith.addf %94, %100 : vector<8x8xf32>
    %102 = vector.extract_strided_slice %96 {offsets = [0, 1], sizes = [32, 8], strides = [1, 1]} : vector<32x20xbf16> to vector<32x8xbf16>
    %c19 = arith.constant 19 : index
    %c0_69 = arith.constant 0 : index
    %c0_70 = arith.constant 0 : index
    %103 = vector.load %arg5[%c19, %c0_69, %c0_70] : memref<27x8x32xbf16, #tpu.memory_space<vmem>>, vector<1x8x32xbf16>
    %104 = vector.shape_cast %103 : vector<1x8x32xbf16> to vector<8x32xbf16>
    %cst_71 = arith.constant dense<0.000000e+00> : vector<8x8xf32>
    %105 = tpu.matmul %104, %102, %cst_71 {dimension_numbers = #tpu.dot_dimension_numbers<[1], [0], [0], [1], [0, 0, 1, 1], [], []>} : vector<8x32xbf16>, vector<32x8xbf16>, vector<8x8xf32> -> vector<8x8xf32>
    %106 = arith.addf %101, %105 : vector<8x8xf32>
    %107 = vector.extract_strided_slice %96 {offsets = [0, 2], sizes = [32, 8], strides = [1, 1]} : vector<32x20xbf16> to vector<32x8xbf16>
    %c20 = arith.constant 20 : index
    %c0_72 = arith.constant 0 : index
    %c0_73 = arith.constant 0 : index
    %108 = vector.load %arg5[%c20, %c0_72, %c0_73] : memref<27x8x32xbf16, #tpu.memory_space<vmem>>, vector<1x8x32xbf16>
    %109 = vector.shape_cast %108 : vector<1x8x32xbf16> to vector<8x32xbf16>
    %cst_74 = arith.constant dense<0.000000e+00> : vector<8x8xf32>
    %110 = tpu.matmul %109, %107, %cst_74 {dimension_numbers = #tpu.dot_dimension_numbers<[1], [0], [0], [1], [0, 0, 1, 1], [], []>} : vector<8x32xbf16>, vector<32x8xbf16>, vector<8x8xf32> -> vector<8x8xf32>
    %111 = arith.addf %106, %110 : vector<8x8xf32>
    %112 = vector.extract_strided_slice %96 {offsets = [0, 4], sizes = [32, 8], strides = [1, 1]} : vector<32x20xbf16> to vector<32x8xbf16>
    %c21 = arith.constant 21 : index
    %c0_75 = arith.constant 0 : index
    %c0_76 = arith.constant 0 : index
    %113 = vector.load %arg5[%c21, %c0_75, %c0_76] : memref<27x8x32xbf16, #tpu.memory_space<vmem>>, vector<1x8x32xbf16>
    %114 = vector.shape_cast %113 : vector<1x8x32xbf16> to vector<8x32xbf16>
    %cst_77 = arith.constant dense<0.000000e+00> : vector<8x8xf32>
    %115 = tpu.matmul %114, %112, %cst_77 {dimension_numbers = #tpu.dot_dimension_numbers<[1], [0], [0], [1], [0, 0, 1, 1], [], []>} : vector<8x32xbf16>, vector<32x8xbf16>, vector<8x8xf32> -> vector<8x8xf32>
    %116 = arith.addf %111, %115 : vector<8x8xf32>
    %117 = vector.extract_strided_slice %96 {offsets = [0, 5], sizes = [32, 8], strides = [1, 1]} : vector<32x20xbf16> to vector<32x8xbf16>
    %c22 = arith.constant 22 : index
    %c0_78 = arith.constant 0 : index
    %c0_79 = arith.constant 0 : index
    %118 = vector.load %arg5[%c22, %c0_78, %c0_79] : memref<27x8x32xbf16, #tpu.memory_space<vmem>>, vector<1x8x32xbf16>
    %119 = vector.shape_cast %118 : vector<1x8x32xbf16> to vector<8x32xbf16>
    %cst_80 = arith.constant dense<0.000000e+00> : vector<8x8xf32>
    %120 = tpu.matmul %119, %117, %cst_80 {dimension_numbers = #tpu.dot_dimension_numbers<[1], [0], [0], [1], [0, 0, 1, 1], [], []>} : vector<8x32xbf16>, vector<32x8xbf16>, vector<8x8xf32> -> vector<8x8xf32>
    %121 = arith.addf %116, %120 : vector<8x8xf32>
    %122 = vector.extract_strided_slice %96 {offsets = [0, 6], sizes = [32, 8], strides = [1, 1]} : vector<32x20xbf16> to vector<32x8xbf16>
    %c23 = arith.constant 23 : index
    %c0_81 = arith.constant 0 : index
    %c0_82 = arith.constant 0 : index
    %123 = vector.load %arg5[%c23, %c0_81, %c0_82] : memref<27x8x32xbf16, #tpu.memory_space<vmem>>, vector<1x8x32xbf16>
    %124 = vector.shape_cast %123 : vector<1x8x32xbf16> to vector<8x32xbf16>
    %cst_83 = arith.constant dense<0.000000e+00> : vector<8x8xf32>
    %125 = tpu.matmul %124, %122, %cst_83 {dimension_numbers = #tpu.dot_dimension_numbers<[1], [0], [0], [1], [0, 0, 1, 1], [], []>} : vector<8x32xbf16>, vector<32x8xbf16>, vector<8x8xf32> -> vector<8x8xf32>
    %126 = arith.addf %121, %125 : vector<8x8xf32>
    %127 = vector.extract_strided_slice %96 {offsets = [0, 8], sizes = [32, 8], strides = [1, 1]} : vector<32x20xbf16> to vector<32x8xbf16>
    %c24 = arith.constant 24 : index
    %c0_84 = arith.constant 0 : index
    %c0_85 = arith.constant 0 : index
    %128 = vector.load %arg5[%c24, %c0_84, %c0_85] : memref<27x8x32xbf16, #tpu.memory_space<vmem>>, vector<1x8x32xbf16>
    %129 = vector.shape_cast %128 : vector<1x8x32xbf16> to vector<8x32xbf16>
    %cst_86 = arith.constant dense<0.000000e+00> : vector<8x8xf32>
    %130 = tpu.matmul %129, %127, %cst_86 {dimension_numbers = #tpu.dot_dimension_numbers<[1], [0], [0], [1], [0, 0, 1, 1], [], []>} : vector<8x32xbf16>, vector<32x8xbf16>, vector<8x8xf32> -> vector<8x8xf32>
    %131 = arith.addf %126, %130 : vector<8x8xf32>
    %132 = vector.extract_strided_slice %96 {offsets = [0, 9], sizes = [32, 8], strides = [1, 1]} : vector<32x20xbf16> to vector<32x8xbf16>
    %c25 = arith.constant 25 : index
    %c0_87 = arith.constant 0 : index
    %c0_88 = arith.constant 0 : index
    %133 = vector.load %arg5[%c25, %c0_87, %c0_88] : memref<27x8x32xbf16, #tpu.memory_space<vmem>>, vector<1x8x32xbf16>
    %134 = vector.shape_cast %133 : vector<1x8x32xbf16> to vector<8x32xbf16>
    %cst_89 = arith.constant dense<0.000000e+00> : vector<8x8xf32>
    %135 = tpu.matmul %134, %132, %cst_89 {dimension_numbers = #tpu.dot_dimension_numbers<[1], [0], [0], [1], [0, 0, 1, 1], [], []>} : vector<8x32xbf16>, vector<32x8xbf16>, vector<8x8xf32> -> vector<8x8xf32>
    %136 = arith.addf %131, %135 : vector<8x8xf32>
    %137 = vector.extract_strided_slice %96 {offsets = [0, 10], sizes = [32, 8], strides = [1, 1]} : vector<32x20xbf16> to vector<32x8xbf16>
    %c26 = arith.constant 26 : index
    %c0_90 = arith.constant 0 : index
    %c0_91 = arith.constant 0 : index
    %138 = vector.load %arg5[%c26, %c0_90, %c0_91] : memref<27x8x32xbf16, #tpu.memory_space<vmem>>, vector<1x8x32xbf16>
    %139 = vector.shape_cast %138 : vector<1x8x32xbf16> to vector<8x32xbf16>
    %cst_92 = arith.constant dense<0.000000e+00> : vector<8x8xf32>
    %140 = tpu.matmul %139, %137, %cst_92 {dimension_numbers = #tpu.dot_dimension_numbers<[1], [0], [0], [1], [0, 0, 1, 1], [], []>} : vector<8x32xbf16>, vector<32x8xbf16>, vector<8x8xf32> -> vector<8x8xf32>
    %141 = arith.addf %136, %140 : vector<8x8xf32>
    %c0_93 = arith.constant 0 : index
    %c0_94 = arith.constant 0 : index
    %142 = vector.load %arg6[%c0_93, %c0_94] : memref<1x8xf32, #tpu.memory_space<vmem>>, vector<1x8xf32>
    %143 = vector.broadcast %142 : vector<1x8xf32> to vector<8x8xf32>
    %144 = arith.mulf %141, %143 : vector<8x8xf32>
    %cst_95 = arith.constant dense<0.000000e+00> : vector<8xf32>
    %145 = vector.multi_reduction <add>, %144, %cst_95 [1] : vector<8x8xf32> to vector<8xf32>
    %146 = vector.shape_cast %145 : vector<8xf32> to vector<8x1xf32>
    %c0_96 = arith.constant 0 : index
    %c0_97 = arith.constant 0 : index
    %c0_98 = arith.constant 0 : index
    %c0_99 = arith.constant 0 : index
    %147 = vector.load %arg8[%c0_96, %c0_97, %c0_98, %c0_99] : memref<1x1x8x1xf32, #tpu.memory_space<vmem>>, vector<1x1x8x1xf32>
    %148 = vector.shape_cast %147 : vector<1x1x8x1xf32> to vector<8x1xf32>
    %149 = vector.shape_cast %146 : vector<8x1xf32> to vector<1x1x8x1xf32>
    tpu.vector_store %arg8[%c0_96, %c0_97, %c0_98, %c0_99], %149 {strides = array<i32>} : memref<1x1x8x1xf32, #tpu.memory_space<vmem>>, vector<1x1x8x1xf32>,
    %150 = arith.mulf %144, %141 : vector<8x8xf32>
    %cst_100 = arith.constant dense<0.000000e+00> : vector<8xf32>
    %151 = vector.multi_reduction <add>, %150, %cst_100 [1] : vector<8x8xf32> to vector<8xf32>
    %152 = vector.shape_cast %151 : vector<8xf32> to vector<8x1xf32>
    %c0_101 = arith.constant 0 : index
    %c0_102 = arith.constant 0 : index
    %c0_103 = arith.constant 0 : index
    %c0_104 = arith.constant 0 : index
    %153 = vector.load %arg9[%c0_101, %c0_102, %c0_103, %c0_104] : memref<1x1x8x1xf32, #tpu.memory_space<vmem>>, vector<1x1x8x1xf32>
    %154 = vector.shape_cast %153 : vector<1x1x8x1xf32> to vector<8x1xf32>
    %155 = vector.shape_cast %152 : vector<8x1xf32> to vector<1x1x8x1xf32>
    tpu.vector_store %arg9[%c0_101, %c0_102, %c0_103, %c0_104], %155 {strides = array<i32>} : memref<1x1x8x1xf32, #tpu.memory_space<vmem>>, vector<1x1x8x1xf32>,
    %156 = arith.truncf %141 : vector<8x8xf32> to vector<8x8xbf16>
    %c0_105 = arith.constant 0 : index
    %c0_106 = arith.constant 0 : index
    %c0_107 = arith.constant 0 : index
    %c0_108 = arith.constant 0 : index
    %157 = vector.load %arg7[%c0_105, %c0_106, %c0_107, %c0_108] : memref<1x1x8x8xbf16, #tpu.memory_space<vmem>>, vector<1x1x8x8xbf16>
    %158 = vector.shape_cast %157 : vector<1x1x8x8xbf16> to vector<8x8xbf16>
    %159 = vector.shape_cast %156 : vector<8x8xbf16> to vector<1x1x8x8xbf16>
    tpu.vector_store %arg7[%c0_105, %c0_106, %c0_107, %c0_108], %159 {strides = array<i32>} : memref<1x1x8x8xbf16, #tpu.memory_space<vmem>>, vector<1x1x8x8xbf16>,
    return
  }
  func.func @transform_0(%arg0: i32, %arg1: i32) -> (i32, i32, i32, i32) {
    %c0_i32 = arith.constant 0 : i32
    %0 = arith.addi %arg1, %c0_i32 : i32
    %c0_i32_0 = arith.constant 0 : i32
    %c0_i32_1 = arith.constant 0 : i32
    %c0_i32_2 = arith.constant 0 : i32
    return %arg0, %0, %c0_i32_0, %c0_i32_1 : i32, i32, i32, i32
  }
  func.func @transform_1(%arg0: i32, %arg1: i32) -> (i32, i32, i32, i32) {
    %c1_i32 = arith.constant 1 : i32
    %0 = arith.addi %arg1, %c1_i32 : i32
    %c0_i32 = arith.constant 0 : i32
    %c0_i32_0 = arith.constant 0 : i32
    %c0_i32_1 = arith.constant 0 : i32
    return %arg0, %0, %c0_i32, %c0_i32_0 : i32, i32, i32, i32
  }
  func.func @transform_2(%arg0: i32, %arg1: i32) -> (i32, i32, i32, i32) {
    %c2_i32 = arith.constant 2 : i32
    %0 = arith.addi %arg1, %c2_i32 : i32
    %c0_i32 = arith.constant 0 : i32
    %c0_i32_0 = arith.constant 0 : i32
    %c0_i32_1 = arith.constant 0 : i32
    return %arg0, %0, %c0_i32, %c0_i32_0 : i32, i32, i32, i32
  }
  func.func @transform_3(%arg0: i32, %arg1: i32) -> (i32, i32, i32) {
    %c0_i32 = arith.constant 0 : i32
    %c0_i32_0 = arith.constant 0 : i32
    %c0_i32_1 = arith.constant 0 : i32
    %c0_i32_2 = arith.constant 0 : i32
    return %c0_i32, %c0_i32_0, %c0_i32_1 : i32, i32, i32
  }
  func.func @transform_4(%arg0: i32, %arg1: i32) -> (i32, i32) {
    %c0_i32 = arith.constant 0 : i32
    %c0_i32_0 = arith.constant 0 : i32
    %c0_i32_1 = arith.constant 0 : i32
    return %c0_i32, %c0_i32_0 : i32, i32
  }
  func.func @transform_5(%arg0: i32, %arg1: i32) -> (i32, i32, i32, i32) {
    %c0_i32 = arith.constant 0 : i32
    %c0_i32_0 = arith.constant 0 : i32
    %c0_i32_1 = arith.constant 0 : i32
    return %arg0, %arg1, %c0_i32, %c0_i32_0 : i32, i32, i32, i32
  }
  func.func @transform_6(%arg0: i32, %arg1: i32) -> (i32, i32, i32, i32) {
    %c0_i32 = arith.constant 0 : i32
    %c0_i32_0 = arith.constant 0 : i32
    %c0_i32_1 = arith.constant 0 : i32
    return %arg0, %arg1, %c0_i32, %c0_i32_0 : i32, i32, i32, i32
  }
  func.func @transform_7(%arg0: i32, %arg1: i32) -> (i32, i32, i32, i32) {
    %c0_i32 = arith.constant 0 : i32
    %c0_i32_0 = arith.constant 0 : i32
    %c0_i32_1 = arith.constant 0 : i32
    return %arg0, %arg1, %c0_i32, %c0_i32_0 : i32, i32, i32, i32
  }
}

module attributes {stable_mosaic.version = 11 : i64} {
  func.func @_deup_kernel(%arg0: i32, %arg1: i32, %arg2: memref<1x1x40x4xbf16, #tpu.memory_space<vmem>>, %arg3: memref<32x40xbf16, #tpu.memory_space<vmem>>, %arg4: memref<32x1xf32, #tpu.memory_space<vmem>>, %arg5: memref<1x1x32x4xbf16, #tpu.memory_space<vmem>>) attributes {dimension_semantics = [#tpu.dimension_semantics<parallel>, #tpu.dimension_semantics<parallel>], iteration_bounds = array<i64: 2, 2>, scalar_prefetch = 0 : i64, scratch_operands = 0 : i64, tpu.core_type = #tpu.core_type<tc>, window_params = [{transform_indices = @transform_0, window_bounds = array<i64: 1, 1, 40, 4>}, {pipeline_mode = #tpu.pipeline_mode<synchronous>, transform_indices = @transform_1, window_bounds = array<i64: 32, 40>}, {pipeline_mode = #tpu.pipeline_mode<synchronous>, transform_indices = @transform_2, window_bounds = array<i64: 32, 1>}, {transform_indices = @transform_3, window_bounds = array<i64: 1, 1, 32, 4>}]} {
    %c0 = arith.constant 0 : index
    %c0_0 = arith.constant 0 : index
    %0 = vector.load %arg3[%c0, %c0_0] : memref<32x40xbf16, #tpu.memory_space<vmem>>, vector<32x40xbf16>
    %c0_1 = arith.constant 0 : index
    %c0_2 = arith.constant 0 : index
    %c0_3 = arith.constant 0 : index
    %c0_4 = arith.constant 0 : index
    %1 = vector.load %arg2[%c0_1, %c0_2, %c0_3, %c0_4] : memref<1x1x40x4xbf16, #tpu.memory_space<vmem>>, vector<1x1x40x4xbf16>
    %2 = vector.shape_cast %1 : vector<1x1x40x4xbf16> to vector<40x4xbf16>
    %cst = arith.constant dense<0.000000e+00> : vector<32x4xf32>
    %3 = tpu.matmul %0, %2, %cst {dimension_numbers = #tpu.dot_dimension_numbers<[1], [0], [0], [1], [0, 0, 1, 1], [], []>} : vector<32x40xbf16>, vector<40x4xbf16>, vector<32x4xf32> -> vector<32x4xf32>
    %c0_5 = arith.constant 0 : index
    %c0_6 = arith.constant 0 : index
    %4 = vector.load %arg4[%c0_5, %c0_6] : memref<32x1xf32, #tpu.memory_space<vmem>>, vector<32x1xf32>
    %5 = vector.broadcast %4 : vector<32x1xf32> to vector<32x4xf32>
    %6 = arith.addf %3, %5 : vector<32x4xf32>
    %7 = arith.truncf %6 : vector<32x4xf32> to vector<32x4xbf16>
    %c0_7 = arith.constant 0 : index
    %c0_8 = arith.constant 0 : index
    %c0_9 = arith.constant 0 : index
    %c0_10 = arith.constant 0 : index
    %8 = vector.load %arg5[%c0_7, %c0_8, %c0_9, %c0_10] : memref<1x1x32x4xbf16, #tpu.memory_space<vmem>>, vector<1x1x32x4xbf16>
    %9 = vector.shape_cast %8 : vector<1x1x32x4xbf16> to vector<32x4xbf16>
    %10 = vector.shape_cast %7 : vector<32x4xbf16> to vector<1x1x32x4xbf16>
    tpu.vector_store %arg5[%c0_7, %c0_8, %c0_9, %c0_10], %10 {strides = array<i32>} : memref<1x1x32x4xbf16, #tpu.memory_space<vmem>>, vector<1x1x32x4xbf16>,
    return
  }
  func.func @transform_0(%arg0: i32, %arg1: i32) -> (i32, i32, i32, i32) {
    %c0_i32 = arith.constant 0 : i32
    %c0_i32_0 = arith.constant 0 : i32
    %c0_i32_1 = arith.constant 0 : i32
    return %arg0, %arg1, %c0_i32, %c0_i32_0 : i32, i32, i32, i32
  }
  func.func @transform_1(%arg0: i32, %arg1: i32) -> (i32, i32) {
    %c0_i32 = arith.constant 0 : i32
    %c0_i32_0 = arith.constant 0 : i32
    %c0_i32_1 = arith.constant 0 : i32
    return %c0_i32, %c0_i32_0 : i32, i32
  }
  func.func @transform_2(%arg0: i32, %arg1: i32) -> (i32, i32) {
    %c0_i32 = arith.constant 0 : i32
    %c0_i32_0 = arith.constant 0 : i32
    %c0_i32_1 = arith.constant 0 : i32
    return %c0_i32, %c0_i32_0 : i32, i32
  }
  func.func @transform_3(%arg0: i32, %arg1: i32) -> (i32, i32, i32, i32) {
    %c0_i32 = arith.constant 0 : i32
    %c0_i32_0 = arith.constant 0 : i32
    %c0_i32_1 = arith.constant 0 : i32
    return %arg0, %arg1, %c0_i32, %c0_i32_0 : i32, i32, i32, i32
  }
}

module attributes {stable_mosaic.version = 11 : i64} {
  func.func @_conv3x3_kernel(%arg0: i32, %arg1: i32, %arg2: memref<1x1x8x20xbf16, #tpu.memory_space<vmem>>, %arg3: memref<1x1x8x20xbf16, #tpu.memory_space<vmem>>, %arg4: memref<1x1x8x20xbf16, #tpu.memory_space<vmem>>, %arg5: memref<27x8x8xbf16, #tpu.memory_space<vmem>>, %arg6: memref<1x8xf32, #tpu.memory_space<vmem>>, %arg7: memref<1x1x8x8xbf16, #tpu.memory_space<vmem>>, %arg8: memref<1x1x8x1xf32, #tpu.memory_space<vmem>>, %arg9: memref<1x1x8x1xf32, #tpu.memory_space<vmem>>) attributes {dimension_semantics = [#tpu.dimension_semantics<parallel>, #tpu.dimension_semantics<parallel>], iteration_bounds = array<i64: 2, 2>, scalar_prefetch = 0 : i64, scratch_operands = 0 : i64, tpu.core_type = #tpu.core_type<tc>, window_params = [{transform_indices = @transform_0, window_bounds = array<i64: 1, 1, 8, 20>}, {transform_indices = @transform_1, window_bounds = array<i64: 1, 1, 8, 20>}, {transform_indices = @transform_2, window_bounds = array<i64: 1, 1, 8, 20>}, {pipeline_mode = #tpu.pipeline_mode<synchronous>, transform_indices = @transform_3, window_bounds = array<i64: 27, 8, 8>}, {pipeline_mode = #tpu.pipeline_mode<synchronous>, transform_indices = @transform_4, window_bounds = array<i64: 1, 8>}, {transform_indices = @transform_5, window_bounds = array<i64: 1, 1, 8, 8>}, {transform_indices = @transform_6, window_bounds = array<i64: 1, 1, 8, 1>}, {transform_indices = @transform_7, window_bounds = array<i64: 1, 1, 8, 1>}]} {
    %cst = arith.constant 0.000000e+00 : f32
    %0 = vector.broadcast %cst : f32 to vector<8x8xf32>
    %c0 = arith.constant 0 : index
    %c0_0 = arith.constant 0 : index
    %c0_1 = arith.constant 0 : index
    %c0_2 = arith.constant 0 : index
    %1 = vector.load %arg2[%c0, %c0_0, %c0_1, %c0_2] : memref<1x1x8x20xbf16, #tpu.memory_space<vmem>>, vector<1x1x8x20xbf16>
    %2 = vector.shape_cast %1 : vector<1x1x8x20xbf16> to vector<8x20xbf16>
    %3 = vector.extract_strided_slice %2 {offsets = [0, 0], sizes = [8, 8], strides = [1, 1]} : vector<8x20xbf16> to vector<8x8xbf16>
    %c0_3 = arith.constant 0 : index
    %c0_4 = arith.constant 0 : index
    %c0_5 = arith.constant 0 : index
    %4 = vector.load %arg5[%c0_3, %c0_4, %c0_5] : memref<27x8x8xbf16, #tpu.memory_space<vmem>>, vector<1x8x8xbf16>
    %5 = vector.shape_cast %4 : vector<1x8x8xbf16> to vector<8x8xbf16>
    %cst_6 = arith.constant dense<0.000000e+00> : vector<8x8xf32>
    %6 = tpu.matmul %5, %3, %cst_6 {dimension_numbers = #tpu.dot_dimension_numbers<[1], [0], [0], [1], [0, 0, 1, 1], [], []>} : vector<8x8xbf16>, vector<8x8xbf16>, vector<8x8xf32> -> vector<8x8xf32>
    %7 = arith.addf %0, %6 : vector<8x8xf32>
    %8 = vector.extract_strided_slice %2 {offsets = [0, 1], sizes = [8, 8], strides = [1, 1]} : vector<8x20xbf16> to vector<8x8xbf16>
    %c1 = arith.constant 1 : index
    %c0_7 = arith.constant 0 : index
    %c0_8 = arith.constant 0 : index
    %9 = vector.load %arg5[%c1, %c0_7, %c0_8] : memref<27x8x8xbf16, #tpu.memory_space<vmem>>, vector<1x8x8xbf16>
    %10 = vector.shape_cast %9 : vector<1x8x8xbf16> to vector<8x8xbf16>
    %cst_9 = arith.constant dense<0.000000e+00> : vector<8x8xf32>
    %11 = tpu.matmul %10, %8, %cst_9 {dimension_numbers = #tpu.dot_dimension_numbers<[1], [0], [0], [1], [0, 0, 1, 1], [], []>} : vector<8x8xbf16>, vector<8x8xbf16>, vector<8x8xf32> -> vector<8x8xf32>
    %12 = arith.addf %7, %11 : vector<8x8xf32>
    %13 = vector.extract_strided_slice %2 {offsets = [0, 2], sizes = [8, 8], strides = [1, 1]} : vector<8x20xbf16> to vector<8x8xbf16>
    %c2 = arith.constant 2 : index
    %c0_10 = arith.constant 0 : index
    %c0_11 = arith.constant 0 : index
    %14 = vector.load %arg5[%c2, %c0_10, %c0_11] : memref<27x8x8xbf16, #tpu.memory_space<vmem>>, vector<1x8x8xbf16>
    %15 = vector.shape_cast %14 : vector<1x8x8xbf16> to vector<8x8xbf16>
    %cst_12 = arith.constant dense<0.000000e+00> : vector<8x8xf32>
    %16 = tpu.matmul %15, %13, %cst_12 {dimension_numbers = #tpu.dot_dimension_numbers<[1], [0], [0], [1], [0, 0, 1, 1], [], []>} : vector<8x8xbf16>, vector<8x8xbf16>, vector<8x8xf32> -> vector<8x8xf32>
    %17 = arith.addf %12, %16 : vector<8x8xf32>
    %18 = vector.extract_strided_slice %2 {offsets = [0, 4], sizes = [8, 8], strides = [1, 1]} : vector<8x20xbf16> to vector<8x8xbf16>
    %c3 = arith.constant 3 : index
    %c0_13 = arith.constant 0 : index
    %c0_14 = arith.constant 0 : index
    %19 = vector.load %arg5[%c3, %c0_13, %c0_14] : memref<27x8x8xbf16, #tpu.memory_space<vmem>>, vector<1x8x8xbf16>
    %20 = vector.shape_cast %19 : vector<1x8x8xbf16> to vector<8x8xbf16>
    %cst_15 = arith.constant dense<0.000000e+00> : vector<8x8xf32>
    %21 = tpu.matmul %20, %18, %cst_15 {dimension_numbers = #tpu.dot_dimension_numbers<[1], [0], [0], [1], [0, 0, 1, 1], [], []>} : vector<8x8xbf16>, vector<8x8xbf16>, vector<8x8xf32> -> vector<8x8xf32>
    %22 = arith.addf %17, %21 : vector<8x8xf32>
    %23 = vector.extract_strided_slice %2 {offsets = [0, 5], sizes = [8, 8], strides = [1, 1]} : vector<8x20xbf16> to vector<8x8xbf16>
    %c4 = arith.constant 4 : index
    %c0_16 = arith.constant 0 : index
    %c0_17 = arith.constant 0 : index
    %24 = vector.load %arg5[%c4, %c0_16, %c0_17] : memref<27x8x8xbf16, #tpu.memory_space<vmem>>, vector<1x8x8xbf16>
    %25 = vector.shape_cast %24 : vector<1x8x8xbf16> to vector<8x8xbf16>
    %cst_18 = arith.constant dense<0.000000e+00> : vector<8x8xf32>
    %26 = tpu.matmul %25, %23, %cst_18 {dimension_numbers = #tpu.dot_dimension_numbers<[1], [0], [0], [1], [0, 0, 1, 1], [], []>} : vector<8x8xbf16>, vector<8x8xbf16>, vector<8x8xf32> -> vector<8x8xf32>
    %27 = arith.addf %22, %26 : vector<8x8xf32>
    %28 = vector.extract_strided_slice %2 {offsets = [0, 6], sizes = [8, 8], strides = [1, 1]} : vector<8x20xbf16> to vector<8x8xbf16>
    %c5 = arith.constant 5 : index
    %c0_19 = arith.constant 0 : index
    %c0_20 = arith.constant 0 : index
    %29 = vector.load %arg5[%c5, %c0_19, %c0_20] : memref<27x8x8xbf16, #tpu.memory_space<vmem>>, vector<1x8x8xbf16>
    %30 = vector.shape_cast %29 : vector<1x8x8xbf16> to vector<8x8xbf16>
    %cst_21 = arith.constant dense<0.000000e+00> : vector<8x8xf32>
    %31 = tpu.matmul %30, %28, %cst_21 {dimension_numbers = #tpu.dot_dimension_numbers<[1], [0], [0], [1], [0, 0, 1, 1], [], []>} : vector<8x8xbf16>, vector<8x8xbf16>, vector<8x8xf32> -> vector<8x8xf32>
    %32 = arith.addf %27, %31 : vector<8x8xf32>
    %33 = vector.extract_strided_slice %2 {offsets = [0, 8], sizes = [8, 8], strides = [1, 1]} : vector<8x20xbf16> to vector<8x8xbf16>
    %c6 = arith.constant 6 : index
    %c0_22 = arith.constant 0 : index
    %c0_23 = arith.constant 0 : index
    %34 = vector.load %arg5[%c6, %c0_22, %c0_23] : memref<27x8x8xbf16, #tpu.memory_space<vmem>>, vector<1x8x8xbf16>
    %35 = vector.shape_cast %34 : vector<1x8x8xbf16> to vector<8x8xbf16>
    %cst_24 = arith.constant dense<0.000000e+00> : vector<8x8xf32>
    %36 = tpu.matmul %35, %33, %cst_24 {dimension_numbers = #tpu.dot_dimension_numbers<[1], [0], [0], [1], [0, 0, 1, 1], [], []>} : vector<8x8xbf16>, vector<8x8xbf16>, vector<8x8xf32> -> vector<8x8xf32>
    %37 = arith.addf %32, %36 : vector<8x8xf32>
    %38 = vector.extract_strided_slice %2 {offsets = [0, 9], sizes = [8, 8], strides = [1, 1]} : vector<8x20xbf16> to vector<8x8xbf16>
    %c7 = arith.constant 7 : index
    %c0_25 = arith.constant 0 : index
    %c0_26 = arith.constant 0 : index
    %39 = vector.load %arg5[%c7, %c0_25, %c0_26] : memref<27x8x8xbf16, #tpu.memory_space<vmem>>, vector<1x8x8xbf16>
    %40 = vector.shape_cast %39 : vector<1x8x8xbf16> to vector<8x8xbf16>
    %cst_27 = arith.constant dense<0.000000e+00> : vector<8x8xf32>
    %41 = tpu.matmul %40, %38, %cst_27 {dimension_numbers = #tpu.dot_dimension_numbers<[1], [0], [0], [1], [0, 0, 1, 1], [], []>} : vector<8x8xbf16>, vector<8x8xbf16>, vector<8x8xf32> -> vector<8x8xf32>
    %42 = arith.addf %37, %41 : vector<8x8xf32>
    %43 = vector.extract_strided_slice %2 {offsets = [0, 10], sizes = [8, 8], strides = [1, 1]} : vector<8x20xbf16> to vector<8x8xbf16>
    %c8 = arith.constant 8 : index
    %c0_28 = arith.constant 0 : index
    %c0_29 = arith.constant 0 : index
    %44 = vector.load %arg5[%c8, %c0_28, %c0_29] : memref<27x8x8xbf16, #tpu.memory_space<vmem>>, vector<1x8x8xbf16>
    %45 = vector.shape_cast %44 : vector<1x8x8xbf16> to vector<8x8xbf16>
    %cst_30 = arith.constant dense<0.000000e+00> : vector<8x8xf32>
    %46 = tpu.matmul %45, %43, %cst_30 {dimension_numbers = #tpu.dot_dimension_numbers<[1], [0], [0], [1], [0, 0, 1, 1], [], []>} : vector<8x8xbf16>, vector<8x8xbf16>, vector<8x8xf32> -> vector<8x8xf32>
    %47 = arith.addf %42, %46 : vector<8x8xf32>
    %c0_31 = arith.constant 0 : index
    %c0_32 = arith.constant 0 : index
    %c0_33 = arith.constant 0 : index
    %c0_34 = arith.constant 0 : index
    %48 = vector.load %arg3[%c0_31, %c0_32, %c0_33, %c0_34] : memref<1x1x8x20xbf16, #tpu.memory_space<vmem>>, vector<1x1x8x20xbf16>
    %49 = vector.shape_cast %48 : vector<1x1x8x20xbf16> to vector<8x20xbf16>
    %50 = vector.extract_strided_slice %49 {offsets = [0, 0], sizes = [8, 8], strides = [1, 1]} : vector<8x20xbf16> to vector<8x8xbf16>
    %c9 = arith.constant 9 : index
    %c0_35 = arith.constant 0 : index
    %c0_36 = arith.constant 0 : index
    %51 = vector.load %arg5[%c9, %c0_35, %c0_36] : memref<27x8x8xbf16, #tpu.memory_space<vmem>>, vector<1x8x8xbf16>
    %52 = vector.shape_cast %51 : vector<1x8x8xbf16> to vector<8x8xbf16>
    %cst_37 = arith.constant dense<0.000000e+00> : vector<8x8xf32>
    %53 = tpu.matmul %52, %50, %cst_37 {dimension_numbers = #tpu.dot_dimension_numbers<[1], [0], [0], [1], [0, 0, 1, 1], [], []>} : vector<8x8xbf16>, vector<8x8xbf16>, vector<8x8xf32> -> vector<8x8xf32>
    %54 = arith.addf %47, %53 : vector<8x8xf32>
    %55 = vector.extract_strided_slice %49 {offsets = [0, 1], sizes = [8, 8], strides = [1, 1]} : vector<8x20xbf16> to vector<8x8xbf16>
    %c10 = arith.constant 10 : index
    %c0_38 = arith.constant 0 : index
    %c0_39 = arith.constant 0 : index
    %56 = vector.load %arg5[%c10, %c0_38, %c0_39] : memref<27x8x8xbf16, #tpu.memory_space<vmem>>, vector<1x8x8xbf16>
    %57 = vector.shape_cast %56 : vector<1x8x8xbf16> to vector<8x8xbf16>
    %cst_40 = arith.constant dense<0.000000e+00> : vector<8x8xf32>
    %58 = tpu.matmul %57, %55, %cst_40 {dimension_numbers = #tpu.dot_dimension_numbers<[1], [0], [0], [1], [0, 0, 1, 1], [], []>} : vector<8x8xbf16>, vector<8x8xbf16>, vector<8x8xf32> -> vector<8x8xf32>
    %59 = arith.addf %54, %58 : vector<8x8xf32>
    %60 = vector.extract_strided_slice %49 {offsets = [0, 2], sizes = [8, 8], strides = [1, 1]} : vector<8x20xbf16> to vector<8x8xbf16>
    %c11 = arith.constant 11 : index
    %c0_41 = arith.constant 0 : index
    %c0_42 = arith.constant 0 : index
    %61 = vector.load %arg5[%c11, %c0_41, %c0_42] : memref<27x8x8xbf16, #tpu.memory_space<vmem>>, vector<1x8x8xbf16>
    %62 = vector.shape_cast %61 : vector<1x8x8xbf16> to vector<8x8xbf16>
    %cst_43 = arith.constant dense<0.000000e+00> : vector<8x8xf32>
    %63 = tpu.matmul %62, %60, %cst_43 {dimension_numbers = #tpu.dot_dimension_numbers<[1], [0], [0], [1], [0, 0, 1, 1], [], []>} : vector<8x8xbf16>, vector<8x8xbf16>, vector<8x8xf32> -> vector<8x8xf32>
    %64 = arith.addf %59, %63 : vector<8x8xf32>
    %65 = vector.extract_strided_slice %49 {offsets = [0, 4], sizes = [8, 8], strides = [1, 1]} : vector<8x20xbf16> to vector<8x8xbf16>
    %c12 = arith.constant 12 : index
    %c0_44 = arith.constant 0 : index
    %c0_45 = arith.constant 0 : index
    %66 = vector.load %arg5[%c12, %c0_44, %c0_45] : memref<27x8x8xbf16, #tpu.memory_space<vmem>>, vector<1x8x8xbf16>
    %67 = vector.shape_cast %66 : vector<1x8x8xbf16> to vector<8x8xbf16>
    %cst_46 = arith.constant dense<0.000000e+00> : vector<8x8xf32>
    %68 = tpu.matmul %67, %65, %cst_46 {dimension_numbers = #tpu.dot_dimension_numbers<[1], [0], [0], [1], [0, 0, 1, 1], [], []>} : vector<8x8xbf16>, vector<8x8xbf16>, vector<8x8xf32> -> vector<8x8xf32>
    %69 = arith.addf %64, %68 : vector<8x8xf32>
    %70 = vector.extract_strided_slice %49 {offsets = [0, 5], sizes = [8, 8], strides = [1, 1]} : vector<8x20xbf16> to vector<8x8xbf16>
    %c13 = arith.constant 13 : index
    %c0_47 = arith.constant 0 : index
    %c0_48 = arith.constant 0 : index
    %71 = vector.load %arg5[%c13, %c0_47, %c0_48] : memref<27x8x8xbf16, #tpu.memory_space<vmem>>, vector<1x8x8xbf16>
    %72 = vector.shape_cast %71 : vector<1x8x8xbf16> to vector<8x8xbf16>
    %cst_49 = arith.constant dense<0.000000e+00> : vector<8x8xf32>
    %73 = tpu.matmul %72, %70, %cst_49 {dimension_numbers = #tpu.dot_dimension_numbers<[1], [0], [0], [1], [0, 0, 1, 1], [], []>} : vector<8x8xbf16>, vector<8x8xbf16>, vector<8x8xf32> -> vector<8x8xf32>
    %74 = arith.addf %69, %73 : vector<8x8xf32>
    %75 = vector.extract_strided_slice %49 {offsets = [0, 6], sizes = [8, 8], strides = [1, 1]} : vector<8x20xbf16> to vector<8x8xbf16>
    %c14 = arith.constant 14 : index
    %c0_50 = arith.constant 0 : index
    %c0_51 = arith.constant 0 : index
    %76 = vector.load %arg5[%c14, %c0_50, %c0_51] : memref<27x8x8xbf16, #tpu.memory_space<vmem>>, vector<1x8x8xbf16>
    %77 = vector.shape_cast %76 : vector<1x8x8xbf16> to vector<8x8xbf16>
    %cst_52 = arith.constant dense<0.000000e+00> : vector<8x8xf32>
    %78 = tpu.matmul %77, %75, %cst_52 {dimension_numbers = #tpu.dot_dimension_numbers<[1], [0], [0], [1], [0, 0, 1, 1], [], []>} : vector<8x8xbf16>, vector<8x8xbf16>, vector<8x8xf32> -> vector<8x8xf32>
    %79 = arith.addf %74, %78 : vector<8x8xf32>
    %80 = vector.extract_strided_slice %49 {offsets = [0, 8], sizes = [8, 8], strides = [1, 1]} : vector<8x20xbf16> to vector<8x8xbf16>
    %c15 = arith.constant 15 : index
    %c0_53 = arith.constant 0 : index
    %c0_54 = arith.constant 0 : index
    %81 = vector.load %arg5[%c15, %c0_53, %c0_54] : memref<27x8x8xbf16, #tpu.memory_space<vmem>>, vector<1x8x8xbf16>
    %82 = vector.shape_cast %81 : vector<1x8x8xbf16> to vector<8x8xbf16>
    %cst_55 = arith.constant dense<0.000000e+00> : vector<8x8xf32>
    %83 = tpu.matmul %82, %80, %cst_55 {dimension_numbers = #tpu.dot_dimension_numbers<[1], [0], [0], [1], [0, 0, 1, 1], [], []>} : vector<8x8xbf16>, vector<8x8xbf16>, vector<8x8xf32> -> vector<8x8xf32>
    %84 = arith.addf %79, %83 : vector<8x8xf32>
    %85 = vector.extract_strided_slice %49 {offsets = [0, 9], sizes = [8, 8], strides = [1, 1]} : vector<8x20xbf16> to vector<8x8xbf16>
    %c16 = arith.constant 16 : index
    %c0_56 = arith.constant 0 : index
    %c0_57 = arith.constant 0 : index
    %86 = vector.load %arg5[%c16, %c0_56, %c0_57] : memref<27x8x8xbf16, #tpu.memory_space<vmem>>, vector<1x8x8xbf16>
    %87 = vector.shape_cast %86 : vector<1x8x8xbf16> to vector<8x8xbf16>
    %cst_58 = arith.constant dense<0.000000e+00> : vector<8x8xf32>
    %88 = tpu.matmul %87, %85, %cst_58 {dimension_numbers = #tpu.dot_dimension_numbers<[1], [0], [0], [1], [0, 0, 1, 1], [], []>} : vector<8x8xbf16>, vector<8x8xbf16>, vector<8x8xf32> -> vector<8x8xf32>
    %89 = arith.addf %84, %88 : vector<8x8xf32>
    %90 = vector.extract_strided_slice %49 {offsets = [0, 10], sizes = [8, 8], strides = [1, 1]} : vector<8x20xbf16> to vector<8x8xbf16>
    %c17 = arith.constant 17 : index
    %c0_59 = arith.constant 0 : index
    %c0_60 = arith.constant 0 : index
    %91 = vector.load %arg5[%c17, %c0_59, %c0_60] : memref<27x8x8xbf16, #tpu.memory_space<vmem>>, vector<1x8x8xbf16>
    %92 = vector.shape_cast %91 : vector<1x8x8xbf16> to vector<8x8xbf16>
    %cst_61 = arith.constant dense<0.000000e+00> : vector<8x8xf32>
    %93 = tpu.matmul %92, %90, %cst_61 {dimension_numbers = #tpu.dot_dimension_numbers<[1], [0], [0], [1], [0, 0, 1, 1], [], []>} : vector<8x8xbf16>, vector<8x8xbf16>, vector<8x8xf32> -> vector<8x8xf32>
    %94 = arith.addf %89, %93 : vector<8x8xf32>
    %c0_62 = arith.constant 0 : index
    %c0_63 = arith.constant 0 : index
    %c0_64 = arith.constant 0 : index
    %c0_65 = arith.constant 0 : index
    %95 = vector.load %arg4[%c0_62, %c0_63, %c0_64, %c0_65] : memref<1x1x8x20xbf16, #tpu.memory_space<vmem>>, vector<1x1x8x20xbf16>
    %96 = vector.shape_cast %95 : vector<1x1x8x20xbf16> to vector<8x20xbf16>
    %97 = vector.extract_strided_slice %96 {offsets = [0, 0], sizes = [8, 8], strides = [1, 1]} : vector<8x20xbf16> to vector<8x8xbf16>
    %c18 = arith.constant 18 : index
    %c0_66 = arith.constant 0 : index
    %c0_67 = arith.constant 0 : index
    %98 = vector.load %arg5[%c18, %c0_66, %c0_67] : memref<27x8x8xbf16, #tpu.memory_space<vmem>>, vector<1x8x8xbf16>
    %99 = vector.shape_cast %98 : vector<1x8x8xbf16> to vector<8x8xbf16>
    %cst_68 = arith.constant dense<0.000000e+00> : vector<8x8xf32>
    %100 = tpu.matmul %99, %97, %cst_68 {dimension_numbers = #tpu.dot_dimension_numbers<[1], [0], [0], [1], [0, 0, 1, 1], [], []>} : vector<8x8xbf16>, vector<8x8xbf16>, vector<8x8xf32> -> vector<8x8xf32>
    %101 = arith.addf %94, %100 : vector<8x8xf32>
    %102 = vector.extract_strided_slice %96 {offsets = [0, 1], sizes = [8, 8], strides = [1, 1]} : vector<8x20xbf16> to vector<8x8xbf16>
    %c19 = arith.constant 19 : index
    %c0_69 = arith.constant 0 : index
    %c0_70 = arith.constant 0 : index
    %103 = vector.load %arg5[%c19, %c0_69, %c0_70] : memref<27x8x8xbf16, #tpu.memory_space<vmem>>, vector<1x8x8xbf16>
    %104 = vector.shape_cast %103 : vector<1x8x8xbf16> to vector<8x8xbf16>
    %cst_71 = arith.constant dense<0.000000e+00> : vector<8x8xf32>
    %105 = tpu.matmul %104, %102, %cst_71 {dimension_numbers = #tpu.dot_dimension_numbers<[1], [0], [0], [1], [0, 0, 1, 1], [], []>} : vector<8x8xbf16>, vector<8x8xbf16>, vector<8x8xf32> -> vector<8x8xf32>
    %106 = arith.addf %101, %105 : vector<8x8xf32>
    %107 = vector.extract_strided_slice %96 {offsets = [0, 2], sizes = [8, 8], strides = [1, 1]} : vector<8x20xbf16> to vector<8x8xbf16>
    %c20 = arith.constant 20 : index
    %c0_72 = arith.constant 0 : index
    %c0_73 = arith.constant 0 : index
    %108 = vector.load %arg5[%c20, %c0_72, %c0_73] : memref<27x8x8xbf16, #tpu.memory_space<vmem>>, vector<1x8x8xbf16>
    %109 = vector.shape_cast %108 : vector<1x8x8xbf16> to vector<8x8xbf16>
    %cst_74 = arith.constant dense<0.000000e+00> : vector<8x8xf32>
    %110 = tpu.matmul %109, %107, %cst_74 {dimension_numbers = #tpu.dot_dimension_numbers<[1], [0], [0], [1], [0, 0, 1, 1], [], []>} : vector<8x8xbf16>, vector<8x8xbf16>, vector<8x8xf32> -> vector<8x8xf32>
    %111 = arith.addf %106, %110 : vector<8x8xf32>
    %112 = vector.extract_strided_slice %96 {offsets = [0, 4], sizes = [8, 8], strides = [1, 1]} : vector<8x20xbf16> to vector<8x8xbf16>
    %c21 = arith.constant 21 : index
    %c0_75 = arith.constant 0 : index
    %c0_76 = arith.constant 0 : index
    %113 = vector.load %arg5[%c21, %c0_75, %c0_76] : memref<27x8x8xbf16, #tpu.memory_space<vmem>>, vector<1x8x8xbf16>
    %114 = vector.shape_cast %113 : vector<1x8x8xbf16> to vector<8x8xbf16>
    %cst_77 = arith.constant dense<0.000000e+00> : vector<8x8xf32>
    %115 = tpu.matmul %114, %112, %cst_77 {dimension_numbers = #tpu.dot_dimension_numbers<[1], [0], [0], [1], [0, 0, 1, 1], [], []>} : vector<8x8xbf16>, vector<8x8xbf16>, vector<8x8xf32> -> vector<8x8xf32>
    %116 = arith.addf %111, %115 : vector<8x8xf32>
    %117 = vector.extract_strided_slice %96 {offsets = [0, 5], sizes = [8, 8], strides = [1, 1]} : vector<8x20xbf16> to vector<8x8xbf16>
    %c22 = arith.constant 22 : index
    %c0_78 = arith.constant 0 : index
    %c0_79 = arith.constant 0 : index
    %118 = vector.load %arg5[%c22, %c0_78, %c0_79] : memref<27x8x8xbf16, #tpu.memory_space<vmem>>, vector<1x8x8xbf16>
    %119 = vector.shape_cast %118 : vector<1x8x8xbf16> to vector<8x8xbf16>
    %cst_80 = arith.constant dense<0.000000e+00> : vector<8x8xf32>
    %120 = tpu.matmul %119, %117, %cst_80 {dimension_numbers = #tpu.dot_dimension_numbers<[1], [0], [0], [1], [0, 0, 1, 1], [], []>} : vector<8x8xbf16>, vector<8x8xbf16>, vector<8x8xf32> -> vector<8x8xf32>
    %121 = arith.addf %116, %120 : vector<8x8xf32>
    %122 = vector.extract_strided_slice %96 {offsets = [0, 6], sizes = [8, 8], strides = [1, 1]} : vector<8x20xbf16> to vector<8x8xbf16>
    %c23 = arith.constant 23 : index
    %c0_81 = arith.constant 0 : index
    %c0_82 = arith.constant 0 : index
    %123 = vector.load %arg5[%c23, %c0_81, %c0_82] : memref<27x8x8xbf16, #tpu.memory_space<vmem>>, vector<1x8x8xbf16>
    %124 = vector.shape_cast %123 : vector<1x8x8xbf16> to vector<8x8xbf16>
    %cst_83 = arith.constant dense<0.000000e+00> : vector<8x8xf32>
    %125 = tpu.matmul %124, %122, %cst_83 {dimension_numbers = #tpu.dot_dimension_numbers<[1], [0], [0], [1], [0, 0, 1, 1], [], []>} : vector<8x8xbf16>, vector<8x8xbf16>, vector<8x8xf32> -> vector<8x8xf32>
    %126 = arith.addf %121, %125 : vector<8x8xf32>
    %127 = vector.extract_strided_slice %96 {offsets = [0, 8], sizes = [8, 8], strides = [1, 1]} : vector<8x20xbf16> to vector<8x8xbf16>
    %c24 = arith.constant 24 : index
    %c0_84 = arith.constant 0 : index
    %c0_85 = arith.constant 0 : index
    %128 = vector.load %arg5[%c24, %c0_84, %c0_85] : memref<27x8x8xbf16, #tpu.memory_space<vmem>>, vector<1x8x8xbf16>
    %129 = vector.shape_cast %128 : vector<1x8x8xbf16> to vector<8x8xbf16>
    %cst_86 = arith.constant dense<0.000000e+00> : vector<8x8xf32>
    %130 = tpu.matmul %129, %127, %cst_86 {dimension_numbers = #tpu.dot_dimension_numbers<[1], [0], [0], [1], [0, 0, 1, 1], [], []>} : vector<8x8xbf16>, vector<8x8xbf16>, vector<8x8xf32> -> vector<8x8xf32>
    %131 = arith.addf %126, %130 : vector<8x8xf32>
    %132 = vector.extract_strided_slice %96 {offsets = [0, 9], sizes = [8, 8], strides = [1, 1]} : vector<8x20xbf16> to vector<8x8xbf16>
    %c25 = arith.constant 25 : index
    %c0_87 = arith.constant 0 : index
    %c0_88 = arith.constant 0 : index
    %133 = vector.load %arg5[%c25, %c0_87, %c0_88] : memref<27x8x8xbf16, #tpu.memory_space<vmem>>, vector<1x8x8xbf16>
    %134 = vector.shape_cast %133 : vector<1x8x8xbf16> to vector<8x8xbf16>
    %cst_89 = arith.constant dense<0.000000e+00> : vector<8x8xf32>
    %135 = tpu.matmul %134, %132, %cst_89 {dimension_numbers = #tpu.dot_dimension_numbers<[1], [0], [0], [1], [0, 0, 1, 1], [], []>} : vector<8x8xbf16>, vector<8x8xbf16>, vector<8x8xf32> -> vector<8x8xf32>
    %136 = arith.addf %131, %135 : vector<8x8xf32>
    %137 = vector.extract_strided_slice %96 {offsets = [0, 10], sizes = [8, 8], strides = [1, 1]} : vector<8x20xbf16> to vector<8x8xbf16>
    %c26 = arith.constant 26 : index
    %c0_90 = arith.constant 0 : index
    %c0_91 = arith.constant 0 : index
    %138 = vector.load %arg5[%c26, %c0_90, %c0_91] : memref<27x8x8xbf16, #tpu.memory_space<vmem>>, vector<1x8x8xbf16>
    %139 = vector.shape_cast %138 : vector<1x8x8xbf16> to vector<8x8xbf16>
    %cst_92 = arith.constant dense<0.000000e+00> : vector<8x8xf32>
    %140 = tpu.matmul %139, %137, %cst_92 {dimension_numbers = #tpu.dot_dimension_numbers<[1], [0], [0], [1], [0, 0, 1, 1], [], []>} : vector<8x8xbf16>, vector<8x8xbf16>, vector<8x8xf32> -> vector<8x8xf32>
    %141 = arith.addf %136, %140 : vector<8x8xf32>
    %c0_93 = arith.constant 0 : index
    %c0_94 = arith.constant 0 : index
    %142 = vector.load %arg6[%c0_93, %c0_94] : memref<1x8xf32, #tpu.memory_space<vmem>>, vector<1x8xf32>
    %143 = vector.broadcast %142 : vector<1x8xf32> to vector<8x8xf32>
    %144 = arith.mulf %141, %143 : vector<8x8xf32>
    %cst_95 = arith.constant dense<0.000000e+00> : vector<8xf32>
    %145 = vector.multi_reduction <add>, %144, %cst_95 [1] : vector<8x8xf32> to vector<8xf32>
    %146 = vector.shape_cast %145 : vector<8xf32> to vector<8x1xf32>
    %c0_96 = arith.constant 0 : index
    %c0_97 = arith.constant 0 : index
    %c0_98 = arith.constant 0 : index
    %c0_99 = arith.constant 0 : index
    %147 = vector.load %arg8[%c0_96, %c0_97, %c0_98, %c0_99] : memref<1x1x8x1xf32, #tpu.memory_space<vmem>>, vector<1x1x8x1xf32>
    %148 = vector.shape_cast %147 : vector<1x1x8x1xf32> to vector<8x1xf32>
    %149 = vector.shape_cast %146 : vector<8x1xf32> to vector<1x1x8x1xf32>
    tpu.vector_store %arg8[%c0_96, %c0_97, %c0_98, %c0_99], %149 {strides = array<i32>} : memref<1x1x8x1xf32, #tpu.memory_space<vmem>>, vector<1x1x8x1xf32>,
    %150 = arith.mulf %144, %141 : vector<8x8xf32>
    %cst_100 = arith.constant dense<0.000000e+00> : vector<8xf32>
    %151 = vector.multi_reduction <add>, %150, %cst_100 [1] : vector<8x8xf32> to vector<8xf32>
    %152 = vector.shape_cast %151 : vector<8xf32> to vector<8x1xf32>
    %c0_101 = arith.constant 0 : index
    %c0_102 = arith.constant 0 : index
    %c0_103 = arith.constant 0 : index
    %c0_104 = arith.constant 0 : index
    %153 = vector.load %arg9[%c0_101, %c0_102, %c0_103, %c0_104] : memref<1x1x8x1xf32, #tpu.memory_space<vmem>>, vector<1x1x8x1xf32>
    %154 = vector.shape_cast %153 : vector<1x1x8x1xf32> to vector<8x1xf32>
    %155 = vector.shape_cast %152 : vector<8x1xf32> to vector<1x1x8x1xf32>
    tpu.vector_store %arg9[%c0_101, %c0_102, %c0_103, %c0_104], %155 {strides = array<i32>} : memref<1x1x8x1xf32, #tpu.memory_space<vmem>>, vector<1x1x8x1xf32>,
    %156 = arith.truncf %141 : vector<8x8xf32> to vector<8x8xbf16>
    %c0_105 = arith.constant 0 : index
    %c0_106 = arith.constant 0 : index
    %c0_107 = arith.constant 0 : index
    %c0_108 = arith.constant 0 : index
    %157 = vector.load %arg7[%c0_105, %c0_106, %c0_107, %c0_108] : memref<1x1x8x8xbf16, #tpu.memory_space<vmem>>, vector<1x1x8x8xbf16>
    %158 = vector.shape_cast %157 : vector<1x1x8x8xbf16> to vector<8x8xbf16>
    %159 = vector.shape_cast %156 : vector<8x8xbf16> to vector<1x1x8x8xbf16>
    tpu.vector_store %arg7[%c0_105, %c0_106, %c0_107, %c0_108], %159 {strides = array<i32>} : memref<1x1x8x8xbf16, #tpu.memory_space<vmem>>, vector<1x1x8x8xbf16>,
    return
  }
  func.func @transform_0(%arg0: i32, %arg1: i32) -> (i32, i32, i32, i32) {
    %c0_i32 = arith.constant 0 : i32
    %0 = arith.addi %arg1, %c0_i32 : i32
    %c0_i32_0 = arith.constant 0 : i32
    %c0_i32_1 = arith.constant 0 : i32
    %c0_i32_2 = arith.constant 0 : i32
    return %arg0, %0, %c0_i32_0, %c0_i32_1 : i32, i32, i32, i32
  }
  func.func @transform_1(%arg0: i32, %arg1: i32) -> (i32, i32, i32, i32) {
    %c1_i32 = arith.constant 1 : i32
    %0 = arith.addi %arg1, %c1_i32 : i32
    %c0_i32 = arith.constant 0 : i32
    %c0_i32_0 = arith.constant 0 : i32
    %c0_i32_1 = arith.constant 0 : i32
    return %arg0, %0, %c0_i32, %c0_i32_0 : i32, i32, i32, i32
  }
  func.func @transform_2(%arg0: i32, %arg1: i32) -> (i32, i32, i32, i32) {
    %c2_i32 = arith.constant 2 : i32
    %0 = arith.addi %arg1, %c2_i32 : i32
    %c0_i32 = arith.constant 0 : i32
    %c0_i32_0 = arith.constant 0 : i32
    %c0_i32_1 = arith.constant 0 : i32
    return %arg0, %0, %c0_i32, %c0_i32_0 : i32, i32, i32, i32
  }
  func.func @transform_3(%arg0: i32, %arg1: i32) -> (i32, i32, i32) {
    %c0_i32 = arith.constant 0 : i32
    %c0_i32_0 = arith.constant 0 : i32
    %c0_i32_1 = arith.constant 0 : i32
    %c0_i32_2 = arith.constant 0 : i32
    return %c0_i32, %c0_i32_0, %c0_i32_1 : i32, i32, i32
  }
  func.func @transform_4(%arg0: i32, %arg1: i32) -> (i32, i32) {
    %c0_i32 = arith.constant 0 : i32
    %c0_i32_0 = arith.constant 0 : i32
    %c0_i32_1 = arith.constant 0 : i32
    return %c0_i32, %c0_i32_0 : i32, i32
  }
  func.func @transform_5(%arg0: i32, %arg1: i32) -> (i32, i32, i32, i32) {
    %c0_i32 = arith.constant 0 : i32
    %c0_i32_0 = arith.constant 0 : i32
    %c0_i32_1 = arith.constant 0 : i32
    return %arg0, %arg1, %c0_i32, %c0_i32_0 : i32, i32, i32, i32
  }
  func.func @transform_6(%arg0: i32, %arg1: i32) -> (i32, i32, i32, i32) {
    %c0_i32 = arith.constant 0 : i32
    %c0_i32_0 = arith.constant 0 : i32
    %c0_i32_1 = arith.constant 0 : i32
    return %arg0, %arg1, %c0_i32, %c0_i32_0 : i32, i32, i32, i32
  }
  func.func @transform_7(%arg0: i32, %arg1: i32) -> (i32, i32, i32, i32) {
    %c0_i32 = arith.constant 0 : i32
    %c0_i32_0 = arith.constant 0 : i32
    %c0_i32_1 = arith.constant 0 : i32
    return %arg0, %arg1, %c0_i32, %c0_i32_0 : i32, i32, i32, i32
  }
}

module attributes {stable_mosaic.version = 11 : i64} {
  func.func @_conv3x3_kernel(%arg0: i32, %arg1: i32, %arg2: memref<1x1x4x42xbf16, #tpu.memory_space<vmem>>, %arg3: memref<1x1x4x42xbf16, #tpu.memory_space<vmem>>, %arg4: memref<1x1x4x42xbf16, #tpu.memory_space<vmem>>, %arg5: memref<27x4x4xbf16, #tpu.memory_space<vmem>>, %arg6: memref<1x24xf32, #tpu.memory_space<vmem>>, %arg7: memref<1x1x4x24xbf16, #tpu.memory_space<vmem>>, %arg8: memref<1x1x4x1xf32, #tpu.memory_space<vmem>>, %arg9: memref<1x1x4x1xf32, #tpu.memory_space<vmem>>) attributes {dimension_semantics = [#tpu.dimension_semantics<parallel>, #tpu.dimension_semantics<parallel>], iteration_bounds = array<i64: 2, 4>, scalar_prefetch = 0 : i64, scratch_operands = 0 : i64, tpu.core_type = #tpu.core_type<tc>, window_params = [{transform_indices = @transform_0, window_bounds = array<i64: 1, 1, 4, 42>}, {transform_indices = @transform_1, window_bounds = array<i64: 1, 1, 4, 42>}, {transform_indices = @transform_2, window_bounds = array<i64: 1, 1, 4, 42>}, {pipeline_mode = #tpu.pipeline_mode<synchronous>, transform_indices = @transform_3, window_bounds = array<i64: 27, 4, 4>}, {pipeline_mode = #tpu.pipeline_mode<synchronous>, transform_indices = @transform_4, window_bounds = array<i64: 1, 24>}, {transform_indices = @transform_5, window_bounds = array<i64: 1, 1, 4, 24>}, {transform_indices = @transform_6, window_bounds = array<i64: 1, 1, 4, 1>}, {transform_indices = @transform_7, window_bounds = array<i64: 1, 1, 4, 1>}]} {
    %cst = arith.constant 0.000000e+00 : f32
    %0 = vector.broadcast %cst : f32 to vector<4x24xf32>
    %c0 = arith.constant 0 : index
    %c0_0 = arith.constant 0 : index
    %c0_1 = arith.constant 0 : index
    %c0_2 = arith.constant 0 : index
    %1 = vector.load %arg2[%c0, %c0_0, %c0_1, %c0_2] : memref<1x1x4x42xbf16, #tpu.memory_space<vmem>>, vector<1x1x4x42xbf16>
    %2 = vector.shape_cast %1 : vector<1x1x4x42xbf16> to vector<4x42xbf16>
    %3 = vector.extract_strided_slice %2 {offsets = [0, 0], sizes = [4, 24], strides = [1, 1]} : vector<4x42xbf16> to vector<4x24xbf16>
    %c0_3 = arith.constant 0 : index
    %c0_4 = arith.constant 0 : index
    %c0_5 = arith.constant 0 : index
    %4 = vector.load %arg5[%c0_3, %c0_4, %c0_5] : memref<27x4x4xbf16, #tpu.memory_space<vmem>>, vector<1x4x4xbf16>
    %5 = vector.shape_cast %4 : vector<1x4x4xbf16> to vector<4x4xbf16>
    %6 = arith.extf %5 : vector<4x4xbf16> to vector<4x4xf32>
    %7 = arith.extf %3 : vector<4x24xbf16> to vector<4x24xf32>
    %8 = vector.extract_strided_slice %6 {offsets = [0, 0], sizes = [4, 1], strides = [1, 1]} : vector<4x4xf32> to vector<4x1xf32>
    %9 = vector.extract_strided_slice %7 {offsets = [0, 0], sizes = [1, 24], strides = [1, 1]} : vector<4x24xf32> to vector<1x24xf32>
    %10 = vector.broadcast %8 : vector<4x1xf32> to vector<4x24xf32>
    %11 = vector.broadcast %9 : vector<1x24xf32> to vector<4x24xf32>
    %12 = arith.mulf %10, %11 : vector<4x24xf32>
    %13 = arith.addf %0, %12 : vector<4x24xf32>
    %14 = vector.extract_strided_slice %6 {offsets = [0, 1], sizes = [4, 1], strides = [1, 1]} : vector<4x4xf32> to vector<4x1xf32>
    %15 = vector.extract_strided_slice %7 {offsets = [1, 0], sizes = [1, 24], strides = [1, 1]} : vector<4x24xf32> to vector<1x24xf32>
    %16 = vector.broadcast %14 : vector<4x1xf32> to vector<4x24xf32>
    %17 = vector.broadcast %15 : vector<1x24xf32> to vector<4x24xf32>
    %18 = arith.mulf %16, %17 : vector<4x24xf32>
    %19 = arith.addf %13, %18 : vector<4x24xf32>
    %20 = vector.extract_strided_slice %6 {offsets = [0, 2], sizes = [4, 1], strides = [1, 1]} : vector<4x4xf32> to vector<4x1xf32>
    %21 = vector.extract_strided_slice %7 {offsets = [2, 0], sizes = [1, 24], strides = [1, 1]} : vector<4x24xf32> to vector<1x24xf32>
    %22 = vector.broadcast %20 : vector<4x1xf32> to vector<4x24xf32>
    %23 = vector.broadcast %21 : vector<1x24xf32> to vector<4x24xf32>
    %24 = arith.mulf %22, %23 : vector<4x24xf32>
    %25 = arith.addf %19, %24 : vector<4x24xf32>
    %26 = vector.extract_strided_slice %6 {offsets = [0, 3], sizes = [4, 1], strides = [1, 1]} : vector<4x4xf32> to vector<4x1xf32>
    %27 = vector.extract_strided_slice %7 {offsets = [3, 0], sizes = [1, 24], strides = [1, 1]} : vector<4x24xf32> to vector<1x24xf32>
    %28 = vector.broadcast %26 : vector<4x1xf32> to vector<4x24xf32>
    %29 = vector.broadcast %27 : vector<1x24xf32> to vector<4x24xf32>
    %30 = arith.mulf %28, %29 : vector<4x24xf32>
    %31 = arith.addf %25, %30 : vector<4x24xf32>
    %32 = vector.extract_strided_slice %2 {offsets = [0, 1], sizes = [4, 24], strides = [1, 1]} : vector<4x42xbf16> to vector<4x24xbf16>
    %c1 = arith.constant 1 : index
    %c0_6 = arith.constant 0 : index
    %c0_7 = arith.constant 0 : index
    %33 = vector.load %arg5[%c1, %c0_6, %c0_7] : memref<27x4x4xbf16, #tpu.memory_space<vmem>>, vector<1x4x4xbf16>
    %34 = vector.shape_cast %33 : vector<1x4x4xbf16> to vector<4x4xbf16>
    %35 = arith.extf %34 : vector<4x4xbf16> to vector<4x4xf32>
    %36 = arith.extf %32 : vector<4x24xbf16> to vector<4x24xf32>
    %37 = vector.extract_strided_slice %35 {offsets = [0, 0], sizes = [4, 1], strides = [1, 1]} : vector<4x4xf32> to vector<4x1xf32>
    %38 = vector.extract_strided_slice %36 {offsets = [0, 0], sizes = [1, 24], strides = [1, 1]} : vector<4x24xf32> to vector<1x24xf32>
    %39 = vector.broadcast %37 : vector<4x1xf32> to vector<4x24xf32>
    %40 = vector.broadcast %38 : vector<1x24xf32> to vector<4x24xf32>
    %41 = arith.mulf %39, %40 : vector<4x24xf32>
    %42 = arith.addf %31, %41 : vector<4x24xf32>
    %43 = vector.extract_strided_slice %35 {offsets = [0, 1], sizes = [4, 1], strides = [1, 1]} : vector<4x4xf32> to vector<4x1xf32>
    %44 = vector.extract_strided_slice %36 {offsets = [1, 0], sizes = [1, 24], strides = [1, 1]} : vector<4x24xf32> to vector<1x24xf32>
    %45 = vector.broadcast %43 : vector<4x1xf32> to vector<4x24xf32>
    %46 = vector.broadcast %44 : vector<1x24xf32> to vector<4x24xf32>
    %47 = arith.mulf %45, %46 : vector<4x24xf32>
    %48 = arith.addf %42, %47 : vector<4x24xf32>
    %49 = vector.extract_strided_slice %35 {offsets = [0, 2], sizes = [4, 1], strides = [1, 1]} : vector<4x4xf32> to vector<4x1xf32>
    %50 = vector.extract_strided_slice %36 {offsets = [2, 0], sizes = [1, 24], strides = [1, 1]} : vector<4x24xf32> to vector<1x24xf32>
    %51 = vector.broadcast %49 : vector<4x1xf32> to vector<4x24xf32>
    %52 = vector.broadcast %50 : vector<1x24xf32> to vector<4x24xf32>
    %53 = arith.mulf %51, %52 : vector<4x24xf32>
    %54 = arith.addf %48, %53 : vector<4x24xf32>
    %55 = vector.extract_strided_slice %35 {offsets = [0, 3], sizes = [4, 1], strides = [1, 1]} : vector<4x4xf32> to vector<4x1xf32>
    %56 = vector.extract_strided_slice %36 {offsets = [3, 0], sizes = [1, 24], strides = [1, 1]} : vector<4x24xf32> to vector<1x24xf32>
    %57 = vector.broadcast %55 : vector<4x1xf32> to vector<4x24xf32>
    %58 = vector.broadcast %56 : vector<1x24xf32> to vector<4x24xf32>
    %59 = arith.mulf %57, %58 : vector<4x24xf32>
    %60 = arith.addf %54, %59 : vector<4x24xf32>
    %61 = vector.extract_strided_slice %2 {offsets = [0, 2], sizes = [4, 24], strides = [1, 1]} : vector<4x42xbf16> to vector<4x24xbf16>
    %c2 = arith.constant 2 : index
    %c0_8 = arith.constant 0 : index
    %c0_9 = arith.constant 0 : index
    %62 = vector.load %arg5[%c2, %c0_8, %c0_9] : memref<27x4x4xbf16, #tpu.memory_space<vmem>>, vector<1x4x4xbf16>
    %63 = vector.shape_cast %62 : vector<1x4x4xbf16> to vector<4x4xbf16>
    %64 = arith.extf %63 : vector<4x4xbf16> to vector<4x4xf32>
    %65 = arith.extf %61 : vector<4x24xbf16> to vector<4x24xf32>
    %66 = vector.extract_strided_slice %64 {offsets = [0, 0], sizes = [4, 1], strides = [1, 1]} : vector<4x4xf32> to vector<4x1xf32>
    %67 = vector.extract_strided_slice %65 {offsets = [0, 0], sizes = [1, 24], strides = [1, 1]} : vector<4x24xf32> to vector<1x24xf32>
    %68 = vector.broadcast %66 : vector<4x1xf32> to vector<4x24xf32>
    %69 = vector.broadcast %67 : vector<1x24xf32> to vector<4x24xf32>
    %70 = arith.mulf %68, %69 : vector<4x24xf32>
    %71 = arith.addf %60, %70 : vector<4x24xf32>
    %72 = vector.extract_strided_slice %64 {offsets = [0, 1], sizes = [4, 1], strides = [1, 1]} : vector<4x4xf32> to vector<4x1xf32>
    %73 = vector.extract_strided_slice %65 {offsets = [1, 0], sizes = [1, 24], strides = [1, 1]} : vector<4x24xf32> to vector<1x24xf32>
    %74 = vector.broadcast %72 : vector<4x1xf32> to vector<4x24xf32>
    %75 = vector.broadcast %73 : vector<1x24xf32> to vector<4x24xf32>
    %76 = arith.mulf %74, %75 : vector<4x24xf32>
    %77 = arith.addf %71, %76 : vector<4x24xf32>
    %78 = vector.extract_strided_slice %64 {offsets = [0, 2], sizes = [4, 1], strides = [1, 1]} : vector<4x4xf32> to vector<4x1xf32>
    %79 = vector.extract_strided_slice %65 {offsets = [2, 0], sizes = [1, 24], strides = [1, 1]} : vector<4x24xf32> to vector<1x24xf32>
    %80 = vector.broadcast %78 : vector<4x1xf32> to vector<4x24xf32>
    %81 = vector.broadcast %79 : vector<1x24xf32> to vector<4x24xf32>
    %82 = arith.mulf %80, %81 : vector<4x24xf32>
    %83 = arith.addf %77, %82 : vector<4x24xf32>
    %84 = vector.extract_strided_slice %64 {offsets = [0, 3], sizes = [4, 1], strides = [1, 1]} : vector<4x4xf32> to vector<4x1xf32>
    %85 = vector.extract_strided_slice %65 {offsets = [3, 0], sizes = [1, 24], strides = [1, 1]} : vector<4x24xf32> to vector<1x24xf32>
    %86 = vector.broadcast %84 : vector<4x1xf32> to vector<4x24xf32>
    %87 = vector.broadcast %85 : vector<1x24xf32> to vector<4x24xf32>
    %88 = arith.mulf %86, %87 : vector<4x24xf32>
    %89 = arith.addf %83, %88 : vector<4x24xf32>
    %90 = vector.extract_strided_slice %2 {offsets = [0, 6], sizes = [4, 24], strides = [1, 1]} : vector<4x42xbf16> to vector<4x24xbf16>
    %c3 = arith.constant 3 : index
    %c0_10 = arith.constant 0 : index
    %c0_11 = arith.constant 0 : index
    %91 = vector.load %arg5[%c3, %c0_10, %c0_11] : memref<27x4x4xbf16, #tpu.memory_space<vmem>>, vector<1x4x4xbf16>
    %92 = vector.shape_cast %91 : vector<1x4x4xbf16> to vector<4x4xbf16>
    %93 = arith.extf %92 : vector<4x4xbf16> to vector<4x4xf32>
    %94 = arith.extf %90 : vector<4x24xbf16> to vector<4x24xf32>
    %95 = vector.extract_strided_slice %93 {offsets = [0, 0], sizes = [4, 1], strides = [1, 1]} : vector<4x4xf32> to vector<4x1xf32>
    %96 = vector.extract_strided_slice %94 {offsets = [0, 0], sizes = [1, 24], strides = [1, 1]} : vector<4x24xf32> to vector<1x24xf32>
    %97 = vector.broadcast %95 : vector<4x1xf32> to vector<4x24xf32>
    %98 = vector.broadcast %96 : vector<1x24xf32> to vector<4x24xf32>
    %99 = arith.mulf %97, %98 : vector<4x24xf32>
    %100 = arith.addf %89, %99 : vector<4x24xf32>
    %101 = vector.extract_strided_slice %93 {offsets = [0, 1], sizes = [4, 1], strides = [1, 1]} : vector<4x4xf32> to vector<4x1xf32>
    %102 = vector.extract_strided_slice %94 {offsets = [1, 0], sizes = [1, 24], strides = [1, 1]} : vector<4x24xf32> to vector<1x24xf32>
    %103 = vector.broadcast %101 : vector<4x1xf32> to vector<4x24xf32>
    %104 = vector.broadcast %102 : vector<1x24xf32> to vector<4x24xf32>
    %105 = arith.mulf %103, %104 : vector<4x24xf32>
    %106 = arith.addf %100, %105 : vector<4x24xf32>
    %107 = vector.extract_strided_slice %93 {offsets = [0, 2], sizes = [4, 1], strides = [1, 1]} : vector<4x4xf32> to vector<4x1xf32>
    %108 = vector.extract_strided_slice %94 {offsets = [2, 0], sizes = [1, 24], strides = [1, 1]} : vector<4x24xf32> to vector<1x24xf32>
    %109 = vector.broadcast %107 : vector<4x1xf32> to vector<4x24xf32>
    %110 = vector.broadcast %108 : vector<1x24xf32> to vector<4x24xf32>
    %111 = arith.mulf %109, %110 : vector<4x24xf32>
    %112 = arith.addf %106, %111 : vector<4x24xf32>
    %113 = vector.extract_strided_slice %93 {offsets = [0, 3], sizes = [4, 1], strides = [1, 1]} : vector<4x4xf32> to vector<4x1xf32>
    %114 = vector.extract_strided_slice %94 {offsets = [3, 0], sizes = [1, 24], strides = [1, 1]} : vector<4x24xf32> to vector<1x24xf32>
    %115 = vector.broadcast %113 : vector<4x1xf32> to vector<4x24xf32>
    %116 = vector.broadcast %114 : vector<1x24xf32> to vector<4x24xf32>
    %117 = arith.mulf %115, %116 : vector<4x24xf32>
    %118 = arith.addf %112, %117 : vector<4x24xf32>
    %119 = vector.extract_strided_slice %2 {offsets = [0, 7], sizes = [4, 24], strides = [1, 1]} : vector<4x42xbf16> to vector<4x24xbf16>
    %c4 = arith.constant 4 : index
    %c0_12 = arith.constant 0 : index
    %c0_13 = arith.constant 0 : index
    %120 = vector.load %arg5[%c4, %c0_12, %c0_13] : memref<27x4x4xbf16, #tpu.memory_space<vmem>>, vector<1x4x4xbf16>
    %121 = vector.shape_cast %120 : vector<1x4x4xbf16> to vector<4x4xbf16>
    %122 = arith.extf %121 : vector<4x4xbf16> to vector<4x4xf32>
    %123 = arith.extf %119 : vector<4x24xbf16> to vector<4x24xf32>
    %124 = vector.extract_strided_slice %122 {offsets = [0, 0], sizes = [4, 1], strides = [1, 1]} : vector<4x4xf32> to vector<4x1xf32>
    %125 = vector.extract_strided_slice %123 {offsets = [0, 0], sizes = [1, 24], strides = [1, 1]} : vector<4x24xf32> to vector<1x24xf32>
    %126 = vector.broadcast %124 : vector<4x1xf32> to vector<4x24xf32>
    %127 = vector.broadcast %125 : vector<1x24xf32> to vector<4x24xf32>
    %128 = arith.mulf %126, %127 : vector<4x24xf32>
    %129 = arith.addf %118, %128 : vector<4x24xf32>
    %130 = vector.extract_strided_slice %122 {offsets = [0, 1], sizes = [4, 1], strides = [1, 1]} : vector<4x4xf32> to vector<4x1xf32>
    %131 = vector.extract_strided_slice %123 {offsets = [1, 0], sizes = [1, 24], strides = [1, 1]} : vector<4x24xf32> to vector<1x24xf32>
    %132 = vector.broadcast %130 : vector<4x1xf32> to vector<4x24xf32>
    %133 = vector.broadcast %131 : vector<1x24xf32> to vector<4x24xf32>
    %134 = arith.mulf %132, %133 : vector<4x24xf32>
    %135 = arith.addf %129, %134 : vector<4x24xf32>
    %136 = vector.extract_strided_slice %122 {offsets = [0, 2], sizes = [4, 1], strides = [1, 1]} : vector<4x4xf32> to vector<4x1xf32>
    %137 = vector.extract_strided_slice %123 {offsets = [2, 0], sizes = [1, 24], strides = [1, 1]} : vector<4x24xf32> to vector<1x24xf32>
    %138 = vector.broadcast %136 : vector<4x1xf32> to vector<4x24xf32>
    %139 = vector.broadcast %137 : vector<1x24xf32> to vector<4x24xf32>
    %140 = arith.mulf %138, %139 : vector<4x24xf32>
    %141 = arith.addf %135, %140 : vector<4x24xf32>
    %142 = vector.extract_strided_slice %122 {offsets = [0, 3], sizes = [4, 1], strides = [1, 1]} : vector<4x4xf32> to vector<4x1xf32>
    %143 = vector.extract_strided_slice %123 {offsets = [3, 0], sizes = [1, 24], strides = [1, 1]} : vector<4x24xf32> to vector<1x24xf32>
    %144 = vector.broadcast %142 : vector<4x1xf32> to vector<4x24xf32>
    %145 = vector.broadcast %143 : vector<1x24xf32> to vector<4x24xf32>
    %146 = arith.mulf %144, %145 : vector<4x24xf32>
    %147 = arith.addf %141, %146 : vector<4x24xf32>
    %148 = vector.extract_strided_slice %2 {offsets = [0, 8], sizes = [4, 24], strides = [1, 1]} : vector<4x42xbf16> to vector<4x24xbf16>
    %c5 = arith.constant 5 : index
    %c0_14 = arith.constant 0 : index
    %c0_15 = arith.constant 0 : index
    %149 = vector.load %arg5[%c5, %c0_14, %c0_15] : memref<27x4x4xbf16, #tpu.memory_space<vmem>>, vector<1x4x4xbf16>
    %150 = vector.shape_cast %149 : vector<1x4x4xbf16> to vector<4x4xbf16>
    %151 = arith.extf %150 : vector<4x4xbf16> to vector<4x4xf32>
    %152 = arith.extf %148 : vector<4x24xbf16> to vector<4x24xf32>
    %153 = vector.extract_strided_slice %151 {offsets = [0, 0], sizes = [4, 1], strides = [1, 1]} : vector<4x4xf32> to vector<4x1xf32>
    %154 = vector.extract_strided_slice %152 {offsets = [0, 0], sizes = [1, 24], strides = [1, 1]} : vector<4x24xf32> to vector<1x24xf32>
    %155 = vector.broadcast %153 : vector<4x1xf32> to vector<4x24xf32>
    %156 = vector.broadcast %154 : vector<1x24xf32> to vector<4x24xf32>
    %157 = arith.mulf %155, %156 : vector<4x24xf32>
    %158 = arith.addf %147, %157 : vector<4x24xf32>
    %159 = vector.extract_strided_slice %151 {offsets = [0, 1], sizes = [4, 1], strides = [1, 1]} : vector<4x4xf32> to vector<4x1xf32>
    %160 = vector.extract_strided_slice %152 {offsets = [1, 0], sizes = [1, 24], strides = [1, 1]} : vector<4x24xf32> to vector<1x24xf32>
    %161 = vector.broadcast %159 : vector<4x1xf32> to vector<4x24xf32>
    %162 = vector.broadcast %160 : vector<1x24xf32> to vector<4x24xf32>
    %163 = arith.mulf %161, %162 : vector<4x24xf32>
    %164 = arith.addf %158, %163 : vector<4x24xf32>
    %165 = vector.extract_strided_slice %151 {offsets = [0, 2], sizes = [4, 1], strides = [1, 1]} : vector<4x4xf32> to vector<4x1xf32>
    %166 = vector.extract_strided_slice %152 {offsets = [2, 0], sizes = [1, 24], strides = [1, 1]} : vector<4x24xf32> to vector<1x24xf32>
    %167 = vector.broadcast %165 : vector<4x1xf32> to vector<4x24xf32>
    %168 = vector.broadcast %166 : vector<1x24xf32> to vector<4x24xf32>
    %169 = arith.mulf %167, %168 : vector<4x24xf32>
    %170 = arith.addf %164, %169 : vector<4x24xf32>
    %171 = vector.extract_strided_slice %151 {offsets = [0, 3], sizes = [4, 1], strides = [1, 1]} : vector<4x4xf32> to vector<4x1xf32>
    %172 = vector.extract_strided_slice %152 {offsets = [3, 0], sizes = [1, 24], strides = [1, 1]} : vector<4x24xf32> to vector<1x24xf32>
    %173 = vector.broadcast %171 : vector<4x1xf32> to vector<4x24xf32>
    %174 = vector.broadcast %172 : vector<1x24xf32> to vector<4x24xf32>
    %175 = arith.mulf %173, %174 : vector<4x24xf32>
    %176 = arith.addf %170, %175 : vector<4x24xf32>
    %177 = vector.extract_strided_slice %2 {offsets = [0, 12], sizes = [4, 24], strides = [1, 1]} : vector<4x42xbf16> to vector<4x24xbf16>
    %c6 = arith.constant 6 : index
    %c0_16 = arith.constant 0 : index
    %c0_17 = arith.constant 0 : index
    %178 = vector.load %arg5[%c6, %c0_16, %c0_17] : memref<27x4x4xbf16, #tpu.memory_space<vmem>>, vector<1x4x4xbf16>
    %179 = vector.shape_cast %178 : vector<1x4x4xbf16> to vector<4x4xbf16>
    %180 = arith.extf %179 : vector<4x4xbf16> to vector<4x4xf32>
    %181 = arith.extf %177 : vector<4x24xbf16> to vector<4x24xf32>
    %182 = vector.extract_strided_slice %180 {offsets = [0, 0], sizes = [4, 1], strides = [1, 1]} : vector<4x4xf32> to vector<4x1xf32>
    %183 = vector.extract_strided_slice %181 {offsets = [0, 0], sizes = [1, 24], strides = [1, 1]} : vector<4x24xf32> to vector<1x24xf32>
    %184 = vector.broadcast %182 : vector<4x1xf32> to vector<4x24xf32>
    %185 = vector.broadcast %183 : vector<1x24xf32> to vector<4x24xf32>
    %186 = arith.mulf %184, %185 : vector<4x24xf32>
    %187 = arith.addf %176, %186 : vector<4x24xf32>
    %188 = vector.extract_strided_slice %180 {offsets = [0, 1], sizes = [4, 1], strides = [1, 1]} : vector<4x4xf32> to vector<4x1xf32>
    %189 = vector.extract_strided_slice %181 {offsets = [1, 0], sizes = [1, 24], strides = [1, 1]} : vector<4x24xf32> to vector<1x24xf32>
    %190 = vector.broadcast %188 : vector<4x1xf32> to vector<4x24xf32>
    %191 = vector.broadcast %189 : vector<1x24xf32> to vector<4x24xf32>
    %192 = arith.mulf %190, %191 : vector<4x24xf32>
    %193 = arith.addf %187, %192 : vector<4x24xf32>
    %194 = vector.extract_strided_slice %180 {offsets = [0, 2], sizes = [4, 1], strides = [1, 1]} : vector<4x4xf32> to vector<4x1xf32>
    %195 = vector.extract_strided_slice %181 {offsets = [2, 0], sizes = [1, 24], strides = [1, 1]} : vector<4x24xf32> to vector<1x24xf32>
    %196 = vector.broadcast %194 : vector<4x1xf32> to vector<4x24xf32>
    %197 = vector.broadcast %195 : vector<1x24xf32> to vector<4x24xf32>
    %198 = arith.mulf %196, %197 : vector<4x24xf32>
    %199 = arith.addf %193, %198 : vector<4x24xf32>
    %200 = vector.extract_strided_slice %180 {offsets = [0, 3], sizes = [4, 1], strides = [1, 1]} : vector<4x4xf32> to vector<4x1xf32>
    %201 = vector.extract_strided_slice %181 {offsets = [3, 0], sizes = [1, 24], strides = [1, 1]} : vector<4x24xf32> to vector<1x24xf32>
    %202 = vector.broadcast %200 : vector<4x1xf32> to vector<4x24xf32>
    %203 = vector.broadcast %201 : vector<1x24xf32> to vector<4x24xf32>
    %204 = arith.mulf %202, %203 : vector<4x24xf32>
    %205 = arith.addf %199, %204 : vector<4x24xf32>
    %206 = vector.extract_strided_slice %2 {offsets = [0, 13], sizes = [4, 24], strides = [1, 1]} : vector<4x42xbf16> to vector<4x24xbf16>
    %c7 = arith.constant 7 : index
    %c0_18 = arith.constant 0 : index
    %c0_19 = arith.constant 0 : index
    %207 = vector.load %arg5[%c7, %c0_18, %c0_19] : memref<27x4x4xbf16, #tpu.memory_space<vmem>>, vector<1x4x4xbf16>
    %208 = vector.shape_cast %207 : vector<1x4x4xbf16> to vector<4x4xbf16>
    %209 = arith.extf %208 : vector<4x4xbf16> to vector<4x4xf32>
    %210 = arith.extf %206 : vector<4x24xbf16> to vector<4x24xf32>
    %211 = vector.extract_strided_slice %209 {offsets = [0, 0], sizes = [4, 1], strides = [1, 1]} : vector<4x4xf32> to vector<4x1xf32>
    %212 = vector.extract_strided_slice %210 {offsets = [0, 0], sizes = [1, 24], strides = [1, 1]} : vector<4x24xf32> to vector<1x24xf32>
    %213 = vector.broadcast %211 : vector<4x1xf32> to vector<4x24xf32>
    %214 = vector.broadcast %212 : vector<1x24xf32> to vector<4x24xf32>
    %215 = arith.mulf %213, %214 : vector<4x24xf32>
    %216 = arith.addf %205, %215 : vector<4x24xf32>
    %217 = vector.extract_strided_slice %209 {offsets = [0, 1], sizes = [4, 1], strides = [1, 1]} : vector<4x4xf32> to vector<4x1xf32>
    %218 = vector.extract_strided_slice %210 {offsets = [1, 0], sizes = [1, 24], strides = [1, 1]} : vector<4x24xf32> to vector<1x24xf32>
    %219 = vector.broadcast %217 : vector<4x1xf32> to vector<4x24xf32>
    %220 = vector.broadcast %218 : vector<1x24xf32> to vector<4x24xf32>
    %221 = arith.mulf %219, %220 : vector<4x24xf32>
    %222 = arith.addf %216, %221 : vector<4x24xf32>
    %223 = vector.extract_strided_slice %209 {offsets = [0, 2], sizes = [4, 1], strides = [1, 1]} : vector<4x4xf32> to vector<4x1xf32>
    %224 = vector.extract_strided_slice %210 {offsets = [2, 0], sizes = [1, 24], strides = [1, 1]} : vector<4x24xf32> to vector<1x24xf32>
    %225 = vector.broadcast %223 : vector<4x1xf32> to vector<4x24xf32>
    %226 = vector.broadcast %224 : vector<1x24xf32> to vector<4x24xf32>
    %227 = arith.mulf %225, %226 : vector<4x24xf32>
    %228 = arith.addf %222, %227 : vector<4x24xf32>
    %229 = vector.extract_strided_slice %209 {offsets = [0, 3], sizes = [4, 1], strides = [1, 1]} : vector<4x4xf32> to vector<4x1xf32>
    %230 = vector.extract_strided_slice %210 {offsets = [3, 0], sizes = [1, 24], strides = [1, 1]} : vector<4x24xf32> to vector<1x24xf32>
    %231 = vector.broadcast %229 : vector<4x1xf32> to vector<4x24xf32>
    %232 = vector.broadcast %230 : vector<1x24xf32> to vector<4x24xf32>
    %233 = arith.mulf %231, %232 : vector<4x24xf32>
    %234 = arith.addf %228, %233 : vector<4x24xf32>
    %235 = vector.extract_strided_slice %2 {offsets = [0, 14], sizes = [4, 24], strides = [1, 1]} : vector<4x42xbf16> to vector<4x24xbf16>
    %c8 = arith.constant 8 : index
    %c0_20 = arith.constant 0 : index
    %c0_21 = arith.constant 0 : index
    %236 = vector.load %arg5[%c8, %c0_20, %c0_21] : memref<27x4x4xbf16, #tpu.memory_space<vmem>>, vector<1x4x4xbf16>
    %237 = vector.shape_cast %236 : vector<1x4x4xbf16> to vector<4x4xbf16>
    %238 = arith.extf %237 : vector<4x4xbf16> to vector<4x4xf32>
    %239 = arith.extf %235 : vector<4x24xbf16> to vector<4x24xf32>
    %240 = vector.extract_strided_slice %238 {offsets = [0, 0], sizes = [4, 1], strides = [1, 1]} : vector<4x4xf32> to vector<4x1xf32>
    %241 = vector.extract_strided_slice %239 {offsets = [0, 0], sizes = [1, 24], strides = [1, 1]} : vector<4x24xf32> to vector<1x24xf32>
    %242 = vector.broadcast %240 : vector<4x1xf32> to vector<4x24xf32>
    %243 = vector.broadcast %241 : vector<1x24xf32> to vector<4x24xf32>
    %244 = arith.mulf %242, %243 : vector<4x24xf32>
    %245 = arith.addf %234, %244 : vector<4x24xf32>
    %246 = vector.extract_strided_slice %238 {offsets = [0, 1], sizes = [4, 1], strides = [1, 1]} : vector<4x4xf32> to vector<4x1xf32>
    %247 = vector.extract_strided_slice %239 {offsets = [1, 0], sizes = [1, 24], strides = [1, 1]} : vector<4x24xf32> to vector<1x24xf32>
    %248 = vector.broadcast %246 : vector<4x1xf32> to vector<4x24xf32>
    %249 = vector.broadcast %247 : vector<1x24xf32> to vector<4x24xf32>
    %250 = arith.mulf %248, %249 : vector<4x24xf32>
    %251 = arith.addf %245, %250 : vector<4x24xf32>
    %252 = vector.extract_strided_slice %238 {offsets = [0, 2], sizes = [4, 1], strides = [1, 1]} : vector<4x4xf32> to vector<4x1xf32>
    %253 = vector.extract_strided_slice %239 {offsets = [2, 0], sizes = [1, 24], strides = [1, 1]} : vector<4x24xf32> to vector<1x24xf32>
    %254 = vector.broadcast %252 : vector<4x1xf32> to vector<4x24xf32>
    %255 = vector.broadcast %253 : vector<1x24xf32> to vector<4x24xf32>
    %256 = arith.mulf %254, %255 : vector<4x24xf32>
    %257 = arith.addf %251, %256 : vector<4x24xf32>
    %258 = vector.extract_strided_slice %238 {offsets = [0, 3], sizes = [4, 1], strides = [1, 1]} : vector<4x4xf32> to vector<4x1xf32>
    %259 = vector.extract_strided_slice %239 {offsets = [3, 0], sizes = [1, 24], strides = [1, 1]} : vector<4x24xf32> to vector<1x24xf32>
    %260 = vector.broadcast %258 : vector<4x1xf32> to vector<4x24xf32>
    %261 = vector.broadcast %259 : vector<1x24xf32> to vector<4x24xf32>
    %262 = arith.mulf %260, %261 : vector<4x24xf32>
    %263 = arith.addf %257, %262 : vector<4x24xf32>
    %c0_22 = arith.constant 0 : index
    %c0_23 = arith.constant 0 : index
    %c0_24 = arith.constant 0 : index
    %c0_25 = arith.constant 0 : index
    %264 = vector.load %arg3[%c0_22, %c0_23, %c0_24, %c0_25] : memref<1x1x4x42xbf16, #tpu.memory_space<vmem>>, vector<1x1x4x42xbf16>
    %265 = vector.shape_cast %264 : vector<1x1x4x42xbf16> to vector<4x42xbf16>
    %266 = vector.extract_strided_slice %265 {offsets = [0, 0], sizes = [4, 24], strides = [1, 1]} : vector<4x42xbf16> to vector<4x24xbf16>
    %c9 = arith.constant 9 : index
    %c0_26 = arith.constant 0 : index
    %c0_27 = arith.constant 0 : index
    %267 = vector.load %arg5[%c9, %c0_26, %c0_27] : memref<27x4x4xbf16, #tpu.memory_space<vmem>>, vector<1x4x4xbf16>
    %268 = vector.shape_cast %267 : vector<1x4x4xbf16> to vector<4x4xbf16>
    %269 = arith.extf %268 : vector<4x4xbf16> to vector<4x4xf32>
    %270 = arith.extf %266 : vector<4x24xbf16> to vector<4x24xf32>
    %271 = vector.extract_strided_slice %269 {offsets = [0, 0], sizes = [4, 1], strides = [1, 1]} : vector<4x4xf32> to vector<4x1xf32>
    %272 = vector.extract_strided_slice %270 {offsets = [0, 0], sizes = [1, 24], strides = [1, 1]} : vector<4x24xf32> to vector<1x24xf32>
    %273 = vector.broadcast %271 : vector<4x1xf32> to vector<4x24xf32>
    %274 = vector.broadcast %272 : vector<1x24xf32> to vector<4x24xf32>
    %275 = arith.mulf %273, %274 : vector<4x24xf32>
    %276 = arith.addf %263, %275 : vector<4x24xf32>
    %277 = vector.extract_strided_slice %269 {offsets = [0, 1], sizes = [4, 1], strides = [1, 1]} : vector<4x4xf32> to vector<4x1xf32>
    %278 = vector.extract_strided_slice %270 {offsets = [1, 0], sizes = [1, 24], strides = [1, 1]} : vector<4x24xf32> to vector<1x24xf32>
    %279 = vector.broadcast %277 : vector<4x1xf32> to vector<4x24xf32>
    %280 = vector.broadcast %278 : vector<1x24xf32> to vector<4x24xf32>
    %281 = arith.mulf %279, %280 : vector<4x24xf32>
    %282 = arith.addf %276, %281 : vector<4x24xf32>
    %283 = vector.extract_strided_slice %269 {offsets = [0, 2], sizes = [4, 1], strides = [1, 1]} : vector<4x4xf32> to vector<4x1xf32>
    %284 = vector.extract_strided_slice %270 {offsets = [2, 0], sizes = [1, 24], strides = [1, 1]} : vector<4x24xf32> to vector<1x24xf32>
    %285 = vector.broadcast %283 : vector<4x1xf32> to vector<4x24xf32>
    %286 = vector.broadcast %284 : vector<1x24xf32> to vector<4x24xf32>
    %287 = arith.mulf %285, %286 : vector<4x24xf32>
    %288 = arith.addf %282, %287 : vector<4x24xf32>
    %289 = vector.extract_strided_slice %269 {offsets = [0, 3], sizes = [4, 1], strides = [1, 1]} : vector<4x4xf32> to vector<4x1xf32>
    %290 = vector.extract_strided_slice %270 {offsets = [3, 0], sizes = [1, 24], strides = [1, 1]} : vector<4x24xf32> to vector<1x24xf32>
    %291 = vector.broadcast %289 : vector<4x1xf32> to vector<4x24xf32>
    %292 = vector.broadcast %290 : vector<1x24xf32> to vector<4x24xf32>
    %293 = arith.mulf %291, %292 : vector<4x24xf32>
    %294 = arith.addf %288, %293 : vector<4x24xf32>
    %295 = vector.extract_strided_slice %265 {offsets = [0, 1], sizes = [4, 24], strides = [1, 1]} : vector<4x42xbf16> to vector<4x24xbf16>
    %c10 = arith.constant 10 : index
    %c0_28 = arith.constant 0 : index
    %c0_29 = arith.constant 0 : index
    %296 = vector.load %arg5[%c10, %c0_28, %c0_29] : memref<27x4x4xbf16, #tpu.memory_space<vmem>>, vector<1x4x4xbf16>
    %297 = vector.shape_cast %296 : vector<1x4x4xbf16> to vector<4x4xbf16>
    %298 = arith.extf %297 : vector<4x4xbf16> to vector<4x4xf32>
    %299 = arith.extf %295 : vector<4x24xbf16> to vector<4x24xf32>
    %300 = vector.extract_strided_slice %298 {offsets = [0, 0], sizes = [4, 1], strides = [1, 1]} : vector<4x4xf32> to vector<4x1xf32>
    %301 = vector.extract_strided_slice %299 {offsets = [0, 0], sizes = [1, 24], strides = [1, 1]} : vector<4x24xf32> to vector<1x24xf32>
    %302 = vector.broadcast %300 : vector<4x1xf32> to vector<4x24xf32>
    %303 = vector.broadcast %301 : vector<1x24xf32> to vector<4x24xf32>
    %304 = arith.mulf %302, %303 : vector<4x24xf32>
    %305 = arith.addf %294, %304 : vector<4x24xf32>
    %306 = vector.extract_strided_slice %298 {offsets = [0, 1], sizes = [4, 1], strides = [1, 1]} : vector<4x4xf32> to vector<4x1xf32>
    %307 = vector.extract_strided_slice %299 {offsets = [1, 0], sizes = [1, 24], strides = [1, 1]} : vector<4x24xf32> to vector<1x24xf32>
    %308 = vector.broadcast %306 : vector<4x1xf32> to vector<4x24xf32>
    %309 = vector.broadcast %307 : vector<1x24xf32> to vector<4x24xf32>
    %310 = arith.mulf %308, %309 : vector<4x24xf32>
    %311 = arith.addf %305, %310 : vector<4x24xf32>
    %312 = vector.extract_strided_slice %298 {offsets = [0, 2], sizes = [4, 1], strides = [1, 1]} : vector<4x4xf32> to vector<4x1xf32>
    %313 = vector.extract_strided_slice %299 {offsets = [2, 0], sizes = [1, 24], strides = [1, 1]} : vector<4x24xf32> to vector<1x24xf32>
    %314 = vector.broadcast %312 : vector<4x1xf32> to vector<4x24xf32>
    %315 = vector.broadcast %313 : vector<1x24xf32> to vector<4x24xf32>
    %316 = arith.mulf %314, %315 : vector<4x24xf32>
    %317 = arith.addf %311, %316 : vector<4x24xf32>
    %318 = vector.extract_strided_slice %298 {offsets = [0, 3], sizes = [4, 1], strides = [1, 1]} : vector<4x4xf32> to vector<4x1xf32>
    %319 = vector.extract_strided_slice %299 {offsets = [3, 0], sizes = [1, 24], strides = [1, 1]} : vector<4x24xf32> to vector<1x24xf32>
    %320 = vector.broadcast %318 : vector<4x1xf32> to vector<4x24xf32>
    %321 = vector.broadcast %319 : vector<1x24xf32> to vector<4x24xf32>
    %322 = arith.mulf %320, %321 : vector<4x24xf32>
    %323 = arith.addf %317, %322 : vector<4x24xf32>
    %324 = vector.extract_strided_slice %265 {offsets = [0, 2], sizes = [4, 24], strides = [1, 1]} : vector<4x42xbf16> to vector<4x24xbf16>
    %c11 = arith.constant 11 : index
    %c0_30 = arith.constant 0 : index
    %c0_31 = arith.constant 0 : index
    %325 = vector.load %arg5[%c11, %c0_30, %c0_31] : memref<27x4x4xbf16, #tpu.memory_space<vmem>>, vector<1x4x4xbf16>
    %326 = vector.shape_cast %325 : vector<1x4x4xbf16> to vector<4x4xbf16>
    %327 = arith.extf %326 : vector<4x4xbf16> to vector<4x4xf32>
    %328 = arith.extf %324 : vector<4x24xbf16> to vector<4x24xf32>
    %329 = vector.extract_strided_slice %327 {offsets = [0, 0], sizes = [4, 1], strides = [1, 1]} : vector<4x4xf32> to vector<4x1xf32>
    %330 = vector.extract_strided_slice %328 {offsets = [0, 0], sizes = [1, 24], strides = [1, 1]} : vector<4x24xf32> to vector<1x24xf32>
    %331 = vector.broadcast %329 : vector<4x1xf32> to vector<4x24xf32>
    %332 = vector.broadcast %330 : vector<1x24xf32> to vector<4x24xf32>
    %333 = arith.mulf %331, %332 : vector<4x24xf32>
    %334 = arith.addf %323, %333 : vector<4x24xf32>
    %335 = vector.extract_strided_slice %327 {offsets = [0, 1], sizes = [4, 1], strides = [1, 1]} : vector<4x4xf32> to vector<4x1xf32>
    %336 = vector.extract_strided_slice %328 {offsets = [1, 0], sizes = [1, 24], strides = [1, 1]} : vector<4x24xf32> to vector<1x24xf32>
    %337 = vector.broadcast %335 : vector<4x1xf32> to vector<4x24xf32>
    %338 = vector.broadcast %336 : vector<1x24xf32> to vector<4x24xf32>
    %339 = arith.mulf %337, %338 : vector<4x24xf32>
    %340 = arith.addf %334, %339 : vector<4x24xf32>
    %341 = vector.extract_strided_slice %327 {offsets = [0, 2], sizes = [4, 1], strides = [1, 1]} : vector<4x4xf32> to vector<4x1xf32>
    %342 = vector.extract_strided_slice %328 {offsets = [2, 0], sizes = [1, 24], strides = [1, 1]} : vector<4x24xf32> to vector<1x24xf32>
    %343 = vector.broadcast %341 : vector<4x1xf32> to vector<4x24xf32>
    %344 = vector.broadcast %342 : vector<1x24xf32> to vector<4x24xf32>
    %345 = arith.mulf %343, %344 : vector<4x24xf32>
    %346 = arith.addf %340, %345 : vector<4x24xf32>
    %347 = vector.extract_strided_slice %327 {offsets = [0, 3], sizes = [4, 1], strides = [1, 1]} : vector<4x4xf32> to vector<4x1xf32>
    %348 = vector.extract_strided_slice %328 {offsets = [3, 0], sizes = [1, 24], strides = [1, 1]} : vector<4x24xf32> to vector<1x24xf32>
    %349 = vector.broadcast %347 : vector<4x1xf32> to vector<4x24xf32>
    %350 = vector.broadcast %348 : vector<1x24xf32> to vector<4x24xf32>
    %351 = arith.mulf %349, %350 : vector<4x24xf32>
    %352 = arith.addf %346, %351 : vector<4x24xf32>
    %353 = vector.extract_strided_slice %265 {offsets = [0, 6], sizes = [4, 24], strides = [1, 1]} : vector<4x42xbf16> to vector<4x24xbf16>
    %c12 = arith.constant 12 : index
    %c0_32 = arith.constant 0 : index
    %c0_33 = arith.constant 0 : index
    %354 = vector.load %arg5[%c12, %c0_32, %c0_33] : memref<27x4x4xbf16, #tpu.memory_space<vmem>>, vector<1x4x4xbf16>
    %355 = vector.shape_cast %354 : vector<1x4x4xbf16> to vector<4x4xbf16>
    %356 = arith.extf %355 : vector<4x4xbf16> to vector<4x4xf32>
    %357 = arith.extf %353 : vector<4x24xbf16> to vector<4x24xf32>
    %358 = vector.extract_strided_slice %356 {offsets = [0, 0], sizes = [4, 1], strides = [1, 1]} : vector<4x4xf32> to vector<4x1xf32>
    %359 = vector.extract_strided_slice %357 {offsets = [0, 0], sizes = [1, 24], strides = [1, 1]} : vector<4x24xf32> to vector<1x24xf32>
    %360 = vector.broadcast %358 : vector<4x1xf32> to vector<4x24xf32>
    %361 = vector.broadcast %359 : vector<1x24xf32> to vector<4x24xf32>
    %362 = arith.mulf %360, %361 : vector<4x24xf32>
    %363 = arith.addf %352, %362 : vector<4x24xf32>
    %364 = vector.extract_strided_slice %356 {offsets = [0, 1], sizes = [4, 1], strides = [1, 1]} : vector<4x4xf32> to vector<4x1xf32>
    %365 = vector.extract_strided_slice %357 {offsets = [1, 0], sizes = [1, 24], strides = [1, 1]} : vector<4x24xf32> to vector<1x24xf32>
    %366 = vector.broadcast %364 : vector<4x1xf32> to vector<4x24xf32>
    %367 = vector.broadcast %365 : vector<1x24xf32> to vector<4x24xf32>
    %368 = arith.mulf %366, %367 : vector<4x24xf32>
    %369 = arith.addf %363, %368 : vector<4x24xf32>
    %370 = vector.extract_strided_slice %356 {offsets = [0, 2], sizes = [4, 1], strides = [1, 1]} : vector<4x4xf32> to vector<4x1xf32>
    %371 = vector.extract_strided_slice %357 {offsets = [2, 0], sizes = [1, 24], strides = [1, 1]} : vector<4x24xf32> to vector<1x24xf32>
    %372 = vector.broadcast %370 : vector<4x1xf32> to vector<4x24xf32>
    %373 = vector.broadcast %371 : vector<1x24xf32> to vector<4x24xf32>
    %374 = arith.mulf %372, %373 : vector<4x24xf32>
    %375 = arith.addf %369, %374 : vector<4x24xf32>
    %376 = vector.extract_strided_slice %356 {offsets = [0, 3], sizes = [4, 1], strides = [1, 1]} : vector<4x4xf32> to vector<4x1xf32>
    %377 = vector.extract_strided_slice %357 {offsets = [3, 0], sizes = [1, 24], strides = [1, 1]} : vector<4x24xf32> to vector<1x24xf32>
    %378 = vector.broadcast %376 : vector<4x1xf32> to vector<4x24xf32>
    %379 = vector.broadcast %377 : vector<1x24xf32> to vector<4x24xf32>
    %380 = arith.mulf %378, %379 : vector<4x24xf32>
    %381 = arith.addf %375, %380 : vector<4x24xf32>
    %382 = vector.extract_strided_slice %265 {offsets = [0, 7], sizes = [4, 24], strides = [1, 1]} : vector<4x42xbf16> to vector<4x24xbf16>
    %c13 = arith.constant 13 : index
    %c0_34 = arith.constant 0 : index
    %c0_35 = arith.constant 0 : index
    %383 = vector.load %arg5[%c13, %c0_34, %c0_35] : memref<27x4x4xbf16, #tpu.memory_space<vmem>>, vector<1x4x4xbf16>
    %384 = vector.shape_cast %383 : vector<1x4x4xbf16> to vector<4x4xbf16>
    %385 = arith.extf %384 : vector<4x4xbf16> to vector<4x4xf32>
    %386 = arith.extf %382 : vector<4x24xbf16> to vector<4x24xf32>
    %387 = vector.extract_strided_slice %385 {offsets = [0, 0], sizes = [4, 1], strides = [1, 1]} : vector<4x4xf32> to vector<4x1xf32>
    %388 = vector.extract_strided_slice %386 {offsets = [0, 0], sizes = [1, 24], strides = [1, 1]} : vector<4x24xf32> to vector<1x24xf32>
    %389 = vector.broadcast %387 : vector<4x1xf32> to vector<4x24xf32>
    %390 = vector.broadcast %388 : vector<1x24xf32> to vector<4x24xf32>
    %391 = arith.mulf %389, %390 : vector<4x24xf32>
    %392 = arith.addf %381, %391 : vector<4x24xf32>
    %393 = vector.extract_strided_slice %385 {offsets = [0, 1], sizes = [4, 1], strides = [1, 1]} : vector<4x4xf32> to vector<4x1xf32>
    %394 = vector.extract_strided_slice %386 {offsets = [1, 0], sizes = [1, 24], strides = [1, 1]} : vector<4x24xf32> to vector<1x24xf32>
    %395 = vector.broadcast %393 : vector<4x1xf32> to vector<4x24xf32>
    %396 = vector.broadcast %394 : vector<1x24xf32> to vector<4x24xf32>
    %397 = arith.mulf %395, %396 : vector<4x24xf32>
    %398 = arith.addf %392, %397 : vector<4x24xf32>
    %399 = vector.extract_strided_slice %385 {offsets = [0, 2], sizes = [4, 1], strides = [1, 1]} : vector<4x4xf32> to vector<4x1xf32>
    %400 = vector.extract_strided_slice %386 {offsets = [2, 0], sizes = [1, 24], strides = [1, 1]} : vector<4x24xf32> to vector<1x24xf32>
    %401 = vector.broadcast %399 : vector<4x1xf32> to vector<4x24xf32>
    %402 = vector.broadcast %400 : vector<1x24xf32> to vector<4x24xf32>
    %403 = arith.mulf %401, %402 : vector<4x24xf32>
    %404 = arith.addf %398, %403 : vector<4x24xf32>
    %405 = vector.extract_strided_slice %385 {offsets = [0, 3], sizes = [4, 1], strides = [1, 1]} : vector<4x4xf32> to vector<4x1xf32>
    %406 = vector.extract_strided_slice %386 {offsets = [3, 0], sizes = [1, 24], strides = [1, 1]} : vector<4x24xf32> to vector<1x24xf32>
    %407 = vector.broadcast %405 : vector<4x1xf32> to vector<4x24xf32>
    %408 = vector.broadcast %406 : vector<1x24xf32> to vector<4x24xf32>
    %409 = arith.mulf %407, %408 : vector<4x24xf32>
    %410 = arith.addf %404, %409 : vector<4x24xf32>
    %411 = vector.extract_strided_slice %265 {offsets = [0, 8], sizes = [4, 24], strides = [1, 1]} : vector<4x42xbf16> to vector<4x24xbf16>
    %c14 = arith.constant 14 : index
    %c0_36 = arith.constant 0 : index
    %c0_37 = arith.constant 0 : index
    %412 = vector.load %arg5[%c14, %c0_36, %c0_37] : memref<27x4x4xbf16, #tpu.memory_space<vmem>>, vector<1x4x4xbf16>
    %413 = vector.shape_cast %412 : vector<1x4x4xbf16> to vector<4x4xbf16>
    %414 = arith.extf %413 : vector<4x4xbf16> to vector<4x4xf32>
    %415 = arith.extf %411 : vector<4x24xbf16> to vector<4x24xf32>
    %416 = vector.extract_strided_slice %414 {offsets = [0, 0], sizes = [4, 1], strides = [1, 1]} : vector<4x4xf32> to vector<4x1xf32>
    %417 = vector.extract_strided_slice %415 {offsets = [0, 0], sizes = [1, 24], strides = [1, 1]} : vector<4x24xf32> to vector<1x24xf32>
    %418 = vector.broadcast %416 : vector<4x1xf32> to vector<4x24xf32>
    %419 = vector.broadcast %417 : vector<1x24xf32> to vector<4x24xf32>
    %420 = arith.mulf %418, %419 : vector<4x24xf32>
    %421 = arith.addf %410, %420 : vector<4x24xf32>
    %422 = vector.extract_strided_slice %414 {offsets = [0, 1], sizes = [4, 1], strides = [1, 1]} : vector<4x4xf32> to vector<4x1xf32>
    %423 = vector.extract_strided_slice %415 {offsets = [1, 0], sizes = [1, 24], strides = [1, 1]} : vector<4x24xf32> to vector<1x24xf32>
    %424 = vector.broadcast %422 : vector<4x1xf32> to vector<4x24xf32>
    %425 = vector.broadcast %423 : vector<1x24xf32> to vector<4x24xf32>
    %426 = arith.mulf %424, %425 : vector<4x24xf32>
    %427 = arith.addf %421, %426 : vector<4x24xf32>
    %428 = vector.extract_strided_slice %414 {offsets = [0, 2], sizes = [4, 1], strides = [1, 1]} : vector<4x4xf32> to vector<4x1xf32>
    %429 = vector.extract_strided_slice %415 {offsets = [2, 0], sizes = [1, 24], strides = [1, 1]} : vector<4x24xf32> to vector<1x24xf32>
    %430 = vector.broadcast %428 : vector<4x1xf32> to vector<4x24xf32>
    %431 = vector.broadcast %429 : vector<1x24xf32> to vector<4x24xf32>
    %432 = arith.mulf %430, %431 : vector<4x24xf32>
    %433 = arith.addf %427, %432 : vector<4x24xf32>
    %434 = vector.extract_strided_slice %414 {offsets = [0, 3], sizes = [4, 1], strides = [1, 1]} : vector<4x4xf32> to vector<4x1xf32>
    %435 = vector.extract_strided_slice %415 {offsets = [3, 0], sizes = [1, 24], strides = [1, 1]} : vector<4x24xf32> to vector<1x24xf32>
    %436 = vector.broadcast %434 : vector<4x1xf32> to vector<4x24xf32>
    %437 = vector.broadcast %435 : vector<1x24xf32> to vector<4x24xf32>
    %438 = arith.mulf %436, %437 : vector<4x24xf32>
    %439 = arith.addf %433, %438 : vector<4x24xf32>
    %440 = vector.extract_strided_slice %265 {offsets = [0, 12], sizes = [4, 24], strides = [1, 1]} : vector<4x42xbf16> to vector<4x24xbf16>
    %c15 = arith.constant 15 : index
    %c0_38 = arith.constant 0 : index
    %c0_39 = arith.constant 0 : index
    %441 = vector.load %arg5[%c15, %c0_38, %c0_39] : memref<27x4x4xbf16, #tpu.memory_space<vmem>>, vector<1x4x4xbf16>
    %442 = vector.shape_cast %441 : vector<1x4x4xbf16> to vector<4x4xbf16>
    %443 = arith.extf %442 : vector<4x4xbf16> to vector<4x4xf32>
    %444 = arith.extf %440 : vector<4x24xbf16> to vector<4x24xf32>
    %445 = vector.extract_strided_slice %443 {offsets = [0, 0], sizes = [4, 1], strides = [1, 1]} : vector<4x4xf32> to vector<4x1xf32>
    %446 = vector.extract_strided_slice %444 {offsets = [0, 0], sizes = [1, 24], strides = [1, 1]} : vector<4x24xf32> to vector<1x24xf32>
    %447 = vector.broadcast %445 : vector<4x1xf32> to vector<4x24xf32>
    %448 = vector.broadcast %446 : vector<1x24xf32> to vector<4x24xf32>
    %449 = arith.mulf %447, %448 : vector<4x24xf32>
    %450 = arith.addf %439, %449 : vector<4x24xf32>
    %451 = vector.extract_strided_slice %443 {offsets = [0, 1], sizes = [4, 1], strides = [1, 1]} : vector<4x4xf32> to vector<4x1xf32>
    %452 = vector.extract_strided_slice %444 {offsets = [1, 0], sizes = [1, 24], strides = [1, 1]} : vector<4x24xf32> to vector<1x24xf32>
    %453 = vector.broadcast %451 : vector<4x1xf32> to vector<4x24xf32>
    %454 = vector.broadcast %452 : vector<1x24xf32> to vector<4x24xf32>
    %455 = arith.mulf %453, %454 : vector<4x24xf32>
    %456 = arith.addf %450, %455 : vector<4x24xf32>
    %457 = vector.extract_strided_slice %443 {offsets = [0, 2], sizes = [4, 1], strides = [1, 1]} : vector<4x4xf32> to vector<4x1xf32>
    %458 = vector.extract_strided_slice %444 {offsets = [2, 0], sizes = [1, 24], strides = [1, 1]} : vector<4x24xf32> to vector<1x24xf32>
    %459 = vector.broadcast %457 : vector<4x1xf32> to vector<4x24xf32>
    %460 = vector.broadcast %458 : vector<1x24xf32> to vector<4x24xf32>
    %461 = arith.mulf %459, %460 : vector<4x24xf32>
    %462 = arith.addf %456, %461 : vector<4x24xf32>
    %463 = vector.extract_strided_slice %443 {offsets = [0, 3], sizes = [4, 1], strides = [1, 1]} : vector<4x4xf32> to vector<4x1xf32>
    %464 = vector.extract_strided_slice %444 {offsets = [3, 0], sizes = [1, 24], strides = [1, 1]} : vector<4x24xf32> to vector<1x24xf32>
    %465 = vector.broadcast %463 : vector<4x1xf32> to vector<4x24xf32>
    %466 = vector.broadcast %464 : vector<1x24xf32> to vector<4x24xf32>
    %467 = arith.mulf %465, %466 : vector<4x24xf32>
    %468 = arith.addf %462, %467 : vector<4x24xf32>
    %469 = vector.extract_strided_slice %265 {offsets = [0, 13], sizes = [4, 24], strides = [1, 1]} : vector<4x42xbf16> to vector<4x24xbf16>
    %c16 = arith.constant 16 : index
    %c0_40 = arith.constant 0 : index
    %c0_41 = arith.constant 0 : index
    %470 = vector.load %arg5[%c16, %c0_40, %c0_41] : memref<27x4x4xbf16, #tpu.memory_space<vmem>>, vector<1x4x4xbf16>
    %471 = vector.shape_cast %470 : vector<1x4x4xbf16> to vector<4x4xbf16>
    %472 = arith.extf %471 : vector<4x4xbf16> to vector<4x4xf32>
    %473 = arith.extf %469 : vector<4x24xbf16> to vector<4x24xf32>
    %474 = vector.extract_strided_slice %472 {offsets = [0, 0], sizes = [4, 1], strides = [1, 1]} : vector<4x4xf32> to vector<4x1xf32>
    %475 = vector.extract_strided_slice %473 {offsets = [0, 0], sizes = [1, 24], strides = [1, 1]} : vector<4x24xf32> to vector<1x24xf32>
    %476 = vector.broadcast %474 : vector<4x1xf32> to vector<4x24xf32>
    %477 = vector.broadcast %475 : vector<1x24xf32> to vector<4x24xf32>
    %478 = arith.mulf %476, %477 : vector<4x24xf32>
    %479 = arith.addf %468, %478 : vector<4x24xf32>
    %480 = vector.extract_strided_slice %472 {offsets = [0, 1], sizes = [4, 1], strides = [1, 1]} : vector<4x4xf32> to vector<4x1xf32>
    %481 = vector.extract_strided_slice %473 {offsets = [1, 0], sizes = [1, 24], strides = [1, 1]} : vector<4x24xf32> to vector<1x24xf32>
    %482 = vector.broadcast %480 : vector<4x1xf32> to vector<4x24xf32>
    %483 = vector.broadcast %481 : vector<1x24xf32> to vector<4x24xf32>
    %484 = arith.mulf %482, %483 : vector<4x24xf32>
    %485 = arith.addf %479, %484 : vector<4x24xf32>
    %486 = vector.extract_strided_slice %472 {offsets = [0, 2], sizes = [4, 1], strides = [1, 1]} : vector<4x4xf32> to vector<4x1xf32>
    %487 = vector.extract_strided_slice %473 {offsets = [2, 0], sizes = [1, 24], strides = [1, 1]} : vector<4x24xf32> to vector<1x24xf32>
    %488 = vector.broadcast %486 : vector<4x1xf32> to vector<4x24xf32>
    %489 = vector.broadcast %487 : vector<1x24xf32> to vector<4x24xf32>
    %490 = arith.mulf %488, %489 : vector<4x24xf32>
    %491 = arith.addf %485, %490 : vector<4x24xf32>
    %492 = vector.extract_strided_slice %472 {offsets = [0, 3], sizes = [4, 1], strides = [1, 1]} : vector<4x4xf32> to vector<4x1xf32>
    %493 = vector.extract_strided_slice %473 {offsets = [3, 0], sizes = [1, 24], strides = [1, 1]} : vector<4x24xf32> to vector<1x24xf32>
    %494 = vector.broadcast %492 : vector<4x1xf32> to vector<4x24xf32>
    %495 = vector.broadcast %493 : vector<1x24xf32> to vector<4x24xf32>
    %496 = arith.mulf %494, %495 : vector<4x24xf32>
    %497 = arith.addf %491, %496 : vector<4x24xf32>
    %498 = vector.extract_strided_slice %265 {offsets = [0, 14], sizes = [4, 24], strides = [1, 1]} : vector<4x42xbf16> to vector<4x24xbf16>
    %c17 = arith.constant 17 : index
    %c0_42 = arith.constant 0 : index
    %c0_43 = arith.constant 0 : index
    %499 = vector.load %arg5[%c17, %c0_42, %c0_43] : memref<27x4x4xbf16, #tpu.memory_space<vmem>>, vector<1x4x4xbf16>
    %500 = vector.shape_cast %499 : vector<1x4x4xbf16> to vector<4x4xbf16>
    %501 = arith.extf %500 : vector<4x4xbf16> to vector<4x4xf32>
    %502 = arith.extf %498 : vector<4x24xbf16> to vector<4x24xf32>
    %503 = vector.extract_strided_slice %501 {offsets = [0, 0], sizes = [4, 1], strides = [1, 1]} : vector<4x4xf32> to vector<4x1xf32>
    %504 = vector.extract_strided_slice %502 {offsets = [0, 0], sizes = [1, 24], strides = [1, 1]} : vector<4x24xf32> to vector<1x24xf32>
    %505 = vector.broadcast %503 : vector<4x1xf32> to vector<4x24xf32>
    %506 = vector.broadcast %504 : vector<1x24xf32> to vector<4x24xf32>
    %507 = arith.mulf %505, %506 : vector<4x24xf32>
    %508 = arith.addf %497, %507 : vector<4x24xf32>
    %509 = vector.extract_strided_slice %501 {offsets = [0, 1], sizes = [4, 1], strides = [1, 1]} : vector<4x4xf32> to vector<4x1xf32>
    %510 = vector.extract_strided_slice %502 {offsets = [1, 0], sizes = [1, 24], strides = [1, 1]} : vector<4x24xf32> to vector<1x24xf32>
    %511 = vector.broadcast %509 : vector<4x1xf32> to vector<4x24xf32>
    %512 = vector.broadcast %510 : vector<1x24xf32> to vector<4x24xf32>
    %513 = arith.mulf %511, %512 : vector<4x24xf32>
    %514 = arith.addf %508, %513 : vector<4x24xf32>
    %515 = vector.extract_strided_slice %501 {offsets = [0, 2], sizes = [4, 1], strides = [1, 1]} : vector<4x4xf32> to vector<4x1xf32>
    %516 = vector.extract_strided_slice %502 {offsets = [2, 0], sizes = [1, 24], strides = [1, 1]} : vector<4x24xf32> to vector<1x24xf32>
    %517 = vector.broadcast %515 : vector<4x1xf32> to vector<4x24xf32>
    %518 = vector.broadcast %516 : vector<1x24xf32> to vector<4x24xf32>
    %519 = arith.mulf %517, %518 : vector<4x24xf32>
    %520 = arith.addf %514, %519 : vector<4x24xf32>
    %521 = vector.extract_strided_slice %501 {offsets = [0, 3], sizes = [4, 1], strides = [1, 1]} : vector<4x4xf32> to vector<4x1xf32>
    %522 = vector.extract_strided_slice %502 {offsets = [3, 0], sizes = [1, 24], strides = [1, 1]} : vector<4x24xf32> to vector<1x24xf32>
    %523 = vector.broadcast %521 : vector<4x1xf32> to vector<4x24xf32>
    %524 = vector.broadcast %522 : vector<1x24xf32> to vector<4x24xf32>
    %525 = arith.mulf %523, %524 : vector<4x24xf32>
    %526 = arith.addf %520, %525 : vector<4x24xf32>
    %c0_44 = arith.constant 0 : index
    %c0_45 = arith.constant 0 : index
    %c0_46 = arith.constant 0 : index
    %c0_47 = arith.constant 0 : index
    %527 = vector.load %arg4[%c0_44, %c0_45, %c0_46, %c0_47] : memref<1x1x4x42xbf16, #tpu.memory_space<vmem>>, vector<1x1x4x42xbf16>
    %528 = vector.shape_cast %527 : vector<1x1x4x42xbf16> to vector<4x42xbf16>
    %529 = vector.extract_strided_slice %528 {offsets = [0, 0], sizes = [4, 24], strides = [1, 1]} : vector<4x42xbf16> to vector<4x24xbf16>
    %c18 = arith.constant 18 : index
    %c0_48 = arith.constant 0 : index
    %c0_49 = arith.constant 0 : index
    %530 = vector.load %arg5[%c18, %c0_48, %c0_49] : memref<27x4x4xbf16, #tpu.memory_space<vmem>>, vector<1x4x4xbf16>
    %531 = vector.shape_cast %530 : vector<1x4x4xbf16> to vector<4x4xbf16>
    %532 = arith.extf %531 : vector<4x4xbf16> to vector<4x4xf32>
    %533 = arith.extf %529 : vector<4x24xbf16> to vector<4x24xf32>
    %534 = vector.extract_strided_slice %532 {offsets = [0, 0], sizes = [4, 1], strides = [1, 1]} : vector<4x4xf32> to vector<4x1xf32>
    %535 = vector.extract_strided_slice %533 {offsets = [0, 0], sizes = [1, 24], strides = [1, 1]} : vector<4x24xf32> to vector<1x24xf32>
    %536 = vector.broadcast %534 : vector<4x1xf32> to vector<4x24xf32>
    %537 = vector.broadcast %535 : vector<1x24xf32> to vector<4x24xf32>
    %538 = arith.mulf %536, %537 : vector<4x24xf32>
    %539 = arith.addf %526, %538 : vector<4x24xf32>
    %540 = vector.extract_strided_slice %532 {offsets = [0, 1], sizes = [4, 1], strides = [1, 1]} : vector<4x4xf32> to vector<4x1xf32>
    %541 = vector.extract_strided_slice %533 {offsets = [1, 0], sizes = [1, 24], strides = [1, 1]} : vector<4x24xf32> to vector<1x24xf32>
    %542 = vector.broadcast %540 : vector<4x1xf32> to vector<4x24xf32>
    %543 = vector.broadcast %541 : vector<1x24xf32> to vector<4x24xf32>
    %544 = arith.mulf %542, %543 : vector<4x24xf32>
    %545 = arith.addf %539, %544 : vector<4x24xf32>
    %546 = vector.extract_strided_slice %532 {offsets = [0, 2], sizes = [4, 1], strides = [1, 1]} : vector<4x4xf32> to vector<4x1xf32>
    %547 = vector.extract_strided_slice %533 {offsets = [2, 0], sizes = [1, 24], strides = [1, 1]} : vector<4x24xf32> to vector<1x24xf32>
    %548 = vector.broadcast %546 : vector<4x1xf32> to vector<4x24xf32>
    %549 = vector.broadcast %547 : vector<1x24xf32> to vector<4x24xf32>
    %550 = arith.mulf %548, %549 : vector<4x24xf32>
    %551 = arith.addf %545, %550 : vector<4x24xf32>
    %552 = vector.extract_strided_slice %532 {offsets = [0, 3], sizes = [4, 1], strides = [1, 1]} : vector<4x4xf32> to vector<4x1xf32>
    %553 = vector.extract_strided_slice %533 {offsets = [3, 0], sizes = [1, 24], strides = [1, 1]} : vector<4x24xf32> to vector<1x24xf32>
    %554 = vector.broadcast %552 : vector<4x1xf32> to vector<4x24xf32>
    %555 = vector.broadcast %553 : vector<1x24xf32> to vector<4x24xf32>
    %556 = arith.mulf %554, %555 : vector<4x24xf32>
    %557 = arith.addf %551, %556 : vector<4x24xf32>
    %558 = vector.extract_strided_slice %528 {offsets = [0, 1], sizes = [4, 24], strides = [1, 1]} : vector<4x42xbf16> to vector<4x24xbf16>
    %c19 = arith.constant 19 : index
    %c0_50 = arith.constant 0 : index
    %c0_51 = arith.constant 0 : index
    %559 = vector.load %arg5[%c19, %c0_50, %c0_51] : memref<27x4x4xbf16, #tpu.memory_space<vmem>>, vector<1x4x4xbf16>
    %560 = vector.shape_cast %559 : vector<1x4x4xbf16> to vector<4x4xbf16>
    %561 = arith.extf %560 : vector<4x4xbf16> to vector<4x4xf32>
    %562 = arith.extf %558 : vector<4x24xbf16> to vector<4x24xf32>
    %563 = vector.extract_strided_slice %561 {offsets = [0, 0], sizes = [4, 1], strides = [1, 1]} : vector<4x4xf32> to vector<4x1xf32>
    %564 = vector.extract_strided_slice %562 {offsets = [0, 0], sizes = [1, 24], strides = [1, 1]} : vector<4x24xf32> to vector<1x24xf32>
    %565 = vector.broadcast %563 : vector<4x1xf32> to vector<4x24xf32>
    %566 = vector.broadcast %564 : vector<1x24xf32> to vector<4x24xf32>
    %567 = arith.mulf %565, %566 : vector<4x24xf32>
    %568 = arith.addf %557, %567 : vector<4x24xf32>
    %569 = vector.extract_strided_slice %561 {offsets = [0, 1], sizes = [4, 1], strides = [1, 1]} : vector<4x4xf32> to vector<4x1xf32>
    %570 = vector.extract_strided_slice %562 {offsets = [1, 0], sizes = [1, 24], strides = [1, 1]} : vector<4x24xf32> to vector<1x24xf32>
    %571 = vector.broadcast %569 : vector<4x1xf32> to vector<4x24xf32>
    %572 = vector.broadcast %570 : vector<1x24xf32> to vector<4x24xf32>
    %573 = arith.mulf %571, %572 : vector<4x24xf32>
    %574 = arith.addf %568, %573 : vector<4x24xf32>
    %575 = vector.extract_strided_slice %561 {offsets = [0, 2], sizes = [4, 1], strides = [1, 1]} : vector<4x4xf32> to vector<4x1xf32>
    %576 = vector.extract_strided_slice %562 {offsets = [2, 0], sizes = [1, 24], strides = [1, 1]} : vector<4x24xf32> to vector<1x24xf32>
    %577 = vector.broadcast %575 : vector<4x1xf32> to vector<4x24xf32>
    %578 = vector.broadcast %576 : vector<1x24xf32> to vector<4x24xf32>
    %579 = arith.mulf %577, %578 : vector<4x24xf32>
    %580 = arith.addf %574, %579 : vector<4x24xf32>
    %581 = vector.extract_strided_slice %561 {offsets = [0, 3], sizes = [4, 1], strides = [1, 1]} : vector<4x4xf32> to vector<4x1xf32>
    %582 = vector.extract_strided_slice %562 {offsets = [3, 0], sizes = [1, 24], strides = [1, 1]} : vector<4x24xf32> to vector<1x24xf32>
    %583 = vector.broadcast %581 : vector<4x1xf32> to vector<4x24xf32>
    %584 = vector.broadcast %582 : vector<1x24xf32> to vector<4x24xf32>
    %585 = arith.mulf %583, %584 : vector<4x24xf32>
    %586 = arith.addf %580, %585 : vector<4x24xf32>
    %587 = vector.extract_strided_slice %528 {offsets = [0, 2], sizes = [4, 24], strides = [1, 1]} : vector<4x42xbf16> to vector<4x24xbf16>
    %c20 = arith.constant 20 : index
    %c0_52 = arith.constant 0 : index
    %c0_53 = arith.constant 0 : index
    %588 = vector.load %arg5[%c20, %c0_52, %c0_53] : memref<27x4x4xbf16, #tpu.memory_space<vmem>>, vector<1x4x4xbf16>
    %589 = vector.shape_cast %588 : vector<1x4x4xbf16> to vector<4x4xbf16>
    %590 = arith.extf %589 : vector<4x4xbf16> to vector<4x4xf32>
    %591 = arith.extf %587 : vector<4x24xbf16> to vector<4x24xf32>
    %592 = vector.extract_strided_slice %590 {offsets = [0, 0], sizes = [4, 1], strides = [1, 1]} : vector<4x4xf32> to vector<4x1xf32>
    %593 = vector.extract_strided_slice %591 {offsets = [0, 0], sizes = [1, 24], strides = [1, 1]} : vector<4x24xf32> to vector<1x24xf32>
    %594 = vector.broadcast %592 : vector<4x1xf32> to vector<4x24xf32>
    %595 = vector.broadcast %593 : vector<1x24xf32> to vector<4x24xf32>
    %596 = arith.mulf %594, %595 : vector<4x24xf32>
    %597 = arith.addf %586, %596 : vector<4x24xf32>
    %598 = vector.extract_strided_slice %590 {offsets = [0, 1], sizes = [4, 1], strides = [1, 1]} : vector<4x4xf32> to vector<4x1xf32>
    %599 = vector.extract_strided_slice %591 {offsets = [1, 0], sizes = [1, 24], strides = [1, 1]} : vector<4x24xf32> to vector<1x24xf32>
    %600 = vector.broadcast %598 : vector<4x1xf32> to vector<4x24xf32>
    %601 = vector.broadcast %599 : vector<1x24xf32> to vector<4x24xf32>
    %602 = arith.mulf %600, %601 : vector<4x24xf32>
    %603 = arith.addf %597, %602 : vector<4x24xf32>
    %604 = vector.extract_strided_slice %590 {offsets = [0, 2], sizes = [4, 1], strides = [1, 1]} : vector<4x4xf32> to vector<4x1xf32>
    %605 = vector.extract_strided_slice %591 {offsets = [2, 0], sizes = [1, 24], strides = [1, 1]} : vector<4x24xf32> to vector<1x24xf32>
    %606 = vector.broadcast %604 : vector<4x1xf32> to vector<4x24xf32>
    %607 = vector.broadcast %605 : vector<1x24xf32> to vector<4x24xf32>
    %608 = arith.mulf %606, %607 : vector<4x24xf32>
    %609 = arith.addf %603, %608 : vector<4x24xf32>
    %610 = vector.extract_strided_slice %590 {offsets = [0, 3], sizes = [4, 1], strides = [1, 1]} : vector<4x4xf32> to vector<4x1xf32>
    %611 = vector.extract_strided_slice %591 {offsets = [3, 0], sizes = [1, 24], strides = [1, 1]} : vector<4x24xf32> to vector<1x24xf32>
    %612 = vector.broadcast %610 : vector<4x1xf32> to vector<4x24xf32>
    %613 = vector.broadcast %611 : vector<1x24xf32> to vector<4x24xf32>
    %614 = arith.mulf %612, %613 : vector<4x24xf32>
    %615 = arith.addf %609, %614 : vector<4x24xf32>
    %616 = vector.extract_strided_slice %528 {offsets = [0, 6], sizes = [4, 24], strides = [1, 1]} : vector<4x42xbf16> to vector<4x24xbf16>
    %c21 = arith.constant 21 : index
    %c0_54 = arith.constant 0 : index
    %c0_55 = arith.constant 0 : index
    %617 = vector.load %arg5[%c21, %c0_54, %c0_55] : memref<27x4x4xbf16, #tpu.memory_space<vmem>>, vector<1x4x4xbf16>
    %618 = vector.shape_cast %617 : vector<1x4x4xbf16> to vector<4x4xbf16>
    %619 = arith.extf %618 : vector<4x4xbf16> to vector<4x4xf32>
    %620 = arith.extf %616 : vector<4x24xbf16> to vector<4x24xf32>
    %621 = vector.extract_strided_slice %619 {offsets = [0, 0], sizes = [4, 1], strides = [1, 1]} : vector<4x4xf32> to vector<4x1xf32>
    %622 = vector.extract_strided_slice %620 {offsets = [0, 0], sizes = [1, 24], strides = [1, 1]} : vector<4x24xf32> to vector<1x24xf32>
    %623 = vector.broadcast %621 : vector<4x1xf32> to vector<4x24xf32>
    %624 = vector.broadcast %622 : vector<1x24xf32> to vector<4x24xf32>
    %625 = arith.mulf %623, %624 : vector<4x24xf32>
    %626 = arith.addf %615, %625 : vector<4x24xf32>
    %627 = vector.extract_strided_slice %619 {offsets = [0, 1], sizes = [4, 1], strides = [1, 1]} : vector<4x4xf32> to vector<4x1xf32>
    %628 = vector.extract_strided_slice %620 {offsets = [1, 0], sizes = [1, 24], strides = [1, 1]} : vector<4x24xf32> to vector<1x24xf32>
    %629 = vector.broadcast %627 : vector<4x1xf32> to vector<4x24xf32>
    %630 = vector.broadcast %628 : vector<1x24xf32> to vector<4x24xf32>
    %631 = arith.mulf %629, %630 : vector<4x24xf32>
    %632 = arith.addf %626, %631 : vector<4x24xf32>
    %633 = vector.extract_strided_slice %619 {offsets = [0, 2], sizes = [4, 1], strides = [1, 1]} : vector<4x4xf32> to vector<4x1xf32>
    %634 = vector.extract_strided_slice %620 {offsets = [2, 0], sizes = [1, 24], strides = [1, 1]} : vector<4x24xf32> to vector<1x24xf32>
    %635 = vector.broadcast %633 : vector<4x1xf32> to vector<4x24xf32>
    %636 = vector.broadcast %634 : vector<1x24xf32> to vector<4x24xf32>
    %637 = arith.mulf %635, %636 : vector<4x24xf32>
    %638 = arith.addf %632, %637 : vector<4x24xf32>
    %639 = vector.extract_strided_slice %619 {offsets = [0, 3], sizes = [4, 1], strides = [1, 1]} : vector<4x4xf32> to vector<4x1xf32>
    %640 = vector.extract_strided_slice %620 {offsets = [3, 0], sizes = [1, 24], strides = [1, 1]} : vector<4x24xf32> to vector<1x24xf32>
    %641 = vector.broadcast %639 : vector<4x1xf32> to vector<4x24xf32>
    %642 = vector.broadcast %640 : vector<1x24xf32> to vector<4x24xf32>
    %643 = arith.mulf %641, %642 : vector<4x24xf32>
    %644 = arith.addf %638, %643 : vector<4x24xf32>
    %645 = vector.extract_strided_slice %528 {offsets = [0, 7], sizes = [4, 24], strides = [1, 1]} : vector<4x42xbf16> to vector<4x24xbf16>
    %c22 = arith.constant 22 : index
    %c0_56 = arith.constant 0 : index
    %c0_57 = arith.constant 0 : index
    %646 = vector.load %arg5[%c22, %c0_56, %c0_57] : memref<27x4x4xbf16, #tpu.memory_space<vmem>>, vector<1x4x4xbf16>
    %647 = vector.shape_cast %646 : vector<1x4x4xbf16> to vector<4x4xbf16>
    %648 = arith.extf %647 : vector<4x4xbf16> to vector<4x4xf32>
    %649 = arith.extf %645 : vector<4x24xbf16> to vector<4x24xf32>
    %650 = vector.extract_strided_slice %648 {offsets = [0, 0], sizes = [4, 1], strides = [1, 1]} : vector<4x4xf32> to vector<4x1xf32>
    %651 = vector.extract_strided_slice %649 {offsets = [0, 0], sizes = [1, 24], strides = [1, 1]} : vector<4x24xf32> to vector<1x24xf32>
    %652 = vector.broadcast %650 : vector<4x1xf32> to vector<4x24xf32>
    %653 = vector.broadcast %651 : vector<1x24xf32> to vector<4x24xf32>
    %654 = arith.mulf %652, %653 : vector<4x24xf32>
    %655 = arith.addf %644, %654 : vector<4x24xf32>
    %656 = vector.extract_strided_slice %648 {offsets = [0, 1], sizes = [4, 1], strides = [1, 1]} : vector<4x4xf32> to vector<4x1xf32>
    %657 = vector.extract_strided_slice %649 {offsets = [1, 0], sizes = [1, 24], strides = [1, 1]} : vector<4x24xf32> to vector<1x24xf32>
    %658 = vector.broadcast %656 : vector<4x1xf32> to vector<4x24xf32>
    %659 = vector.broadcast %657 : vector<1x24xf32> to vector<4x24xf32>
    %660 = arith.mulf %658, %659 : vector<4x24xf32>
    %661 = arith.addf %655, %660 : vector<4x24xf32>
    %662 = vector.extract_strided_slice %648 {offsets = [0, 2], sizes = [4, 1], strides = [1, 1]} : vector<4x4xf32> to vector<4x1xf32>
    %663 = vector.extract_strided_slice %649 {offsets = [2, 0], sizes = [1, 24], strides = [1, 1]} : vector<4x24xf32> to vector<1x24xf32>
    %664 = vector.broadcast %662 : vector<4x1xf32> to vector<4x24xf32>
    %665 = vector.broadcast %663 : vector<1x24xf32> to vector<4x24xf32>
    %666 = arith.mulf %664, %665 : vector<4x24xf32>
    %667 = arith.addf %661, %666 : vector<4x24xf32>
    %668 = vector.extract_strided_slice %648 {offsets = [0, 3], sizes = [4, 1], strides = [1, 1]} : vector<4x4xf32> to vector<4x1xf32>
    %669 = vector.extract_strided_slice %649 {offsets = [3, 0], sizes = [1, 24], strides = [1, 1]} : vector<4x24xf32> to vector<1x24xf32>
    %670 = vector.broadcast %668 : vector<4x1xf32> to vector<4x24xf32>
    %671 = vector.broadcast %669 : vector<1x24xf32> to vector<4x24xf32>
    %672 = arith.mulf %670, %671 : vector<4x24xf32>
    %673 = arith.addf %667, %672 : vector<4x24xf32>
    %674 = vector.extract_strided_slice %528 {offsets = [0, 8], sizes = [4, 24], strides = [1, 1]} : vector<4x42xbf16> to vector<4x24xbf16>
    %c23 = arith.constant 23 : index
    %c0_58 = arith.constant 0 : index
    %c0_59 = arith.constant 0 : index
    %675 = vector.load %arg5[%c23, %c0_58, %c0_59] : memref<27x4x4xbf16, #tpu.memory_space<vmem>>, vector<1x4x4xbf16>
    %676 = vector.shape_cast %675 : vector<1x4x4xbf16> to vector<4x4xbf16>
    %677 = arith.extf %676 : vector<4x4xbf16> to vector<4x4xf32>
    %678 = arith.extf %674 : vector<4x24xbf16> to vector<4x24xf32>
    %679 = vector.extract_strided_slice %677 {offsets = [0, 0], sizes = [4, 1], strides = [1, 1]} : vector<4x4xf32> to vector<4x1xf32>
    %680 = vector.extract_strided_slice %678 {offsets = [0, 0], sizes = [1, 24], strides = [1, 1]} : vector<4x24xf32> to vector<1x24xf32>
    %681 = vector.broadcast %679 : vector<4x1xf32> to vector<4x24xf32>
    %682 = vector.broadcast %680 : vector<1x24xf32> to vector<4x24xf32>
    %683 = arith.mulf %681, %682 : vector<4x24xf32>
    %684 = arith.addf %673, %683 : vector<4x24xf32>
    %685 = vector.extract_strided_slice %677 {offsets = [0, 1], sizes = [4, 1], strides = [1, 1]} : vector<4x4xf32> to vector<4x1xf32>
    %686 = vector.extract_strided_slice %678 {offsets = [1, 0], sizes = [1, 24], strides = [1, 1]} : vector<4x24xf32> to vector<1x24xf32>
    %687 = vector.broadcast %685 : vector<4x1xf32> to vector<4x24xf32>
    %688 = vector.broadcast %686 : vector<1x24xf32> to vector<4x24xf32>
    %689 = arith.mulf %687, %688 : vector<4x24xf32>
    %690 = arith.addf %684, %689 : vector<4x24xf32>
    %691 = vector.extract_strided_slice %677 {offsets = [0, 2], sizes = [4, 1], strides = [1, 1]} : vector<4x4xf32> to vector<4x1xf32>
    %692 = vector.extract_strided_slice %678 {offsets = [2, 0], sizes = [1, 24], strides = [1, 1]} : vector<4x24xf32> to vector<1x24xf32>
    %693 = vector.broadcast %691 : vector<4x1xf32> to vector<4x24xf32>
    %694 = vector.broadcast %692 : vector<1x24xf32> to vector<4x24xf32>
    %695 = arith.mulf %693, %694 : vector<4x24xf32>
    %696 = arith.addf %690, %695 : vector<4x24xf32>
    %697 = vector.extract_strided_slice %677 {offsets = [0, 3], sizes = [4, 1], strides = [1, 1]} : vector<4x4xf32> to vector<4x1xf32>
    %698 = vector.extract_strided_slice %678 {offsets = [3, 0], sizes = [1, 24], strides = [1, 1]} : vector<4x24xf32> to vector<1x24xf32>
    %699 = vector.broadcast %697 : vector<4x1xf32> to vector<4x24xf32>
    %700 = vector.broadcast %698 : vector<1x24xf32> to vector<4x24xf32>
    %701 = arith.mulf %699, %700 : vector<4x24xf32>
    %702 = arith.addf %696, %701 : vector<4x24xf32>
    %703 = vector.extract_strided_slice %528 {offsets = [0, 12], sizes = [4, 24], strides = [1, 1]} : vector<4x42xbf16> to vector<4x24xbf16>
    %c24 = arith.constant 24 : index
    %c0_60 = arith.constant 0 : index
    %c0_61 = arith.constant 0 : index
    %704 = vector.load %arg5[%c24, %c0_60, %c0_61] : memref<27x4x4xbf16, #tpu.memory_space<vmem>>, vector<1x4x4xbf16>
    %705 = vector.shape_cast %704 : vector<1x4x4xbf16> to vector<4x4xbf16>
    %706 = arith.extf %705 : vector<4x4xbf16> to vector<4x4xf32>
    %707 = arith.extf %703 : vector<4x24xbf16> to vector<4x24xf32>
    %708 = vector.extract_strided_slice %706 {offsets = [0, 0], sizes = [4, 1], strides = [1, 1]} : vector<4x4xf32> to vector<4x1xf32>
    %709 = vector.extract_strided_slice %707 {offsets = [0, 0], sizes = [1, 24], strides = [1, 1]} : vector<4x24xf32> to vector<1x24xf32>
    %710 = vector.broadcast %708 : vector<4x1xf32> to vector<4x24xf32>
    %711 = vector.broadcast %709 : vector<1x24xf32> to vector<4x24xf32>
    %712 = arith.mulf %710, %711 : vector<4x24xf32>
    %713 = arith.addf %702, %712 : vector<4x24xf32>
    %714 = vector.extract_strided_slice %706 {offsets = [0, 1], sizes = [4, 1], strides = [1, 1]} : vector<4x4xf32> to vector<4x1xf32>
    %715 = vector.extract_strided_slice %707 {offsets = [1, 0], sizes = [1, 24], strides = [1, 1]} : vector<4x24xf32> to vector<1x24xf32>
    %716 = vector.broadcast %714 : vector<4x1xf32> to vector<4x24xf32>
    %717 = vector.broadcast %715 : vector<1x24xf32> to vector<4x24xf32>
    %718 = arith.mulf %716, %717 : vector<4x24xf32>
    %719 = arith.addf %713, %718 : vector<4x24xf32>
    %720 = vector.extract_strided_slice %706 {offsets = [0, 2], sizes = [4, 1], strides = [1, 1]} : vector<4x4xf32> to vector<4x1xf32>
    %721 = vector.extract_strided_slice %707 {offsets = [2, 0], sizes = [1, 24], strides = [1, 1]} : vector<4x24xf32> to vector<1x24xf32>
    %722 = vector.broadcast %720 : vector<4x1xf32> to vector<4x24xf32>
    %723 = vector.broadcast %721 : vector<1x24xf32> to vector<4x24xf32>
    %724 = arith.mulf %722, %723 : vector<4x24xf32>
    %725 = arith.addf %719, %724 : vector<4x24xf32>
    %726 = vector.extract_strided_slice %706 {offsets = [0, 3], sizes = [4, 1], strides = [1, 1]} : vector<4x4xf32> to vector<4x1xf32>
    %727 = vector.extract_strided_slice %707 {offsets = [3, 0], sizes = [1, 24], strides = [1, 1]} : vector<4x24xf32> to vector<1x24xf32>
    %728 = vector.broadcast %726 : vector<4x1xf32> to vector<4x24xf32>
    %729 = vector.broadcast %727 : vector<1x24xf32> to vector<4x24xf32>
    %730 = arith.mulf %728, %729 : vector<4x24xf32>
    %731 = arith.addf %725, %730 : vector<4x24xf32>
    %732 = vector.extract_strided_slice %528 {offsets = [0, 13], sizes = [4, 24], strides = [1, 1]} : vector<4x42xbf16> to vector<4x24xbf16>
    %c25 = arith.constant 25 : index
    %c0_62 = arith.constant 0 : index
    %c0_63 = arith.constant 0 : index
    %733 = vector.load %arg5[%c25, %c0_62, %c0_63] : memref<27x4x4xbf16, #tpu.memory_space<vmem>>, vector<1x4x4xbf16>
    %734 = vector.shape_cast %733 : vector<1x4x4xbf16> to vector<4x4xbf16>
    %735 = arith.extf %734 : vector<4x4xbf16> to vector<4x4xf32>
    %736 = arith.extf %732 : vector<4x24xbf16> to vector<4x24xf32>
    %737 = vector.extract_strided_slice %735 {offsets = [0, 0], sizes = [4, 1], strides = [1, 1]} : vector<4x4xf32> to vector<4x1xf32>
    %738 = vector.extract_strided_slice %736 {offsets = [0, 0], sizes = [1, 24], strides = [1, 1]} : vector<4x24xf32> to vector<1x24xf32>
    %739 = vector.broadcast %737 : vector<4x1xf32> to vector<4x24xf32>
    %740 = vector.broadcast %738 : vector<1x24xf32> to vector<4x24xf32>
    %741 = arith.mulf %739, %740 : vector<4x24xf32>
    %742 = arith.addf %731, %741 : vector<4x24xf32>
    %743 = vector.extract_strided_slice %735 {offsets = [0, 1], sizes = [4, 1], strides = [1, 1]} : vector<4x4xf32> to vector<4x1xf32>
    %744 = vector.extract_strided_slice %736 {offsets = [1, 0], sizes = [1, 24], strides = [1, 1]} : vector<4x24xf32> to vector<1x24xf32>
    %745 = vector.broadcast %743 : vector<4x1xf32> to vector<4x24xf32>
    %746 = vector.broadcast %744 : vector<1x24xf32> to vector<4x24xf32>
    %747 = arith.mulf %745, %746 : vector<4x24xf32>
    %748 = arith.addf %742, %747 : vector<4x24xf32>
    %749 = vector.extract_strided_slice %735 {offsets = [0, 2], sizes = [4, 1], strides = [1, 1]} : vector<4x4xf32> to vector<4x1xf32>
    %750 = vector.extract_strided_slice %736 {offsets = [2, 0], sizes = [1, 24], strides = [1, 1]} : vector<4x24xf32> to vector<1x24xf32>
    %751 = vector.broadcast %749 : vector<4x1xf32> to vector<4x24xf32>
    %752 = vector.broadcast %750 : vector<1x24xf32> to vector<4x24xf32>
    %753 = arith.mulf %751, %752 : vector<4x24xf32>
    %754 = arith.addf %748, %753 : vector<4x24xf32>
    %755 = vector.extract_strided_slice %735 {offsets = [0, 3], sizes = [4, 1], strides = [1, 1]} : vector<4x4xf32> to vector<4x1xf32>
    %756 = vector.extract_strided_slice %736 {offsets = [3, 0], sizes = [1, 24], strides = [1, 1]} : vector<4x24xf32> to vector<1x24xf32>
    %757 = vector.broadcast %755 : vector<4x1xf32> to vector<4x24xf32>
    %758 = vector.broadcast %756 : vector<1x24xf32> to vector<4x24xf32>
    %759 = arith.mulf %757, %758 : vector<4x24xf32>
    %760 = arith.addf %754, %759 : vector<4x24xf32>
    %761 = vector.extract_strided_slice %528 {offsets = [0, 14], sizes = [4, 24], strides = [1, 1]} : vector<4x42xbf16> to vector<4x24xbf16>
    %c26 = arith.constant 26 : index
    %c0_64 = arith.constant 0 : index
    %c0_65 = arith.constant 0 : index
    %762 = vector.load %arg5[%c26, %c0_64, %c0_65] : memref<27x4x4xbf16, #tpu.memory_space<vmem>>, vector<1x4x4xbf16>
    %763 = vector.shape_cast %762 : vector<1x4x4xbf16> to vector<4x4xbf16>
    %764 = arith.extf %763 : vector<4x4xbf16> to vector<4x4xf32>
    %765 = arith.extf %761 : vector<4x24xbf16> to vector<4x24xf32>
    %766 = vector.extract_strided_slice %764 {offsets = [0, 0], sizes = [4, 1], strides = [1, 1]} : vector<4x4xf32> to vector<4x1xf32>
    %767 = vector.extract_strided_slice %765 {offsets = [0, 0], sizes = [1, 24], strides = [1, 1]} : vector<4x24xf32> to vector<1x24xf32>
    %768 = vector.broadcast %766 : vector<4x1xf32> to vector<4x24xf32>
    %769 = vector.broadcast %767 : vector<1x24xf32> to vector<4x24xf32>
    %770 = arith.mulf %768, %769 : vector<4x24xf32>
    %771 = arith.addf %760, %770 : vector<4x24xf32>
    %772 = vector.extract_strided_slice %764 {offsets = [0, 1], sizes = [4, 1], strides = [1, 1]} : vector<4x4xf32> to vector<4x1xf32>
    %773 = vector.extract_strided_slice %765 {offsets = [1, 0], sizes = [1, 24], strides = [1, 1]} : vector<4x24xf32> to vector<1x24xf32>
    %774 = vector.broadcast %772 : vector<4x1xf32> to vector<4x24xf32>
    %775 = vector.broadcast %773 : vector<1x24xf32> to vector<4x24xf32>
    %776 = arith.mulf %774, %775 : vector<4x24xf32>
    %777 = arith.addf %771, %776 : vector<4x24xf32>
    %778 = vector.extract_strided_slice %764 {offsets = [0, 2], sizes = [4, 1], strides = [1, 1]} : vector<4x4xf32> to vector<4x1xf32>
    %779 = vector.extract_strided_slice %765 {offsets = [2, 0], sizes = [1, 24], strides = [1, 1]} : vector<4x24xf32> to vector<1x24xf32>
    %780 = vector.broadcast %778 : vector<4x1xf32> to vector<4x24xf32>
    %781 = vector.broadcast %779 : vector<1x24xf32> to vector<4x24xf32>
    %782 = arith.mulf %780, %781 : vector<4x24xf32>
    %783 = arith.addf %777, %782 : vector<4x24xf32>
    %784 = vector.extract_strided_slice %764 {offsets = [0, 3], sizes = [4, 1], strides = [1, 1]} : vector<4x4xf32> to vector<4x1xf32>
    %785 = vector.extract_strided_slice %765 {offsets = [3, 0], sizes = [1, 24], strides = [1, 1]} : vector<4x24xf32> to vector<1x24xf32>
    %786 = vector.broadcast %784 : vector<4x1xf32> to vector<4x24xf32>
    %787 = vector.broadcast %785 : vector<1x24xf32> to vector<4x24xf32>
    %788 = arith.mulf %786, %787 : vector<4x24xf32>
    %789 = arith.addf %783, %788 : vector<4x24xf32>
    %c0_66 = arith.constant 0 : index
    %c0_67 = arith.constant 0 : index
    %790 = vector.load %arg6[%c0_66, %c0_67] : memref<1x24xf32, #tpu.memory_space<vmem>>, vector<1x24xf32>
    %791 = vector.broadcast %790 : vector<1x24xf32> to vector<4x24xf32>
    %792 = arith.mulf %789, %791 : vector<4x24xf32>
    %cst_68 = arith.constant dense<0.000000e+00> : vector<4xf32>
    %793 = vector.multi_reduction <add>, %792, %cst_68 [1] : vector<4x24xf32> to vector<4xf32>
    %794 = vector.shape_cast %793 : vector<4xf32> to vector<4x1xf32>
    %c0_69 = arith.constant 0 : index
    %c0_70 = arith.constant 0 : index
    %c0_71 = arith.constant 0 : index
    %c0_72 = arith.constant 0 : index
    %795 = vector.load %arg8[%c0_69, %c0_70, %c0_71, %c0_72] : memref<1x1x4x1xf32, #tpu.memory_space<vmem>>, vector<1x1x4x1xf32>
    %796 = vector.shape_cast %795 : vector<1x1x4x1xf32> to vector<4x1xf32>
    %797 = vector.shape_cast %794 : vector<4x1xf32> to vector<1x1x4x1xf32>
    tpu.vector_store %arg8[%c0_69, %c0_70, %c0_71, %c0_72], %797 {strides = array<i32>} : memref<1x1x4x1xf32, #tpu.memory_space<vmem>>, vector<1x1x4x1xf32>,
    %798 = arith.mulf %792, %789 : vector<4x24xf32>
    %cst_73 = arith.constant dense<0.000000e+00> : vector<4xf32>
    %799 = vector.multi_reduction <add>, %798, %cst_73 [1] : vector<4x24xf32> to vector<4xf32>
    %800 = vector.shape_cast %799 : vector<4xf32> to vector<4x1xf32>
    %c0_74 = arith.constant 0 : index
    %c0_75 = arith.constant 0 : index
    %c0_76 = arith.constant 0 : index
    %c0_77 = arith.constant 0 : index
    %801 = vector.load %arg9[%c0_74, %c0_75, %c0_76, %c0_77] : memref<1x1x4x1xf32, #tpu.memory_space<vmem>>, vector<1x1x4x1xf32>
    %802 = vector.shape_cast %801 : vector<1x1x4x1xf32> to vector<4x1xf32>
    %803 = vector.shape_cast %800 : vector<4x1xf32> to vector<1x1x4x1xf32>
    tpu.vector_store %arg9[%c0_74, %c0_75, %c0_76, %c0_77], %803 {strides = array<i32>} : memref<1x1x4x1xf32, #tpu.memory_space<vmem>>, vector<1x1x4x1xf32>,
    %804 = arith.truncf %789 : vector<4x24xf32> to vector<4x24xbf16>
    %c0_78 = arith.constant 0 : index
    %c0_79 = arith.constant 0 : index
    %c0_80 = arith.constant 0 : index
    %c0_81 = arith.constant 0 : index
    %805 = vector.load %arg7[%c0_78, %c0_79, %c0_80, %c0_81] : memref<1x1x4x24xbf16, #tpu.memory_space<vmem>>, vector<1x1x4x24xbf16>
    %806 = vector.shape_cast %805 : vector<1x1x4x24xbf16> to vector<4x24xbf16>
    %807 = vector.shape_cast %804 : vector<4x24xbf16> to vector<1x1x4x24xbf16>
    tpu.vector_store %arg7[%c0_78, %c0_79, %c0_80, %c0_81], %807 {strides = array<i32>} : memref<1x1x4x24xbf16, #tpu.memory_space<vmem>>, vector<1x1x4x24xbf16>,
    return
  }
  func.func @transform_0(%arg0: i32, %arg1: i32) -> (i32, i32, i32, i32) {
    %c0_i32 = arith.constant 0 : i32
    %0 = arith.addi %arg1, %c0_i32 : i32
    %c0_i32_0 = arith.constant 0 : i32
    %c0_i32_1 = arith.constant 0 : i32
    %c0_i32_2 = arith.constant 0 : i32
    return %arg0, %0, %c0_i32_0, %c0_i32_1 : i32, i32, i32, i32
  }
  func.func @transform_1(%arg0: i32, %arg1: i32) -> (i32, i32, i32, i32) {
    %c1_i32 = arith.constant 1 : i32
    %0 = arith.addi %arg1, %c1_i32 : i32
    %c0_i32 = arith.constant 0 : i32
    %c0_i32_0 = arith.constant 0 : i32
    %c0_i32_1 = arith.constant 0 : i32
    return %arg0, %0, %c0_i32, %c0_i32_0 : i32, i32, i32, i32
  }
  func.func @transform_2(%arg0: i32, %arg1: i32) -> (i32, i32, i32, i32) {
    %c2_i32 = arith.constant 2 : i32
    %0 = arith.addi %arg1, %c2_i32 : i32
    %c0_i32 = arith.constant 0 : i32
    %c0_i32_0 = arith.constant 0 : i32
    %c0_i32_1 = arith.constant 0 : i32
    return %arg0, %0, %c0_i32, %c0_i32_0 : i32, i32, i32, i32
  }
  func.func @transform_3(%arg0: i32, %arg1: i32) -> (i32, i32, i32) {
    %c0_i32 = arith.constant 0 : i32
    %c0_i32_0 = arith.constant 0 : i32
    %c0_i32_1 = arith.constant 0 : i32
    %c0_i32_2 = arith.constant 0 : i32
    return %c0_i32, %c0_i32_0, %c0_i32_1 : i32, i32, i32
  }
  func.func @transform_4(%arg0: i32, %arg1: i32) -> (i32, i32) {
    %c0_i32 = arith.constant 0 : i32
    %c0_i32_0 = arith.constant 0 : i32
    %c0_i32_1 = arith.constant 0 : i32
    return %c0_i32, %c0_i32_0 : i32, i32
  }
  func.func @transform_5(%arg0: i32, %arg1: i32) -> (i32, i32, i32, i32) {
    %c0_i32 = arith.constant 0 : i32
    %c0_i32_0 = arith.constant 0 : i32
    %c0_i32_1 = arith.constant 0 : i32
    return %arg0, %arg1, %c0_i32, %c0_i32_0 : i32, i32, i32, i32
  }
  func.func @transform_6(%arg0: i32, %arg1: i32) -> (i32, i32, i32, i32) {
    %c0_i32 = arith.constant 0 : i32
    %c0_i32_0 = arith.constant 0 : i32
    %c0_i32_1 = arith.constant 0 : i32
    return %arg0, %arg1, %c0_i32, %c0_i32_0 : i32, i32, i32, i32
  }
  func.func @transform_7(%arg0: i32, %arg1: i32) -> (i32, i32, i32, i32) {
    %c0_i32 = arith.constant 0 : i32
    %c0_i32_0 = arith.constant 0 : i32
    %c0_i32_1 = arith.constant 0 : i32
    return %arg0, %arg1, %c0_i32, %c0_i32_0 : i32, i32, i32, i32
  }
}

module attributes {stable_mosaic.version = 11 : i64} {
  func.func @_deup_kernel(%arg0: i32, %arg1: i32, %arg2: memref<1x1x20x16xbf16, #tpu.memory_space<vmem>>, %arg3: memref<16x20xbf16, #tpu.memory_space<vmem>>, %arg4: memref<16x1xf32, #tpu.memory_space<vmem>>, %arg5: memref<1x1x16x16xbf16, #tpu.memory_space<vmem>>) attributes {dimension_semantics = [#tpu.dimension_semantics<parallel>, #tpu.dimension_semantics<parallel>], iteration_bounds = array<i64: 2, 4>, scalar_prefetch = 0 : i64, scratch_operands = 0 : i64, tpu.core_type = #tpu.core_type<tc>, window_params = [{transform_indices = @transform_0, window_bounds = array<i64: 1, 1, 20, 16>}, {pipeline_mode = #tpu.pipeline_mode<synchronous>, transform_indices = @transform_1, window_bounds = array<i64: 16, 20>}, {pipeline_mode = #tpu.pipeline_mode<synchronous>, transform_indices = @transform_2, window_bounds = array<i64: 16, 1>}, {transform_indices = @transform_3, window_bounds = array<i64: 1, 1, 16, 16>}]} {
    %c0 = arith.constant 0 : index
    %c0_0 = arith.constant 0 : index
    %0 = vector.load %arg3[%c0, %c0_0] : memref<16x20xbf16, #tpu.memory_space<vmem>>, vector<16x20xbf16>
    %c0_1 = arith.constant 0 : index
    %c0_2 = arith.constant 0 : index
    %c0_3 = arith.constant 0 : index
    %c0_4 = arith.constant 0 : index
    %1 = vector.load %arg2[%c0_1, %c0_2, %c0_3, %c0_4] : memref<1x1x20x16xbf16, #tpu.memory_space<vmem>>, vector<1x1x20x16xbf16>
    %2 = vector.shape_cast %1 : vector<1x1x20x16xbf16> to vector<20x16xbf16>
    %cst = arith.constant dense<0.000000e+00> : vector<16x16xf32>
    %3 = tpu.matmul %0, %2, %cst {dimension_numbers = #tpu.dot_dimension_numbers<[1], [0], [0], [1], [0, 0, 1, 1], [], []>} : vector<16x20xbf16>, vector<20x16xbf16>, vector<16x16xf32> -> vector<16x16xf32>
    %c0_5 = arith.constant 0 : index
    %c0_6 = arith.constant 0 : index
    %4 = vector.load %arg4[%c0_5, %c0_6] : memref<16x1xf32, #tpu.memory_space<vmem>>, vector<16x1xf32>
    %5 = vector.broadcast %4 : vector<16x1xf32> to vector<16x16xf32>
    %6 = arith.addf %3, %5 : vector<16x16xf32>
    %7 = arith.truncf %6 : vector<16x16xf32> to vector<16x16xbf16>
    %c0_7 = arith.constant 0 : index
    %c0_8 = arith.constant 0 : index
    %c0_9 = arith.constant 0 : index
    %c0_10 = arith.constant 0 : index
    %8 = vector.load %arg5[%c0_7, %c0_8, %c0_9, %c0_10] : memref<1x1x16x16xbf16, #tpu.memory_space<vmem>>, vector<1x1x16x16xbf16>
    %9 = vector.shape_cast %8 : vector<1x1x16x16xbf16> to vector<16x16xbf16>
    %10 = vector.shape_cast %7 : vector<16x16xbf16> to vector<1x1x16x16xbf16>
    tpu.vector_store %arg5[%c0_7, %c0_8, %c0_9, %c0_10], %10 {strides = array<i32>} : memref<1x1x16x16xbf16, #tpu.memory_space<vmem>>, vector<1x1x16x16xbf16>,
    return
  }
  func.func @transform_0(%arg0: i32, %arg1: i32) -> (i32, i32, i32, i32) {
    %c0_i32 = arith.constant 0 : i32
    %c0_i32_0 = arith.constant 0 : i32
    %c0_i32_1 = arith.constant 0 : i32
    return %arg0, %arg1, %c0_i32, %c0_i32_0 : i32, i32, i32, i32
  }
  func.func @transform_1(%arg0: i32, %arg1: i32) -> (i32, i32) {
    %c0_i32 = arith.constant 0 : i32
    %c0_i32_0 = arith.constant 0 : i32
    %c0_i32_1 = arith.constant 0 : i32
    return %c0_i32, %c0_i32_0 : i32, i32
  }
  func.func @transform_2(%arg0: i32, %arg1: i32) -> (i32, i32) {
    %c0_i32 = arith.constant 0 : i32
    %c0_i32_0 = arith.constant 0 : i32
    %c0_i32_1 = arith.constant 0 : i32
    return %c0_i32, %c0_i32_0 : i32, i32
  }
  func.func @transform_3(%arg0: i32, %arg1: i32) -> (i32, i32, i32, i32) {
    %c0_i32 = arith.constant 0 : i32
    %c0_i32_0 = arith.constant 0 : i32
    %c0_i32_1 = arith.constant 0 : i32
    return %arg0, %arg1, %c0_i32, %c0_i32_0 : i32, i32, i32, i32
  }
}

module attributes {stable_mosaic.version = 11 : i64} {
  func.func @_conv3x3_kernel(%arg0: i32, %arg1: i32, %arg2: memref<1x1x2x110xbf16, #tpu.memory_space<vmem>>, %arg3: memref<1x1x2x110xbf16, #tpu.memory_space<vmem>>, %arg4: memref<1x1x2x110xbf16, #tpu.memory_space<vmem>>, %arg5: memref<27x2x2xbf16, #tpu.memory_space<vmem>>, %arg6: memref<1x80xf32, #tpu.memory_space<vmem>>, %arg7: memref<1x1x2x80xbf16, #tpu.memory_space<vmem>>, %arg8: memref<1x1x2x1xf32, #tpu.memory_space<vmem>>, %arg9: memref<1x1x2x1xf32, #tpu.memory_space<vmem>>) attributes {dimension_semantics = [#tpu.dimension_semantics<parallel>, #tpu.dimension_semantics<parallel>], iteration_bounds = array<i64: 2, 8>, scalar_prefetch = 0 : i64, scratch_operands = 0 : i64, tpu.core_type = #tpu.core_type<tc>, window_params = [{transform_indices = @transform_0, window_bounds = array<i64: 1, 1, 2, 110>}, {transform_indices = @transform_1, window_bounds = array<i64: 1, 1, 2, 110>}, {transform_indices = @transform_2, window_bounds = array<i64: 1, 1, 2, 110>}, {pipeline_mode = #tpu.pipeline_mode<synchronous>, transform_indices = @transform_3, window_bounds = array<i64: 27, 2, 2>}, {pipeline_mode = #tpu.pipeline_mode<synchronous>, transform_indices = @transform_4, window_bounds = array<i64: 1, 80>}, {transform_indices = @transform_5, window_bounds = array<i64: 1, 1, 2, 80>}, {transform_indices = @transform_6, window_bounds = array<i64: 1, 1, 2, 1>}, {transform_indices = @transform_7, window_bounds = array<i64: 1, 1, 2, 1>}]} {
    %cst = arith.constant 0.000000e+00 : f32
    %0 = vector.broadcast %cst : f32 to vector<2x80xf32>
    %c0 = arith.constant 0 : index
    %c0_0 = arith.constant 0 : index
    %c0_1 = arith.constant 0 : index
    %c0_2 = arith.constant 0 : index
    %1 = vector.load %arg2[%c0, %c0_0, %c0_1, %c0_2] : memref<1x1x2x110xbf16, #tpu.memory_space<vmem>>, vector<1x1x2x110xbf16>
    %2 = vector.shape_cast %1 : vector<1x1x2x110xbf16> to vector<2x110xbf16>
    %3 = vector.extract_strided_slice %2 {offsets = [0, 0], sizes = [2, 80], strides = [1, 1]} : vector<2x110xbf16> to vector<2x80xbf16>
    %c0_3 = arith.constant 0 : index
    %c0_4 = arith.constant 0 : index
    %c0_5 = arith.constant 0 : index
    %4 = vector.load %arg5[%c0_3, %c0_4, %c0_5] : memref<27x2x2xbf16, #tpu.memory_space<vmem>>, vector<1x2x2xbf16>
    %5 = vector.shape_cast %4 : vector<1x2x2xbf16> to vector<2x2xbf16>
    %6 = arith.extf %5 : vector<2x2xbf16> to vector<2x2xf32>
    %7 = arith.extf %3 : vector<2x80xbf16> to vector<2x80xf32>
    %8 = vector.extract_strided_slice %6 {offsets = [0, 0], sizes = [2, 1], strides = [1, 1]} : vector<2x2xf32> to vector<2x1xf32>
    %9 = vector.extract_strided_slice %7 {offsets = [0, 0], sizes = [1, 80], strides = [1, 1]} : vector<2x80xf32> to vector<1x80xf32>
    %10 = vector.broadcast %8 : vector<2x1xf32> to vector<2x80xf32>
    %11 = vector.broadcast %9 : vector<1x80xf32> to vector<2x80xf32>
    %12 = arith.mulf %10, %11 : vector<2x80xf32>
    %13 = arith.addf %0, %12 : vector<2x80xf32>
    %14 = vector.extract_strided_slice %6 {offsets = [0, 1], sizes = [2, 1], strides = [1, 1]} : vector<2x2xf32> to vector<2x1xf32>
    %15 = vector.extract_strided_slice %7 {offsets = [1, 0], sizes = [1, 80], strides = [1, 1]} : vector<2x80xf32> to vector<1x80xf32>
    %16 = vector.broadcast %14 : vector<2x1xf32> to vector<2x80xf32>
    %17 = vector.broadcast %15 : vector<1x80xf32> to vector<2x80xf32>
    %18 = arith.mulf %16, %17 : vector<2x80xf32>
    %19 = arith.addf %13, %18 : vector<2x80xf32>
    %20 = vector.extract_strided_slice %2 {offsets = [0, 1], sizes = [2, 80], strides = [1, 1]} : vector<2x110xbf16> to vector<2x80xbf16>
    %c1 = arith.constant 1 : index
    %c0_6 = arith.constant 0 : index
    %c0_7 = arith.constant 0 : index
    %21 = vector.load %arg5[%c1, %c0_6, %c0_7] : memref<27x2x2xbf16, #tpu.memory_space<vmem>>, vector<1x2x2xbf16>
    %22 = vector.shape_cast %21 : vector<1x2x2xbf16> to vector<2x2xbf16>
    %23 = arith.extf %22 : vector<2x2xbf16> to vector<2x2xf32>
    %24 = arith.extf %20 : vector<2x80xbf16> to vector<2x80xf32>
    %25 = vector.extract_strided_slice %23 {offsets = [0, 0], sizes = [2, 1], strides = [1, 1]} : vector<2x2xf32> to vector<2x1xf32>
    %26 = vector.extract_strided_slice %24 {offsets = [0, 0], sizes = [1, 80], strides = [1, 1]} : vector<2x80xf32> to vector<1x80xf32>
    %27 = vector.broadcast %25 : vector<2x1xf32> to vector<2x80xf32>
    %28 = vector.broadcast %26 : vector<1x80xf32> to vector<2x80xf32>
    %29 = arith.mulf %27, %28 : vector<2x80xf32>
    %30 = arith.addf %19, %29 : vector<2x80xf32>
    %31 = vector.extract_strided_slice %23 {offsets = [0, 1], sizes = [2, 1], strides = [1, 1]} : vector<2x2xf32> to vector<2x1xf32>
    %32 = vector.extract_strided_slice %24 {offsets = [1, 0], sizes = [1, 80], strides = [1, 1]} : vector<2x80xf32> to vector<1x80xf32>
    %33 = vector.broadcast %31 : vector<2x1xf32> to vector<2x80xf32>
    %34 = vector.broadcast %32 : vector<1x80xf32> to vector<2x80xf32>
    %35 = arith.mulf %33, %34 : vector<2x80xf32>
    %36 = arith.addf %30, %35 : vector<2x80xf32>
    %37 = vector.extract_strided_slice %2 {offsets = [0, 2], sizes = [2, 80], strides = [1, 1]} : vector<2x110xbf16> to vector<2x80xbf16>
    %c2 = arith.constant 2 : index
    %c0_8 = arith.constant 0 : index
    %c0_9 = arith.constant 0 : index
    %38 = vector.load %arg5[%c2, %c0_8, %c0_9] : memref<27x2x2xbf16, #tpu.memory_space<vmem>>, vector<1x2x2xbf16>
    %39 = vector.shape_cast %38 : vector<1x2x2xbf16> to vector<2x2xbf16>
    %40 = arith.extf %39 : vector<2x2xbf16> to vector<2x2xf32>
    %41 = arith.extf %37 : vector<2x80xbf16> to vector<2x80xf32>
    %42 = vector.extract_strided_slice %40 {offsets = [0, 0], sizes = [2, 1], strides = [1, 1]} : vector<2x2xf32> to vector<2x1xf32>
    %43 = vector.extract_strided_slice %41 {offsets = [0, 0], sizes = [1, 80], strides = [1, 1]} : vector<2x80xf32> to vector<1x80xf32>
    %44 = vector.broadcast %42 : vector<2x1xf32> to vector<2x80xf32>
    %45 = vector.broadcast %43 : vector<1x80xf32> to vector<2x80xf32>
    %46 = arith.mulf %44, %45 : vector<2x80xf32>
    %47 = arith.addf %36, %46 : vector<2x80xf32>
    %48 = vector.extract_strided_slice %40 {offsets = [0, 1], sizes = [2, 1], strides = [1, 1]} : vector<2x2xf32> to vector<2x1xf32>
    %49 = vector.extract_strided_slice %41 {offsets = [1, 0], sizes = [1, 80], strides = [1, 1]} : vector<2x80xf32> to vector<1x80xf32>
    %50 = vector.broadcast %48 : vector<2x1xf32> to vector<2x80xf32>
    %51 = vector.broadcast %49 : vector<1x80xf32> to vector<2x80xf32>
    %52 = arith.mulf %50, %51 : vector<2x80xf32>
    %53 = arith.addf %47, %52 : vector<2x80xf32>
    %54 = vector.extract_strided_slice %2 {offsets = [0, 10], sizes = [2, 80], strides = [1, 1]} : vector<2x110xbf16> to vector<2x80xbf16>
    %c3 = arith.constant 3 : index
    %c0_10 = arith.constant 0 : index
    %c0_11 = arith.constant 0 : index
    %55 = vector.load %arg5[%c3, %c0_10, %c0_11] : memref<27x2x2xbf16, #tpu.memory_space<vmem>>, vector<1x2x2xbf16>
    %56 = vector.shape_cast %55 : vector<1x2x2xbf16> to vector<2x2xbf16>
    %57 = arith.extf %56 : vector<2x2xbf16> to vector<2x2xf32>
    %58 = arith.extf %54 : vector<2x80xbf16> to vector<2x80xf32>
    %59 = vector.extract_strided_slice %57 {offsets = [0, 0], sizes = [2, 1], strides = [1, 1]} : vector<2x2xf32> to vector<2x1xf32>
    %60 = vector.extract_strided_slice %58 {offsets = [0, 0], sizes = [1, 80], strides = [1, 1]} : vector<2x80xf32> to vector<1x80xf32>
    %61 = vector.broadcast %59 : vector<2x1xf32> to vector<2x80xf32>
    %62 = vector.broadcast %60 : vector<1x80xf32> to vector<2x80xf32>
    %63 = arith.mulf %61, %62 : vector<2x80xf32>
    %64 = arith.addf %53, %63 : vector<2x80xf32>
    %65 = vector.extract_strided_slice %57 {offsets = [0, 1], sizes = [2, 1], strides = [1, 1]} : vector<2x2xf32> to vector<2x1xf32>
    %66 = vector.extract_strided_slice %58 {offsets = [1, 0], sizes = [1, 80], strides = [1, 1]} : vector<2x80xf32> to vector<1x80xf32>
    %67 = vector.broadcast %65 : vector<2x1xf32> to vector<2x80xf32>
    %68 = vector.broadcast %66 : vector<1x80xf32> to vector<2x80xf32>
    %69 = arith.mulf %67, %68 : vector<2x80xf32>
    %70 = arith.addf %64, %69 : vector<2x80xf32>
    %71 = vector.extract_strided_slice %2 {offsets = [0, 11], sizes = [2, 80], strides = [1, 1]} : vector<2x110xbf16> to vector<2x80xbf16>
    %c4 = arith.constant 4 : index
    %c0_12 = arith.constant 0 : index
    %c0_13 = arith.constant 0 : index
    %72 = vector.load %arg5[%c4, %c0_12, %c0_13] : memref<27x2x2xbf16, #tpu.memory_space<vmem>>, vector<1x2x2xbf16>
    %73 = vector.shape_cast %72 : vector<1x2x2xbf16> to vector<2x2xbf16>
    %74 = arith.extf %73 : vector<2x2xbf16> to vector<2x2xf32>
    %75 = arith.extf %71 : vector<2x80xbf16> to vector<2x80xf32>
    %76 = vector.extract_strided_slice %74 {offsets = [0, 0], sizes = [2, 1], strides = [1, 1]} : vector<2x2xf32> to vector<2x1xf32>
    %77 = vector.extract_strided_slice %75 {offsets = [0, 0], sizes = [1, 80], strides = [1, 1]} : vector<2x80xf32> to vector<1x80xf32>
    %78 = vector.broadcast %76 : vector<2x1xf32> to vector<2x80xf32>
    %79 = vector.broadcast %77 : vector<1x80xf32> to vector<2x80xf32>
    %80 = arith.mulf %78, %79 : vector<2x80xf32>
    %81 = arith.addf %70, %80 : vector<2x80xf32>
    %82 = vector.extract_strided_slice %74 {offsets = [0, 1], sizes = [2, 1], strides = [1, 1]} : vector<2x2xf32> to vector<2x1xf32>
    %83 = vector.extract_strided_slice %75 {offsets = [1, 0], sizes = [1, 80], strides = [1, 1]} : vector<2x80xf32> to vector<1x80xf32>
    %84 = vector.broadcast %82 : vector<2x1xf32> to vector<2x80xf32>
    %85 = vector.broadcast %83 : vector<1x80xf32> to vector<2x80xf32>
    %86 = arith.mulf %84, %85 : vector<2x80xf32>
    %87 = arith.addf %81, %86 : vector<2x80xf32>
    %88 = vector.extract_strided_slice %2 {offsets = [0, 12], sizes = [2, 80], strides = [1, 1]} : vector<2x110xbf16> to vector<2x80xbf16>
    %c5 = arith.constant 5 : index
    %c0_14 = arith.constant 0 : index
    %c0_15 = arith.constant 0 : index
    %89 = vector.load %arg5[%c5, %c0_14, %c0_15] : memref<27x2x2xbf16, #tpu.memory_space<vmem>>, vector<1x2x2xbf16>
    %90 = vector.shape_cast %89 : vector<1x2x2xbf16> to vector<2x2xbf16>
    %91 = arith.extf %90 : vector<2x2xbf16> to vector<2x2xf32>
    %92 = arith.extf %88 : vector<2x80xbf16> to vector<2x80xf32>
    %93 = vector.extract_strided_slice %91 {offsets = [0, 0], sizes = [2, 1], strides = [1, 1]} : vector<2x2xf32> to vector<2x1xf32>
    %94 = vector.extract_strided_slice %92 {offsets = [0, 0], sizes = [1, 80], strides = [1, 1]} : vector<2x80xf32> to vector<1x80xf32>
    %95 = vector.broadcast %93 : vector<2x1xf32> to vector<2x80xf32>
    %96 = vector.broadcast %94 : vector<1x80xf32> to vector<2x80xf32>
    %97 = arith.mulf %95, %96 : vector<2x80xf32>
    %98 = arith.addf %87, %97 : vector<2x80xf32>
    %99 = vector.extract_strided_slice %91 {offsets = [0, 1], sizes = [2, 1], strides = [1, 1]} : vector<2x2xf32> to vector<2x1xf32>
    %100 = vector.extract_strided_slice %92 {offsets = [1, 0], sizes = [1, 80], strides = [1, 1]} : vector<2x80xf32> to vector<1x80xf32>
    %101 = vector.broadcast %99 : vector<2x1xf32> to vector<2x80xf32>
    %102 = vector.broadcast %100 : vector<1x80xf32> to vector<2x80xf32>
    %103 = arith.mulf %101, %102 : vector<2x80xf32>
    %104 = arith.addf %98, %103 : vector<2x80xf32>
    %105 = vector.extract_strided_slice %2 {offsets = [0, 20], sizes = [2, 80], strides = [1, 1]} : vector<2x110xbf16> to vector<2x80xbf16>
    %c6 = arith.constant 6 : index
    %c0_16 = arith.constant 0 : index
    %c0_17 = arith.constant 0 : index
    %106 = vector.load %arg5[%c6, %c0_16, %c0_17] : memref<27x2x2xbf16, #tpu.memory_space<vmem>>, vector<1x2x2xbf16>
    %107 = vector.shape_cast %106 : vector<1x2x2xbf16> to vector<2x2xbf16>
    %108 = arith.extf %107 : vector<2x2xbf16> to vector<2x2xf32>
    %109 = arith.extf %105 : vector<2x80xbf16> to vector<2x80xf32>
    %110 = vector.extract_strided_slice %108 {offsets = [0, 0], sizes = [2, 1], strides = [1, 1]} : vector<2x2xf32> to vector<2x1xf32>
    %111 = vector.extract_strided_slice %109 {offsets = [0, 0], sizes = [1, 80], strides = [1, 1]} : vector<2x80xf32> to vector<1x80xf32>
    %112 = vector.broadcast %110 : vector<2x1xf32> to vector<2x80xf32>
    %113 = vector.broadcast %111 : vector<1x80xf32> to vector<2x80xf32>
    %114 = arith.mulf %112, %113 : vector<2x80xf32>
    %115 = arith.addf %104, %114 : vector<2x80xf32>
    %116 = vector.extract_strided_slice %108 {offsets = [0, 1], sizes = [2, 1], strides = [1, 1]} : vector<2x2xf32> to vector<2x1xf32>
    %117 = vector.extract_strided_slice %109 {offsets = [1, 0], sizes = [1, 80], strides = [1, 1]} : vector<2x80xf32> to vector<1x80xf32>
    %118 = vector.broadcast %116 : vector<2x1xf32> to vector<2x80xf32>
    %119 = vector.broadcast %117 : vector<1x80xf32> to vector<2x80xf32>
    %120 = arith.mulf %118, %119 : vector<2x80xf32>
    %121 = arith.addf %115, %120 : vector<2x80xf32>
    %122 = vector.extract_strided_slice %2 {offsets = [0, 21], sizes = [2, 80], strides = [1, 1]} : vector<2x110xbf16> to vector<2x80xbf16>
    %c7 = arith.constant 7 : index
    %c0_18 = arith.constant 0 : index
    %c0_19 = arith.constant 0 : index
    %123 = vector.load %arg5[%c7, %c0_18, %c0_19] : memref<27x2x2xbf16, #tpu.memory_space<vmem>>, vector<1x2x2xbf16>
    %124 = vector.shape_cast %123 : vector<1x2x2xbf16> to vector<2x2xbf16>
    %125 = arith.extf %124 : vector<2x2xbf16> to vector<2x2xf32>
    %126 = arith.extf %122 : vector<2x80xbf16> to vector<2x80xf32>
    %127 = vector.extract_strided_slice %125 {offsets = [0, 0], sizes = [2, 1], strides = [1, 1]} : vector<2x2xf32> to vector<2x1xf32>
    %128 = vector.extract_strided_slice %126 {offsets = [0, 0], sizes = [1, 80], strides = [1, 1]} : vector<2x80xf32> to vector<1x80xf32>
    %129 = vector.broadcast %127 : vector<2x1xf32> to vector<2x80xf32>
    %130 = vector.broadcast %128 : vector<1x80xf32> to vector<2x80xf32>
    %131 = arith.mulf %129, %130 : vector<2x80xf32>
    %132 = arith.addf %121, %131 : vector<2x80xf32>
    %133 = vector.extract_strided_slice %125 {offsets = [0, 1], sizes = [2, 1], strides = [1, 1]} : vector<2x2xf32> to vector<2x1xf32>
    %134 = vector.extract_strided_slice %126 {offsets = [1, 0], sizes = [1, 80], strides = [1, 1]} : vector<2x80xf32> to vector<1x80xf32>
    %135 = vector.broadcast %133 : vector<2x1xf32> to vector<2x80xf32>
    %136 = vector.broadcast %134 : vector<1x80xf32> to vector<2x80xf32>
    %137 = arith.mulf %135, %136 : vector<2x80xf32>
    %138 = arith.addf %132, %137 : vector<2x80xf32>
    %139 = vector.extract_strided_slice %2 {offsets = [0, 22], sizes = [2, 80], strides = [1, 1]} : vector<2x110xbf16> to vector<2x80xbf16>
    %c8 = arith.constant 8 : index
    %c0_20 = arith.constant 0 : index
    %c0_21 = arith.constant 0 : index
    %140 = vector.load %arg5[%c8, %c0_20, %c0_21] : memref<27x2x2xbf16, #tpu.memory_space<vmem>>, vector<1x2x2xbf16>
    %141 = vector.shape_cast %140 : vector<1x2x2xbf16> to vector<2x2xbf16>
    %142 = arith.extf %141 : vector<2x2xbf16> to vector<2x2xf32>
    %143 = arith.extf %139 : vector<2x80xbf16> to vector<2x80xf32>
    %144 = vector.extract_strided_slice %142 {offsets = [0, 0], sizes = [2, 1], strides = [1, 1]} : vector<2x2xf32> to vector<2x1xf32>
    %145 = vector.extract_strided_slice %143 {offsets = [0, 0], sizes = [1, 80], strides = [1, 1]} : vector<2x80xf32> to vector<1x80xf32>
    %146 = vector.broadcast %144 : vector<2x1xf32> to vector<2x80xf32>
    %147 = vector.broadcast %145 : vector<1x80xf32> to vector<2x80xf32>
    %148 = arith.mulf %146, %147 : vector<2x80xf32>
    %149 = arith.addf %138, %148 : vector<2x80xf32>
    %150 = vector.extract_strided_slice %142 {offsets = [0, 1], sizes = [2, 1], strides = [1, 1]} : vector<2x2xf32> to vector<2x1xf32>
    %151 = vector.extract_strided_slice %143 {offsets = [1, 0], sizes = [1, 80], strides = [1, 1]} : vector<2x80xf32> to vector<1x80xf32>
    %152 = vector.broadcast %150 : vector<2x1xf32> to vector<2x80xf32>
    %153 = vector.broadcast %151 : vector<1x80xf32> to vector<2x80xf32>
    %154 = arith.mulf %152, %153 : vector<2x80xf32>
    %155 = arith.addf %149, %154 : vector<2x80xf32>
    %c0_22 = arith.constant 0 : index
    %c0_23 = arith.constant 0 : index
    %c0_24 = arith.constant 0 : index
    %c0_25 = arith.constant 0 : index
    %156 = vector.load %arg3[%c0_22, %c0_23, %c0_24, %c0_25] : memref<1x1x2x110xbf16, #tpu.memory_space<vmem>>, vector<1x1x2x110xbf16>
    %157 = vector.shape_cast %156 : vector<1x1x2x110xbf16> to vector<2x110xbf16>
    %158 = vector.extract_strided_slice %157 {offsets = [0, 0], sizes = [2, 80], strides = [1, 1]} : vector<2x110xbf16> to vector<2x80xbf16>
    %c9 = arith.constant 9 : index
    %c0_26 = arith.constant 0 : index
    %c0_27 = arith.constant 0 : index
    %159 = vector.load %arg5[%c9, %c0_26, %c0_27] : memref<27x2x2xbf16, #tpu.memory_space<vmem>>, vector<1x2x2xbf16>
    %160 = vector.shape_cast %159 : vector<1x2x2xbf16> to vector<2x2xbf16>
    %161 = arith.extf %160 : vector<2x2xbf16> to vector<2x2xf32>
    %162 = arith.extf %158 : vector<2x80xbf16> to vector<2x80xf32>
    %163 = vector.extract_strided_slice %161 {offsets = [0, 0], sizes = [2, 1], strides = [1, 1]} : vector<2x2xf32> to vector<2x1xf32>
    %164 = vector.extract_strided_slice %162 {offsets = [0, 0], sizes = [1, 80], strides = [1, 1]} : vector<2x80xf32> to vector<1x80xf32>
    %165 = vector.broadcast %163 : vector<2x1xf32> to vector<2x80xf32>
    %166 = vector.broadcast %164 : vector<1x80xf32> to vector<2x80xf32>
    %167 = arith.mulf %165, %166 : vector<2x80xf32>
    %168 = arith.addf %155, %167 : vector<2x80xf32>
    %169 = vector.extract_strided_slice %161 {offsets = [0, 1], sizes = [2, 1], strides = [1, 1]} : vector<2x2xf32> to vector<2x1xf32>
    %170 = vector.extract_strided_slice %162 {offsets = [1, 0], sizes = [1, 80], strides = [1, 1]} : vector<2x80xf32> to vector<1x80xf32>
    %171 = vector.broadcast %169 : vector<2x1xf32> to vector<2x80xf32>
    %172 = vector.broadcast %170 : vector<1x80xf32> to vector<2x80xf32>
    %173 = arith.mulf %171, %172 : vector<2x80xf32>
    %174 = arith.addf %168, %173 : vector<2x80xf32>
    %175 = vector.extract_strided_slice %157 {offsets = [0, 1], sizes = [2, 80], strides = [1, 1]} : vector<2x110xbf16> to vector<2x80xbf16>
    %c10 = arith.constant 10 : index
    %c0_28 = arith.constant 0 : index
    %c0_29 = arith.constant 0 : index
    %176 = vector.load %arg5[%c10, %c0_28, %c0_29] : memref<27x2x2xbf16, #tpu.memory_space<vmem>>, vector<1x2x2xbf16>
    %177 = vector.shape_cast %176 : vector<1x2x2xbf16> to vector<2x2xbf16>
    %178 = arith.extf %177 : vector<2x2xbf16> to vector<2x2xf32>
    %179 = arith.extf %175 : vector<2x80xbf16> to vector<2x80xf32>
    %180 = vector.extract_strided_slice %178 {offsets = [0, 0], sizes = [2, 1], strides = [1, 1]} : vector<2x2xf32> to vector<2x1xf32>
    %181 = vector.extract_strided_slice %179 {offsets = [0, 0], sizes = [1, 80], strides = [1, 1]} : vector<2x80xf32> to vector<1x80xf32>
    %182 = vector.broadcast %180 : vector<2x1xf32> to vector<2x80xf32>
    %183 = vector.broadcast %181 : vector<1x80xf32> to vector<2x80xf32>
    %184 = arith.mulf %182, %183 : vector<2x80xf32>
    %185 = arith.addf %174, %184 : vector<2x80xf32>
    %186 = vector.extract_strided_slice %178 {offsets = [0, 1], sizes = [2, 1], strides = [1, 1]} : vector<2x2xf32> to vector<2x1xf32>
    %187 = vector.extract_strided_slice %179 {offsets = [1, 0], sizes = [1, 80], strides = [1, 1]} : vector<2x80xf32> to vector<1x80xf32>
    %188 = vector.broadcast %186 : vector<2x1xf32> to vector<2x80xf32>
    %189 = vector.broadcast %187 : vector<1x80xf32> to vector<2x80xf32>
    %190 = arith.mulf %188, %189 : vector<2x80xf32>
    %191 = arith.addf %185, %190 : vector<2x80xf32>
    %192 = vector.extract_strided_slice %157 {offsets = [0, 2], sizes = [2, 80], strides = [1, 1]} : vector<2x110xbf16> to vector<2x80xbf16>
    %c11 = arith.constant 11 : index
    %c0_30 = arith.constant 0 : index
    %c0_31 = arith.constant 0 : index
    %193 = vector.load %arg5[%c11, %c0_30, %c0_31] : memref<27x2x2xbf16, #tpu.memory_space<vmem>>, vector<1x2x2xbf16>
    %194 = vector.shape_cast %193 : vector<1x2x2xbf16> to vector<2x2xbf16>
    %195 = arith.extf %194 : vector<2x2xbf16> to vector<2x2xf32>
    %196 = arith.extf %192 : vector<2x80xbf16> to vector<2x80xf32>
    %197 = vector.extract_strided_slice %195 {offsets = [0, 0], sizes = [2, 1], strides = [1, 1]} : vector<2x2xf32> to vector<2x1xf32>
    %198 = vector.extract_strided_slice %196 {offsets = [0, 0], sizes = [1, 80], strides = [1, 1]} : vector<2x80xf32> to vector<1x80xf32>
    %199 = vector.broadcast %197 : vector<2x1xf32> to vector<2x80xf32>
    %200 = vector.broadcast %198 : vector<1x80xf32> to vector<2x80xf32>
    %201 = arith.mulf %199, %200 : vector<2x80xf32>
    %202 = arith.addf %191, %201 : vector<2x80xf32>
    %203 = vector.extract_strided_slice %195 {offsets = [0, 1], sizes = [2, 1], strides = [1, 1]} : vector<2x2xf32> to vector<2x1xf32>
    %204 = vector.extract_strided_slice %196 {offsets = [1, 0], sizes = [1, 80], strides = [1, 1]} : vector<2x80xf32> to vector<1x80xf32>
    %205 = vector.broadcast %203 : vector<2x1xf32> to vector<2x80xf32>
    %206 = vector.broadcast %204 : vector<1x80xf32> to vector<2x80xf32>
    %207 = arith.mulf %205, %206 : vector<2x80xf32>
    %208 = arith.addf %202, %207 : vector<2x80xf32>
    %209 = vector.extract_strided_slice %157 {offsets = [0, 10], sizes = [2, 80], strides = [1, 1]} : vector<2x110xbf16> to vector<2x80xbf16>
    %c12 = arith.constant 12 : index
    %c0_32 = arith.constant 0 : index
    %c0_33 = arith.constant 0 : index
    %210 = vector.load %arg5[%c12, %c0_32, %c0_33] : memref<27x2x2xbf16, #tpu.memory_space<vmem>>, vector<1x2x2xbf16>
    %211 = vector.shape_cast %210 : vector<1x2x2xbf16> to vector<2x2xbf16>
    %212 = arith.extf %211 : vector<2x2xbf16> to vector<2x2xf32>
    %213 = arith.extf %209 : vector<2x80xbf16> to vector<2x80xf32>
    %214 = vector.extract_strided_slice %212 {offsets = [0, 0], sizes = [2, 1], strides = [1, 1]} : vector<2x2xf32> to vector<2x1xf32>
    %215 = vector.extract_strided_slice %213 {offsets = [0, 0], sizes = [1, 80], strides = [1, 1]} : vector<2x80xf32> to vector<1x80xf32>
    %216 = vector.broadcast %214 : vector<2x1xf32> to vector<2x80xf32>
    %217 = vector.broadcast %215 : vector<1x80xf32> to vector<2x80xf32>
    %218 = arith.mulf %216, %217 : vector<2x80xf32>
    %219 = arith.addf %208, %218 : vector<2x80xf32>
    %220 = vector.extract_strided_slice %212 {offsets = [0, 1], sizes = [2, 1], strides = [1, 1]} : vector<2x2xf32> to vector<2x1xf32>
    %221 = vector.extract_strided_slice %213 {offsets = [1, 0], sizes = [1, 80], strides = [1, 1]} : vector<2x80xf32> to vector<1x80xf32>
    %222 = vector.broadcast %220 : vector<2x1xf32> to vector<2x80xf32>
    %223 = vector.broadcast %221 : vector<1x80xf32> to vector<2x80xf32>
    %224 = arith.mulf %222, %223 : vector<2x80xf32>
    %225 = arith.addf %219, %224 : vector<2x80xf32>
    %226 = vector.extract_strided_slice %157 {offsets = [0, 11], sizes = [2, 80], strides = [1, 1]} : vector<2x110xbf16> to vector<2x80xbf16>
    %c13 = arith.constant 13 : index
    %c0_34 = arith.constant 0 : index
    %c0_35 = arith.constant 0 : index
    %227 = vector.load %arg5[%c13, %c0_34, %c0_35] : memref<27x2x2xbf16, #tpu.memory_space<vmem>>, vector<1x2x2xbf16>
    %228 = vector.shape_cast %227 : vector<1x2x2xbf16> to vector<2x2xbf16>
    %229 = arith.extf %228 : vector<2x2xbf16> to vector<2x2xf32>
    %230 = arith.extf %226 : vector<2x80xbf16> to vector<2x80xf32>
    %231 = vector.extract_strided_slice %229 {offsets = [0, 0], sizes = [2, 1], strides = [1, 1]} : vector<2x2xf32> to vector<2x1xf32>
    %232 = vector.extract_strided_slice %230 {offsets = [0, 0], sizes = [1, 80], strides = [1, 1]} : vector<2x80xf32> to vector<1x80xf32>
    %233 = vector.broadcast %231 : vector<2x1xf32> to vector<2x80xf32>
    %234 = vector.broadcast %232 : vector<1x80xf32> to vector<2x80xf32>
    %235 = arith.mulf %233, %234 : vector<2x80xf32>
    %236 = arith.addf %225, %235 : vector<2x80xf32>
    %237 = vector.extract_strided_slice %229 {offsets = [0, 1], sizes = [2, 1], strides = [1, 1]} : vector<2x2xf32> to vector<2x1xf32>
    %238 = vector.extract_strided_slice %230 {offsets = [1, 0], sizes = [1, 80], strides = [1, 1]} : vector<2x80xf32> to vector<1x80xf32>
    %239 = vector.broadcast %237 : vector<2x1xf32> to vector<2x80xf32>
    %240 = vector.broadcast %238 : vector<1x80xf32> to vector<2x80xf32>
    %241 = arith.mulf %239, %240 : vector<2x80xf32>
    %242 = arith.addf %236, %241 : vector<2x80xf32>
    %243 = vector.extract_strided_slice %157 {offsets = [0, 12], sizes = [2, 80], strides = [1, 1]} : vector<2x110xbf16> to vector<2x80xbf16>
    %c14 = arith.constant 14 : index
    %c0_36 = arith.constant 0 : index
    %c0_37 = arith.constant 0 : index
    %244 = vector.load %arg5[%c14, %c0_36, %c0_37] : memref<27x2x2xbf16, #tpu.memory_space<vmem>>, vector<1x2x2xbf16>
    %245 = vector.shape_cast %244 : vector<1x2x2xbf16> to vector<2x2xbf16>
    %246 = arith.extf %245 : vector<2x2xbf16> to vector<2x2xf32>
    %247 = arith.extf %243 : vector<2x80xbf16> to vector<2x80xf32>
    %248 = vector.extract_strided_slice %246 {offsets = [0, 0], sizes = [2, 1], strides = [1, 1]} : vector<2x2xf32> to vector<2x1xf32>
    %249 = vector.extract_strided_slice %247 {offsets = [0, 0], sizes = [1, 80], strides = [1, 1]} : vector<2x80xf32> to vector<1x80xf32>
    %250 = vector.broadcast %248 : vector<2x1xf32> to vector<2x80xf32>
    %251 = vector.broadcast %249 : vector<1x80xf32> to vector<2x80xf32>
    %252 = arith.mulf %250, %251 : vector<2x80xf32>
    %253 = arith.addf %242, %252 : vector<2x80xf32>
    %254 = vector.extract_strided_slice %246 {offsets = [0, 1], sizes = [2, 1], strides = [1, 1]} : vector<2x2xf32> to vector<2x1xf32>
    %255 = vector.extract_strided_slice %247 {offsets = [1, 0], sizes = [1, 80], strides = [1, 1]} : vector<2x80xf32> to vector<1x80xf32>
    %256 = vector.broadcast %254 : vector<2x1xf32> to vector<2x80xf32>
    %257 = vector.broadcast %255 : vector<1x80xf32> to vector<2x80xf32>
    %258 = arith.mulf %256, %257 : vector<2x80xf32>
    %259 = arith.addf %253, %258 : vector<2x80xf32>
    %260 = vector.extract_strided_slice %157 {offsets = [0, 20], sizes = [2, 80], strides = [1, 1]} : vector<2x110xbf16> to vector<2x80xbf16>
    %c15 = arith.constant 15 : index
    %c0_38 = arith.constant 0 : index
    %c0_39 = arith.constant 0 : index
    %261 = vector.load %arg5[%c15, %c0_38, %c0_39] : memref<27x2x2xbf16, #tpu.memory_space<vmem>>, vector<1x2x2xbf16>
    %262 = vector.shape_cast %261 : vector<1x2x2xbf16> to vector<2x2xbf16>
    %263 = arith.extf %262 : vector<2x2xbf16> to vector<2x2xf32>
    %264 = arith.extf %260 : vector<2x80xbf16> to vector<2x80xf32>
    %265 = vector.extract_strided_slice %263 {offsets = [0, 0], sizes = [2, 1], strides = [1, 1]} : vector<2x2xf32> to vector<2x1xf32>
    %266 = vector.extract_strided_slice %264 {offsets = [0, 0], sizes = [1, 80], strides = [1, 1]} : vector<2x80xf32> to vector<1x80xf32>
    %267 = vector.broadcast %265 : vector<2x1xf32> to vector<2x80xf32>
    %268 = vector.broadcast %266 : vector<1x80xf32> to vector<2x80xf32>
    %269 = arith.mulf %267, %268 : vector<2x80xf32>
    %270 = arith.addf %259, %269 : vector<2x80xf32>
    %271 = vector.extract_strided_slice %263 {offsets = [0, 1], sizes = [2, 1], strides = [1, 1]} : vector<2x2xf32> to vector<2x1xf32>
    %272 = vector.extract_strided_slice %264 {offsets = [1, 0], sizes = [1, 80], strides = [1, 1]} : vector<2x80xf32> to vector<1x80xf32>
    %273 = vector.broadcast %271 : vector<2x1xf32> to vector<2x80xf32>
    %274 = vector.broadcast %272 : vector<1x80xf32> to vector<2x80xf32>
    %275 = arith.mulf %273, %274 : vector<2x80xf32>
    %276 = arith.addf %270, %275 : vector<2x80xf32>
    %277 = vector.extract_strided_slice %157 {offsets = [0, 21], sizes = [2, 80], strides = [1, 1]} : vector<2x110xbf16> to vector<2x80xbf16>
    %c16 = arith.constant 16 : index
    %c0_40 = arith.constant 0 : index
    %c0_41 = arith.constant 0 : index
    %278 = vector.load %arg5[%c16, %c0_40, %c0_41] : memref<27x2x2xbf16, #tpu.memory_space<vmem>>, vector<1x2x2xbf16>
    %279 = vector.shape_cast %278 : vector<1x2x2xbf16> to vector<2x2xbf16>
    %280 = arith.extf %279 : vector<2x2xbf16> to vector<2x2xf32>
    %281 = arith.extf %277 : vector<2x80xbf16> to vector<2x80xf32>
    %282 = vector.extract_strided_slice %280 {offsets = [0, 0], sizes = [2, 1], strides = [1, 1]} : vector<2x2xf32> to vector<2x1xf32>
    %283 = vector.extract_strided_slice %281 {offsets = [0, 0], sizes = [1, 80], strides = [1, 1]} : vector<2x80xf32> to vector<1x80xf32>
    %284 = vector.broadcast %282 : vector<2x1xf32> to vector<2x80xf32>
    %285 = vector.broadcast %283 : vector<1x80xf32> to vector<2x80xf32>
    %286 = arith.mulf %284, %285 : vector<2x80xf32>
    %287 = arith.addf %276, %286 : vector<2x80xf32>
    %288 = vector.extract_strided_slice %280 {offsets = [0, 1], sizes = [2, 1], strides = [1, 1]} : vector<2x2xf32> to vector<2x1xf32>
    %289 = vector.extract_strided_slice %281 {offsets = [1, 0], sizes = [1, 80], strides = [1, 1]} : vector<2x80xf32> to vector<1x80xf32>
    %290 = vector.broadcast %288 : vector<2x1xf32> to vector<2x80xf32>
    %291 = vector.broadcast %289 : vector<1x80xf32> to vector<2x80xf32>
    %292 = arith.mulf %290, %291 : vector<2x80xf32>
    %293 = arith.addf %287, %292 : vector<2x80xf32>
    %294 = vector.extract_strided_slice %157 {offsets = [0, 22], sizes = [2, 80], strides = [1, 1]} : vector<2x110xbf16> to vector<2x80xbf16>
    %c17 = arith.constant 17 : index
    %c0_42 = arith.constant 0 : index
    %c0_43 = arith.constant 0 : index
    %295 = vector.load %arg5[%c17, %c0_42, %c0_43] : memref<27x2x2xbf16, #tpu.memory_space<vmem>>, vector<1x2x2xbf16>
    %296 = vector.shape_cast %295 : vector<1x2x2xbf16> to vector<2x2xbf16>
    %297 = arith.extf %296 : vector<2x2xbf16> to vector<2x2xf32>
    %298 = arith.extf %294 : vector<2x80xbf16> to vector<2x80xf32>
    %299 = vector.extract_strided_slice %297 {offsets = [0, 0], sizes = [2, 1], strides = [1, 1]} : vector<2x2xf32> to vector<2x1xf32>
    %300 = vector.extract_strided_slice %298 {offsets = [0, 0], sizes = [1, 80], strides = [1, 1]} : vector<2x80xf32> to vector<1x80xf32>
    %301 = vector.broadcast %299 : vector<2x1xf32> to vector<2x80xf32>
    %302 = vector.broadcast %300 : vector<1x80xf32> to vector<2x80xf32>
    %303 = arith.mulf %301, %302 : vector<2x80xf32>
    %304 = arith.addf %293, %303 : vector<2x80xf32>
    %305 = vector.extract_strided_slice %297 {offsets = [0, 1], sizes = [2, 1], strides = [1, 1]} : vector<2x2xf32> to vector<2x1xf32>
    %306 = vector.extract_strided_slice %298 {offsets = [1, 0], sizes = [1, 80], strides = [1, 1]} : vector<2x80xf32> to vector<1x80xf32>
    %307 = vector.broadcast %305 : vector<2x1xf32> to vector<2x80xf32>
    %308 = vector.broadcast %306 : vector<1x80xf32> to vector<2x80xf32>
    %309 = arith.mulf %307, %308 : vector<2x80xf32>
    %310 = arith.addf %304, %309 : vector<2x80xf32>
    %c0_44 = arith.constant 0 : index
    %c0_45 = arith.constant 0 : index
    %c0_46 = arith.constant 0 : index
    %c0_47 = arith.constant 0 : index
    %311 = vector.load %arg4[%c0_44, %c0_45, %c0_46, %c0_47] : memref<1x1x2x110xbf16, #tpu.memory_space<vmem>>, vector<1x1x2x110xbf16>
    %312 = vector.shape_cast %311 : vector<1x1x2x110xbf16> to vector<2x110xbf16>
    %313 = vector.extract_strided_slice %312 {offsets = [0, 0], sizes = [2, 80], strides = [1, 1]} : vector<2x110xbf16> to vector<2x80xbf16>
    %c18 = arith.constant 18 : index
    %c0_48 = arith.constant 0 : index
    %c0_49 = arith.constant 0 : index
    %314 = vector.load %arg5[%c18, %c0_48, %c0_49] : memref<27x2x2xbf16, #tpu.memory_space<vmem>>, vector<1x2x2xbf16>
    %315 = vector.shape_cast %314 : vector<1x2x2xbf16> to vector<2x2xbf16>
    %316 = arith.extf %315 : vector<2x2xbf16> to vector<2x2xf32>
    %317 = arith.extf %313 : vector<2x80xbf16> to vector<2x80xf32>
    %318 = vector.extract_strided_slice %316 {offsets = [0, 0], sizes = [2, 1], strides = [1, 1]} : vector<2x2xf32> to vector<2x1xf32>
    %319 = vector.extract_strided_slice %317 {offsets = [0, 0], sizes = [1, 80], strides = [1, 1]} : vector<2x80xf32> to vector<1x80xf32>
    %320 = vector.broadcast %318 : vector<2x1xf32> to vector<2x80xf32>
    %321 = vector.broadcast %319 : vector<1x80xf32> to vector<2x80xf32>
    %322 = arith.mulf %320, %321 : vector<2x80xf32>
    %323 = arith.addf %310, %322 : vector<2x80xf32>
    %324 = vector.extract_strided_slice %316 {offsets = [0, 1], sizes = [2, 1], strides = [1, 1]} : vector<2x2xf32> to vector<2x1xf32>
    %325 = vector.extract_strided_slice %317 {offsets = [1, 0], sizes = [1, 80], strides = [1, 1]} : vector<2x80xf32> to vector<1x80xf32>
    %326 = vector.broadcast %324 : vector<2x1xf32> to vector<2x80xf32>
    %327 = vector.broadcast %325 : vector<1x80xf32> to vector<2x80xf32>
    %328 = arith.mulf %326, %327 : vector<2x80xf32>
    %329 = arith.addf %323, %328 : vector<2x80xf32>
    %330 = vector.extract_strided_slice %312 {offsets = [0, 1], sizes = [2, 80], strides = [1, 1]} : vector<2x110xbf16> to vector<2x80xbf16>
    %c19 = arith.constant 19 : index
    %c0_50 = arith.constant 0 : index
    %c0_51 = arith.constant 0 : index
    %331 = vector.load %arg5[%c19, %c0_50, %c0_51] : memref<27x2x2xbf16, #tpu.memory_space<vmem>>, vector<1x2x2xbf16>
    %332 = vector.shape_cast %331 : vector<1x2x2xbf16> to vector<2x2xbf16>
    %333 = arith.extf %332 : vector<2x2xbf16> to vector<2x2xf32>
    %334 = arith.extf %330 : vector<2x80xbf16> to vector<2x80xf32>
    %335 = vector.extract_strided_slice %333 {offsets = [0, 0], sizes = [2, 1], strides = [1, 1]} : vector<2x2xf32> to vector<2x1xf32>
    %336 = vector.extract_strided_slice %334 {offsets = [0, 0], sizes = [1, 80], strides = [1, 1]} : vector<2x80xf32> to vector<1x80xf32>
    %337 = vector.broadcast %335 : vector<2x1xf32> to vector<2x80xf32>
    %338 = vector.broadcast %336 : vector<1x80xf32> to vector<2x80xf32>
    %339 = arith.mulf %337, %338 : vector<2x80xf32>
    %340 = arith.addf %329, %339 : vector<2x80xf32>
    %341 = vector.extract_strided_slice %333 {offsets = [0, 1], sizes = [2, 1], strides = [1, 1]} : vector<2x2xf32> to vector<2x1xf32>
    %342 = vector.extract_strided_slice %334 {offsets = [1, 0], sizes = [1, 80], strides = [1, 1]} : vector<2x80xf32> to vector<1x80xf32>
    %343 = vector.broadcast %341 : vector<2x1xf32> to vector<2x80xf32>
    %344 = vector.broadcast %342 : vector<1x80xf32> to vector<2x80xf32>
    %345 = arith.mulf %343, %344 : vector<2x80xf32>
    %346 = arith.addf %340, %345 : vector<2x80xf32>
    %347 = vector.extract_strided_slice %312 {offsets = [0, 2], sizes = [2, 80], strides = [1, 1]} : vector<2x110xbf16> to vector<2x80xbf16>
    %c20 = arith.constant 20 : index
    %c0_52 = arith.constant 0 : index
    %c0_53 = arith.constant 0 : index
    %348 = vector.load %arg5[%c20, %c0_52, %c0_53] : memref<27x2x2xbf16, #tpu.memory_space<vmem>>, vector<1x2x2xbf16>
    %349 = vector.shape_cast %348 : vector<1x2x2xbf16> to vector<2x2xbf16>
    %350 = arith.extf %349 : vector<2x2xbf16> to vector<2x2xf32>
    %351 = arith.extf %347 : vector<2x80xbf16> to vector<2x80xf32>
    %352 = vector.extract_strided_slice %350 {offsets = [0, 0], sizes = [2, 1], strides = [1, 1]} : vector<2x2xf32> to vector<2x1xf32>
    %353 = vector.extract_strided_slice %351 {offsets = [0, 0], sizes = [1, 80], strides = [1, 1]} : vector<2x80xf32> to vector<1x80xf32>
    %354 = vector.broadcast %352 : vector<2x1xf32> to vector<2x80xf32>
    %355 = vector.broadcast %353 : vector<1x80xf32> to vector<2x80xf32>
    %356 = arith.mulf %354, %355 : vector<2x80xf32>
    %357 = arith.addf %346, %356 : vector<2x80xf32>
    %358 = vector.extract_strided_slice %350 {offsets = [0, 1], sizes = [2, 1], strides = [1, 1]} : vector<2x2xf32> to vector<2x1xf32>
    %359 = vector.extract_strided_slice %351 {offsets = [1, 0], sizes = [1, 80], strides = [1, 1]} : vector<2x80xf32> to vector<1x80xf32>
    %360 = vector.broadcast %358 : vector<2x1xf32> to vector<2x80xf32>
    %361 = vector.broadcast %359 : vector<1x80xf32> to vector<2x80xf32>
    %362 = arith.mulf %360, %361 : vector<2x80xf32>
    %363 = arith.addf %357, %362 : vector<2x80xf32>
    %364 = vector.extract_strided_slice %312 {offsets = [0, 10], sizes = [2, 80], strides = [1, 1]} : vector<2x110xbf16> to vector<2x80xbf16>
    %c21 = arith.constant 21 : index
    %c0_54 = arith.constant 0 : index
    %c0_55 = arith.constant 0 : index
    %365 = vector.load %arg5[%c21, %c0_54, %c0_55] : memref<27x2x2xbf16, #tpu.memory_space<vmem>>, vector<1x2x2xbf16>
    %366 = vector.shape_cast %365 : vector<1x2x2xbf16> to vector<2x2xbf16>
    %367 = arith.extf %366 : vector<2x2xbf16> to vector<2x2xf32>
    %368 = arith.extf %364 : vector<2x80xbf16> to vector<2x80xf32>
    %369 = vector.extract_strided_slice %367 {offsets = [0, 0], sizes = [2, 1], strides = [1, 1]} : vector<2x2xf32> to vector<2x1xf32>
    %370 = vector.extract_strided_slice %368 {offsets = [0, 0], sizes = [1, 80], strides = [1, 1]} : vector<2x80xf32> to vector<1x80xf32>
    %371 = vector.broadcast %369 : vector<2x1xf32> to vector<2x80xf32>
    %372 = vector.broadcast %370 : vector<1x80xf32> to vector<2x80xf32>
    %373 = arith.mulf %371, %372 : vector<2x80xf32>
    %374 = arith.addf %363, %373 : vector<2x80xf32>
    %375 = vector.extract_strided_slice %367 {offsets = [0, 1], sizes = [2, 1], strides = [1, 1]} : vector<2x2xf32> to vector<2x1xf32>
    %376 = vector.extract_strided_slice %368 {offsets = [1, 0], sizes = [1, 80], strides = [1, 1]} : vector<2x80xf32> to vector<1x80xf32>
    %377 = vector.broadcast %375 : vector<2x1xf32> to vector<2x80xf32>
    %378 = vector.broadcast %376 : vector<1x80xf32> to vector<2x80xf32>
    %379 = arith.mulf %377, %378 : vector<2x80xf32>
    %380 = arith.addf %374, %379 : vector<2x80xf32>
    %381 = vector.extract_strided_slice %312 {offsets = [0, 11], sizes = [2, 80], strides = [1, 1]} : vector<2x110xbf16> to vector<2x80xbf16>
    %c22 = arith.constant 22 : index
    %c0_56 = arith.constant 0 : index
    %c0_57 = arith.constant 0 : index
    %382 = vector.load %arg5[%c22, %c0_56, %c0_57] : memref<27x2x2xbf16, #tpu.memory_space<vmem>>, vector<1x2x2xbf16>
    %383 = vector.shape_cast %382 : vector<1x2x2xbf16> to vector<2x2xbf16>
    %384 = arith.extf %383 : vector<2x2xbf16> to vector<2x2xf32>
    %385 = arith.extf %381 : vector<2x80xbf16> to vector<2x80xf32>
    %386 = vector.extract_strided_slice %384 {offsets = [0, 0], sizes = [2, 1], strides = [1, 1]} : vector<2x2xf32> to vector<2x1xf32>
    %387 = vector.extract_strided_slice %385 {offsets = [0, 0], sizes = [1, 80], strides = [1, 1]} : vector<2x80xf32> to vector<1x80xf32>
    %388 = vector.broadcast %386 : vector<2x1xf32> to vector<2x80xf32>
    %389 = vector.broadcast %387 : vector<1x80xf32> to vector<2x80xf32>
    %390 = arith.mulf %388, %389 : vector<2x80xf32>
    %391 = arith.addf %380, %390 : vector<2x80xf32>
    %392 = vector.extract_strided_slice %384 {offsets = [0, 1], sizes = [2, 1], strides = [1, 1]} : vector<2x2xf32> to vector<2x1xf32>
    %393 = vector.extract_strided_slice %385 {offsets = [1, 0], sizes = [1, 80], strides = [1, 1]} : vector<2x80xf32> to vector<1x80xf32>
    %394 = vector.broadcast %392 : vector<2x1xf32> to vector<2x80xf32>
    %395 = vector.broadcast %393 : vector<1x80xf32> to vector<2x80xf32>
    %396 = arith.mulf %394, %395 : vector<2x80xf32>
    %397 = arith.addf %391, %396 : vector<2x80xf32>
    %398 = vector.extract_strided_slice %312 {offsets = [0, 12], sizes = [2, 80], strides = [1, 1]} : vector<2x110xbf16> to vector<2x80xbf16>
    %c23 = arith.constant 23 : index
    %c0_58 = arith.constant 0 : index
    %c0_59 = arith.constant 0 : index
    %399 = vector.load %arg5[%c23, %c0_58, %c0_59] : memref<27x2x2xbf16, #tpu.memory_space<vmem>>, vector<1x2x2xbf16>
    %400 = vector.shape_cast %399 : vector<1x2x2xbf16> to vector<2x2xbf16>
    %401 = arith.extf %400 : vector<2x2xbf16> to vector<2x2xf32>
    %402 = arith.extf %398 : vector<2x80xbf16> to vector<2x80xf32>
    %403 = vector.extract_strided_slice %401 {offsets = [0, 0], sizes = [2, 1], strides = [1, 1]} : vector<2x2xf32> to vector<2x1xf32>
    %404 = vector.extract_strided_slice %402 {offsets = [0, 0], sizes = [1, 80], strides = [1, 1]} : vector<2x80xf32> to vector<1x80xf32>
    %405 = vector.broadcast %403 : vector<2x1xf32> to vector<2x80xf32>
    %406 = vector.broadcast %404 : vector<1x80xf32> to vector<2x80xf32>
    %407 = arith.mulf %405, %406 : vector<2x80xf32>
    %408 = arith.addf %397, %407 : vector<2x80xf32>
    %409 = vector.extract_strided_slice %401 {offsets = [0, 1], sizes = [2, 1], strides = [1, 1]} : vector<2x2xf32> to vector<2x1xf32>
    %410 = vector.extract_strided_slice %402 {offsets = [1, 0], sizes = [1, 80], strides = [1, 1]} : vector<2x80xf32> to vector<1x80xf32>
    %411 = vector.broadcast %409 : vector<2x1xf32> to vector<2x80xf32>
    %412 = vector.broadcast %410 : vector<1x80xf32> to vector<2x80xf32>
    %413 = arith.mulf %411, %412 : vector<2x80xf32>
    %414 = arith.addf %408, %413 : vector<2x80xf32>
    %415 = vector.extract_strided_slice %312 {offsets = [0, 20], sizes = [2, 80], strides = [1, 1]} : vector<2x110xbf16> to vector<2x80xbf16>
    %c24 = arith.constant 24 : index
    %c0_60 = arith.constant 0 : index
    %c0_61 = arith.constant 0 : index
    %416 = vector.load %arg5[%c24, %c0_60, %c0_61] : memref<27x2x2xbf16, #tpu.memory_space<vmem>>, vector<1x2x2xbf16>
    %417 = vector.shape_cast %416 : vector<1x2x2xbf16> to vector<2x2xbf16>
    %418 = arith.extf %417 : vector<2x2xbf16> to vector<2x2xf32>
    %419 = arith.extf %415 : vector<2x80xbf16> to vector<2x80xf32>
    %420 = vector.extract_strided_slice %418 {offsets = [0, 0], sizes = [2, 1], strides = [1, 1]} : vector<2x2xf32> to vector<2x1xf32>
    %421 = vector.extract_strided_slice %419 {offsets = [0, 0], sizes = [1, 80], strides = [1, 1]} : vector<2x80xf32> to vector<1x80xf32>
    %422 = vector.broadcast %420 : vector<2x1xf32> to vector<2x80xf32>
    %423 = vector.broadcast %421 : vector<1x80xf32> to vector<2x80xf32>
    %424 = arith.mulf %422, %423 : vector<2x80xf32>
    %425 = arith.addf %414, %424 : vector<2x80xf32>
    %426 = vector.extract_strided_slice %418 {offsets = [0, 1], sizes = [2, 1], strides = [1, 1]} : vector<2x2xf32> to vector<2x1xf32>
    %427 = vector.extract_strided_slice %419 {offsets = [1, 0], sizes = [1, 80], strides = [1, 1]} : vector<2x80xf32> to vector<1x80xf32>
    %428 = vector.broadcast %426 : vector<2x1xf32> to vector<2x80xf32>
    %429 = vector.broadcast %427 : vector<1x80xf32> to vector<2x80xf32>
    %430 = arith.mulf %428, %429 : vector<2x80xf32>
    %431 = arith.addf %425, %430 : vector<2x80xf32>
    %432 = vector.extract_strided_slice %312 {offsets = [0, 21], sizes = [2, 80], strides = [1, 1]} : vector<2x110xbf16> to vector<2x80xbf16>
    %c25 = arith.constant 25 : index
    %c0_62 = arith.constant 0 : index
    %c0_63 = arith.constant 0 : index
    %433 = vector.load %arg5[%c25, %c0_62, %c0_63] : memref<27x2x2xbf16, #tpu.memory_space<vmem>>, vector<1x2x2xbf16>
    %434 = vector.shape_cast %433 : vector<1x2x2xbf16> to vector<2x2xbf16>
    %435 = arith.extf %434 : vector<2x2xbf16> to vector<2x2xf32>
    %436 = arith.extf %432 : vector<2x80xbf16> to vector<2x80xf32>
    %437 = vector.extract_strided_slice %435 {offsets = [0, 0], sizes = [2, 1], strides = [1, 1]} : vector<2x2xf32> to vector<2x1xf32>
    %438 = vector.extract_strided_slice %436 {offsets = [0, 0], sizes = [1, 80], strides = [1, 1]} : vector<2x80xf32> to vector<1x80xf32>
    %439 = vector.broadcast %437 : vector<2x1xf32> to vector<2x80xf32>
    %440 = vector.broadcast %438 : vector<1x80xf32> to vector<2x80xf32>
    %441 = arith.mulf %439, %440 : vector<2x80xf32>
    %442 = arith.addf %431, %441 : vector<2x80xf32>
    %443 = vector.extract_strided_slice %435 {offsets = [0, 1], sizes = [2, 1], strides = [1, 1]} : vector<2x2xf32> to vector<2x1xf32>
    %444 = vector.extract_strided_slice %436 {offsets = [1, 0], sizes = [1, 80], strides = [1, 1]} : vector<2x80xf32> to vector<1x80xf32>
    %445 = vector.broadcast %443 : vector<2x1xf32> to vector<2x80xf32>
    %446 = vector.broadcast %444 : vector<1x80xf32> to vector<2x80xf32>
    %447 = arith.mulf %445, %446 : vector<2x80xf32>
    %448 = arith.addf %442, %447 : vector<2x80xf32>
    %449 = vector.extract_strided_slice %312 {offsets = [0, 22], sizes = [2, 80], strides = [1, 1]} : vector<2x110xbf16> to vector<2x80xbf16>
    %c26 = arith.constant 26 : index
    %c0_64 = arith.constant 0 : index
    %c0_65 = arith.constant 0 : index
    %450 = vector.load %arg5[%c26, %c0_64, %c0_65] : memref<27x2x2xbf16, #tpu.memory_space<vmem>>, vector<1x2x2xbf16>
    %451 = vector.shape_cast %450 : vector<1x2x2xbf16> to vector<2x2xbf16>
    %452 = arith.extf %451 : vector<2x2xbf16> to vector<2x2xf32>
    %453 = arith.extf %449 : vector<2x80xbf16> to vector<2x80xf32>
    %454 = vector.extract_strided_slice %452 {offsets = [0, 0], sizes = [2, 1], strides = [1, 1]} : vector<2x2xf32> to vector<2x1xf32>
    %455 = vector.extract_strided_slice %453 {offsets = [0, 0], sizes = [1, 80], strides = [1, 1]} : vector<2x80xf32> to vector<1x80xf32>
    %456 = vector.broadcast %454 : vector<2x1xf32> to vector<2x80xf32>
    %457 = vector.broadcast %455 : vector<1x80xf32> to vector<2x80xf32>
    %458 = arith.mulf %456, %457 : vector<2x80xf32>
    %459 = arith.addf %448, %458 : vector<2x80xf32>
    %460 = vector.extract_strided_slice %452 {offsets = [0, 1], sizes = [2, 1], strides = [1, 1]} : vector<2x2xf32> to vector<2x1xf32>
    %461 = vector.extract_strided_slice %453 {offsets = [1, 0], sizes = [1, 80], strides = [1, 1]} : vector<2x80xf32> to vector<1x80xf32>
    %462 = vector.broadcast %460 : vector<2x1xf32> to vector<2x80xf32>
    %463 = vector.broadcast %461 : vector<1x80xf32> to vector<2x80xf32>
    %464 = arith.mulf %462, %463 : vector<2x80xf32>
    %465 = arith.addf %459, %464 : vector<2x80xf32>
    %c0_66 = arith.constant 0 : index
    %c0_67 = arith.constant 0 : index
    %466 = vector.load %arg6[%c0_66, %c0_67] : memref<1x80xf32, #tpu.memory_space<vmem>>, vector<1x80xf32>
    %467 = vector.broadcast %466 : vector<1x80xf32> to vector<2x80xf32>
    %468 = arith.mulf %465, %467 : vector<2x80xf32>
    %cst_68 = arith.constant dense<0.000000e+00> : vector<2xf32>
    %469 = vector.multi_reduction <add>, %468, %cst_68 [1] : vector<2x80xf32> to vector<2xf32>
    %470 = vector.shape_cast %469 : vector<2xf32> to vector<2x1xf32>
    %c0_69 = arith.constant 0 : index
    %c0_70 = arith.constant 0 : index
    %c0_71 = arith.constant 0 : index
    %c0_72 = arith.constant 0 : index
    %471 = vector.load %arg8[%c0_69, %c0_70, %c0_71, %c0_72] : memref<1x1x2x1xf32, #tpu.memory_space<vmem>>, vector<1x1x2x1xf32>
    %472 = vector.shape_cast %471 : vector<1x1x2x1xf32> to vector<2x1xf32>
    %473 = vector.shape_cast %470 : vector<2x1xf32> to vector<1x1x2x1xf32>
    tpu.vector_store %arg8[%c0_69, %c0_70, %c0_71, %c0_72], %473 {strides = array<i32>} : memref<1x1x2x1xf32, #tpu.memory_space<vmem>>, vector<1x1x2x1xf32>,
    %474 = arith.mulf %468, %465 : vector<2x80xf32>
    %cst_73 = arith.constant dense<0.000000e+00> : vector<2xf32>
    %475 = vector.multi_reduction <add>, %474, %cst_73 [1] : vector<2x80xf32> to vector<2xf32>
    %476 = vector.shape_cast %475 : vector<2xf32> to vector<2x1xf32>
    %c0_74 = arith.constant 0 : index
    %c0_75 = arith.constant 0 : index
    %c0_76 = arith.constant 0 : index
    %c0_77 = arith.constant 0 : index
    %477 = vector.load %arg9[%c0_74, %c0_75, %c0_76, %c0_77] : memref<1x1x2x1xf32, #tpu.memory_space<vmem>>, vector<1x1x2x1xf32>
    %478 = vector.shape_cast %477 : vector<1x1x2x1xf32> to vector<2x1xf32>
    %479 = vector.shape_cast %476 : vector<2x1xf32> to vector<1x1x2x1xf32>
    tpu.vector_store %arg9[%c0_74, %c0_75, %c0_76, %c0_77], %479 {strides = array<i32>} : memref<1x1x2x1xf32, #tpu.memory_space<vmem>>, vector<1x1x2x1xf32>,
    %480 = arith.truncf %465 : vector<2x80xf32> to vector<2x80xbf16>
    %c0_78 = arith.constant 0 : index
    %c0_79 = arith.constant 0 : index
    %c0_80 = arith.constant 0 : index
    %c0_81 = arith.constant 0 : index
    %481 = vector.load %arg7[%c0_78, %c0_79, %c0_80, %c0_81] : memref<1x1x2x80xbf16, #tpu.memory_space<vmem>>, vector<1x1x2x80xbf16>
    %482 = vector.shape_cast %481 : vector<1x1x2x80xbf16> to vector<2x80xbf16>
    %483 = vector.shape_cast %480 : vector<2x80xbf16> to vector<1x1x2x80xbf16>
    tpu.vector_store %arg7[%c0_78, %c0_79, %c0_80, %c0_81], %483 {strides = array<i32>} : memref<1x1x2x80xbf16, #tpu.memory_space<vmem>>, vector<1x1x2x80xbf16>,
    return
  }
  func.func @transform_0(%arg0: i32, %arg1: i32) -> (i32, i32, i32, i32) {
    %c0_i32 = arith.constant 0 : i32
    %0 = arith.addi %arg1, %c0_i32 : i32
    %c0_i32_0 = arith.constant 0 : i32
    %c0_i32_1 = arith.constant 0 : i32
    %c0_i32_2 = arith.constant 0 : i32
    return %arg0, %0, %c0_i32_0, %c0_i32_1 : i32, i32, i32, i32
  }
  func.func @transform_1(%arg0: i32, %arg1: i32) -> (i32, i32, i32, i32) {
    %c1_i32 = arith.constant 1 : i32
    %0 = arith.addi %arg1, %c1_i32 : i32
    %c0_i32 = arith.constant 0 : i32
    %c0_i32_0 = arith.constant 0 : i32
    %c0_i32_1 = arith.constant 0 : i32
    return %arg0, %0, %c0_i32, %c0_i32_0 : i32, i32, i32, i32
  }
  func.func @transform_2(%arg0: i32, %arg1: i32) -> (i32, i32, i32, i32) {
    %c2_i32 = arith.constant 2 : i32
    %0 = arith.addi %arg1, %c2_i32 : i32
    %c0_i32 = arith.constant 0 : i32
    %c0_i32_0 = arith.constant 0 : i32
    %c0_i32_1 = arith.constant 0 : i32
    return %arg0, %0, %c0_i32, %c0_i32_0 : i32, i32, i32, i32
  }
  func.func @transform_3(%arg0: i32, %arg1: i32) -> (i32, i32, i32) {
    %c0_i32 = arith.constant 0 : i32
    %c0_i32_0 = arith.constant 0 : i32
    %c0_i32_1 = arith.constant 0 : i32
    %c0_i32_2 = arith.constant 0 : i32
    return %c0_i32, %c0_i32_0, %c0_i32_1 : i32, i32, i32
  }
  func.func @transform_4(%arg0: i32, %arg1: i32) -> (i32, i32) {
    %c0_i32 = arith.constant 0 : i32
    %c0_i32_0 = arith.constant 0 : i32
    %c0_i32_1 = arith.constant 0 : i32
    return %c0_i32, %c0_i32_0 : i32, i32
  }
  func.func @transform_5(%arg0: i32, %arg1: i32) -> (i32, i32, i32, i32) {
    %c0_i32 = arith.constant 0 : i32
    %c0_i32_0 = arith.constant 0 : i32
    %c0_i32_1 = arith.constant 0 : i32
    return %arg0, %arg1, %c0_i32, %c0_i32_0 : i32, i32, i32, i32
  }
  func.func @transform_6(%arg0: i32, %arg1: i32) -> (i32, i32, i32, i32) {
    %c0_i32 = arith.constant 0 : i32
    %c0_i32_0 = arith.constant 0 : i32
    %c0_i32_1 = arith.constant 0 : i32
    return %arg0, %arg1, %c0_i32, %c0_i32_0 : i32, i32, i32, i32
  }
  func.func @transform_7(%arg0: i32, %arg1: i32) -> (i32, i32, i32, i32) {
    %c0_i32 = arith.constant 0 : i32
    %c0_i32_0 = arith.constant 0 : i32
    %c0_i32_1 = arith.constant 0 : i32
    return %arg0, %arg1, %c0_i32, %c0_i32_0 : i32, i32, i32, i32
  }
}

module attributes {stable_mosaic.version = 11 : i64} {
  func.func @_deup_kernel(%arg0: i32, %arg1: i32, %arg2: memref<1x1x10x64xbf16, #tpu.memory_space<vmem>>, %arg3: memref<8x10xbf16, #tpu.memory_space<vmem>>, %arg4: memref<8x1xf32, #tpu.memory_space<vmem>>, %arg5: memref<1x1x8x64xbf16, #tpu.memory_space<vmem>>) attributes {dimension_semantics = [#tpu.dimension_semantics<parallel>, #tpu.dimension_semantics<parallel>], iteration_bounds = array<i64: 2, 8>, scalar_prefetch = 0 : i64, scratch_operands = 0 : i64, tpu.core_type = #tpu.core_type<tc>, window_params = [{transform_indices = @transform_0, window_bounds = array<i64: 1, 1, 10, 64>}, {pipeline_mode = #tpu.pipeline_mode<synchronous>, transform_indices = @transform_1, window_bounds = array<i64: 8, 10>}, {pipeline_mode = #tpu.pipeline_mode<synchronous>, transform_indices = @transform_2, window_bounds = array<i64: 8, 1>}, {transform_indices = @transform_3, window_bounds = array<i64: 1, 1, 8, 64>}]} {
    %c0 = arith.constant 0 : index
    %c0_0 = arith.constant 0 : index
    %0 = vector.load %arg3[%c0, %c0_0] : memref<8x10xbf16, #tpu.memory_space<vmem>>, vector<8x10xbf16>
    %c0_1 = arith.constant 0 : index
    %c0_2 = arith.constant 0 : index
    %c0_3 = arith.constant 0 : index
    %c0_4 = arith.constant 0 : index
    %1 = vector.load %arg2[%c0_1, %c0_2, %c0_3, %c0_4] : memref<1x1x10x64xbf16, #tpu.memory_space<vmem>>, vector<1x1x10x64xbf16>
    %2 = vector.shape_cast %1 : vector<1x1x10x64xbf16> to vector<10x64xbf16>
    %cst = arith.constant dense<0.000000e+00> : vector<8x64xf32>
    %3 = tpu.matmul %0, %2, %cst {dimension_numbers = #tpu.dot_dimension_numbers<[1], [0], [0], [1], [0, 0, 1, 1], [], []>} : vector<8x10xbf16>, vector<10x64xbf16>, vector<8x64xf32> -> vector<8x64xf32>
    %c0_5 = arith.constant 0 : index
    %c0_6 = arith.constant 0 : index
    %4 = vector.load %arg4[%c0_5, %c0_6] : memref<8x1xf32, #tpu.memory_space<vmem>>, vector<8x1xf32>
    %5 = vector.broadcast %4 : vector<8x1xf32> to vector<8x64xf32>
    %6 = arith.addf %3, %5 : vector<8x64xf32>
    %7 = arith.truncf %6 : vector<8x64xf32> to vector<8x64xbf16>
    %c0_7 = arith.constant 0 : index
    %c0_8 = arith.constant 0 : index
    %c0_9 = arith.constant 0 : index
    %c0_10 = arith.constant 0 : index
    %8 = vector.load %arg5[%c0_7, %c0_8, %c0_9, %c0_10] : memref<1x1x8x64xbf16, #tpu.memory_space<vmem>>, vector<1x1x8x64xbf16>
    %9 = vector.shape_cast %8 : vector<1x1x8x64xbf16> to vector<8x64xbf16>
    %10 = vector.shape_cast %7 : vector<8x64xbf16> to vector<1x1x8x64xbf16>
    tpu.vector_store %arg5[%c0_7, %c0_8, %c0_9, %c0_10], %10 {strides = array<i32>} : memref<1x1x8x64xbf16, #tpu.memory_space<vmem>>, vector<1x1x8x64xbf16>,
    return
  }
  func.func @transform_0(%arg0: i32, %arg1: i32) -> (i32, i32, i32, i32) {
    %c0_i32 = arith.constant 0 : i32
    %c0_i32_0 = arith.constant 0 : i32
    %c0_i32_1 = arith.constant 0 : i32
    return %arg0, %arg1, %c0_i32, %c0_i32_0 : i32, i32, i32, i32
  }
  func.func @transform_1(%arg0: i32, %arg1: i32) -> (i32, i32) {
    %c0_i32 = arith.constant 0 : i32
    %c0_i32_0 = arith.constant 0 : i32
    %c0_i32_1 = arith.constant 0 : i32
    return %c0_i32, %c0_i32_0 : i32, i32
  }
  func.func @transform_2(%arg0: i32, %arg1: i32) -> (i32, i32) {
    %c0_i32 = arith.constant 0 : i32
    %c0_i32_0 = arith.constant 0 : i32
    %c0_i32_1 = arith.constant 0 : i32
    return %c0_i32, %c0_i32_0 : i32, i32
  }
  func.func @transform_3(%arg0: i32, %arg1: i32) -> (i32, i32, i32, i32) {
    %c0_i32 = arith.constant 0 : i32
    %c0_i32_0 = arith.constant 0 : i32
    %c0_i32_1 = arith.constant 0 : i32
    return %arg0, %arg1, %c0_i32, %c0_i32_0 : i32, i32, i32, i32
  }
}

module attributes {stable_mosaic.version = 11 : i64} {
  func.func @_conv3x3_kernel(%arg0: i32, %arg1: i32, %arg2: memref<1x1x1x342xbf16, #tpu.memory_space<vmem>>, %arg3: memref<1x1x1x342xbf16, #tpu.memory_space<vmem>>, %arg4: memref<1x1x1x342xbf16, #tpu.memory_space<vmem>>, %arg5: memref<27x1x1xbf16, #tpu.memory_space<vmem>>, %arg6: memref<1x288xf32, #tpu.memory_space<vmem>>, %arg7: memref<1x1x1x288xbf16, #tpu.memory_space<vmem>>, %arg8: memref<1x1x1x1xf32, #tpu.memory_space<vmem>>, %arg9: memref<1x1x1x1xf32, #tpu.memory_space<vmem>>) attributes {dimension_semantics = [#tpu.dimension_semantics<parallel>, #tpu.dimension_semantics<parallel>], iteration_bounds = array<i64: 2, 16>, scalar_prefetch = 0 : i64, scratch_operands = 0 : i64, tpu.core_type = #tpu.core_type<tc>, window_params = [{transform_indices = @transform_0, window_bounds = array<i64: 1, 1, 1, 342>}, {transform_indices = @transform_1, window_bounds = array<i64: 1, 1, 1, 342>}, {transform_indices = @transform_2, window_bounds = array<i64: 1, 1, 1, 342>}, {pipeline_mode = #tpu.pipeline_mode<synchronous>, transform_indices = @transform_3, window_bounds = array<i64: 27, 1, 1>}, {pipeline_mode = #tpu.pipeline_mode<synchronous>, transform_indices = @transform_4, window_bounds = array<i64: 1, 288>}, {transform_indices = @transform_5, window_bounds = array<i64: 1, 1, 1, 288>}, {transform_indices = @transform_6, window_bounds = array<i64: 1, 1, 1, 1>}, {transform_indices = @transform_7, window_bounds = array<i64: 1, 1, 1, 1>}]} {
    %cst = arith.constant 0.000000e+00 : f32
    %0 = vector.broadcast %cst : f32 to vector<1x288xf32>
    %c0 = arith.constant 0 : index
    %c0_0 = arith.constant 0 : index
    %c0_1 = arith.constant 0 : index
    %c0_2 = arith.constant 0 : index
    %1 = vector.load %arg2[%c0, %c0_0, %c0_1, %c0_2] : memref<1x1x1x342xbf16, #tpu.memory_space<vmem>>, vector<1x1x1x342xbf16>
    %2 = vector.shape_cast %1 : vector<1x1x1x342xbf16> to vector<1x342xbf16>
    %3 = vector.extract_strided_slice %2 {offsets = [0, 0], sizes = [1, 288], strides = [1, 1]} : vector<1x342xbf16> to vector<1x288xbf16>
    %c0_3 = arith.constant 0 : index
    %c0_4 = arith.constant 0 : index
    %c0_5 = arith.constant 0 : index
    %4 = vector.load %arg5[%c0_3, %c0_4, %c0_5] : memref<27x1x1xbf16, #tpu.memory_space<vmem>>, vector<1x1x1xbf16>
    %5 = vector.shape_cast %4 : vector<1x1x1xbf16> to vector<1x1xbf16>
    %6 = arith.extf %5 : vector<1x1xbf16> to vector<1x1xf32>
    %7 = arith.extf %3 : vector<1x288xbf16> to vector<1x288xf32>
    %8 = vector.broadcast %6 : vector<1x1xf32> to vector<1x288xf32>
    %9 = arith.mulf %8, %7 : vector<1x288xf32>
    %10 = arith.addf %0, %9 : vector<1x288xf32>
    %11 = vector.extract_strided_slice %2 {offsets = [0, 1], sizes = [1, 288], strides = [1, 1]} : vector<1x342xbf16> to vector<1x288xbf16>
    %c1 = arith.constant 1 : index
    %c0_6 = arith.constant 0 : index
    %c0_7 = arith.constant 0 : index
    %12 = vector.load %arg5[%c1, %c0_6, %c0_7] : memref<27x1x1xbf16, #tpu.memory_space<vmem>>, vector<1x1x1xbf16>
    %13 = vector.shape_cast %12 : vector<1x1x1xbf16> to vector<1x1xbf16>
    %14 = arith.extf %13 : vector<1x1xbf16> to vector<1x1xf32>
    %15 = arith.extf %11 : vector<1x288xbf16> to vector<1x288xf32>
    %16 = vector.broadcast %14 : vector<1x1xf32> to vector<1x288xf32>
    %17 = arith.mulf %16, %15 : vector<1x288xf32>
    %18 = arith.addf %10, %17 : vector<1x288xf32>
    %19 = vector.extract_strided_slice %2 {offsets = [0, 2], sizes = [1, 288], strides = [1, 1]} : vector<1x342xbf16> to vector<1x288xbf16>
    %c2 = arith.constant 2 : index
    %c0_8 = arith.constant 0 : index
    %c0_9 = arith.constant 0 : index
    %20 = vector.load %arg5[%c2, %c0_8, %c0_9] : memref<27x1x1xbf16, #tpu.memory_space<vmem>>, vector<1x1x1xbf16>
    %21 = vector.shape_cast %20 : vector<1x1x1xbf16> to vector<1x1xbf16>
    %22 = arith.extf %21 : vector<1x1xbf16> to vector<1x1xf32>
    %23 = arith.extf %19 : vector<1x288xbf16> to vector<1x288xf32>
    %24 = vector.broadcast %22 : vector<1x1xf32> to vector<1x288xf32>
    %25 = arith.mulf %24, %23 : vector<1x288xf32>
    %26 = arith.addf %18, %25 : vector<1x288xf32>
    %27 = vector.extract_strided_slice %2 {offsets = [0, 18], sizes = [1, 288], strides = [1, 1]} : vector<1x342xbf16> to vector<1x288xbf16>
    %c3 = arith.constant 3 : index
    %c0_10 = arith.constant 0 : index
    %c0_11 = arith.constant 0 : index
    %28 = vector.load %arg5[%c3, %c0_10, %c0_11] : memref<27x1x1xbf16, #tpu.memory_space<vmem>>, vector<1x1x1xbf16>
    %29 = vector.shape_cast %28 : vector<1x1x1xbf16> to vector<1x1xbf16>
    %30 = arith.extf %29 : vector<1x1xbf16> to vector<1x1xf32>
    %31 = arith.extf %27 : vector<1x288xbf16> to vector<1x288xf32>
    %32 = vector.broadcast %30 : vector<1x1xf32> to vector<1x288xf32>
    %33 = arith.mulf %32, %31 : vector<1x288xf32>
    %34 = arith.addf %26, %33 : vector<1x288xf32>
    %35 = vector.extract_strided_slice %2 {offsets = [0, 19], sizes = [1, 288], strides = [1, 1]} : vector<1x342xbf16> to vector<1x288xbf16>
    %c4 = arith.constant 4 : index
    %c0_12 = arith.constant 0 : index
    %c0_13 = arith.constant 0 : index
    %36 = vector.load %arg5[%c4, %c0_12, %c0_13] : memref<27x1x1xbf16, #tpu.memory_space<vmem>>, vector<1x1x1xbf16>
    %37 = vector.shape_cast %36 : vector<1x1x1xbf16> to vector<1x1xbf16>
    %38 = arith.extf %37 : vector<1x1xbf16> to vector<1x1xf32>
    %39 = arith.extf %35 : vector<1x288xbf16> to vector<1x288xf32>
    %40 = vector.broadcast %38 : vector<1x1xf32> to vector<1x288xf32>
    %41 = arith.mulf %40, %39 : vector<1x288xf32>
    %42 = arith.addf %34, %41 : vector<1x288xf32>
    %43 = vector.extract_strided_slice %2 {offsets = [0, 20], sizes = [1, 288], strides = [1, 1]} : vector<1x342xbf16> to vector<1x288xbf16>
    %c5 = arith.constant 5 : index
    %c0_14 = arith.constant 0 : index
    %c0_15 = arith.constant 0 : index
    %44 = vector.load %arg5[%c5, %c0_14, %c0_15] : memref<27x1x1xbf16, #tpu.memory_space<vmem>>, vector<1x1x1xbf16>
    %45 = vector.shape_cast %44 : vector<1x1x1xbf16> to vector<1x1xbf16>
    %46 = arith.extf %45 : vector<1x1xbf16> to vector<1x1xf32>
    %47 = arith.extf %43 : vector<1x288xbf16> to vector<1x288xf32>
    %48 = vector.broadcast %46 : vector<1x1xf32> to vector<1x288xf32>
    %49 = arith.mulf %48, %47 : vector<1x288xf32>
    %50 = arith.addf %42, %49 : vector<1x288xf32>
    %51 = vector.extract_strided_slice %2 {offsets = [0, 36], sizes = [1, 288], strides = [1, 1]} : vector<1x342xbf16> to vector<1x288xbf16>
    %c6 = arith.constant 6 : index
    %c0_16 = arith.constant 0 : index
    %c0_17 = arith.constant 0 : index
    %52 = vector.load %arg5[%c6, %c0_16, %c0_17] : memref<27x1x1xbf16, #tpu.memory_space<vmem>>, vector<1x1x1xbf16>
    %53 = vector.shape_cast %52 : vector<1x1x1xbf16> to vector<1x1xbf16>
    %54 = arith.extf %53 : vector<1x1xbf16> to vector<1x1xf32>
    %55 = arith.extf %51 : vector<1x288xbf16> to vector<1x288xf32>
    %56 = vector.broadcast %54 : vector<1x1xf32> to vector<1x288xf32>
    %57 = arith.mulf %56, %55 : vector<1x288xf32>
    %58 = arith.addf %50, %57 : vector<1x288xf32>
    %59 = vector.extract_strided_slice %2 {offsets = [0, 37], sizes = [1, 288], strides = [1, 1]} : vector<1x342xbf16> to vector<1x288xbf16>
    %c7 = arith.constant 7 : index
    %c0_18 = arith.constant 0 : index
    %c0_19 = arith.constant 0 : index
    %60 = vector.load %arg5[%c7, %c0_18, %c0_19] : memref<27x1x1xbf16, #tpu.memory_space<vmem>>, vector<1x1x1xbf16>
    %61 = vector.shape_cast %60 : vector<1x1x1xbf16> to vector<1x1xbf16>
    %62 = arith.extf %61 : vector<1x1xbf16> to vector<1x1xf32>
    %63 = arith.extf %59 : vector<1x288xbf16> to vector<1x288xf32>
    %64 = vector.broadcast %62 : vector<1x1xf32> to vector<1x288xf32>
    %65 = arith.mulf %64, %63 : vector<1x288xf32>
    %66 = arith.addf %58, %65 : vector<1x288xf32>
    %67 = vector.extract_strided_slice %2 {offsets = [0, 38], sizes = [1, 288], strides = [1, 1]} : vector<1x342xbf16> to vector<1x288xbf16>
    %c8 = arith.constant 8 : index
    %c0_20 = arith.constant 0 : index
    %c0_21 = arith.constant 0 : index
    %68 = vector.load %arg5[%c8, %c0_20, %c0_21] : memref<27x1x1xbf16, #tpu.memory_space<vmem>>, vector<1x1x1xbf16>
    %69 = vector.shape_cast %68 : vector<1x1x1xbf16> to vector<1x1xbf16>
    %70 = arith.extf %69 : vector<1x1xbf16> to vector<1x1xf32>
    %71 = arith.extf %67 : vector<1x288xbf16> to vector<1x288xf32>
    %72 = vector.broadcast %70 : vector<1x1xf32> to vector<1x288xf32>
    %73 = arith.mulf %72, %71 : vector<1x288xf32>
    %74 = arith.addf %66, %73 : vector<1x288xf32>
    %c0_22 = arith.constant 0 : index
    %c0_23 = arith.constant 0 : index
    %c0_24 = arith.constant 0 : index
    %c0_25 = arith.constant 0 : index
    %75 = vector.load %arg3[%c0_22, %c0_23, %c0_24, %c0_25] : memref<1x1x1x342xbf16, #tpu.memory_space<vmem>>, vector<1x1x1x342xbf16>
    %76 = vector.shape_cast %75 : vector<1x1x1x342xbf16> to vector<1x342xbf16>
    %77 = vector.extract_strided_slice %76 {offsets = [0, 0], sizes = [1, 288], strides = [1, 1]} : vector<1x342xbf16> to vector<1x288xbf16>
    %c9 = arith.constant 9 : index
    %c0_26 = arith.constant 0 : index
    %c0_27 = arith.constant 0 : index
    %78 = vector.load %arg5[%c9, %c0_26, %c0_27] : memref<27x1x1xbf16, #tpu.memory_space<vmem>>, vector<1x1x1xbf16>
    %79 = vector.shape_cast %78 : vector<1x1x1xbf16> to vector<1x1xbf16>
    %80 = arith.extf %79 : vector<1x1xbf16> to vector<1x1xf32>
    %81 = arith.extf %77 : vector<1x288xbf16> to vector<1x288xf32>
    %82 = vector.broadcast %80 : vector<1x1xf32> to vector<1x288xf32>
    %83 = arith.mulf %82, %81 : vector<1x288xf32>
    %84 = arith.addf %74, %83 : vector<1x288xf32>
    %85 = vector.extract_strided_slice %76 {offsets = [0, 1], sizes = [1, 288], strides = [1, 1]} : vector<1x342xbf16> to vector<1x288xbf16>
    %c10 = arith.constant 10 : index
    %c0_28 = arith.constant 0 : index
    %c0_29 = arith.constant 0 : index
    %86 = vector.load %arg5[%c10, %c0_28, %c0_29] : memref<27x1x1xbf16, #tpu.memory_space<vmem>>, vector<1x1x1xbf16>
    %87 = vector.shape_cast %86 : vector<1x1x1xbf16> to vector<1x1xbf16>
    %88 = arith.extf %87 : vector<1x1xbf16> to vector<1x1xf32>
    %89 = arith.extf %85 : vector<1x288xbf16> to vector<1x288xf32>
    %90 = vector.broadcast %88 : vector<1x1xf32> to vector<1x288xf32>
    %91 = arith.mulf %90, %89 : vector<1x288xf32>
    %92 = arith.addf %84, %91 : vector<1x288xf32>
    %93 = vector.extract_strided_slice %76 {offsets = [0, 2], sizes = [1, 288], strides = [1, 1]} : vector<1x342xbf16> to vector<1x288xbf16>
    %c11 = arith.constant 11 : index
    %c0_30 = arith.constant 0 : index
    %c0_31 = arith.constant 0 : index
    %94 = vector.load %arg5[%c11, %c0_30, %c0_31] : memref<27x1x1xbf16, #tpu.memory_space<vmem>>, vector<1x1x1xbf16>
    %95 = vector.shape_cast %94 : vector<1x1x1xbf16> to vector<1x1xbf16>
    %96 = arith.extf %95 : vector<1x1xbf16> to vector<1x1xf32>
    %97 = arith.extf %93 : vector<1x288xbf16> to vector<1x288xf32>
    %98 = vector.broadcast %96 : vector<1x1xf32> to vector<1x288xf32>
    %99 = arith.mulf %98, %97 : vector<1x288xf32>
    %100 = arith.addf %92, %99 : vector<1x288xf32>
    %101 = vector.extract_strided_slice %76 {offsets = [0, 18], sizes = [1, 288], strides = [1, 1]} : vector<1x342xbf16> to vector<1x288xbf16>
    %c12 = arith.constant 12 : index
    %c0_32 = arith.constant 0 : index
    %c0_33 = arith.constant 0 : index
    %102 = vector.load %arg5[%c12, %c0_32, %c0_33] : memref<27x1x1xbf16, #tpu.memory_space<vmem>>, vector<1x1x1xbf16>
    %103 = vector.shape_cast %102 : vector<1x1x1xbf16> to vector<1x1xbf16>
    %104 = arith.extf %103 : vector<1x1xbf16> to vector<1x1xf32>
    %105 = arith.extf %101 : vector<1x288xbf16> to vector<1x288xf32>
    %106 = vector.broadcast %104 : vector<1x1xf32> to vector<1x288xf32>
    %107 = arith.mulf %106, %105 : vector<1x288xf32>
    %108 = arith.addf %100, %107 : vector<1x288xf32>
    %109 = vector.extract_strided_slice %76 {offsets = [0, 19], sizes = [1, 288], strides = [1, 1]} : vector<1x342xbf16> to vector<1x288xbf16>
    %c13 = arith.constant 13 : index
    %c0_34 = arith.constant 0 : index
    %c0_35 = arith.constant 0 : index
    %110 = vector.load %arg5[%c13, %c0_34, %c0_35] : memref<27x1x1xbf16, #tpu.memory_space<vmem>>, vector<1x1x1xbf16>
    %111 = vector.shape_cast %110 : vector<1x1x1xbf16> to vector<1x1xbf16>
    %112 = arith.extf %111 : vector<1x1xbf16> to vector<1x1xf32>
    %113 = arith.extf %109 : vector<1x288xbf16> to vector<1x288xf32>
    %114 = vector.broadcast %112 : vector<1x1xf32> to vector<1x288xf32>
    %115 = arith.mulf %114, %113 : vector<1x288xf32>
    %116 = arith.addf %108, %115 : vector<1x288xf32>
    %117 = vector.extract_strided_slice %76 {offsets = [0, 20], sizes = [1, 288], strides = [1, 1]} : vector<1x342xbf16> to vector<1x288xbf16>
    %c14 = arith.constant 14 : index
    %c0_36 = arith.constant 0 : index
    %c0_37 = arith.constant 0 : index
    %118 = vector.load %arg5[%c14, %c0_36, %c0_37] : memref<27x1x1xbf16, #tpu.memory_space<vmem>>, vector<1x1x1xbf16>
    %119 = vector.shape_cast %118 : vector<1x1x1xbf16> to vector<1x1xbf16>
    %120 = arith.extf %119 : vector<1x1xbf16> to vector<1x1xf32>
    %121 = arith.extf %117 : vector<1x288xbf16> to vector<1x288xf32>
    %122 = vector.broadcast %120 : vector<1x1xf32> to vector<1x288xf32>
    %123 = arith.mulf %122, %121 : vector<1x288xf32>
    %124 = arith.addf %116, %123 : vector<1x288xf32>
    %125 = vector.extract_strided_slice %76 {offsets = [0, 36], sizes = [1, 288], strides = [1, 1]} : vector<1x342xbf16> to vector<1x288xbf16>
    %c15 = arith.constant 15 : index
    %c0_38 = arith.constant 0 : index
    %c0_39 = arith.constant 0 : index
    %126 = vector.load %arg5[%c15, %c0_38, %c0_39] : memref<27x1x1xbf16, #tpu.memory_space<vmem>>, vector<1x1x1xbf16>
    %127 = vector.shape_cast %126 : vector<1x1x1xbf16> to vector<1x1xbf16>
    %128 = arith.extf %127 : vector<1x1xbf16> to vector<1x1xf32>
    %129 = arith.extf %125 : vector<1x288xbf16> to vector<1x288xf32>
    %130 = vector.broadcast %128 : vector<1x1xf32> to vector<1x288xf32>
    %131 = arith.mulf %130, %129 : vector<1x288xf32>
    %132 = arith.addf %124, %131 : vector<1x288xf32>
    %133 = vector.extract_strided_slice %76 {offsets = [0, 37], sizes = [1, 288], strides = [1, 1]} : vector<1x342xbf16> to vector<1x288xbf16>
    %c16 = arith.constant 16 : index
    %c0_40 = arith.constant 0 : index
    %c0_41 = arith.constant 0 : index
    %134 = vector.load %arg5[%c16, %c0_40, %c0_41] : memref<27x1x1xbf16, #tpu.memory_space<vmem>>, vector<1x1x1xbf16>
    %135 = vector.shape_cast %134 : vector<1x1x1xbf16> to vector<1x1xbf16>
    %136 = arith.extf %135 : vector<1x1xbf16> to vector<1x1xf32>
    %137 = arith.extf %133 : vector<1x288xbf16> to vector<1x288xf32>
    %138 = vector.broadcast %136 : vector<1x1xf32> to vector<1x288xf32>
    %139 = arith.mulf %138, %137 : vector<1x288xf32>
    %140 = arith.addf %132, %139 : vector<1x288xf32>
    %141 = vector.extract_strided_slice %76 {offsets = [0, 38], sizes = [1, 288], strides = [1, 1]} : vector<1x342xbf16> to vector<1x288xbf16>
    %c17 = arith.constant 17 : index
    %c0_42 = arith.constant 0 : index
    %c0_43 = arith.constant 0 : index
    %142 = vector.load %arg5[%c17, %c0_42, %c0_43] : memref<27x1x1xbf16, #tpu.memory_space<vmem>>, vector<1x1x1xbf16>
    %143 = vector.shape_cast %142 : vector<1x1x1xbf16> to vector<1x1xbf16>
    %144 = arith.extf %143 : vector<1x1xbf16> to vector<1x1xf32>
    %145 = arith.extf %141 : vector<1x288xbf16> to vector<1x288xf32>
    %146 = vector.broadcast %144 : vector<1x1xf32> to vector<1x288xf32>
    %147 = arith.mulf %146, %145 : vector<1x288xf32>
    %148 = arith.addf %140, %147 : vector<1x288xf32>
    %c0_44 = arith.constant 0 : index
    %c0_45 = arith.constant 0 : index
    %c0_46 = arith.constant 0 : index
    %c0_47 = arith.constant 0 : index
    %149 = vector.load %arg4[%c0_44, %c0_45, %c0_46, %c0_47] : memref<1x1x1x342xbf16, #tpu.memory_space<vmem>>, vector<1x1x1x342xbf16>
    %150 = vector.shape_cast %149 : vector<1x1x1x342xbf16> to vector<1x342xbf16>
    %151 = vector.extract_strided_slice %150 {offsets = [0, 0], sizes = [1, 288], strides = [1, 1]} : vector<1x342xbf16> to vector<1x288xbf16>
    %c18 = arith.constant 18 : index
    %c0_48 = arith.constant 0 : index
    %c0_49 = arith.constant 0 : index
    %152 = vector.load %arg5[%c18, %c0_48, %c0_49] : memref<27x1x1xbf16, #tpu.memory_space<vmem>>, vector<1x1x1xbf16>
    %153 = vector.shape_cast %152 : vector<1x1x1xbf16> to vector<1x1xbf16>
    %154 = arith.extf %153 : vector<1x1xbf16> to vector<1x1xf32>
    %155 = arith.extf %151 : vector<1x288xbf16> to vector<1x288xf32>
    %156 = vector.broadcast %154 : vector<1x1xf32> to vector<1x288xf32>
    %157 = arith.mulf %156, %155 : vector<1x288xf32>
    %158 = arith.addf %148, %157 : vector<1x288xf32>
    %159 = vector.extract_strided_slice %150 {offsets = [0, 1], sizes = [1, 288], strides = [1, 1]} : vector<1x342xbf16> to vector<1x288xbf16>
    %c19 = arith.constant 19 : index
    %c0_50 = arith.constant 0 : index
    %c0_51 = arith.constant 0 : index
    %160 = vector.load %arg5[%c19, %c0_50, %c0_51] : memref<27x1x1xbf16, #tpu.memory_space<vmem>>, vector<1x1x1xbf16>
    %161 = vector.shape_cast %160 : vector<1x1x1xbf16> to vector<1x1xbf16>
    %162 = arith.extf %161 : vector<1x1xbf16> to vector<1x1xf32>
    %163 = arith.extf %159 : vector<1x288xbf16> to vector<1x288xf32>
    %164 = vector.broadcast %162 : vector<1x1xf32> to vector<1x288xf32>
    %165 = arith.mulf %164, %163 : vector<1x288xf32>
    %166 = arith.addf %158, %165 : vector<1x288xf32>
    %167 = vector.extract_strided_slice %150 {offsets = [0, 2], sizes = [1, 288], strides = [1, 1]} : vector<1x342xbf16> to vector<1x288xbf16>
    %c20 = arith.constant 20 : index
    %c0_52 = arith.constant 0 : index
    %c0_53 = arith.constant 0 : index
    %168 = vector.load %arg5[%c20, %c0_52, %c0_53] : memref<27x1x1xbf16, #tpu.memory_space<vmem>>, vector<1x1x1xbf16>
    %169 = vector.shape_cast %168 : vector<1x1x1xbf16> to vector<1x1xbf16>
    %170 = arith.extf %169 : vector<1x1xbf16> to vector<1x1xf32>
    %171 = arith.extf %167 : vector<1x288xbf16> to vector<1x288xf32>
    %172 = vector.broadcast %170 : vector<1x1xf32> to vector<1x288xf32>
    %173 = arith.mulf %172, %171 : vector<1x288xf32>
    %174 = arith.addf %166, %173 : vector<1x288xf32>
    %175 = vector.extract_strided_slice %150 {offsets = [0, 18], sizes = [1, 288], strides = [1, 1]} : vector<1x342xbf16> to vector<1x288xbf16>
    %c21 = arith.constant 21 : index
    %c0_54 = arith.constant 0 : index
    %c0_55 = arith.constant 0 : index
    %176 = vector.load %arg5[%c21, %c0_54, %c0_55] : memref<27x1x1xbf16, #tpu.memory_space<vmem>>, vector<1x1x1xbf16>
    %177 = vector.shape_cast %176 : vector<1x1x1xbf16> to vector<1x1xbf16>
    %178 = arith.extf %177 : vector<1x1xbf16> to vector<1x1xf32>
    %179 = arith.extf %175 : vector<1x288xbf16> to vector<1x288xf32>
    %180 = vector.broadcast %178 : vector<1x1xf32> to vector<1x288xf32>
    %181 = arith.mulf %180, %179 : vector<1x288xf32>
    %182 = arith.addf %174, %181 : vector<1x288xf32>
    %183 = vector.extract_strided_slice %150 {offsets = [0, 19], sizes = [1, 288], strides = [1, 1]} : vector<1x342xbf16> to vector<1x288xbf16>
    %c22 = arith.constant 22 : index
    %c0_56 = arith.constant 0 : index
    %c0_57 = arith.constant 0 : index
    %184 = vector.load %arg5[%c22, %c0_56, %c0_57] : memref<27x1x1xbf16, #tpu.memory_space<vmem>>, vector<1x1x1xbf16>
    %185 = vector.shape_cast %184 : vector<1x1x1xbf16> to vector<1x1xbf16>
    %186 = arith.extf %185 : vector<1x1xbf16> to vector<1x1xf32>
    %187 = arith.extf %183 : vector<1x288xbf16> to vector<1x288xf32>
    %188 = vector.broadcast %186 : vector<1x1xf32> to vector<1x288xf32>
    %189 = arith.mulf %188, %187 : vector<1x288xf32>
    %190 = arith.addf %182, %189 : vector<1x288xf32>
    %191 = vector.extract_strided_slice %150 {offsets = [0, 20], sizes = [1, 288], strides = [1, 1]} : vector<1x342xbf16> to vector<1x288xbf16>
    %c23 = arith.constant 23 : index
    %c0_58 = arith.constant 0 : index
    %c0_59 = arith.constant 0 : index
    %192 = vector.load %arg5[%c23, %c0_58, %c0_59] : memref<27x1x1xbf16, #tpu.memory_space<vmem>>, vector<1x1x1xbf16>
    %193 = vector.shape_cast %192 : vector<1x1x1xbf16> to vector<1x1xbf16>
    %194 = arith.extf %193 : vector<1x1xbf16> to vector<1x1xf32>
    %195 = arith.extf %191 : vector<1x288xbf16> to vector<1x288xf32>
    %196 = vector.broadcast %194 : vector<1x1xf32> to vector<1x288xf32>
    %197 = arith.mulf %196, %195 : vector<1x288xf32>
    %198 = arith.addf %190, %197 : vector<1x288xf32>
    %199 = vector.extract_strided_slice %150 {offsets = [0, 36], sizes = [1, 288], strides = [1, 1]} : vector<1x342xbf16> to vector<1x288xbf16>
    %c24 = arith.constant 24 : index
    %c0_60 = arith.constant 0 : index
    %c0_61 = arith.constant 0 : index
    %200 = vector.load %arg5[%c24, %c0_60, %c0_61] : memref<27x1x1xbf16, #tpu.memory_space<vmem>>, vector<1x1x1xbf16>
    %201 = vector.shape_cast %200 : vector<1x1x1xbf16> to vector<1x1xbf16>
    %202 = arith.extf %201 : vector<1x1xbf16> to vector<1x1xf32>
    %203 = arith.extf %199 : vector<1x288xbf16> to vector<1x288xf32>
    %204 = vector.broadcast %202 : vector<1x1xf32> to vector<1x288xf32>
    %205 = arith.mulf %204, %203 : vector<1x288xf32>
    %206 = arith.addf %198, %205 : vector<1x288xf32>
    %207 = vector.extract_strided_slice %150 {offsets = [0, 37], sizes = [1, 288], strides = [1, 1]} : vector<1x342xbf16> to vector<1x288xbf16>
    %c25 = arith.constant 25 : index
    %c0_62 = arith.constant 0 : index
    %c0_63 = arith.constant 0 : index
    %208 = vector.load %arg5[%c25, %c0_62, %c0_63] : memref<27x1x1xbf16, #tpu.memory_space<vmem>>, vector<1x1x1xbf16>
    %209 = vector.shape_cast %208 : vector<1x1x1xbf16> to vector<1x1xbf16>
    %210 = arith.extf %209 : vector<1x1xbf16> to vector<1x1xf32>
    %211 = arith.extf %207 : vector<1x288xbf16> to vector<1x288xf32>
    %212 = vector.broadcast %210 : vector<1x1xf32> to vector<1x288xf32>
    %213 = arith.mulf %212, %211 : vector<1x288xf32>
    %214 = arith.addf %206, %213 : vector<1x288xf32>
    %215 = vector.extract_strided_slice %150 {offsets = [0, 38], sizes = [1, 288], strides = [1, 1]} : vector<1x342xbf16> to vector<1x288xbf16>
    %c26 = arith.constant 26 : index
    %c0_64 = arith.constant 0 : index
    %c0_65 = arith.constant 0 : index
    %216 = vector.load %arg5[%c26, %c0_64, %c0_65] : memref<27x1x1xbf16, #tpu.memory_space<vmem>>, vector<1x1x1xbf16>
    %217 = vector.shape_cast %216 : vector<1x1x1xbf16> to vector<1x1xbf16>
    %218 = arith.extf %217 : vector<1x1xbf16> to vector<1x1xf32>
    %219 = arith.extf %215 : vector<1x288xbf16> to vector<1x288xf32>
    %220 = vector.broadcast %218 : vector<1x1xf32> to vector<1x288xf32>
    %221 = arith.mulf %220, %219 : vector<1x288xf32>
    %222 = arith.addf %214, %221 : vector<1x288xf32>
    %c0_66 = arith.constant 0 : index
    %c0_67 = arith.constant 0 : index
    %223 = vector.load %arg6[%c0_66, %c0_67] : memref<1x288xf32, #tpu.memory_space<vmem>>, vector<1x288xf32>
    %224 = arith.mulf %222, %223 : vector<1x288xf32>
    %cst_68 = arith.constant dense<0.000000e+00> : vector<1xf32>
    %225 = vector.multi_reduction <add>, %224, %cst_68 [1] : vector<1x288xf32> to vector<1xf32>
    %226 = vector.shape_cast %225 : vector<1xf32> to vector<1x1xf32>
    %c0_69 = arith.constant 0 : index
    %c0_70 = arith.constant 0 : index
    %c0_71 = arith.constant 0 : index
    %c0_72 = arith.constant 0 : index
    %227 = vector.load %arg8[%c0_69, %c0_70, %c0_71, %c0_72] : memref<1x1x1x1xf32, #tpu.memory_space<vmem>>, vector<1x1x1x1xf32>
    %228 = vector.shape_cast %227 : vector<1x1x1x1xf32> to vector<1x1xf32>
    %229 = vector.shape_cast %226 : vector<1x1xf32> to vector<1x1x1x1xf32>
    tpu.vector_store %arg8[%c0_69, %c0_70, %c0_71, %c0_72], %229 {strides = array<i32>} : memref<1x1x1x1xf32, #tpu.memory_space<vmem>>, vector<1x1x1x1xf32>,
    %230 = arith.mulf %224, %222 : vector<1x288xf32>
    %cst_73 = arith.constant dense<0.000000e+00> : vector<1xf32>
    %231 = vector.multi_reduction <add>, %230, %cst_73 [1] : vector<1x288xf32> to vector<1xf32>
    %232 = vector.shape_cast %231 : vector<1xf32> to vector<1x1xf32>
    %c0_74 = arith.constant 0 : index
    %c0_75 = arith.constant 0 : index
    %c0_76 = arith.constant 0 : index
    %c0_77 = arith.constant 0 : index
    %233 = vector.load %arg9[%c0_74, %c0_75, %c0_76, %c0_77] : memref<1x1x1x1xf32, #tpu.memory_space<vmem>>, vector<1x1x1x1xf32>
    %234 = vector.shape_cast %233 : vector<1x1x1x1xf32> to vector<1x1xf32>
    %235 = vector.shape_cast %232 : vector<1x1xf32> to vector<1x1x1x1xf32>
    tpu.vector_store %arg9[%c0_74, %c0_75, %c0_76, %c0_77], %235 {strides = array<i32>} : memref<1x1x1x1xf32, #tpu.memory_space<vmem>>, vector<1x1x1x1xf32>,
    %236 = arith.truncf %222 : vector<1x288xf32> to vector<1x288xbf16>
    %c0_78 = arith.constant 0 : index
    %c0_79 = arith.constant 0 : index
    %c0_80 = arith.constant 0 : index
    %c0_81 = arith.constant 0 : index
    %237 = vector.load %arg7[%c0_78, %c0_79, %c0_80, %c0_81] : memref<1x1x1x288xbf16, #tpu.memory_space<vmem>>, vector<1x1x1x288xbf16>
    %238 = vector.shape_cast %237 : vector<1x1x1x288xbf16> to vector<1x288xbf16>
    %239 = vector.shape_cast %236 : vector<1x288xbf16> to vector<1x1x1x288xbf16>
    tpu.vector_store %arg7[%c0_78, %c0_79, %c0_80, %c0_81], %239 {strides = array<i32>} : memref<1x1x1x288xbf16, #tpu.memory_space<vmem>>, vector<1x1x1x288xbf16>,
    return
  }
  func.func @transform_0(%arg0: i32, %arg1: i32) -> (i32, i32, i32, i32) {
    %c0_i32 = arith.constant 0 : i32
    %0 = arith.addi %arg1, %c0_i32 : i32
    %c0_i32_0 = arith.constant 0 : i32
    %c0_i32_1 = arith.constant 0 : i32
    %c0_i32_2 = arith.constant 0 : i32
    return %arg0, %0, %c0_i32_0, %c0_i32_1 : i32, i32, i32, i32
  }
  func.func @transform_1(%arg0: i32, %arg1: i32) -> (i32, i32, i32, i32) {
    %c1_i32 = arith.constant 1 : i32
    %0 = arith.addi %arg1, %c1_i32 : i32
    %c0_i32 = arith.constant 0 : i32
    %c0_i32_0 = arith.constant 0 : i32
    %c0_i32_1 = arith.constant 0 : i32
    return %arg0, %0, %c0_i32, %c0_i32_0 : i32, i32, i32, i32
  }
  func.func @transform_2(%arg0: i32, %arg1: i32) -> (i32, i32, i32, i32) {
    %c2_i32 = arith.constant 2 : i32
    %0 = arith.addi %arg1, %c2_i32 : i32
    %c0_i32 = arith.constant 0 : i32
    %c0_i32_0 = arith.constant 0 : i32
    %c0_i32_1 = arith.constant 0 : i32
    return %arg0, %0, %c0_i32, %c0_i32_0 : i32, i32, i32, i32
  }
  func.func @transform_3(%arg0: i32, %arg1: i32) -> (i32, i32, i32) {
    %c0_i32 = arith.constant 0 : i32
    %c0_i32_0 = arith.constant 0 : i32
    %c0_i32_1 = arith.constant 0 : i32
    %c0_i32_2 = arith.constant 0 : i32
    return %c0_i32, %c0_i32_0, %c0_i32_1 : i32, i32, i32
  }
  func.func @transform_4(%arg0: i32, %arg1: i32) -> (i32, i32) {
    %c0_i32 = arith.constant 0 : i32
    %c0_i32_0 = arith.constant 0 : i32
    %c0_i32_1 = arith.constant 0 : i32
    return %c0_i32, %c0_i32_0 : i32, i32
  }
  func.func @transform_5(%arg0: i32, %arg1: i32) -> (i32, i32, i32, i32) {
    %c0_i32 = arith.constant 0 : i32
    %c0_i32_0 = arith.constant 0 : i32
    %c0_i32_1 = arith.constant 0 : i32
    return %arg0, %arg1, %c0_i32, %c0_i32_0 : i32, i32, i32, i32
  }
  func.func @transform_6(%arg0: i32, %arg1: i32) -> (i32, i32, i32, i32) {
    %c0_i32 = arith.constant 0 : i32
    %c0_i32_0 = arith.constant 0 : i32
    %c0_i32_1 = arith.constant 0 : i32
    return %arg0, %arg1, %c0_i32, %c0_i32_0 : i32, i32, i32, i32
  }
  func.func @transform_7(%arg0: i32, %arg1: i32) -> (i32, i32, i32, i32) {
    %c0_i32 = arith.constant 0 : i32
    %c0_i32_0 = arith.constant 0 : i32
    %c0_i32_1 = arith.constant 0 : i32
    return %arg0, %arg1, %c0_i32, %c0_i32_0 : i32, i32, i32, i32
  }
}

module attributes {stable_mosaic.version = 11 : i64} {
  func.func @_endconv_kernel(%arg0: i32, %arg1: i32, %arg2: memref<1x1x1x288xbf16, #tpu.memory_space<vmem>>, %arg3: memref<1x1xf32, #tpu.memory_space<vmem>>, %arg4: memref<1x1xf32, #tpu.memory_space<vmem>>, %arg5: memref<4x1xf32, #tpu.memory_space<vmem>>, %arg6: memref<4x1xf32, #tpu.memory_space<vmem>>, %arg7: memref<1x1x4x288xf32, #tpu.memory_space<vmem>>) attributes {dimension_semantics = [#tpu.dimension_semantics<parallel>, #tpu.dimension_semantics<parallel>], iteration_bounds = array<i64: 2, 16>, scalar_prefetch = 0 : i64, scratch_operands = 0 : i64, tpu.core_type = #tpu.core_type<tc>, window_params = [{transform_indices = @transform_0, window_bounds = array<i64: 1, 1, 1, 288>}, {pipeline_mode = #tpu.pipeline_mode<synchronous>, transform_indices = @transform_1, window_bounds = array<i64: 1, 1>}, {pipeline_mode = #tpu.pipeline_mode<synchronous>, transform_indices = @transform_2, window_bounds = array<i64: 1, 1>}, {pipeline_mode = #tpu.pipeline_mode<synchronous>, transform_indices = @transform_3, window_bounds = array<i64: 4, 1>}, {pipeline_mode = #tpu.pipeline_mode<synchronous>, transform_indices = @transform_4, window_bounds = array<i64: 4, 1>}, {transform_indices = @transform_5, window_bounds = array<i64: 1, 1, 4, 288>}]} {
    %c0 = arith.constant 0 : index
    %c0_0 = arith.constant 0 : index
    %c0_1 = arith.constant 0 : index
    %c0_2 = arith.constant 0 : index
    %0 = vector.load %arg2[%c0, %c0_0, %c0_1, %c0_2] : memref<1x1x1x288xbf16, #tpu.memory_space<vmem>>, vector<1x1x1x288xbf16>
    %1 = vector.shape_cast %0 : vector<1x1x1x288xbf16> to vector<1x288xbf16>
    %2 = arith.extf %1 : vector<1x288xbf16> to vector<1x288xf32>
    %c0_3 = arith.constant 0 : index
    %c0_4 = arith.constant 0 : index
    %3 = vector.load %arg3[%c0_3, %c0_4] : memref<1x1xf32, #tpu.memory_space<vmem>>, vector<1x1xf32>
    %4 = vector.broadcast %3 : vector<1x1xf32> to vector<1x288xf32>
    %5 = arith.mulf %2, %4 : vector<1x288xf32>
    %c0_5 = arith.constant 0 : index
    %c0_6 = arith.constant 0 : index
    %6 = vector.load %arg4[%c0_5, %c0_6] : memref<1x1xf32, #tpu.memory_space<vmem>>, vector<1x1xf32>
    %7 = vector.broadcast %6 : vector<1x1xf32> to vector<1x288xf32>
    %8 = arith.addf %5, %7 : vector<1x288xf32>
    %cst = arith.constant 0.000000e+00 : f32
    %9 = vector.broadcast %cst : f32 to vector<1x288xf32>
    %10 = arith.maximumf %8, %9 : vector<1x288xf32>
    %c0_7 = arith.constant 0 : index
    %c0_8 = arith.constant 0 : index
    %11 = vector.load %arg5[%c0_7, %c0_8] : memref<4x1xf32, #tpu.memory_space<vmem>>, vector<4x1xf32>
    %cst_9 = arith.constant 0.000000e+00 : f32
    %12 = vector.broadcast %cst_9 : f32 to vector<4x288xf32>
    %13 = vector.broadcast %11 : vector<4x1xf32> to vector<4x288xf32>
    %14 = vector.broadcast %10 : vector<1x288xf32> to vector<4x288xf32>
    %15 = arith.mulf %13, %14 : vector<4x288xf32>
    %16 = arith.addf %12, %15 : vector<4x288xf32>
    %c0_10 = arith.constant 0 : index
    %c0_11 = arith.constant 0 : index
    %17 = vector.load %arg6[%c0_10, %c0_11] : memref<4x1xf32, #tpu.memory_space<vmem>>, vector<4x1xf32>
    %18 = vector.broadcast %17 : vector<4x1xf32> to vector<4x288xf32>
    %19 = arith.addf %16, %18 : vector<4x288xf32>
    %c0_12 = arith.constant 0 : index
    %c0_13 = arith.constant 0 : index
    %c0_14 = arith.constant 0 : index
    %c0_15 = arith.constant 0 : index
    %20 = vector.load %arg7[%c0_12, %c0_13, %c0_14, %c0_15] : memref<1x1x4x288xf32, #tpu.memory_space<vmem>>, vector<1x1x4x288xf32>
    %21 = vector.shape_cast %20 : vector<1x1x4x288xf32> to vector<4x288xf32>
    %22 = vector.shape_cast %19 : vector<4x288xf32> to vector<1x1x4x288xf32>
    tpu.vector_store %arg7[%c0_12, %c0_13, %c0_14, %c0_15], %22 {strides = array<i32>} : memref<1x1x4x288xf32, #tpu.memory_space<vmem>>, vector<1x1x4x288xf32>,
    return
  }
  func.func @transform_0(%arg0: i32, %arg1: i32) -> (i32, i32, i32, i32) {
    %c0_i32 = arith.constant 0 : i32
    %c0_i32_0 = arith.constant 0 : i32
    %c0_i32_1 = arith.constant 0 : i32
    return %arg0, %arg1, %c0_i32, %c0_i32_0 : i32, i32, i32, i32
  }
  func.func @transform_1(%arg0: i32, %arg1: i32) -> (i32, i32) {
    %c0_i32 = arith.constant 0 : i32
    %c0_i32_0 = arith.constant 0 : i32
    %c0_i32_1 = arith.constant 0 : i32
    return %c0_i32, %c0_i32_0 : i32, i32
  }
  func.func @transform_2(%arg0: i32, %arg1: i32) -> (i32, i32) {
    %c0_i32 = arith.constant 0 : i32
    %c0_i32_0 = arith.constant 0 : i32
    %c0_i32_1 = arith.constant 0 : i32
    return %c0_i32, %c0_i32_0 : i32, i32
  }
  func.func @transform_3(%arg0: i32, %arg1: i32) -> (i32, i32) {
    %c0_i32 = arith.constant 0 : i32
    %c0_i32_0 = arith.constant 0 : i32
    %c0_i32_1 = arith.constant 0 : i32
    return %c0_i32, %c0_i32_0 : i32, i32
  }
  func.func @transform_4(%arg0: i32, %arg1: i32) -> (i32, i32) {
    %c0_i32 = arith.constant 0 : i32
    %c0_i32_0 = arith.constant 0 : i32
    %c0_i32_1 = arith.constant 0 : i32
    return %c0_i32, %c0_i32_0 : i32, i32
  }
  func.func @transform_5(%arg0: i32, %arg1: i32) -> (i32, i32, i32, i32) {
    %c0_i32 = arith.constant 0 : i32
    %c0_i32_0 = arith.constant 0 : i32
    %c0_i32_1 = arith.constant 0 : i32
    return %arg0, %arg1, %c0_i32, %c0_i32_0 : i32, i32, i32, i32
  }
}

</mosaic_0001>

<bundles_post_ra>
// kernel: _lambda_.18
= control target key start
LH: loop header
LB: loop body
LE: loop exit
PB: predicated region body
PF: predicated region fallthrough
CT: control target
= control target key end

     0   :  { %s595_s12 = smov 0   ;;  %s597_s13 = smov 0   ;;  %s666_s0 = inlined_call_operand.vmem [shape: bf16[2,2,40,4], index: 0, kind: input, shape index: {}]   ;;  %s667_s1 = inlined_call_operand.vmem [shape: bf16[32,40], index: 1, kind: input, shape index: {}]   ;;  %s668_s2 = inlined_call_operand.vmem [shape: f32[32,1], index: 2, kind: input, shape index: {}]   ;;  %s669_s3 = inlined_call_operand.vmem [shape: bf16[2,2,32,4], index: 3, kind: output, shape index: {}]  }
   0x1   :  { %s599_s14 = smov 0   ;;  %s601_s15 = smov 0  }
   0x2   :  { %s603_s16 = smov 0  }
   0x3 LB: > { %s22_s17 = sadd.s32 1, %s564_s14  ;;  %s25_s18 = sadd.s32 1, %s568_s15  ;;  %s572_s16 = sphi %s603_s16, %s13_s16   ;;  %s568_s15 = sphi %s601_s15, %s673_s15   ;;  %s564_s14 = sphi %s599_s14, %s672_s14   ;;  %s560_s13 = sphi %s597_s13, %s671_s13   ;;  %s556_s12 = sphi %s595_s12, %s670_s12  }
   0x4   : > { %p23_p0 = scmp.ge.s32.totalorder %s22_s17, 2  ;;  %p446_p1 = scmp.ge.s32.totalorder %s572_s16, 1 }
   0x5   : > { %p157_p2 = scmp.lt.s32.totalorder %s572_s16, 5 }
   0x6   : > { %s675_s17 = smov (%p23_p0, %s22_s17), 0  ;;  %s677_s18 = smov (!%p23_p0, %s25_s18), %s568_s15 }
   0x7   : > { %p158_p3 = pnand %p446_p1, %p157_p2  ;;  %p27_p4 = scmp.ge.s32.totalorder %s677_s18, 2 }
   0x8   : > { %p189_p5 = scmp.lt.s32.totalorder (!%p158_p3), %s560_s13, 1  ;;  %p191_p6 = scmp.lt.s32.totalorder (!%p158_p3), %s556_s12, 1  ;;  %v532_v0 = vld [vmem:[%s667_s1] sm:$0xff] (!%p158_p3)   ;;  %vm266_vm0 = vcmask (!%p158_p3), 326656   ;;  %v219_v1 = vld [vmem:[%s668_s2 + $0x10] sm:$0xff] (!%p158_p3)  ;;  %v574_v3 = vmov (!%p158_p3), 0  }
   0x9   : > { %s679_s18 = smov (%p27_p4, %s677_s18), 0  ;;  %161 = sbr.rel (%p158_p3) target bundleno = 256 (0x100), region = 32 }
   0xa   : > { %479 = vmatprep.mubr.msk.bf16.mxu0 (!%p158_p3), %vm266_vm0, %v532_v0  ;;  %v217_v2 = vld [vmem:[%s668_s2] sm:$0xff] (!%p158_p3)  ;;  %528 = vset.pattern.permute.xlu1 (!%p158_p3), %v574_v3  ;;  %v220_v4 = vld [vmem:[%s668_s2 + $0x18] sm:$0xff] (!%p158_p3)  ;;  %v218_v5 = vld [vmem:[%s668_s2 + $0x8] sm:$0xff] (!%p158_p3)  ;;  %vm273_vm1 = vcmask (!%p158_p3), 1043456   ;;  %vm342_vm2 = vcmask (!%p158_p3), 27648  }
   0xb   : > { %527 = vset.pattern.permute.xlu0 (!%p158_p3), %v574_v3  ;;  %233 = vperm.xlu1 (!%p158_p3), %528, %v219_v1   ;;  %v533_v10 = vld [vmem:[%s667_s1 + $0x8] sm:$0xff] (!%p158_p3)  }
   0xc   : > { %223 = vperm.xlu0 (!%p158_p3), %527, %v217_v2  }
   0xf   : > { %238 = vperm.xlu1 (!%p158_p3), %528, %v220_v4  }
  0x10   : > { %s681_s13 = smov (!%p189_p5, %s560_s13), 1  ;;  %s683_s12 = smov (!%p191_p6, %s556_s12), 1  ;;  %228 = vperm.xlu0 %527, %v218_v5  }
  0x11   : > { %s485_s25 = smul.u32 10, %s681_s13  ;;  %s448_s5 = sshll.u32 %s683_s12, 2 }
  0x12   : > { %s484_s26 = smul.u32 5, %s683_s12  ;;  %s449_s7 = sshll.u32 %s681_s13, 3 }
  0x13   : > { %s204_s11 = sadd.s32 %s449_s7, %s448_s5 }
  0x14   : > { %s195_s4 = sadd.s32 %s485_s25, %s484_s26  ;;  %s450_s13 = sshll.u32 %s204_s11, 2 }
  0x15   : > { %s447_s6 = sshll.u32 %s195_s4, 2  ;;  %s206_s22 = scalar_lea.vmem %s669_s3, %s450_s13 }
  0x16   : > { %s197_s10 = scalar_lea.vmem %s666_s0, %s447_s6 }
  0x17   : > { %v529_v6 = vld [vmem:[%s197_s10] sm:$0xff]   ;;  %v530_v7 = vld [vmem:[%s197_s10 + $0x8] sm:$0xff]   ;;  %v531_v8 = vld [vmem:[%s197_s10 + $0x10] ss:$0 sps:$4 sm:$0xff]  }
  0x18   : > { %473 = vmatprep.subr.bf16.mxu0 %v529_v6  ;;  %v275_v9 = vsel %vm273_vm1, %v531_v8, 0 }
  0x19   : > { %474 = vmatpush3.bf16.msra.mxu0 %v529_v6 }
  0x1a   : > { %475 = vmatprep.subr.bf16.mxu0 %v530_v7 }
  0x1d   : > { %476 = vmatpush3.bf16.msra.mxu0 %v530_v7 }
  0x1e   : > { %483 = vmatprep.subr.msk.bf16.mxu0 %vm273_vm1, %v531_v8 }
  0x21   : > { %478 = vmatpush3.bf16.msra.mxu0 %v275_v9 }
  0x24   : > { %480 = vmatmul.mubr.msk.bf16.vlgmr.msra.gmra.mrb[0].mxu0 %vm266_vm0, %v533_v10 }
  0x8a   : > { %v234_v11 = vpop.permute.xlu1 %233 }
  0x8b   : > { %v224_v12 = vpop.permute.xlu0 %223 }
  0x8e   : > { %v239_v16 = vpop.permute.xlu1 %238 }
  0x8f   : > { %v229_v19 = vpop.permute.xlu0 %228 }
  0xf7   : > { %v481_v13 = vpop.f32.mrb[0].mxu0 }
  0xf8   : > { %v320_v14 = vadd.f32 %v481_v13, %v234_v11  ;;  %v311_v15 = vpop.f32.mrb[1].mxu0 }
  0xf9   : > { %v312_v17 = vadd.f32 %v311_v15, %v224_v12  ;;  %v482_v18 = vpop.f32.mrb[2].mxu0 }
  0xfa   : > { %v466_v20 = vpack.c.bf16 %v320_v14, %v320_v14  ;;  %v323_v21 = vadd.f32 %v482_v18, %v239_v16  ;;  %v314_v22 = vpop.f32.mrb[3].mxu0 }
  0xfb   : > { %v464_v23 = vpack.c.bf16 %v312_v17, %v312_v17  ;;  %v315_v24 = vadd.f32 %v314_v22, %v229_v19 }
  0xfc   : > { %345 = vst.msk [vmem:[%s206_s22 + $0x8] sm:$0xf] %vm342_vm2, %v466_v20  ;;  %v467_v25 = vpack.c.bf16 %v323_v21, %v323_v21 }
  0xfd   : > { %343 = vst.msk [vmem:[%s206_s22] sm:$0xf] %vm342_vm2, %v464_v23  ;;  %v465_v26 = vpack.c.bf16 %v315_v24, %v315_v24 }
  0xfe   : > { %346 = vst.msk [vmem:[%s206_s22 + $0xc] sm:$0xf] %vm342_vm2, %v467_v25 }
  0xff   : > { %344 = vst.msk [vmem:[%s206_s22 + $0x4] sm:$0xf] %vm342_vm2, %v465_v26 }
 0x100 PF: > { %s13_s16 = sadd.s32 1, %s572_s16   ;;  %s670_s12 = smov %s564_s14 }
 0x101   : > { %p10_p7 = scmp.ge.s32.totalorder %s13_s16, 6   ;;  %s671_s13 = smov %s568_s15 }
 0x102   : > { %s672_s14 = smov %s675_s17  ;;  %s673_s15 = smov %s679_s18 }
 0x103   :  { %12 = sbr.rel (!%p10_p7) target bundleno = 3 (0x3), region = 62 }

// kernel: _lambda_.14
= control target key start
LH: loop header
LB: loop body
LE: loop exit
PB: predicated region body
PF: predicated region fallthrough
CT: control target
= control target key end

     0   :  { %s2742_s24 = smov 0   ;;  %s2744_s25 = smov 0   ;;  %s3150_s0 = inlined_call_operand.vmem [shape: bf16[2,4,32,20], index: 0, kind: input, shape index: {}, may-alias: {0,1,2}]   ;;  %s3151_s1 = inlined_call_operand.vmem [shape: bf16[2,4,32,20], index: 1, kind: input, shape index: {}, may-alias: {0,1,2}]   ;;  %s3152_s2 = inlined_call_operand.vmem [shape: bf16[2,4,32,20], index: 2, kind: input, shape index: {}, may-alias: {0,1,2}]   ;;  %s3153_s3 = inlined_call_operand.vmem [shape: bf16[27,8,32], index: 3, kind: input, shape index: {}]   ;;  %s3154_s4 = inlined_call_operand.vmem [shape: f32[1,8], index: 4, kind: input, shape index: {}]   ;;  %s3155_s5 = inlined_call_operand.vmem [shape: bf16[2,2,8,8], index: 5, kind: output, shape index: {0}]   ;;  %s3156_s6 = inlined_call_operand.vmem [shape: f32[2,2,8,1], index: 6, kind: output, shape index: {1}]   ;;  %s3157_s7 = inlined_call_operand.vmem [shape: f32[2,2,8,1], index: 7, kind: output, shape index: {2}]  }
   0x1   :  { %s2746_s26 = smov 0   ;;  %s2748_s27 = smov 0  }
   0x2   :  { %s2750_s28 = smov 0  }
   0x3 LB: > { %s27_s29 = sadd.s32 1, %s2682_s26  ;;  %s30_s30 = sadd.s32 1, %s2686_s27  ;;  %s2690_s28 = sphi %s2750_s28, %s18_s28   ;;  %s2686_s27 = sphi %s2748_s27, %s3161_s27   ;;  %s2682_s26 = sphi %s2746_s26, %s3160_s26   ;;  %s2678_s25 = sphi %s2744_s25, %s3159_s25   ;;  %s2674_s24 = sphi %s2742_s24, %s3158_s24  }
   0x4   : > { %p28_p0 = scmp.ge.s32.totalorder %s27_s29, 2  ;;  %p2120_p1 = scmp.ge.s32.totalorder %s2690_s28, 1 }
   0x5   : > { %p306_p2 = scmp.lt.s32.totalorder %s2690_s28, 5 }
   0x6   : > { %s3163_s29 = smov (%p28_p0, %s27_s29), 0  ;;  %s3165_s30 = smov (!%p28_p0, %s30_s30), %s2686_s27 }
   0x7   : > { %p307_p3 = pnand %p2120_p1, %p306_p2  ;;  %p32_p4 = scmp.ge.s32.totalorder %s3165_s30, 2 }
   0x8   : > { %p381_p5 = scmp.lt.s32.totalorder (!%p307_p3), %s2678_s25, 1  ;;  %s390_s8 = sadd.s32 (!%p307_p3), 1, %s2674_s24  ;;  %v2692_v0 = vmov (!%p307_p3), 0.0   ;;  %vm2693_vm0 = vmmov (!%p307_p3), 0   ;;  %vm460_vm1 = vcmask (!%p307_p3), 261120   ;;  %vm1877_vm2 = vcmask (!%p307_p3), 64512  }
   0x9   : > { %s3167_s30 = smov (%p32_p4, %s3165_s30), 0  ;;  %310 = sbr.rel (%p307_p3) target bundleno = 662 (0x296), region = 40 }
   0xa   : > { %p393_p6 = scmp.lt.s32.totalorder (!%p307_p3), %s390_s8, 3  ;;  %2383 = vmatprep.subr.bf16.mxu0 (!%p307_p3), %v2692_v0  ;;  %2279 = vmatprep.subr.bf16.mxu1 (!%p307_p3), %v2692_v0  ;;  %p383_p7 = scmp.lt.s32.totalorder (!%p307_p3), %s2674_s24, 3  ;;  %v2165_v9 = vld [vmem:[%s3153_s3 + $0x34] sm:$0xf] (!%p307_p3)  ;;  %v2136_v13 = vld [vmem:[%s3153_s3 + $0x4] sm:$0xf] (!%p307_p3) }
   0xb   : > { %2387 = vmatprep.mubr.msk.bf16.mxu0 (!%p307_p3), %vm2693_vm0, %v2692_v0  ;;  %2283 = vmatprep.mubr.msk.bf16.mxu1 (!%p307_p3), %vm2693_vm0, %v2692_v0  ;;  %s2694_s17 = smov (!%p307_p3), 123   ;;  %s401_s21 = sadd.s32 (!%p307_p3), 2, %s2674_s24  ;;  %v2167_v16 = vld [vmem:[%s3153_s3 + $0x38] sm:$0xf] (!%p307_p3)  ;;  %v441_v19 = vld [vmem:[%s3153_s3] sm:$0xf] (!%p307_p3) }
   0xc   : > { %p404_p8 = scmp.lt.s32.totalorder (!%p307_p3), %s401_s21, 3  ;;  %s2696_s14 = smov (!%p307_p3), 122   ;;  %v2169_v22 = vld [vmem:[%s3153_s3 + $0x3c] sm:$0xf] (!%p307_p3)  ;;  %v2141_v25 = vld [vmem:[%s3153_s3 + $0x8] sm:$0xf] (!%p307_p3) }
   0xd   : > { %s2701_s22 = smov (!%p307_p3), 118   ;;  %v2171_v28 = vld [vmem:[%s3153_s3 + $0x40] sm:$0xf] (!%p307_p3)  ;;  %v2143_v30 = vld [vmem:[%s3153_s3 + $0xc] sm:$0xf] (!%p307_p3)  ;;  %p414_p9 = scmp.lt.s32.totalorder (!%p307_p3), %s2674_s24, 1 }
   0xe   : > { %v2173_v33 = vld [vmem:[%s3153_s3 + $0x44] sm:$0xf] (!%p307_p3)  ;;  %v2145_v35 = vld [vmem:[%s3153_s3 + $0x10] sm:$0xf] (!%p307_p3)  ;;  %v2175_v38 = vld [vmem:[%s3153_s3 + $0x48] sm:$0xf] (!%p307_p3) }
   0xf   : > { %v2147_v41 = vld [vmem:[%s3153_s3 + $0x14] sm:$0xf] (!%p307_p3)  ;;  %v2179_v44 = vld [vmem:[%s3153_s3 + $0x4c] sm:$0xf] (!%p307_p3)  ;;  %v2149_v47 = vld [vmem:[%s3153_s3 + $0x18] sm:$0xf] (!%p307_p3) }
  0x10   : > { %s3169_s25 = smov (!%p381_p5, %s2678_s25), 1  ;;  %s3171_s8 = smov (!%p393_p6, %s390_s8), 3  ;;  %v2181_v50 = vld [vmem:[%s3153_s3 + $0x50] sm:$0xf]  ;;  %v2151_v53 = vld [vmem:[%s3153_s3 + $0x1c] sm:$0xf] }
  0x11   : > { %s2122_s9 = sshll.u32 %s3169_s25, 4  ;;  %s2124_s10 = sshll.u32 %s3171_s8, 2  ;;  %v2183_v56 = vld [vmem:[%s3153_s3 + $0x54] sm:$0xf]  ;;  %v2153_v58 = vld [vmem:[%s3153_s3 + $0x20] sm:$0xf] }
  0x12   : > { %s397_s11 = sadd.s32 %s2124_s10, %s2122_s9  ;;  %s3173_s21 = smov (!%p404_p8, %s401_s21), 3  ;;  %v2185_v60 = vld [vmem:[%s3153_s3 + $0x58] sm:$0xf]  ;;  %v2155_v63 = vld [vmem:[%s3153_s3 + $0x24] sm:$0xf]  ;;  %vm1889_vm3 = vcmask 60416  }
  0x13   : > { %s2126_s12 = sshll.u32 %s397_s11, 2  ;;  %s2695_s10 = smov 127   ;;  %vm1881_vm4 = vcmask 7168  }
  0x14   : > { %s399_s15 = scalar_lea.vmem %s3151_s1, %s2126_s12  ;;  %s2127_s11 = sshll.u32 %s3173_s21, 2 }
  0x15   : > { %v2788_v1 = vld [vmem:[%s399_s15] sm:$0xff]   ;;  %s384_s16 = scalar_select %p383_p7, %s2674_s24, 3  ;;  %v2793_v2 = vld [vmem:[%s399_s15 + $0x8] sm:$0xff]  }
  0x16   : > { %1133 = vrot.lane.b32.xlu0 %v2788_v1, %s2694_s17  ;;  %s408_s12 = sadd.s32 %s2127_s11, %s2122_s9  ;;  %s2700_s21 = smov 124  }
  0x17   : > { %s2121_s18 = sshll.u32 %s384_s16, 2  ;;  %s2129_s13 = sshll.u32 %s408_s12, 2 }
  0x18   : > { %s387_s19 = sadd.s32 %s2122_s9, %s2121_s18  ;;  %s410_s18 = scalar_lea.vmem %s3152_s2, %s2129_s13 }
  0x19   : > { %s2123_s20 = sshll.u32 %s387_s19, 2  ;;  %s2697_s19 = smov 120   ;;  %v2842_v5 = vld [vmem:[%s410_s18] sm:$0xff]   ;;  %v2848_v6 = vld [vmem:[%s410_s18 + $0x8] sm:$0xff]  }
  0x1a   : > { %s389_s8 = scalar_lea.vmem %s3150_s0, %s2123_s20  ;;  %1135 = vrot.lane.b32.xlu0 %v2793_v2, %s2694_s17  ;;  %s2698_s20 = smov 126  }
  0x1b   : > { %v2801_v3 = vld [vmem:[%s389_s8] sm:$0xff]   ;;  %v2803_v4 = vld [vmem:[%s389_s8 + $0x8] sm:$0xff]   ;;  %s2699_s9 = smov 119   ;;  %s3175_s24 = smov (!%p414_p9, %s2674_s24), 1 }
  0x1c   : > { %454 = vrot.lane.b32.xlu1 %v2801_v3, %s2695_s10  ;;  %s2130_s13 = sshll.u32 %s3169_s25, 1 }
  0x1e   : > { %456 = vrot.lane.b32.xlu0 %v2803_v4, %s2695_s10 }
  0x20   : > { %1185 = vrot.lane.b32.xlu1 %v2788_v1, %s2696_s14 }
  0x22   : > { %1237 = vrot.lane.b32.xlu0 %v2788_v1, %s2697_s19 }
  0x24   : > { %1187 = vrot.lane.b32.xlu1 %v2793_v2, %s2696_s14 }
  0x26   : > { %551 = vrot.lane.b32.xlu0 %v2801_v3, %s2698_s20 }
  0x28   : > { %1239 = vrot.lane.b32.xlu1 %v2793_v2, %s2697_s19 }
  0x2a   : > { %553 = vrot.lane.b32.xlu0 %v2803_v4, %s2698_s20 }
  0x2c   : > { %1289 = vrot.lane.b32.xlu1 %v2788_v1, %s2699_s9 }
  0x2e   : > { %603 = vrot.lane.b32.xlu0 %v2801_v3, %s2700_s21 }
  0x30   : > { %1291 = vrot.lane.b32.xlu1 %v2793_v2, %s2699_s9 }
  0x32   : > { %605 = vrot.lane.b32.xlu0 %v2803_v4, %s2700_s21 }
  0x34   : > { %1341 = vrot.lane.b32.xlu1 %v2788_v1, %s2701_s22 }
  0x36   : > { %655 = vrot.lane.b32.xlu0 %v2801_v3, %s2694_s17 }
  0x38   : > { %1343 = vrot.lane.b32.xlu1 %v2793_v2, %s2701_s22 }
  0x3a   : > { %707 = vrot.lane.b32.xlu0 %v2801_v3, %s2696_s14 }
  0x3c   : > { %657 = vrot.lane.b32.xlu1 %v2803_v4, %s2694_s17 }
  0x3e   : > { %709 = vrot.lane.b32.xlu0 %v2803_v4, %s2696_s14 }
  0x40   : > { %1455 = vrot.lane.b32.xlu1 %v2842_v5, %s2695_s10 }
  0x42   : > { %759 = vrot.lane.b32.xlu0 %v2801_v3, %s2697_s19 }
  0x44   : > { %1457 = vrot.lane.b32.xlu1 %v2848_v6, %s2695_s10 }
  0x46   : > { %761 = vrot.lane.b32.xlu0 %v2803_v4, %s2697_s19 }
  0x48   : > { %1507 = vrot.lane.b32.xlu1 %v2842_v5, %s2698_s20 }
  0x4a   : > { %811 = vrot.lane.b32.xlu0 %v2801_v3, %s2699_s9 }
  0x4c   : > { %1509 = vrot.lane.b32.xlu1 %v2848_v6, %s2698_s20 }
  0x4e   : > { %813 = vrot.lane.b32.xlu0 %v2803_v4, %s2699_s9 }
  0x50   : > { %1559 = vrot.lane.b32.xlu1 %v2842_v5, %s2700_s21 }
  0x52   : > { %863 = vrot.lane.b32.xlu0 %v2801_v3, %s2701_s22 }
  0x54   : > { %1561 = vrot.lane.b32.xlu1 %v2848_v6, %s2700_s21 }
  0x56   : > { %865 = vrot.lane.b32.xlu0 %v2803_v4, %s2701_s22 }
  0x58   : > { %1611 = vrot.lane.b32.xlu1 %v2842_v5, %s2694_s17 }
  0x5a   : > { %1663 = vrot.lane.b32.xlu0 %v2842_v5, %s2696_s14 }
  0x5c   : > { %1613 = vrot.lane.b32.xlu1 %v2848_v6, %s2694_s17 }
  0x5e   : > { %977 = vrot.lane.b32.xlu0 %v2788_v1, %s2695_s10 }
  0x60   : > { %1665 = vrot.lane.b32.xlu1 %v2848_v6, %s2696_s14  ;;  %s417_s14 = sadd.s32 %s2130_s13, %s3175_s24 }
  0x61   : > { %s2131_s15 = sshll.u32 %s417_s14, 2  ;;  %s2133_s24 = sshll.u32 %s417_s14, 3 }
  0x62   : > { %979 = vrot.lane.b32.xlu0 %v2793_v2, %s2695_s10  ;;  %s435_s8 = scalar_lea.vmem %s3157_s7, %s2133_s24 }
  0x64   : > { %1715 = vrot.lane.b32.xlu1 %v2842_v5, %s2697_s19 }
  0x66   : > { %1029 = vrot.lane.b32.xlu0 %v2788_v1, %s2698_s20 }
  0x68   : > { %1717 = vrot.lane.b32.xlu1 %v2848_v6, %s2697_s19 }
  0x6a   : > { %1031 = vrot.lane.b32.xlu0 %v2793_v2, %s2698_s20 }
  0x6c   : > { %1767 = vrot.lane.b32.xlu1 %v2842_v5, %s2699_s9 }
  0x6e   : > { %1081 = vrot.lane.b32.xlu0 %v2788_v1, %s2700_s21 }
  0x70   : > { %1769 = vrot.lane.b32.xlu1 %v2848_v6, %s2699_s9  ;;  %s419_s9 = scalar_lea.vmem %s3155_s5, %s2131_s15 }
  0x72   : > { %1083 = vrot.lane.b32.xlu0 %v2793_v2, %s2700_s21 }
  0x74   : > { %1819 = vrot.lane.b32.xlu1 %v2842_v5, %s2701_s22 }
  0x78   : > { %1821 = vrot.lane.b32.xlu1 %v2848_v6, %s2701_s22  ;;  %s427_s22 = scalar_lea.vmem %s3156_s6, %s2133_s24 }
  0x88   : > { %v1134_v7 = vpop.permute.xlu0 %1133 }
  0x89   : > { %2384 = vmatpush3.bf16.msra.mxu0 %v1134_v7 }
  0x8a   : > { %2385 = vmatprep.subr.bf16.mxu0 %v2692_v0 }
  0x8c   : > { %v1136_v8 = vpop.permute.xlu0 %1135 }
  0x8d   : > { %2386 = vmatpush3.bf16.msra.mxu0 %v1136_v8 }
  0x8e   : > { %v455_v10 = vpop.permute.xlu1 %454  ;;  %2391 = vmatprep.subr.bf16.mxu0 %v2692_v0 }
  0x8f   : > { %2280 = vmatpush3.bf16.msra.mxu1 %v455_v10 }
  0x90   : > { %2388 = vmatmul.mubr.msk.bf16.vlgmr.msra.gmra.mrb[0].mxu0 %vm460_vm1, %v2165_v9  ;;  %v457_v11 = vpop.permute.xlu0 %456  ;;  %2281 = vmatprep.subr.bf16.mxu1 %v2692_v0  ;;  %v2189_v9 = vld [vmem:[%s3153_s3 + $0x60] sm:$0xf] }
  0x91   : > { %2395 = vmatprep.mubr.msk.bf16.mxu0 %vm2693_vm0, %v2692_v0 }
  0x92   : > { %v1186_v12 = vpop.permute.xlu1 %1185 }
  0x93   : > { %2282 = vmatpush3.bf16.msra.mxu1 %v457_v11  ;;  %2392 = vmatpush3.bf16.msra.mxu0 %v1186_v12  ;;  %v2161_v12 = vld [vmem:[%s3153_s3 + $0x2c] sm:$0xf] }
  0x94   : > { %2393 = vmatprep.subr.bf16.mxu0 %v2692_v0  ;;  %2287 = vmatprep.subr.bf16.mxu1 %v2692_v0  ;;  %v1238_v15 = vpop.permute.xlu0 %1237 }
  0x96   : > { %2284 = vmatmul.mubr.msk.bf16.vlgmr.msra.gmra.mrb[0].mxu1 %vm460_vm1, %v2136_v13  ;;  %v1188_v14 = vpop.permute.xlu1 %1187 }
  0x97   : > { %2394 = vmatpush3.bf16.msra.mxu0 %v1188_v14  ;;  %2288 = vmatpush3.bf16.msra.mxu1 %v2801_v3  ;;  %v2187_v3 = vld [vmem:[%s3153_s3 + $0x5c] sm:$0xf] }
  0x98   : > { %2289 = vmatprep.subr.bf16.mxu1 %v2692_v0  ;;  %2399 = vmatprep.subr.bf16.mxu0 %v2692_v0  ;;  %v552_v18 = vpop.permute.xlu0 %551 }
  0x99   : > { %2291 = vmatprep.mubr.msk.bf16.mxu1 %vm2693_vm0, %v2692_v0 }
  0x9a   : > { %v1240_v17 = vpop.permute.xlu1 %1239 }
  0x9b   : > { %2290 = vmatpush3.bf16.msra.mxu1 %v2803_v4 }
  0x9c   : > { %2396 = vmatmul.mubr.msk.bf16.vlgmr.msra.gmra.mrb[0].mxu0 %vm460_vm1, %v2167_v16  ;;  %2295 = vmatprep.subr.bf16.mxu1 %v2692_v0  ;;  %v554_v20 = vpop.permute.xlu0 %553 }
  0x9d   : > { %2400 = vmatpush3.bf16.msra.mxu0 %v1238_v15  ;;  %2403 = vmatprep.mubr.msk.bf16.mxu0 %vm2693_vm0, %v2692_v0  ;;  %v2191_v15 = vld [vmem:[%s3153_s3 + $0x64] sm:$0xf] }
  0x9e   : > { %2401 = vmatprep.subr.bf16.mxu0 %v2692_v0  ;;  %v1290_v21 = vpop.permute.xlu1 %1289 }
  0xa0   : > { %v604_v24 = vpop.permute.xlu0 %603 }
  0xa1   : > { %2402 = vmatpush3.bf16.msra.mxu0 %v1240_v17  ;;  %v2163_v17 = vld [vmem:[%s3153_s3 + $0x30] sm:$0xf] }
  0xa2   : > { %2292 = vmatmul.mubr.msk.bf16.vlgmr.msra.gmra.mrb[0].mxu1 %vm460_vm1, %v441_v19  ;;  %2407 = vmatprep.subr.bf16.mxu0 %v2692_v0  ;;  %v1292_v23 = vpop.permute.xlu1 %1291 }
  0xa3   : > { %2296 = vmatpush3.bf16.msra.mxu1 %v552_v18  ;;  %2299 = vmatprep.mubr.msk.bf16.mxu1 %vm2693_vm0, %v2692_v0  ;;  %v2193_v18 = vld [vmem:[%s3153_s3 + $0x68] sm:$0xf] }
  0xa4   : > { %2297 = vmatprep.subr.bf16.mxu1 %v2692_v0  ;;  %v606_v26 = vpop.permute.xlu0 %605 }
  0xa6   : > { %v1342_v27 = vpop.permute.xlu1 %1341 }
  0xa7   : > { %2298 = vmatpush3.bf16.msra.mxu1 %v554_v20 }
  0xa8   : > { %2404 = vmatmul.mubr.msk.bf16.vlgmr.msra.gmra.mrb[0].mxu0 %vm460_vm1, %v2169_v22  ;;  %2303 = vmatprep.subr.bf16.mxu1 %v2692_v0  ;;  %v656_v31 = vpop.permute.xlu0 %655 }
  0xa9   : > { %2408 = vmatpush3.bf16.msra.mxu0 %v1290_v21  ;;  %2411 = vmatprep.mubr.msk.bf16.mxu0 %vm2693_vm0, %v2692_v0 }
  0xaa   : > { %2409 = vmatprep.subr.bf16.mxu0 %v2692_v0  ;;  %v1344_v29 = vpop.permute.xlu1 %1343 }
  0xac   : > { %v708_v34 = vpop.permute.xlu0 %707 }
  0xad   : > { %2410 = vmatpush3.bf16.msra.mxu0 %v1292_v23  ;;  %v2195_v23 = vld [vmem:[%s3154_s4] ss:$0 sm:$0xff] }
  0xae   : > { %2300 = vmatmul.mubr.msk.bf16.vlgmr.msra.gmra.mrb[0].mxu1 %vm460_vm1, %v2141_v25  ;;  %2415 = vmatprep.subr.bf16.mxu0 %v2692_v0  ;;  %v658_v32 = vpop.permute.xlu1 %657 }
  0xaf   : > { %2304 = vmatpush3.bf16.msra.mxu1 %v604_v24  ;;  %2307 = vmatprep.mubr.msk.bf16.mxu1 %vm2693_vm0, %v2692_v0 }
  0xb0   : > { %2305 = vmatprep.subr.bf16.mxu1 %v2692_v0  ;;  %v710_v36 = vpop.permute.xlu0 %709 }
  0xb2   : > { %v1456_v37 = vpop.permute.xlu1 %1455 }
  0xb3   : > { %2306 = vmatpush3.bf16.msra.mxu1 %v606_v26 }
  0xb4   : > { %2412 = vmatmul.mubr.msk.bf16.vlgmr.msra.gmra.mrb[0].mxu0 %vm460_vm1, %v2171_v28  ;;  %2311 = vmatprep.subr.bf16.mxu1 %v2692_v0  ;;  %v760_v40 = vpop.permute.xlu0 %759 }
  0xb5   : > { %2416 = vmatpush3.bf16.msra.mxu0 %v1342_v27  ;;  %2419 = vmatprep.mubr.msk.bf16.mxu0 %vm2693_vm0, %v2692_v0 }
  0xb6   : > { %2417 = vmatprep.subr.bf16.mxu0 %v2692_v0  ;;  %v1458_v39 = vpop.permute.xlu1 %1457 }
  0xb8   : > { %v762_v42 = vpop.permute.xlu0 %761 }
  0xb9   : > { %2418 = vmatpush3.bf16.msra.mxu0 %v1344_v29 }
  0xba   : > { %2308 = vmatmul.mubr.msk.bf16.vlgmr.msra.gmra.mrb[0].mxu1 %vm460_vm1, %v2143_v30  ;;  %2423 = vmatprep.subr.bf16.mxu0 %v2692_v0  ;;  %v1508_v43 = vpop.permute.xlu1 %1507 }
  0xbb   : > { %2312 = vmatpush3.bf16.msra.mxu1 %v656_v31  ;;  %2315 = vmatprep.mubr.msk.bf16.mxu1 %vm2693_vm0, %v2692_v0 }
  0xbc   : > { %2313 = vmatprep.subr.bf16.mxu1 %v2692_v0  ;;  %v812_v46 = vpop.permute.xlu0 %811 }
  0xbe   : > { %v1510_v45 = vpop.permute.xlu1 %1509 }
  0xbf   : > { %2314 = vmatpush3.bf16.msra.mxu1 %v658_v32 }
  0xc0   : > { %2420 = vmatmul.mubr.msk.bf16.vlgmr.msra.gmra.mrb[0].mxu0 %vm460_vm1, %v2173_v33  ;;  %2319 = vmatprep.subr.bf16.mxu1 %v2692_v0  ;;  %v814_v48 = vpop.permute.xlu0 %813 }
  0xc1   : > { %2424 = vmatpush3.bf16.msra.mxu0 %v2842_v5  ;;  %2427 = vmatprep.mubr.msk.bf16.mxu0 %vm2693_vm0, %v2692_v0 }
  0xc2   : > { %2425 = vmatprep.subr.bf16.mxu0 %v2692_v0  ;;  %v1560_v49 = vpop.permute.xlu1 %1559 }
  0xc4   : > { %v864_v52 = vpop.permute.xlu0 %863 }
  0xc5   : > { %2426 = vmatpush3.bf16.msra.mxu0 %v2848_v6  ;;  %v2159_v6 = vld [vmem:[%s3153_s3 + $0x28] sm:$0xf] }
  0xc6   : > { %2316 = vmatmul.mubr.msk.bf16.vlgmr.msra.gmra.mrb[0].mxu1 %vm460_vm1, %v2145_v35  ;;  %2431 = vmatprep.subr.bf16.mxu0 %v2692_v0  ;;  %v1562_v51 = vpop.permute.xlu1 %1561 }
  0xc7   : > { %2320 = vmatpush3.bf16.msra.mxu1 %v708_v34  ;;  %2323 = vmatprep.mubr.msk.bf16.mxu1 %vm2693_vm0, %v2692_v0 }
  0xc8   : > { %2321 = vmatprep.subr.bf16.mxu1 %v2692_v0  ;;  %v866_v54 = vpop.permute.xlu0 %865 }
  0xca   : > { %v1612_v55 = vpop.permute.xlu1 %1611 }
  0xcb   : > { %2322 = vmatpush3.bf16.msra.mxu1 %v710_v36 }
  0xcc   : > { %2428 = vmatmul.mubr.msk.bf16.vlgmr.msra.gmra.mrb[0].mxu0 %vm460_vm1, %v2175_v38  ;;  %2327 = vmatprep.subr.bf16.mxu1 %v2692_v0  ;;  %v1664_v59 = vpop.permute.xlu0 %1663 }
  0xcd   : > { %2432 = vmatpush3.bf16.msra.mxu0 %v1456_v37  ;;  %2435 = vmatprep.mubr.msk.bf16.mxu0 %vm2693_vm0, %v2692_v0 }
  0xce   : > { %2433 = vmatprep.subr.bf16.mxu0 %v2692_v0  ;;  %v1614_v57 = vpop.permute.xlu1 %1613 }
  0xd0   : > { %v978_v62 = vpop.permute.xlu0 %977 }
  0xd1   : > { %2434 = vmatpush3.bf16.msra.mxu0 %v1458_v39 }
  0xd2   : > { %2324 = vmatmul.mubr.msk.bf16.vlgmr.msra.gmra.mrb[0].mxu1 %vm460_vm1, %v2147_v41  ;;  %2439 = vmatprep.subr.bf16.mxu0 %v2692_v0  ;;  %v1666_v61 = vpop.permute.xlu1 %1665 }
  0xd3   : > { %2328 = vmatpush3.bf16.msra.mxu1 %v760_v40  ;;  %2331 = vmatprep.mubr.msk.bf16.mxu1 %vm2693_vm0, %v2692_v0 }
  0xd4   : > { %2329 = vmatprep.subr.bf16.mxu1 %v2692_v0 }
  0xd7   : > { %2330 = vmatpush3.bf16.msra.mxu1 %v762_v42 }
  0xd8   : > { %2436 = vmatmul.mubr.msk.bf16.vlgmr.msra.gmra.mrb[0].mxu0 %vm460_vm1, %v2179_v44  ;;  %2335 = vmatprep.subr.bf16.mxu1 %v2692_v0 }
  0xd9   : > { %2440 = vmatpush3.bf16.msra.mxu0 %v1508_v43  ;;  %2443 = vmatprep.mubr.msk.bf16.mxu0 %vm2693_vm0, %v2692_v0 }
  0xda   : > { %2441 = vmatprep.subr.bf16.mxu0 %v2692_v0 }
  0xdd   : > { %2442 = vmatpush3.bf16.msra.mxu0 %v1510_v45 }
  0xde   : > { %2332 = vmatmul.mubr.msk.bf16.vlgmr.msra.gmra.mrb[0].mxu1 %vm460_vm1, %v2149_v47  ;;  %2447 = vmatprep.subr.bf16.mxu0 %v2692_v0 }
  0xdf   : > { %2336 = vmatpush3.bf16.msra.mxu1 %v812_v46  ;;  %2339 = vmatprep.mubr.msk.bf16.mxu1 %vm2693_vm0, %v2692_v0 }
  0xe0   : > { %2337 = vmatprep.subr.bf16.mxu1 %v2692_v0 }
  0xe3   : > { %2338 = vmatpush3.bf16.msra.mxu1 %v814_v48 }
  0xe4   : > { %2444 = vmatmul.mubr.msk.bf16.vlgmr.msra.gmra.mrb[0].mxu0 %vm460_vm1, %v2181_v50  ;;  %2343 = vmatprep.subr.bf16.mxu1 %v2692_v0 }
  0xe5   : > { %2448 = vmatpush3.bf16.msra.mxu0 %v1560_v49  ;;  %2451 = vmatprep.mubr.msk.bf16.mxu0 %vm2693_vm0, %v2692_v0 }
  0xe6   : > { %2449 = vmatprep.subr.bf16.mxu0 %v2692_v0 }
  0xe9   : > { %2450 = vmatpush3.bf16.msra.mxu0 %v1562_v51 }
  0xea   : > { %2340 = vmatmul.mubr.msk.bf16.vlgmr.msra.gmra.mrb[0].mxu1 %vm460_vm1, %v2151_v53  ;;  %2455 = vmatprep.subr.bf16.mxu0 %v2692_v0 }
  0xeb   : > { %2344 = vmatpush3.bf16.msra.mxu1 %v864_v52  ;;  %2347 = vmatprep.mubr.msk.bf16.mxu1 %vm2693_vm0, %v2692_v0 }
  0xec   : > { %2345 = vmatprep.subr.bf16.mxu1 %v2692_v0 }
  0xef   : > { %2346 = vmatpush3.bf16.msra.mxu1 %v866_v54 }
  0xf0   : > { %2452 = vmatmul.mubr.msk.bf16.vlgmr.msra.gmra.mrb[0].mxu0 %vm460_vm1, %v2183_v56  ;;  %2351 = vmatprep.subr.bf16.mxu1 %v2692_v0 }
  0xf1   : > { %2456 = vmatpush3.bf16.msra.mxu0 %v1612_v55  ;;  %2459 = vmatprep.mubr.msk.bf16.mxu0 %vm2693_vm0, %v2692_v0 }
  0xf2   : > { %2457 = vmatprep.subr.bf16.mxu0 %v2692_v0 }
  0xf5   : > { %2458 = vmatpush3.bf16.msra.mxu0 %v1614_v57 }
  0xf6   : > { %2348 = vmatmul.mubr.msk.bf16.vlgmr.msra.gmra.mrb[0].mxu1 %vm460_vm1, %v2153_v58  ;;  %2463 = vmatprep.subr.bf16.mxu0 %v2692_v0 }
  0xf7   : > { %2352 = vmatpush3.bf16.msra.mxu1 %v2788_v1  ;;  %2355 = vmatprep.mubr.msk.bf16.mxu1 %vm2693_vm0, %v2692_v0  ;;  %v980_v1 = vpop.permute.xlu0 %979 }
  0xf8   : > { %2353 = vmatprep.subr.bf16.mxu1 %v2692_v0 }
  0xfb   : > { %2354 = vmatpush3.bf16.msra.mxu1 %v2793_v2  ;;  %v1716_v2 = vpop.permute.xlu1 %1715  ;;  %v1030_v5 = vpop.permute.xlu0 %1029 }
  0xfc   : > { %2460 = vmatmul.mubr.msk.bf16.vlgmr.msra.gmra.mrb[0].mxu0 %vm460_vm1, %v2185_v60  ;;  %2359 = vmatprep.subr.bf16.mxu1 %v2692_v0 }
  0xfd   : > { %2464 = vmatpush3.bf16.msra.mxu0 %v1664_v59  ;;  %2467 = vmatprep.mubr.msk.bf16.mxu0 %vm2693_vm0, %v2692_v0 }
  0xfe   : > { %2465 = vmatprep.subr.bf16.mxu0 %v2692_v0 }
  0xff   : > { %v1718_v4 = vpop.permute.xlu1 %1717  ;;  %v1032_v7 = vpop.permute.xlu0 %1031 }
 0x101   : > { %2466 = vmatpush3.bf16.msra.mxu0 %v1666_v61 }
 0x102   : > { %2356 = vmatmul.mubr.msk.bf16.vlgmr.msra.gmra.mrb[0].mxu1 %vm460_vm1, %v2155_v63  ;;  %2471 = vmatprep.subr.bf16.mxu0 %v2692_v0 }
 0x103   : > { %2360 = vmatpush3.bf16.msra.mxu1 %v978_v62  ;;  %2363 = vmatprep.mubr.msk.bf16.mxu1 %vm2693_vm0, %v2692_v0  ;;  %v1768_v8 = vpop.permute.xlu1 %1767  ;;  %v1082_v11 = vpop.permute.xlu0 %1081 }
 0x104   : > { %2361 = vmatprep.subr.bf16.mxu1 %v2692_v0 }
 0x107   : > { %2362 = vmatpush3.bf16.msra.mxu1 %v980_v1  ;;  %v1770_v10 = vpop.permute.xlu1 %1769  ;;  %v1084_v13 = vpop.permute.xlu0 %1083 }
 0x108   : > { %2468 = vmatmul.mubr.msk.bf16.vlgmr.msra.gmra.mrb[0].mxu0 %vm460_vm1, %v2187_v3  ;;  %2367 = vmatprep.subr.bf16.mxu1 %v2692_v0 }
 0x109   : > { %2472 = vmatpush3.bf16.msra.mxu0 %v1716_v2  ;;  %2475 = vmatprep.mubr.msk.bf16.mxu0 %vm2693_vm0, %v2692_v0 }
 0x10a   : > { %2473 = vmatprep.subr.bf16.mxu0 %v2692_v0 }
 0x10b   : > { %v1820_v14 = vpop.permute.xlu1 %1819 }
 0x10d   : > { %2474 = vmatpush3.bf16.msra.mxu0 %v1718_v4 }
 0x10e   : > { %2364 = vmatmul.mubr.msk.bf16.vlgmr.msra.gmra.mrb[0].mxu1 %vm460_vm1, %v2159_v6  ;;  %2479 = vmatprep.subr.bf16.mxu0 %v2692_v0 }
 0x10f   : > { %2368 = vmatpush3.bf16.msra.mxu1 %v1030_v5  ;;  %2371 = vmatprep.mubr.msk.bf16.mxu1 %vm2693_vm0, %v2692_v0  ;;  %v1822_v16 = vpop.permute.xlu1 %1821 }
 0x110   : > { %2369 = vmatprep.subr.bf16.mxu1 %v2692_v0 }
 0x113   : > { %2370 = vmatpush3.bf16.msra.mxu1 %v1032_v7 }
 0x114   : > { %2476 = vmatmul.mubr.msk.bf16.vlgmr.msra.gmra.mrb[0].mxu0 %vm460_vm1, %v2189_v9  ;;  %2375 = vmatprep.subr.bf16.mxu1 %v2692_v0 }
 0x115   : > { %2480 = vmatpush3.bf16.msra.mxu0 %v1768_v8  ;;  %2483 = vmatprep.mubr.msk.bf16.mxu0 %vm2693_vm0, %v2692_v0 }
 0x116   : > { %2481 = vmatprep.subr.bf16.mxu0 %v2692_v0 }
 0x119   : > { %2482 = vmatpush3.bf16.msra.mxu0 %v1770_v10 }
 0x11a   : > { %2372 = vmatmul.mubr.msk.bf16.vlgmr.msra.gmra.mrb[0].mxu1 %vm460_vm1, %v2161_v12  ;;  %2487 = vmatprep.subr.bf16.mxu0 %v2692_v0 }
 0x11b   : > { %2376 = vmatpush3.bf16.msra.mxu1 %v1082_v11  ;;  %2379 = vmatprep.mubr.msk.bf16.mxu1 %vm2693_vm0, %v2692_v0 }
 0x11c   : > { %2377 = vmatprep.subr.bf16.mxu1 %v2692_v0 }
 0x11f   : > { %2378 = vmatpush3.bf16.msra.mxu1 %v1084_v13 }
 0x120   : > { %2484 = vmatmul.mubr.msk.bf16.vlgmr.msra.gmra.mrb[0].mxu0 %vm460_vm1, %v2191_v15 }
 0x121   : > { %2488 = vmatpush3.bf16.msra.mxu0 %v1820_v14  ;;  %2491 = vmatprep.mubr.msk.bf16.mxu0 %vm2693_vm0, %v2692_v0 }
 0x122   : > { %2489 = vmatprep.subr.bf16.mxu0 %v2692_v0 }
 0x125   : > { %2490 = vmatpush3.bf16.msra.mxu0 %v1822_v16 }
 0x126   : > { %2380 = vmatmul.mubr.msk.bf16.vlgmr.msra.gmra.mrb[0].mxu1 %vm460_vm1, %v2163_v17 }
 0x12c   : > { %2492 = vmatmul.mubr.msk.bf16.vlgmr.msra.gmra.mrb[0].mxu0 %vm460_vm1, %v2193_v18 }
 0x1f9   : > { %v1124_v19 = vpop.f32.mrb[0].mxu1 }
 0x1fa   : > { %v2381_v20 = vpop.f32.mrb[1].mxu1 }
 0x1fb   : > { %v1127_v0 = vpop.f32.mrb[2].mxu1 }
 0x1fc   : > { %v2382_v21 = vpop.f32.mrb[3].mxu1 }
 0x1ff   : > { %v1862_v22 = vpop.f32.mrb[0].mxu0 }
 0x200   : > { %v2495_v24 = vadd.f32 %v1862_v22, %v1124_v19  ;;  %v2493_v25 = vpop.f32.mrb[1].mxu0 }
 0x201   : > { %v1865_v26 = vpop.f32.mrb[2].mxu0 }
 0x202   : > { %v1888_v27 = vpack.c.bf16 %v2495_v24, %v2495_v24  ;;  %v2494_v28 = vpop.f32.mrb[3].mxu0  ;;  %v1876_v29 = vmul.f32 %v2495_v24, %v2195_v23 }
 0x204   : > { %v1878_v30 = vsel %vm1877_vm2, %v1876_v29, 0.0  ;;  %v1883_v31 = vmul.f32 %v2495_v24, %v1876_v29  ;;  %1890 = vst.msk [vmem:[%s419_s9] sm:$0xf] %vm1889_vm3, %v1888_v27 }
 0x205   : > { %1879 = vadd.xlane.f32.xlu0 %v1878_v30 }
 0x206   : > { %v1884_v32 = vsel %vm1877_vm2, %v1883_v31, 0.0 }
 0x207   : > { %1885 = vadd.xlane.f32.xlu1 %v1884_v32 }
 0x292   : > { %v1880_v33 = vpop.xlane.xlu0 %1879 }
 0x293   : > { %1882 = vst.msk [vmem:[%s427_s22] sm:$0xff] %vm1881_vm4, %v1880_v33 }
 0x294   : > { %v1886_v34 = vpop.xlane.xlu1 %1885 }
 0x295   : > { %1887 = vst.msk [vmem:[%s435_s8] sm:$0xff] %vm1881_vm4, %v1886_v34 }
 0x296 PF: > { %s18_s28 = sadd.s32 1, %s2690_s28   ;;  %s3158_s24 = smov %s2682_s26 }
 0x297   : > { %p15_p10 = scmp.ge.s32.totalorder %s18_s28, 6   ;;  %s3159_s25 = smov %s2686_s27 }
 0x298   : > { %s3160_s26 = smov %s3163_s29  ;;  %s3161_s27 = smov %s3167_s30 }
 0x299   :  { %17 = sbr.rel (!%p15_p10) target bundleno = 3 (0x3), region = 126 }

// kernel: _lambda_.15
= control target key start
LH: loop header
LB: loop body
LE: loop exit
PB: predicated region body
PF: predicated region fallthrough
CT: control target
= control target key end

     0   :  { %s2583_s24 = smov 0   ;;  %s2585_s25 = smov 0   ;;  %s2895_s0 = inlined_call_operand.vmem [shape: bf16[2,4,8,20], index: 0, kind: input, shape index: {}, may-alias: {0,1,2}]   ;;  %s2896_s1 = inlined_call_operand.vmem [shape: bf16[2,4,8,20], index: 1, kind: input, shape index: {}, may-alias: {0,1,2}]   ;;  %s2897_s2 = inlined_call_operand.vmem [shape: bf16[2,4,8,20], index: 2, kind: input, shape index: {}, may-alias: {0,1,2}]   ;;  %s2898_s3 = inlined_call_operand.vmem [shape: bf16[27,8,8], index: 3, kind: input, shape index: {}]   ;;  %s2899_s4 = inlined_call_operand.vmem [shape: f32[1,8], index: 4, kind: input, shape index: {}]   ;;  %s2900_s5 = inlined_call_operand.vmem [shape: bf16[2,2,8,8], index: 5, kind: output, shape index: {0}]   ;;  %s2901_s6 = inlined_call_operand.vmem [shape: f32[2,2,8,1], index: 6, kind: output, shape index: {1}]   ;;  %s2902_s7 = inlined_call_operand.vmem [shape: f32[2,2,8,1], index: 7, kind: output, shape index: {2}]  }
   0x1   :  { %s2587_s26 = smov 0   ;;  %s2589_s27 = smov 0  }
   0x2   :  { %s2591_s28 = smov 0  }
   0x3 LB: > { %s27_s29 = sadd.s32 1, %s2523_s26  ;;  %s30_s30 = sadd.s32 1, %s2527_s27  ;;  %s2531_s28 = sphi %s2591_s28, %s18_s28   ;;  %s2527_s27 = sphi %s2589_s27, %s2906_s27   ;;  %s2523_s26 = sphi %s2587_s26, %s2905_s26   ;;  %s2519_s25 = sphi %s2585_s25, %s2904_s25   ;;  %s2515_s24 = sphi %s2583_s24, %s2903_s24  }
   0x4   : > { %p28_p0 = scmp.ge.s32.totalorder %s27_s29, 2  ;;  %p2051_p1 = scmp.ge.s32.totalorder %s2531_s28, 1 }
   0x5   : > { %p303_p2 = scmp.lt.s32.totalorder %s2531_s28, 5 }
   0x6   : > { %s2908_s29 = smov (%p28_p0, %s27_s29), 0  ;;  %s2910_s30 = smov (!%p28_p0, %s30_s30), %s2527_s27 }
   0x7   : > { %p304_p3 = pnand %p2051_p1, %p303_p2  ;;  %p32_p4 = scmp.ge.s32.totalorder %s2910_s30, 2 }
   0x8   : > { %p375_p5 = scmp.lt.s32.totalorder (!%p304_p3), %s2519_s25, 1  ;;  %s383_s8 = sadd.s32 (!%p304_p3), 1, %s2515_s24  ;;  %v2533_v0 = vmov (!%p304_p3), 0.0   ;;  %vm2534_vm0 = vmmov (!%p304_p3), 0   ;;  %vm441_vm1 = vcmask (!%p304_p3), 1043456   ;;  %vm437_vm2 = vcmask (!%p304_p3), 64512  }
   0x9   : > { %s2912_s30 = smov (%p32_p4, %s2910_s30), 0  ;;  %307 = sbr.rel (%p304_p3) target bundleno = 661 (0x295), region = 40 }
   0xa   : > { %p386_p6 = scmp.lt.s32.totalorder (!%p304_p3), %s383_s8, 3  ;;  %2255 = vmatprep.subr.bf16.mxu0 (!%p304_p3), %v2533_v0  ;;  %2257 = vmatprep.mubr.msk.bf16.mxu0 (!%p304_p3), %vm2534_vm0, %v2533_v0  ;;  %p377_p7 = scmp.lt.s32.totalorder (!%p304_p3), %s2515_s24, 3  ;;  %v2091_v10 = vld [vmem:[%s2898_s3 + $0x34] sm:$0xf] (!%p304_p3)  ;;  %v2064_v14 = vld [vmem:[%s2898_s3 + $0x4] sm:$0xf] (!%p304_p3) }
   0xb   : > { %2177 = vmatprep.subr.bf16.mxu1 (!%p304_p3), %v2533_v0  ;;  %2179 = vmatprep.mubr.msk.bf16.mxu1 (!%p304_p3), %vm2534_vm0, %v2533_v0  ;;  %s2535_s17 = smov (!%p304_p3), 123   ;;  %s2536_s18 = smov (!%p304_p3), 122   ;;  %v2093_v17 = vld [vmem:[%s2898_s3 + $0x38] sm:$0xf] (!%p304_p3)  ;;  %v429_v20 = vld [vmem:[%s2898_s3] sm:$0xf] (!%p304_p3) }
   0xc   : > { %s393_s23 = sadd.s32 (!%p304_p3), 2, %s2515_s24  ;;  %s2539_s12 = smov (!%p304_p3), 119   ;;  %v2095_v23 = vld [vmem:[%s2898_s3 + $0x3c] sm:$0xf] (!%p304_p3)  ;;  %v2068_v26 = vld [vmem:[%s2898_s3 + $0x8] sm:$0xf] (!%p304_p3) }
   0xd   : > { %p396_p8 = scmp.lt.s32.totalorder (!%p304_p3), %s393_s23, 3  ;;  %s2542_s21 = smov (!%p304_p3), 124   ;;  %v2097_v29 = vld [vmem:[%s2898_s3 + $0x40] sm:$0xf] (!%p304_p3)  ;;  %v2070_v32 = vld [vmem:[%s2898_s3 + $0xc] sm:$0xf] (!%p304_p3) }
   0xe   : > { %v2099_v34 = vld [vmem:[%s2898_s3 + $0x44] sm:$0xf] (!%p304_p3)  ;;  %v2072_v37 = vld [vmem:[%s2898_s3 + $0x10] sm:$0xf] (!%p304_p3)  ;;  %v2101_v40 = vld [vmem:[%s2898_s3 + $0x48] sm:$0xf] (!%p304_p3) }
   0xf   : > { %v2074_v43 = vld [vmem:[%s2898_s3 + $0x14] sm:$0xf] (!%p304_p3)  ;;  %v2103_v46 = vld [vmem:[%s2898_s3 + $0x4c] sm:$0xf] (!%p304_p3)  ;;  %v2076_v49 = vld [vmem:[%s2898_s3 + $0x18] sm:$0xf] (!%p304_p3) }
  0x10   : > { %s2914_s25 = smov (!%p375_p5, %s2519_s25), 1  ;;  %s2916_s8 = smov (!%p386_p6, %s383_s8), 3  ;;  %v2106_v52 = vld [vmem:[%s2898_s3 + $0x50] sm:$0xf]  ;;  %v2078_v55 = vld [vmem:[%s2898_s3 + $0x1c] sm:$0xf] }
  0x11   : > { %s2052_s9 = sshll.u32 %s2914_s25, 2  ;;  %s2918_s23 = smov (!%p396_p8, %s393_s23), 3  ;;  %v2108_v58 = vld [vmem:[%s2898_s3 + $0x54] sm:$0xf]  ;;  %v2080_v60 = vld [vmem:[%s2898_s3 + $0x20] sm:$0xf] }
  0x12   : > { %s389_s10 = sadd.s32 %s2052_s9, %s2916_s8  ;;  %s2537_s8 = smov 120   ;;  %v2110_v63 = vld [vmem:[%s2898_s3 + $0x58] sm:$0xf]  ;;  %vm1829_vm3 = vcmask 60416   ;;  %vm1821_vm4 = vcmask 7168  }
  0x13   : > { %s2055_s11 = sshll.u32 %s389_s10, 2  ;;  %s2538_s10 = smov 127  }
  0x14   : > { %s391_s14 = scalar_lea.vmem %s2896_s1, %s2055_s11  ;;  %s399_s11 = sadd.s32 %s2052_s9, %s2918_s23 }
  0x15   : > { %v2629_v1 = vld [vmem:[%s391_s14] sm:$0xf]  ;;  %s378_s15 = scalar_select %p377_p7, %s2515_s24, 3 }
  0x16   : > { %v2085_v2 = vcombine.low %v2629_v1, %v2629_v1  ;;  %s2057_s13 = sshll.u32 %s399_s11, 2  ;;  %s2540_s14 = smov 126   ;;  %v895_v61 = vsel %vm441_vm1, %v2629_v1, 0  ;;  %v2082_v1 = vld [vmem:[%s2898_s3 + $0x24] sm:$0xf] }
  0x17   : > { %s380_s16 = sadd.s32 %s2052_s9, %s378_s15  ;;  %s401_s20 = scalar_lea.vmem %s2897_s2, %s2057_s13 }
  0x18   : > { %1096 = vrot.lane.b32.xlu0 %v2085_v2, %s2535_s17  ;;  %1147 = vrot.lane.b32.xlu1 %v2085_v2, %s2536_s18  ;;  %s2053_s19 = sshll.u32 %s380_s16, 2  ;;  %v2643_v5 = vld [vmem:[%s401_s20] sm:$0xf]  ;;  %p405_p9 = scmp.lt.s32.totalorder %s2515_s24, 1 }
  0x19   : > { %s382_s22 = scalar_lea.vmem %s2895_s0, %s2053_s19  ;;  %s2541_s19 = smov 118   ;;  %v2104_v6 = vcombine.low %v2643_v5, %v2643_v5  ;;  %v1356_v35 = vsel %vm441_vm1, %v2643_v5, 0 }
  0x1a   : > { %v428_v3 = vld [vmem:[%s382_s22] sm:$0xf]  ;;  %s2920_s24 = smov (!%p405_p9, %s2515_s24), 1 }
  0x1b   : > { %v2065_v4 = vcombine.low %v428_v3, %v428_v3  ;;  %v489_v15 = vsel %vm441_vm1, %v428_v3, 0 }
  0x1c   : > { %1198 = vrot.lane.b32.xlu1 %v2085_v2, %s2537_s8 }
  0x1d   : > { %435 = vrot.lane.b32.xlu0 %v2065_v4, %s2538_s10 }
  0x20   : > { %1249 = vrot.lane.b32.xlu1 %v2085_v2, %s2539_s12 }
  0x21   : > { %533 = vrot.lane.b32.xlu0 %v2065_v4, %s2540_s14 }
  0x24   : > { %1300 = vrot.lane.b32.xlu1 %v2085_v2, %s2541_s19 }
  0x25   : > { %584 = vrot.lane.b32.xlu0 %v2065_v4, %s2542_s21 }
  0x28   : > { %686 = vrot.lane.b32.xlu1 %v2065_v4, %s2536_s18 }
  0x29   : > { %635 = vrot.lane.b32.xlu0 %v2065_v4, %s2535_s17 }
  0x2c   : > { %737 = vrot.lane.b32.xlu1 %v2065_v4, %s2537_s8 }
  0x2d   : > { %1404 = vrot.lane.b32.xlu0 %v2104_v6, %s2538_s10 }
  0x30   : > { %788 = vrot.lane.b32.xlu1 %v2065_v4, %s2539_s12 }
  0x31   : > { %1455 = vrot.lane.b32.xlu0 %v2104_v6, %s2540_s14 }
  0x34   : > { %839 = vrot.lane.b32.xlu1 %v2065_v4, %s2541_s19 }
  0x35   : > { %1506 = vrot.lane.b32.xlu0 %v2104_v6, %s2542_s21 }
  0x38   : > { %1608 = vrot.lane.b32.xlu1 %v2104_v6, %s2536_s18 }
  0x39   : > { %1557 = vrot.lane.b32.xlu0 %v2104_v6, %s2535_s17 }
  0x3c   : > { %1659 = vrot.lane.b32.xlu1 %v2104_v6, %s2537_s8 }
  0x3d   : > { %943 = vrot.lane.b32.xlu0 %v2085_v2, %s2538_s10  ;;  %s2058_s10 = sshll.u32 %s2914_s25, 1 }
  0x3e   : > { %s408_s11 = sadd.s32 %s2058_s10, %s2920_s24 }
  0x3f   : > { %s2061_s24 = sshll.u32 %s408_s11, 3 }
  0x40   : > { %1710 = vrot.lane.b32.xlu1 %v2104_v6, %s2539_s12  ;;  %s2059_s12 = sshll.u32 %s408_s11, 2  ;;  %s426_s17 = scalar_lea.vmem %s2902_s7, %s2061_s24 }
  0x41   : > { %994 = vrot.lane.b32.xlu0 %v2085_v2, %s2540_s14  ;;  %s410_s20 = scalar_lea.vmem %s2900_s5, %s2059_s12 }
  0x44   : > { %1761 = vrot.lane.b32.xlu1 %v2104_v6, %s2541_s19  ;;  %v2112_v6 = vld [vmem:[%s2898_s3 + $0x5c] sm:$0xf] }
  0x45   : > { %1045 = vrot.lane.b32.xlu0 %v2085_v2, %s2542_s21  ;;  %s418_s21 = scalar_lea.vmem %s2901_s6, %s2061_s24 }
  0x8a   : > { %v1097_v7 = vpop.permute.xlu0 %1096  ;;  %v1148_v8 = vpop.permute.xlu1 %1147 }
  0x8b   : > { %v1102_v9 = vsel %vm441_vm1, %v1097_v7, 0  ;;  %v1153_v11 = vsel %vm441_vm1, %v1148_v8, 0 }
  0x8c   : > { %2256 = vmatpush3.bf16.msra.mxu0 %v1102_v9  ;;  %v2084_v9 = vld [vmem:[%s2898_s3 + $0x28] sm:$0xf] }
  0x8d   : > { %2261 = vmatprep.subr.bf16.mxu0 %v2533_v0 }
  0x8e   : > { %v1199_v16 = vpop.permute.xlu1 %1198 }
  0x8f   : > { %v436_v12 = vpop.permute.xlu0 %435  ;;  %2258 = vmatmul.mubr.msk.bf16.vlgmr.msra.gmra.mrb[0].mxu0 %vm437_vm2, %v2091_v10  ;;  %v1204_v18 = vsel %vm441_vm1, %v1199_v16, 0 }
  0x90   : > { %v443_v13 = vsel %vm441_vm1, %v436_v12, 0  ;;  %2262 = vmatpush3.bf16.msra.mxu0 %v1153_v11  ;;  %2263 = vmatprep.mubr.msk.bf16.mxu0 %vm2534_vm0, %v2533_v0  ;;  %v2114_v12 = vld [vmem:[%s2898_s3 + $0x60] sm:$0xf] }
  0x91   : > { %2178 = vmatpush3.bf16.msra.mxu1 %v443_v13  ;;  %2267 = vmatprep.subr.bf16.mxu0 %v2533_v0 }
  0x92   : > { %2183 = vmatprep.subr.bf16.mxu1 %v2533_v0  ;;  %v1250_v22 = vpop.permute.xlu1 %1249 }
  0x93   : > { %v534_v19 = vpop.permute.xlu0 %533  ;;  %v1255_v24 = vsel %vm441_vm1, %v1250_v22, 0 }
  0x94   : > { %2180 = vmatmul.mubr.msk.bf16.vlgmr.msra.gmra.mrb[0].mxu1 %vm437_vm2, %v2064_v14  ;;  %v539_v21 = vsel %vm441_vm1, %v534_v19, 0 }
  0x95   : > { %2184 = vmatpush3.bf16.msra.mxu1 %v489_v15  ;;  %2185 = vmatprep.mubr.msk.bf16.mxu1 %vm2534_vm0, %v2533_v0  ;;  %v2087_v15 = vld [vmem:[%s2898_s3 + $0x2c] sm:$0xf] }
  0x96   : > { %2189 = vmatprep.subr.bf16.mxu1 %v2533_v0  ;;  %v1301_v28 = vpop.permute.xlu1 %1300 }
  0x97   : > { %v585_v25 = vpop.permute.xlu0 %584  ;;  %v1306_v30 = vsel %vm441_vm1, %v1301_v28, 0 }
  0x98   : > { %v590_v27 = vsel %vm441_vm1, %v585_v25, 0 }
  0x9a   : > { %v687_v36 = vpop.permute.xlu1 %686 }
  0x9b   : > { %2264 = vmatmul.mubr.msk.bf16.vlgmr.msra.gmra.mrb[0].mxu0 %vm437_vm2, %v2093_v17  ;;  %v636_v31 = vpop.permute.xlu0 %635  ;;  %v692_v38 = vsel %vm441_vm1, %v687_v36, 0 }
  0x9c   : > { %2268 = vmatpush3.bf16.msra.mxu0 %v1204_v18  ;;  %2269 = vmatprep.mubr.msk.bf16.mxu0 %vm2534_vm0, %v2533_v0  ;;  %v641_v33 = vsel %vm441_vm1, %v636_v31, 0  ;;  %v2116_v18 = vld [vmem:[%s2898_s3 + $0x64] sm:$0xf] }
  0x9d   : > { %2273 = vmatprep.subr.bf16.mxu0 %v2533_v0 }
  0x9e   : > { %v738_v42 = vpop.permute.xlu1 %737 }
  0x9f   : > { %v1405_v39 = vpop.permute.xlu0 %1404  ;;  %v743_v44 = vsel %vm441_vm1, %v738_v42, 0 }
  0xa0   : > { %2186 = vmatmul.mubr.msk.bf16.vlgmr.msra.gmra.mrb[0].mxu1 %vm437_vm2, %v429_v20  ;;  %v1410_v41 = vsel %vm441_vm1, %v1405_v39, 0  ;;  %v2089_v20 = vld [vmem:[%s2898_s3 + $0x30] sm:$0xf] }
  0xa1   : > { %2190 = vmatpush3.bf16.msra.mxu1 %v539_v21  ;;  %2191 = vmatprep.mubr.msk.bf16.mxu1 %vm2534_vm0, %v2533_v0  ;;  %v2118_v21 = vld [vmem:[%s2898_s3 + $0x68] sm:$0xf] }
  0xa2   : > { %2195 = vmatprep.subr.bf16.mxu1 %v2533_v0  ;;  %v789_v48 = vpop.permute.xlu1 %788 }
  0xa3   : > { %v1456_v45 = vpop.permute.xlu0 %1455  ;;  %v794_v50 = vsel %vm441_vm1, %v789_v48, 0 }
  0xa4   : > { %v1461_v47 = vsel %vm441_vm1, %v1456_v45, 0 }
  0xa6   : > { %v840_v54 = vpop.permute.xlu1 %839 }
  0xa7   : > { %2270 = vmatmul.mubr.msk.bf16.vlgmr.msra.gmra.mrb[0].mxu0 %vm437_vm2, %v2095_v23  ;;  %v1507_v51 = vpop.permute.xlu0 %1506  ;;  %v845_v56 = vsel %vm441_vm1, %v840_v54, 0 }
  0xa8   : > { %2274 = vmatpush3.bf16.msra.mxu0 %v1255_v24  ;;  %2275 = vmatprep.mubr.msk.bf16.mxu0 %vm2534_vm0, %v2533_v0  ;;  %v1512_v53 = vsel %vm441_vm1, %v1507_v51, 0 }
  0xa9   : > { %2279 = vmatprep.subr.bf16.mxu0 %v2533_v0 }
  0xaa   : > { %v1609_v62 = vpop.permute.xlu1 %1608 }
  0xab   : > { %v1558_v57 = vpop.permute.xlu0 %1557  ;;  %v1614_v2 = vsel %vm441_vm1, %v1609_v62, 0 }
  0xac   : > { %2192 = vmatmul.mubr.msk.bf16.vlgmr.msra.gmra.mrb[0].mxu1 %vm437_vm2, %v2068_v26  ;;  %v1563_v59 = vsel %vm441_vm1, %v1558_v57, 0  ;;  %v2120_v26 = vld [vmem:[%s2899_s4] ss:$0 sm:$0xff] }
  0xad   : > { %2196 = vmatpush3.bf16.msra.mxu1 %v590_v27  ;;  %2197 = vmatprep.mubr.msk.bf16.mxu1 %vm2534_vm0, %v2533_v0 }
  0xae   : > { %2201 = vmatprep.subr.bf16.mxu1 %v2533_v0  ;;  %v1660_v5 = vpop.permute.xlu1 %1659 }
  0xaf   : > { %v944_v3 = vpop.permute.xlu0 %943  ;;  %v1665_v7 = vsel %vm441_vm1, %v1660_v5, 0 }
  0xb0   : > { %v949_v4 = vsel %vm441_vm1, %v944_v3, 0 }
  0xb2   : > { %v1711_v11 = vpop.permute.xlu1 %1710 }
  0xb3   : > { %2276 = vmatmul.mubr.msk.bf16.vlgmr.msra.gmra.mrb[0].mxu0 %vm437_vm2, %v2097_v29  ;;  %v995_v8 = vpop.permute.xlu0 %994  ;;  %v1716_v13 = vsel %vm441_vm1, %v1711_v11, 0 }
  0xb4   : > { %2280 = vmatpush3.bf16.msra.mxu0 %v1306_v30  ;;  %2281 = vmatprep.mubr.msk.bf16.mxu0 %vm2534_vm0, %v2533_v0  ;;  %v1000_v10 = vsel %vm441_vm1, %v995_v8, 0 }
  0xb5   : > { %2285 = vmatprep.subr.bf16.mxu0 %v2533_v0 }
  0xb6   : > { %v1762_v17 = vpop.permute.xlu1 %1761 }
  0xb7   : > { %v1046_v14 = vpop.permute.xlu0 %1045  ;;  %v1767_v19 = vsel %vm441_vm1, %v1762_v17, 0 }
  0xb8   : > { %2198 = vmatmul.mubr.msk.bf16.vlgmr.msra.gmra.mrb[0].mxu1 %vm437_vm2, %v2070_v32  ;;  %v1051_v16 = vsel %vm441_vm1, %v1046_v14, 0 }
  0xb9   : > { %2202 = vmatpush3.bf16.msra.mxu1 %v641_v33  ;;  %2203 = vmatprep.mubr.msk.bf16.mxu1 %vm2534_vm0, %v2533_v0 }
  0xba   : > { %2207 = vmatprep.subr.bf16.mxu1 %v2533_v0 }
  0xbf   : > { %2282 = vmatmul.mubr.msk.bf16.vlgmr.msra.gmra.mrb[0].mxu0 %vm437_vm2, %v2099_v34 }
  0xc0   : > { %2286 = vmatpush3.bf16.msra.mxu0 %v1356_v35  ;;  %2287 = vmatprep.mubr.msk.bf16.mxu0 %vm2534_vm0, %v2533_v0 }
  0xc1   : > { %2291 = vmatprep.subr.bf16.mxu0 %v2533_v0 }
  0xc4   : > { %2204 = vmatmul.mubr.msk.bf16.vlgmr.msra.gmra.mrb[0].mxu1 %vm437_vm2, %v2072_v37 }
  0xc5   : > { %2208 = vmatpush3.bf16.msra.mxu1 %v692_v38  ;;  %2209 = vmatprep.mubr.msk.bf16.mxu1 %vm2534_vm0, %v2533_v0 }
  0xc6   : > { %2213 = vmatprep.subr.bf16.mxu1 %v2533_v0 }
  0xcb   : > { %2288 = vmatmul.mubr.msk.bf16.vlgmr.msra.gmra.mrb[0].mxu0 %vm437_vm2, %v2101_v40 }
  0xcc   : > { %2292 = vmatpush3.bf16.msra.mxu0 %v1410_v41  ;;  %2293 = vmatprep.mubr.msk.bf16.mxu0 %vm2534_vm0, %v2533_v0 }
  0xcd   : > { %2297 = vmatprep.subr.bf16.mxu0 %v2533_v0 }
  0xd0   : > { %2210 = vmatmul.mubr.msk.bf16.vlgmr.msra.gmra.mrb[0].mxu1 %vm437_vm2, %v2074_v43 }
  0xd1   : > { %2214 = vmatpush3.bf16.msra.mxu1 %v743_v44  ;;  %2215 = vmatprep.mubr.msk.bf16.mxu1 %vm2534_vm0, %v2533_v0 }
  0xd2   : > { %2219 = vmatprep.subr.bf16.mxu1 %v2533_v0 }
  0xd7   : > { %2294 = vmatmul.mubr.msk.bf16.vlgmr.msra.gmra.mrb[0].mxu0 %vm437_vm2, %v2103_v46 }
  0xd8   : > { %2298 = vmatpush3.bf16.msra.mxu0 %v1461_v47  ;;  %2299 = vmatprep.mubr.msk.bf16.mxu0 %vm2534_vm0, %v2533_v0 }
  0xd9   : > { %2303 = vmatprep.subr.bf16.mxu0 %v2533_v0 }
  0xdc   : > { %2216 = vmatmul.mubr.msk.bf16.vlgmr.msra.gmra.mrb[0].mxu1 %vm437_vm2, %v2076_v49 }
  0xdd   : > { %2220 = vmatpush3.bf16.msra.mxu1 %v794_v50  ;;  %2221 = vmatprep.mubr.msk.bf16.mxu1 %vm2534_vm0, %v2533_v0 }
  0xde   : > { %2225 = vmatprep.subr.bf16.mxu1 %v2533_v0 }
  0xe3   : > { %2300 = vmatmul.mubr.msk.bf16.vlgmr.msra.gmra.mrb[0].mxu0 %vm437_vm2, %v2106_v52 }
  0xe4   : > { %2304 = vmatpush3.bf16.msra.mxu0 %v1512_v53  ;;  %2305 = vmatprep.mubr.msk.bf16.mxu0 %vm2534_vm0, %v2533_v0 }
  0xe5   : > { %2309 = vmatprep.subr.bf16.mxu0 %v2533_v0 }
  0xe8   : > { %2222 = vmatmul.mubr.msk.bf16.vlgmr.msra.gmra.mrb[0].mxu1 %vm437_vm2, %v2078_v55 }
  0xe9   : > { %2226 = vmatpush3.bf16.msra.mxu1 %v845_v56  ;;  %2227 = vmatprep.mubr.msk.bf16.mxu1 %vm2534_vm0, %v2533_v0 }
  0xea   : > { %2231 = vmatprep.subr.bf16.mxu1 %v2533_v0 }
  0xef   : > { %2306 = vmatmul.mubr.msk.bf16.vlgmr.msra.gmra.mrb[0].mxu0 %vm437_vm2, %v2108_v58 }
  0xf0   : > { %2310 = vmatpush3.bf16.msra.mxu0 %v1563_v59  ;;  %2311 = vmatprep.mubr.msk.bf16.mxu0 %vm2534_vm0, %v2533_v0 }
  0xf1   : > { %2315 = vmatprep.subr.bf16.mxu0 %v2533_v0 }
  0xf4   : > { %2228 = vmatmul.mubr.msk.bf16.vlgmr.msra.gmra.mrb[0].mxu1 %vm437_vm2, %v2080_v60 }
  0xf5   : > { %2232 = vmatpush3.bf16.msra.mxu1 %v895_v61  ;;  %2233 = vmatprep.mubr.msk.bf16.mxu1 %vm2534_vm0, %v2533_v0 }
  0xf6   : > { %2237 = vmatprep.subr.bf16.mxu1 %v2533_v0 }
  0xfb   : > { %2312 = vmatmul.mubr.msk.bf16.vlgmr.msra.gmra.mrb[0].mxu0 %vm437_vm2, %v2110_v63 }
  0xfc   : > { %2316 = vmatpush3.bf16.msra.mxu0 %v1614_v2  ;;  %2317 = vmatprep.mubr.msk.bf16.mxu0 %vm2534_vm0, %v2533_v0 }
  0xfd   : > { %2321 = vmatprep.subr.bf16.mxu0 %v2533_v0 }
 0x100   : > { %2234 = vmatmul.mubr.msk.bf16.vlgmr.msra.gmra.mrb[0].mxu1 %vm437_vm2, %v2082_v1 }
 0x101   : > { %2238 = vmatpush3.bf16.msra.mxu1 %v949_v4  ;;  %2239 = vmatprep.mubr.msk.bf16.mxu1 %vm2534_vm0, %v2533_v0 }
 0x102   : > { %2243 = vmatprep.subr.bf16.mxu1 %v2533_v0 }
 0x107   : > { %2318 = vmatmul.mubr.msk.bf16.vlgmr.msra.gmra.mrb[0].mxu0 %vm437_vm2, %v2112_v6 }
 0x108   : > { %2322 = vmatpush3.bf16.msra.mxu0 %v1665_v7  ;;  %2323 = vmatprep.mubr.msk.bf16.mxu0 %vm2534_vm0, %v2533_v0 }
 0x109   : > { %2327 = vmatprep.subr.bf16.mxu0 %v2533_v0 }
 0x10c   : > { %2240 = vmatmul.mubr.msk.bf16.vlgmr.msra.gmra.mrb[0].mxu1 %vm437_vm2, %v2084_v9 }
 0x10d   : > { %2244 = vmatpush3.bf16.msra.mxu1 %v1000_v10  ;;  %2245 = vmatprep.mubr.msk.bf16.mxu1 %vm2534_vm0, %v2533_v0 }
 0x10e   : > { %2249 = vmatprep.subr.bf16.mxu1 %v2533_v0 }
 0x113   : > { %2324 = vmatmul.mubr.msk.bf16.vlgmr.msra.gmra.mrb[0].mxu0 %vm437_vm2, %v2114_v12 }
 0x114   : > { %2328 = vmatpush3.bf16.msra.mxu0 %v1716_v13  ;;  %2329 = vmatprep.mubr.msk.bf16.mxu0 %vm2534_vm0, %v2533_v0 }
 0x115   : > { %2333 = vmatprep.subr.bf16.mxu0 %v2533_v0 }
 0x118   : > { %2246 = vmatmul.mubr.msk.bf16.vlgmr.msra.gmra.mrb[0].mxu1 %vm437_vm2, %v2087_v15 }
 0x119   : > { %2250 = vmatpush3.bf16.msra.mxu1 %v1051_v16  ;;  %2251 = vmatprep.mubr.msk.bf16.mxu1 %vm2534_vm0, %v2533_v0 }
 0x11f   : > { %2330 = vmatmul.mubr.msk.bf16.vlgmr.msra.gmra.mrb[0].mxu0 %vm437_vm2, %v2116_v18 }
 0x120   : > { %2334 = vmatpush3.bf16.msra.mxu0 %v1767_v19  ;;  %2335 = vmatprep.mubr.msk.bf16.mxu0 %vm2534_vm0, %v2533_v0 }
 0x124   : > { %2252 = vmatmul.mubr.msk.bf16.vlgmr.msra.gmra.mrb[0].mxu1 %vm437_vm2, %v2089_v20 }
 0x12b   : > { %2336 = vmatmul.mubr.msk.bf16.vlgmr.msra.gmra.mrb[0].mxu0 %vm437_vm2, %v2118_v21 }
 0x1f7   : > { %v1087_v22 = vpop.f32.mrb[0].mxu1 }
 0x1f8   : > { %v2253_v23 = vpop.f32.mrb[1].mxu1 }
 0x1f9   : > { %v1090_v24 = vpop.f32.mrb[2].mxu1 }
 0x1fa   : > { %v2254_v25 = vpop.f32.mrb[3].mxu1 }
 0x1fe   : > { %v1803_v0 = vpop.f32.mrb[0].mxu0 }
 0x1ff   : > { %v2339_v27 = vadd.f32 %v1803_v0, %v1087_v22  ;;  %v2337_v28 = vpop.f32.mrb[1].mxu0 }
 0x200   : > { %v1806_v29 = vpop.f32.mrb[2].mxu0 }
 0x201   : > { %v1828_v30 = vpack.c.bf16 %v2339_v27, %v2339_v27  ;;  %v2338_v31 = vpop.f32.mrb[3].mxu0  ;;  %v1817_v32 = vmul.f32 %v2339_v27, %v2120_v26 }
 0x203   : > { %v1818_v33 = vsel %vm437_vm2, %v1817_v32, 0.0  ;;  %v1823_v34 = vmul.f32 %v2339_v27, %v1817_v32  ;;  %1830 = vst.msk [vmem:[%s410_s20] sm:$0xf] %vm1829_vm3, %v1828_v30 }
 0x204   : > { %1819 = vadd.xlane.f32.xlu0 %v1818_v33 }
 0x205   : > { %v1824_v35 = vsel %vm437_vm2, %v1823_v34, 0.0 }
 0x206   : > { %1825 = vadd.xlane.f32.xlu1 %v1824_v35 }
 0x291   : > { %v1820_v36 = vpop.xlane.xlu0 %1819 }
 0x292   : > { %1822 = vst.msk [vmem:[%s418_s21] sm:$0xff] %vm1821_vm4, %v1820_v36 }
 0x293   : > { %v1826_v37 = vpop.xlane.xlu1 %1825 }
 0x294   : > { %1827 = vst.msk [vmem:[%s426_s17] sm:$0xff] %vm1821_vm4, %v1826_v37 }
 0x295 PF: > { %s18_s28 = sadd.s32 1, %s2531_s28   ;;  %s2903_s24 = smov %s2523_s26 }
 0x296   : > { %p15_p10 = scmp.ge.s32.totalorder %s18_s28, 6   ;;  %s2904_s25 = smov %s2527_s27 }
 0x297   : > { %s2905_s26 = smov %s2908_s29  ;;  %s2906_s27 = smov %s2912_s30 }
 0x298   :  { %17 = sbr.rel (!%p15_p10) target bundleno = 3 (0x3), region = 126 }

// kernel: _lambda_.21
= control target key start
LH: loop header
LB: loop body
LE: loop exit
PB: predicated region body
PF: predicated region fallthrough
CT: control target
= control target key end

     0   :  { %s536_s12 = smov 0   ;;  %s538_s13 = smov 0   ;;  %s596_s0 = inlined_call_operand.vmem [shape: bf16[2,4,20,16], index: 0, kind: input, shape index: {}]   ;;  %s597_s1 = inlined_call_operand.vmem [shape: bf16[16,20], index: 1, kind: input, shape index: {}]   ;;  %s598_s2 = inlined_call_operand.vmem [shape: f32[16,1], index: 2, kind: input, shape index: {}]   ;;  %s599_s3 = inlined_call_operand.vmem [shape: bf16[2,4,16,16], index: 3, kind: output, shape index: {}]  }
   0x1   :  { %s540_s14 = smov 0   ;;  %s542_s15 = smov 0  }
   0x2   :  { %s544_s16 = smov 0  }
   0x3 LB: > { %s22_s17 = sadd.s32 1, %s503_s14  ;;  %s25_s18 = sadd.s32 1, %s507_s15  ;;  %s511_s16 = sphi %s544_s16, %s13_s16   ;;  %s507_s15 = sphi %s542_s15, %s603_s15   ;;  %s503_s14 = sphi %s540_s14, %s602_s14   ;;  %s499_s13 = sphi %s538_s13, %s601_s13   ;;  %s495_s12 = sphi %s536_s12, %s600_s12  }
   0x4   : > { %p23_p0 = scmp.ge.s32.totalorder %s22_s17, 4  ;;  %p398_p1 = scmp.ge.s32.totalorder %s511_s16, 1 }
   0x5   : > { %p157_p2 = scmp.lt.s32.totalorder %s511_s16, 9 }
   0x6   : > { %s605_s17 = smov (%p23_p0, %s22_s17), 0  ;;  %s607_s18 = smov (!%p23_p0, %s25_s18), %s507_s15 }
   0x7   : > { %p158_p3 = pnand %p398_p1, %p157_p2  ;;  %p27_p4 = scmp.ge.s32.totalorder %s607_s18, 2 }
   0x8   : > { %p189_p5 = scmp.lt.s32.totalorder (!%p158_p3), %s499_s13, 1  ;;  %p191_p6 = scmp.lt.s32.totalorder (!%p158_p3), %s495_s12, 3  ;;  %v513_v0 = vmov (!%p158_p3), 0.0   ;;  %vm514_vm0 = vmmov (!%p158_p3), 0   ;;  %v515_v1 = vmov (!%p158_p3), 0   ;;  %v213_v2 = vld [vmem:[%s598_s2] sm:$0xff] (!%p158_p3) }
   0x9   : > { %s609_s18 = smov (%p27_p4, %s607_s18), 0  ;;  %161 = sbr.rel (%p158_p3) target bundleno = 250 (0xfa), region = 32 }
   0xa   : > { %416 = vmatprep.subr.bf16.mxu0 (!%p158_p3), %v513_v0  ;;  %420 = vmatprep.mubr.msk.bf16.mxu0 (!%p158_p3), %vm514_vm0, %v513_v0  ;;  %v214_v3 = vld [vmem:[%s598_s2 + $0x8] sm:$0xff] (!%p158_p3)  ;;  %vm243_vm1 = vcmask (!%p158_p3), 1041408   ;;  %v472_v7 = vld [vmem:[%s597_s1] sm:$0xff] (!%p158_p3)   ;;  %vm239_vm2 = vcmask (!%p158_p3), 162816   ;;  %vm296_vm3 = vcmask (!%p158_p3), 125952  }
   0xb   : > { %469 = vset.pattern.permute.xlu0 (!%p158_p3), %v515_v1 }
   0xc   : > { %217 = vperm.xlu0 (!%p158_p3), %469, %v213_v2  }
  0x10   : > { %s611_s13 = smov (!%p189_p5, %s499_s13), 1  ;;  %s613_s12 = smov (!%p191_p6, %s495_s12), 3  ;;  %222 = vperm.xlu0 %469, %v214_v3  }
  0x11   : > { %s425_s21 = smul.u32 12, %s611_s13  ;;  %s400_s25 = sshll.u32 %s613_s12, 1 }
  0x12   : > { %s424_s24 = smul.u32 3, %s613_s12  ;;  %s401_s26 = sshll.u32 %s611_s13, 3 }
  0x13   : > { %s204_s28 = sadd.s32 %s401_s26, %s400_s25 }
  0x14   : > { %s195_s27 = sadd.s32 %s425_s21, %s424_s24  ;;  %s402_s8 = sshll.u32 %s204_s28, 2 }
  0x15   : > { %s399_s29 = sshll.u32 %s195_s27, 2  ;;  %s206_s11 = scalar_lea.vmem %s599_s3, %s402_s8 }
  0x16   : > { %s197_s5 = scalar_lea.vmem %s596_s0, %s399_s29 }
  0x17   : > { %v470_v4 = vld [vmem:[%s197_s5] sm:$0xff]   ;;  %v471_v5 = vld [vmem:[%s197_s5 + $0x8] ss:$0 sps:$4 sm:$0x33]  }
  0x18   : > { %417 = vmatpush3.bf16.msra.mxu0 %v470_v4  ;;  %v245_v6 = vsel %vm243_vm1, %v471_v5, 0 }
  0x19   : > { %418 = vmatprep.subr.bf16.mxu0 %v513_v0 }
  0x1c   : > { %419 = vmatpush3.bf16.msra.mxu0 %v245_v6 }
  0x1f   : > { %421 = vmatmul.mubr.msk.bf16.vlgmr.msra.gmra.mrb[0].mxu0 %vm239_vm2, %v472_v7 }
  0x8b   : > { %v218_v8 = vpop.permute.xlu0 %217 }
  0x8f   : > { %v223_v12 = vpop.permute.xlu0 %222 }
  0xf2   : > { %v281_v9 = vpop.f32.mrb[0].mxu0 }
  0xf3   : > { %v282_v10 = vadd.f32 %v281_v9, %v218_v8  ;;  %v422_v11 = vpop.f32.mrb[1].mxu0 }
  0xf4   : > { %v284_v13 = vpop.f32.mrb[2].mxu0 }
  0xf5   : > { %v411_v14 = vpack.c.bf16 %v282_v10, %v282_v10  ;;  %v285_v15 = vadd.f32 %v284_v13, %v223_v12  ;;  %v423_v16 = vpop.f32.mrb[3].mxu0 }
  0xf7   : > { %297 = vst.msk [vmem:[%s206_s11] sm:$0xf] %vm296_vm3, %v411_v14  ;;  %v412_v17 = vpack.c.bf16 %v285_v15, %v285_v15 }
  0xf9   : > { %298 = vst.msk [vmem:[%s206_s11 + $0x4] sm:$0xf] %vm296_vm3, %v412_v17 }
  0xfa PF: > { %s13_s16 = sadd.s32 1, %s511_s16   ;;  %s600_s12 = smov %s503_s14 }
  0xfb   : > { %p10_p7 = scmp.ge.s32.totalorder %s13_s16, 10   ;;  %s601_s13 = smov %s507_s15 }
  0xfc   : > { %s602_s14 = smov %s605_s17  ;;  %s603_s15 = smov %s609_s18 }
  0xfd   :  { %12 = sbr.rel (!%p10_p7) target bundleno = 3 (0x3), region = 62 }

// kernel: _lambda_.19
= control target key start
LH: loop header
LB: loop body
LE: loop exit
PB: predicated region body
PF: predicated region fallthrough
CT: control target
= control target key end

     0   :  { %s3254_s24 = smov 0   ;;  %s3256_s25 = smov 0   ;;  %s3840_s0 = inlined_call_operand.vmem [shape: bf16[2,6,4,42], index: 0, kind: input, shape index: {}, may-alias: {0,1,2}]   ;;  %s3841_s1 = inlined_call_operand.vmem [shape: bf16[2,6,4,42], index: 1, kind: input, shape index: {}, may-alias: {0,1,2}]   ;;  %s3842_s2 = inlined_call_operand.vmem [shape: bf16[2,6,4,42], index: 2, kind: input, shape index: {}, may-alias: {0,1,2}]   ;;  %s3843_s3 = inlined_call_operand.vmem [shape: bf16[27,4,4], index: 3, kind: input, shape index: {}]   ;;  %s3844_s4 = inlined_call_operand.vmem [shape: f32[1,24], index: 4, kind: input, shape index: {}]   ;;  %s3845_s5 = inlined_call_operand.vmem [shape: bf16[2,4,4,24], index: 5, kind: output, shape index: {0}]   ;;  %s3846_s6 = inlined_call_operand.vmem [shape: f32[2,4,4,1], index: 6, kind: output, shape index: {1}]   ;;  %s3847_s7 = inlined_call_operand.vmem [shape: f32[2,4,4,1], index: 7, kind: output, shape index: {2}]  }
   0x1   :  { %s3258_s26 = smov 0   ;;  %s3260_s27 = smov 0  }
   0x2   :  { %s3262_s28 = smov 0  }
   0x3 LB: > { %s27_s29 = sadd.s32 1, %s3191_s26  ;;  %s30_s30 = sadd.s32 1, %s3195_s27  ;;  %s3199_s28 = sphi %s3262_s28, %s18_s28   ;;  %s3195_s27 = sphi %s3260_s27, %s3851_s27   ;;  %s3191_s26 = sphi %s3258_s26, %s3850_s26   ;;  %s3187_s25 = sphi %s3256_s25, %s3849_s25   ;;  %s3183_s24 = sphi %s3254_s24, %s3848_s24  }
   0x4   : > { %p28_p0 = scmp.ge.s32.totalorder %s27_s29, 4  ;;  %p2534_p1 = scmp.ge.s32.totalorder %s3199_s28, 1 }
   0x5   : > { %p303_p2 = scmp.lt.s32.totalorder %s3199_s28, 9 }
   0x6   : > { %s3853_s29 = smov (%p28_p0, %s27_s29), 0  ;;  %s3855_s30 = smov (!%p28_p0, %s30_s30), %s3195_s27 }
   0x7   : > { %p304_p3 = pnand %p2534_p1, %p303_p2  ;;  %p32_p4 = scmp.ge.s32.totalorder %s3855_s30, 2 }
   0x8   : > { %v428_v0 = vld [vmem:[%s3843_s3] sm:$0x3] (!%p304_p3)  ;;  %v2544_v1 = vld [vmem:[%s3843_s3 + $0x2] sm:$0x3] (!%p304_p3)  ;;  %v3201_v2 = vmov (!%p304_p3), 2   ;;  %v3202_v3 = vmov (!%p304_p3), 0   ;;  %v439_v6 = vlaneseq (!%p304_p3) }
   0x9   : > { %s3857_s30 = smov (%p32_p4, %s3855_s30), 0  ;;  %307 = sbr.rel (%p304_p3) target bundleno = 562 (0x232), region = 40 }
   0xa   : > { %2639 = vset.pattern.permute.xlu1 (!%p304_p3), %v3201_v2  ;;  %2627 = vset.pattern.permute.xlu0 (!%p304_p3), %v3202_v3  ;;  %v429_v4 = vunpack.c.l.bf16 (!%p304_p3), %v428_v0  ;;  %v502_v5 = vunpack.c.l.bf16 (!%p304_p3), %v2544_v1  ;;  %p375_p5 = scmp.lt.s32.totalorder (!%p304_p3), %s3187_s25, 1  ;;  %p377_p6 = scmp.lt.s32.totalorder (!%p304_p3), %s3183_s24, 5  ;;  %v2545_v8 = vld [vmem:[%s3843_s3 + $0x4] sm:$0x3] (!%p304_p3)  ;;  %v2546_v9 = vld [vmem:[%s3843_s3 + $0x6] sm:$0x3] (!%p304_p3) }
   0xb   : > { %v3307_v10 = vshrl.u32 (!%p304_p3), %v439_v6, 7  ;;  %v574_v11 = vunpack.c.l.bf16 (!%p304_p3), %v2545_v8  ;;  %v642_v12 = vunpack.c.l.bf16 (!%p304_p3), %v2546_v9  ;;  %v3203_v13 = vmov (!%p304_p3), 3   ;;  %s3205_s23 = smov (!%p304_p3), 127   ;;  %s3206_s8 = smov (!%p304_p3), 126   ;;  %v2547_v28 = vld [vmem:[%s3843_s3 + $0x8] sm:$0x3] (!%p304_p3) }
   0xc   : > { %v2640_v7 = vpack.i.bf16 (!%p304_p3), %v502_v5, %v429_v4  ;;  %v3204_v14 = vmov (!%p304_p3), 1   ;;  %v2548_v29 = vld [vmem:[%s3843_s3 + $0xa] sm:$0x3] (!%p304_p3)  ;;  %v710_v30 = vunpack.c.l.bf16 (!%p304_p3), %v2547_v28  ;;  %s3207_s13 = smov (!%p304_p3), 122   ;;  %v2549_v33 = vld [vmem:[%s3843_s3 + $0xc] sm:$0x3] (!%p304_p3) }
   0xd   : > { %v3316_v15 = vsub.s32 (!%p304_p3), 2, %v3307_v10  ;;  %v3319_v16 = vsub.s32 (!%p304_p3), 3, %v3307_v10  ;;  %v3322_v17 = vsub.s32 (!%p304_p3), 0, %v3307_v10  ;;  %v3325_v18 = vsub.s32 (!%p304_p3), 1, %v3307_v10  ;;  %v2550_v34 = vld [vmem:[%s3843_s3 + $0xe] sm:$0x3] (!%p304_p3) }
   0xe   : > { %2641 = vperm.xlu1 (!%p304_p3), %2639, %v2640_v7   ;;  %2629 = vperm.xlu0 (!%p304_p3), %2627, %v2640_v7   ;;  %v2652_v19 = vpack.i.bf16 (!%p304_p3), %v642_v12, %v574_v11  ;;  %v778_v31 = vunpack.c.l.bf16 (!%p304_p3), %v2548_v29  ;;  %v846_v35 = vunpack.c.l.bf16 (!%p304_p3), %v2549_v33  ;;  %v914_v36 = vunpack.c.l.bf16 (!%p304_p3), %v2550_v34  ;;  %s3209_s20 = smov (!%p304_p3), 120   ;;  %s383_s21 = sadd.s32 (!%p304_p3), 1, %s3183_s24  ;;  %v2551_v38 = vld [vmem:[%s3843_s3 + $0x10] sm:$0x3] (!%p304_p3)  ;;  %v2552_v39 = vld [vmem:[%s3843_s3 + $0x12] sm:$0x3] (!%p304_p3) }
   0xf   : > { %p386_p7 = scmp.lt.s32.totalorder (!%p304_p3), %s383_s21, 5  ;;  %v982_v40 = vunpack.c.l.bf16 (!%p304_p3), %v2551_v38  ;;  %v1051_v41 = vunpack.c.l.bf16 (!%p304_p3), %v2552_v39  ;;  %s3210_s10 = smov (!%p304_p3), 115   ;;  %v2553_v45 = vld [vmem:[%s3843_s3 + $0x14] sm:$0x3] (!%p304_p3)  ;;  %v2554_v46 = vld [vmem:[%s3843_s3 + $0x16] sm:$0x3] (!%p304_p3) }
  0x10   : > { %s3859_s25 = smov (!%p375_p5, %s3187_s25), 1  ;;  %v2706_v32 = vpack.i.bf16 %v778_v31, %v710_v30  ;;  %v2760_v37 = vpack.i.bf16 %v914_v36, %v846_v35  ;;  %s3211_s12 = smov 116   ;;  %v1124_v49 = vunpack.c.l.bf16 %v2553_v45  ;;  %v1196_v50 = vunpack.c.l.bf16 %v2554_v46  ;;  %v2555_v56 = vld [vmem:[%s3843_s3 + $0x18] sm:$0x3]  ;;  %v2556_v57 = vld [vmem:[%s3843_s3 + $0x1a] sm:$0x3] }
  0x11   : > { %s378_s16 = scalar_select %p377_p6, %s3183_s24, 5  ;;  %v2792_v42 = vpack.i.bf16 %v1051_v41, %v982_v40  ;;  %v1264_v61 = vunpack.c.l.bf16 %v2555_v56  ;;  %v1332_v62 = vunpack.c.l.bf16 %v2556_v57  ;;  %v2565_v0 = vld [vmem:[%s3843_s3 + $0x2c] sm:$0x3]  ;;  %v2566_v1 = vld [vmem:[%s3843_s3 + $0x2e] sm:$0x3]  ;;  %vm2300_vm0 = vcmask 191488  }
  0x12   : > { %s3305_s17 = smul.u32 6, %s3859_s25  ;;  %2645 = vset.pattern.permute.xlu1 %v3203_v13  ;;  %2633 = vset.pattern.permute.xlu0 %v3204_v14  ;;  %s3863_s21 = smov (!%p386_p7, %s383_s21), 5  ;;  %v3422_v51 = vpack.i.bf16 %v1196_v50, %v1124_v49  ;;  %v1954_v4 = vunpack.c.l.bf16 %v2565_v0  ;;  %v2022_v5 = vunpack.c.l.bf16 %v2566_v1  ;;  %v2557_v6 = vld [vmem:[%s3843_s3 + $0x1c] sm:$0x3]  ;;  %v2562_v33 = vld [vmem:[%s3843_s3 + $0x26] sm:$0x3] }
  0x13   : > { %2647 = vperm.xlu1 %2645, %v2640_v7   ;;  %2635 = vperm.xlu0 %2633, %v2640_v7   ;;  %v3460_v63 = vpack.i.bf16 %v1332_v62, %v1264_v61  ;;  %v2558_v7 = vld [vmem:[%s3843_s3 + $0x1e] sm:$0x3]  ;;  %v1400_v9 = vunpack.c.l.bf16 %v2557_v6  ;;  %v1746_v35 = vunpack.c.l.bf16 %v2562_v33  ;;  %v2564_v38 = vld [vmem:[%s3843_s3 + $0x2a] sm:$0x3]  ;;  %v3213_v39 = vmov 839922192  }
  0x14   : > { %s380_s18 = sadd.s32 %s3305_s17, %s378_s16  ;;  %s389_s11 = sadd.s32 %s3305_s17, %s3863_s21  ;;  %v3475_v8 = vpack.i.bf16 %v2022_v5, %v1954_v4  ;;  %v1468_v11 = vunpack.c.l.bf16 %v2558_v7  ;;  %v437_v40 = vunpack.c.l.s4 %v3213_v39  ;;  %vm2312_vm1 = vcmask 189440  }
  0x15   : > { %s2535_s19 = sshll.u32 %s380_s18, 1  ;;  %p405_p9 = scmp.lt.s32.totalorder %s3183_s24, 3  ;;  %vm2304_vm2 = vcmask 3072  }
  0x16   : > { %s382_s22 = scalar_lea.vmem %s3840_s0, %s2535_s19  ;;  %s3208_s19 = smov 121   ;;  %v3484_v12 = vpack.i.bf16 %v1468_v11, %v1400_v9 }
  0x17   : > { %v427_v20 = vld [vmem:[%s382_s22] sm:$0x3]  ;;  %2651 = vset.pattern.permute.xlu1 %v3202_v3  ;;  %2678 = vset.pattern.permute.xlu0 %v3201_v2  ;;  %s393_s22 = sadd.s32 2, %s3183_s24  ;;  %s3865_s24 = smov (!%p405_p9, %s3183_s24), 3 }
  0x18   : > { %v430_v21 = vunpack.c.l.bf16 %v427_v20  ;;  %2653 = vperm.xlu1 %2651, %v2652_v19   ;;  %p396_p8 = scmp.lt.s32.totalorder %s393_s22, 5  ;;  %v2560_v20 = vld [vmem:[%s3843_s3 + $0x22] sm:$0x3] }
  0x1a   : > { %v3329_v22 = vrot.slane %v430_v21, %v3316_v15  ;;  %v3332_v23 = vrot.slane %v430_v21, %v3319_v16  ;;  %v3335_v24 = vrot.slane %v430_v21, %v3322_v17  ;;  %v3338_v25 = vrot.slane %v430_v21, %v3325_v18  ;;  %s3861_s22 = smov (!%p396_p8, %s393_s22), 5  ;;  %v2568_v21 = vld [vmem:[%s3843_s3 + $0x32] sm:$0x3] }
  0x1b   : > { %s399_s14 = sadd.s32 %s3305_s17, %s3861_s22  ;;  %s2536_s17 = sshll.u32 %s389_s11, 1  ;;  %v2158_v29 = vunpack.c.l.bf16 %v2568_v21 }
  0x1c   : > { %v3343_v26 = vpack.i.bf16 %v3332_v23, %v3329_v22  ;;  %v3347_v27 = vpack.i.bf16 %v3338_v25, %v3335_v24  ;;  %2672 = vset.pattern.permute.xlu1 %v3204_v14  ;;  %s2537_s15 = sshll.u32 %s399_s14, 1 }
  0x1d   : > { %s401_s9 = scalar_lea.vmem %s3842_s2, %s2537_s15  ;;  %s3212_s15 = smov 114  }
  0x1e   : > { %2663 = vrot.lane.b32.xlu0 %v3343_v26, %s3205_s23  ;;  %2658 = vrot.lane.b32.xlu1 %v3347_v27, %s3205_s23  ;;  %v1670_v43 = vld [vmem:[%s401_s9] sm:$0x3]  ;;  %s391_s9 = scalar_lea.vmem %s3841_s1, %s2536_s17 }
  0x1f   : > { %v1674_v44 = vunpack.c.l.bf16 %v1670_v43  ;;  %v1048_v52 = vld [vmem:[%s391_s9] sm:$0x3] }
  0x20   : > { %v1052_v55 = vunpack.c.l.bf16 %v1048_v52 }
  0x21   : > { %v3413_v47 = vrot.slane %v1674_v44, %v3322_v17  ;;  %v3416_v48 = vrot.slane %v1674_v44, %v3325_v18  ;;  %v3427_v53 = vrot.slane %v1674_v44, %v3316_v15  ;;  %v3430_v54 = vrot.slane %v1674_v44, %v3319_v16 }
  0x22   : > { %2668 = vrot.lane.b32.xlu0 %v3347_v27, %s3206_s8  ;;  %2674 = vperm.xlu1 %2672, %v2652_v19   ;;  %v3442_v58 = vrot.slane %v1052_v55, %v3322_v17  ;;  %v3445_v59 = vrot.slane %v1052_v55, %v3325_v18  ;;  %v3489_v17 = vrot.slane %v1052_v55, %v3316_v15  ;;  %v438_v44 = vunpack.c.0.s8 %v437_v40 }
  0x23   : > { %v3492_v18 = vrot.slane %v1052_v55, %v3319_v16  ;;  %v2567_v16 = vld [vmem:[%s3843_s3 + $0x30] sm:$0x3] }
  0x24   : > { %v3453_v60 = vpack.i.bf16 %v3445_v59, %v3442_v58  ;;  %v2090_v28 = vunpack.c.l.bf16 %v2567_v16  ;;  %v3565_v50 = vsub.s32 %v438_v44, %v3307_v10 }
  0x25   : > { %v3505_v15 = vpack.i.bf16 %v3492_v18, %v3489_v17 }
  0x26   : > { %2680 = vperm.xlu0 %2678, %v2652_v19   ;;  %2685 = vrot.lane.b32.xlu1 %v3343_v26, %s3206_s8  ;;  %v3522_v31 = vpack.i.bf16 %v2158_v29, %v2090_v28 }
  0x27   : > { %2689 = vset.pattern.permute.xlu1 %v3203_v13 }
  0x2a   : > { %2696 = vrot.lane.b32.xlu0 %v3347_v27, %s3207_s13  ;;  %2691 = vperm.xlu1 %2689, %v2652_v19   ;;  %v2559_v19 = vld [vmem:[%s3843_s3 + $0x20] sm:$0x3] }
  0x2b   : > { %2705 = vset.pattern.permute.xlu0 %v3202_v3 }
  0x2e   : > { %2707 = vperm.xlu0 %2705, %v2706_v32   ;;  %2701 = vrot.lane.b32.xlu1 %v3343_v26, %s3207_s13 }
  0x2f   : > { %2716 = vset.pattern.permute.xlu1 %v3204_v14 }
  0x32   : > { %2722 = vset.pattern.permute.xlu0 %v3201_v2  ;;  %2712 = vrot.lane.b32.xlu1 %v3347_v27, %s3208_s19 }
  0x33   : > { %2724 = vperm.xlu0 %2722, %v2706_v32  }
  0x36   : > { %2718 = vperm.xlu1 %2716, %v2706_v32  }
  0x37   : > { %2740 = vrot.lane.b32.xlu0 %v3347_v27, %s3209_s20 }
  0x3a   : > { %2729 = vrot.lane.b32.xlu1 %v3343_v26, %s3208_s19 }
  0x3b   : > { %2761 = vperm.xlu0 %2722, %v2760_v37   ;;  %2733 = vset.pattern.permute.xlu1 %v3203_v13 }
  0x3e   : > { %2735 = vperm.xlu1 %2733, %v2706_v32   ;;  %v2561_v32 = vld [vmem:[%s3843_s3 + $0x24] sm:$0x3] }
  0x3f   : > { %2765 = vset.pattern.permute.xlu0 %v3202_v3  ;;  %v1673_v34 = vunpack.c.l.bf16 %v2561_v32 }
  0x40   : > { %2767 = vperm.xlu0 %2765, %v2760_v37  }
  0x41   : > { %v3541_v36 = vpack.i.bf16 %v1746_v35, %v1673_v34 }
  0x42   : > { %2745 = vrot.lane.b32.xlu1 %v3343_v26, %s3209_s20 }
  0x43   : > { %2754 = vset.pattern.permute.xlu1 %v3204_v14 }
  0x44   : > { %2783 = vrot.lane.b32.xlu0 %v3347_v27, %s3210_s10 }
  0x46   : > { %2750 = vrot.lane.b32.xlu1 %v3347_v27, %s3211_s12 }
  0x48   : > { %2793 = vperm.xlu0 %2765, %v2792_v42  }
  0x4a   : > { %2756 = vperm.xlu1 %2754, %v2760_v37  }
  0x4c   : > { %2808 = vset.pattern.permute.xlu0 %v3201_v2 }
  0x4d   : > { %2810 = vperm.xlu0 %2808, %v2792_v42  }
  0x4e   : > { %2772 = vrot.lane.b32.xlu1 %v3343_v26, %s3211_s12 }
  0x4f   : > { %2776 = vset.pattern.permute.xlu1 %v3203_v13 }
  0x51   : > { %2825 = vset.pattern.permute.xlu0 %v3202_v3 }
  0x52   : > { %2827 = vperm.xlu0 %2825, %v3422_v51   ;;  %2778 = vperm.xlu1 %2776, %v2760_v37   ;;  %v2563_v37 = vld [vmem:[%s3843_s3 + $0x28] sm:$0x3] }
  0x53   : > { %v1818_v41 = vunpack.c.l.bf16 %v2563_v37 }
  0x56   : > { %2842 = vset.pattern.permute.xlu0 %v3201_v2  ;;  %2788 = vrot.lane.b32.xlu1 %v3343_v26, %s3210_s10 }
  0x57   : > { %2844 = vperm.xlu0 %2842, %v3422_v51   ;;  %2802 = vset.pattern.permute.xlu1 %v3204_v14 }
  0x5a   : > { %2798 = vrot.lane.b32.xlu1 %v3347_v27, %s3212_s15  ;;  %v1604_v27 = vunpack.c.l.bf16 %v2560_v20 }
  0x5b   : > { %2860 = vrot.lane.b32.xlu0 %v3453_v60, %s3206_s8 }
  0x5e   : > { %2804 = vperm.xlu1 %2802, %v2792_v42  }
  0x5f   : > { %2881 = vperm.xlu0 %2842, %v3460_v63  }
  0x62   : > { %2815 = vrot.lane.b32.xlu1 %v3343_v26, %s3212_s15  ;;  %v1536_v26 = vunpack.c.l.bf16 %v2559_v19 }
  0x63   : > { %2885 = vset.pattern.permute.xlu0 %v3202_v3  ;;  %2819 = vset.pattern.permute.xlu1 %v3203_v13 }
  0x64   : > { %2887 = vperm.xlu0 %2885, %v3460_v63   ;;  %v3520_v30 = vpack.i.bf16 %v1604_v27, %v1536_v26 }
  0x66   : > { %2821 = vperm.xlu1 %2819, %v2792_v42   ;;  %v1886_v42 = vunpack.c.l.bf16 %v2564_v38 }
  0x68   : > { %2903 = vrot.lane.b32.xlu0 %v3453_v60, %s3208_s19  ;;  %v3557_v43 = vpack.i.bf16 %v1886_v42, %v1818_v41 }
  0x6a   : > { %2832 = vrot.lane.b32.xlu1 %v3453_v60, %s3205_s23 }
  0x6b   : > { %2836 = vset.pattern.permute.xlu1 %v3204_v14 }
  0x6c   : > { %2913 = vperm.xlu0 %2885, %v3484_v12  }
  0x6e   : > { %2838 = vperm.xlu1 %2836, %v3422_v51  }
  0x70   : > { %2928 = vset.pattern.permute.xlu0 %v3201_v2 }
  0x71   : > { %2930 = vperm.xlu0 %2928, %v3484_v12  }
  0x72   : > { %2849 = vrot.lane.b32.xlu1 %v3505_v15, %s3205_s23 }
  0x73   : > { %2853 = vset.pattern.permute.xlu1 %v3203_v13 }
  0x75   : > { %2946 = vrot.lane.b32.xlu0 %v3453_v60, %s3211_s12 }
  0x76   : > { %2855 = vperm.xlu1 %2853, %v3422_v51  }
  0x79   : > { %2967 = vperm.xlu0 %2928, %v3520_v30  }
  0x7a   : > { %2865 = vrot.lane.b32.xlu1 %v3505_v15, %s3206_s8 }
  0x7b   : > { %2874 = vset.pattern.permute.xlu1 %v3204_v14 }
  0x7d   : > { %2971 = vset.pattern.permute.xlu0 %v3202_v3 }
  0x7e   : > { %2973 = vperm.xlu0 %2971, %v3520_v30   ;;  %2870 = vrot.lane.b32.xlu1 %v3453_v60, %s3207_s13 }
  0x82   : > { %2989 = vrot.lane.b32.xlu0 %v3453_v60, %s3212_s15  ;;  %2876 = vperm.xlu1 %2874, %v3460_v63  }
  0x86   : > { %2999 = vperm.xlu0 %2971, %v3541_v36   ;;  %2892 = vrot.lane.b32.xlu1 %v3505_v15, %s3207_s13 }
  0x87   : > { %2896 = vset.pattern.permute.xlu1 %v3203_v13 }
  0x8a   : > { %3015 = vset.pattern.permute.xlu0 %v3203_v13  ;;  %2898 = vperm.xlu1 %2896, %v3460_v63  }
  0x8b   : > { %3017 = vperm.xlu0 %3015, %v3541_v36  }
  0x8d   : > { %v2642_v45 = vpop.permute.xlu1 %2641  ;;  %v2630_v46 = vpop.permute.xlu0 %2629 }
  0x8e   : > { %2908 = vrot.lane.b32.xlu1 %v3505_v15, %s3208_s19  ;;  %v2631_v49 = vunpack.i.l.bf16 %v2630_v46  ;;  %v2643_v51 = vunpack.i.l.bf16 %v2642_v45  ;;  %v2632_v0 = vunpack.i.h.bf16 %v2630_v46  ;;  %v2644_v19 = vunpack.i.h.bf16 %v2642_v45 }
  0x8f   : > { %3032 = vset.pattern.permute.xlu0 %v3204_v14  ;;  %2922 = vset.pattern.permute.xlu1 %v3204_v14 }
  0x90   : > { %3034 = vperm.xlu0 %3032, %v3557_v43   ;;  %v442_v52 = vrot.slane %v2631_v49, %v3565_v50  ;;  %v476_v62 = vrot.slane %v2643_v51, %v3565_v50  ;;  %v514_v11 = vrot.slane %v2632_v0, %v3565_v50  ;;  %v548_v35 = vrot.slane %v2644_v19, %v3565_v50 }
  0x92   : > { %2918 = vrot.lane.b32.xlu1 %v3453_v60, %s3209_s20  ;;  %v2648_v55 = vpop.permute.xlu1 %2647  ;;  %v2636_v56 = vpop.permute.xlu0 %2635  ;;  %v447_v10 = vmul.f32 %v3335_v24, %v442_v52  ;;  %v481_v24 = vmul.f32 %v3329_v22, %v476_v62  ;;  %v3594_v22 = vpack.i.bf16 %v3416_v48, %v3413_v47 }
  0x93   : > { %v2649_v57 = vunpack.i.l.bf16 %v2648_v55  ;;  %v2637_v61 = vunpack.i.l.bf16 %v2636_v56  ;;  %v2638_v6 = vunpack.i.h.bf16 %v2636_v56  ;;  %v2650_v28 = vunpack.i.h.bf16 %v2648_v55 }
  0x94   : > { %3049 = vset.pattern.permute.xlu0 %v3203_v13 }
  0x95   : > { %3051 = vperm.xlu0 %3049, %v3557_v43   ;;  %v459_v63 = vrot.slane %v2637_v61, %v3565_v50  ;;  %v493_v1 = vrot.slane %v2649_v57, %v3565_v50  ;;  %v531_v21 = vrot.slane %v2638_v6, %v3565_v50  ;;  %v565_v41 = vrot.slane %v2650_v28, %v3565_v50 }
  0x96   : > { %2924 = vperm.xlu1 %2922, %v3484_v12   ;;  %v2664_v7 = vpop.permute.xlu0 %2663 }
  0x97   : > { %v464_v4 = vmul.f32 %v3338_v25, %v459_v63  ;;  %v3579_v5 = vpop.permute.xlu1 %2653  ;;  %v498_v20 = vmul.f32 %v3332_v23, %v493_v1  ;;  %v2665_v32 = vunpack.i.l.bf16 %v2664_v7  ;;  %v2666_v38 = vunpack.i.h.bf16 %v2664_v7 }
  0x98   : > { %v2655_v23 = vunpack.i.l.bf16 %v3579_v5  ;;  %v2656_v6 = vunpack.i.h.bf16 %v3579_v5  ;;  %v2569_v5 = vld [vmem:[%s3843_s3 + $0x34] sm:$0x3] }
  0x99   : > { %3065 = vset.pattern.permute.xlu0 %v3202_v3  ;;  %v465_v9 = vadd.f32 %v464_v4, %v447_v10  ;;  %v553_v42 = vmul.f32 %v2665_v32, %v548_v35  ;;  %v570_v55 = vmul.f32 %v2666_v38, %v565_v41 }
  0x9a   : > { %3067 = vperm.xlu0 %3065, %v3475_v8   ;;  %2935 = vrot.lane.b32.xlu1 %v3505_v15, %s3209_s20  ;;  %v2669_v33 = vpop.permute.xlu0 %2668  ;;  %v586_v44 = vrot.slane %v2655_v23, %v3565_v50  ;;  %v654_v28 = vrot.slane %v2656_v6, %v3565_v50 }
  0x9b   : > { %2939 = vset.pattern.permute.xlu1 %v3203_v13  ;;  %v482_v25 = vadd.f32 %v481_v24, %v465_v9  ;;  %v2659_v16 = vpop.permute.xlu1 %2658  ;;  %v2670_v45 = vunpack.i.l.bf16 %v2669_v33  ;;  %v2671_v56 = vunpack.i.h.bf16 %v2669_v33 }
  0x9c   : > { %v2661_v26 = vunpack.i.h.bf16 %v2659_v16  ;;  %v2660_v27 = vunpack.i.l.bf16 %v2659_v16 }
  0x9d   : > { %v499_v29 = vadd.f32 %v498_v20, %v482_v25  ;;  %v590_v62 = vmul.f32 %v2670_v45, %v586_v44 }
  0x9e   : > { %3082 = vset.pattern.permute.xlu0 %v3201_v2  ;;  %2941 = vperm.xlu1 %2939, %v3484_v12   ;;  %v519_v34 = vmul.f32 %v2660_v27, %v514_v11  ;;  %v536_v39 = vmul.f32 %v2661_v26, %v531_v21 }
  0x9f   : > { %3084 = vperm.xlu0 %3082, %v3475_v8  }
  0xa0   : > { %v520_v40 = vadd.f32 %v519_v34, %v499_v29 }
  0xa1   : > { %v2675_v37 = vpop.permute.xlu1 %2674 }
  0xa2   : > { %v2676_v12 = vunpack.i.l.bf16 %v2675_v37  ;;  %2951 = vrot.lane.b32.xlu1 %v3505_v15, %s3211_s12  ;;  %v537_v46 = vadd.f32 %v536_v39, %v520_v40  ;;  %v2677_v11 = vunpack.i.h.bf16 %v2675_v37  ;;  %v3626_v37 = vunpack.c.l.bf16 %v2569_v5 }
  0xa3   : > { %3100 = vrot.lane.b32.xlu0 %v3594_v22, %s3208_s19  ;;  %2960 = vset.pattern.permute.xlu1 %v3204_v14 }
  0xa4   : > { %v554_v57 = vadd.f32 %v553_v42, %v537_v46  ;;  %v602_v61 = vrot.slane %v2676_v12, %v3565_v50  ;;  %v670_v33 = vrot.slane %v2677_v11, %v3565_v50 }
  0xa5   : > { %v2681_v49 = vpop.permute.xlu0 %2680  ;;  %v2686_v52 = vpop.permute.xlu1 %2685 }
  0xa6   : > { %v2682_v51 = vunpack.i.l.bf16 %v2681_v49  ;;  %2956 = vrot.lane.b32.xlu1 %v3453_v60, %s3210_s10  ;;  %v571_v10 = vadd.f32 %v570_v55, %v554_v57  ;;  %v2687_v0 = vunpack.i.l.bf16 %v2686_v52  ;;  %v606_v24 = vmul.f32 %v2671_v56, %v602_v61 }
  0xa7   : > { %3121 = vperm.xlu0 %3082, %v3522_v31   ;;  %v2683_v60 = vunpack.i.h.bf16 %v2681_v49  ;;  %v2688_v19 = vunpack.i.h.bf16 %v2686_v52 }
  0xa8   : > { %v618_v63 = vrot.slane %v2682_v51, %v3565_v50  ;;  %v591_v7 = vadd.f32 %v590_v62, %v571_v10 }
  0xa9   : > { %v2697_v1 = vpop.permute.xlu0 %2696  ;;  %v2692_v4 = vpop.permute.xlu1 %2691  ;;  %v686_v34 = vrot.slane %v2683_v60, %v3565_v50 }
  0xaa   : > { %v2693_v9 = vunpack.i.l.bf16 %v2692_v4  ;;  %2962 = vperm.xlu1 %2960, %v3520_v30   ;;  %v607_v20 = vadd.f32 %v606_v24, %v591_v7  ;;  %v622_v25 = vmul.f32 %v2687_v0, %v618_v63  ;;  %v2698_v16 = vunpack.i.l.bf16 %v2697_v1 }
  0xab   : > { %3125 = vset.pattern.permute.xlu0 %v3202_v3  ;;  %v2699_v32 = vunpack.i.h.bf16 %v2697_v1  ;;  %v2694_v35 = vunpack.i.h.bf16 %v2692_v4 }
  0xac   : > { %3127 = vperm.xlu0 %3125, %v3522_v31   ;;  %v634_v21 = vrot.slane %v2693_v9, %v3565_v50  ;;  %v623_v29 = vadd.f32 %v622_v25, %v607_v20  ;;  %v658_v38 = vmul.f32 %v2698_v16, %v654_v28 }
  0xad   : > { %v2708_v26 = vpop.permute.xlu0 %2707  ;;  %v2702_v27 = vpop.permute.xlu1 %2701  ;;  %v674_v44 = vmul.f32 %v2699_v32, %v670_v33  ;;  %v702_v49 = vrot.slane %v2694_v35, %v3565_v50 }
  0xae   : > { %v638_v23 = vmul.f32 %v2688_v19, %v634_v21  ;;  %2978 = vrot.lane.b32.xlu1 %v3505_v15, %s3210_s10  ;;  %v2703_v40 = vunpack.i.l.bf16 %v2702_v27  ;;  %v2709_v12 = vunpack.i.l.bf16 %v2708_v26  ;;  %v2704_v46 = vunpack.i.h.bf16 %v2702_v27 }
  0xaf   : > { %2982 = vset.pattern.permute.xlu1 %v3203_v13  ;;  %v2710_v7 = vunpack.i.h.bf16 %v2708_v26 }
  0xb0   : > { %3143 = vrot.lane.b32.xlu0 %v3594_v22, %s3211_s12  ;;  %v639_v39 = vadd.f32 %v638_v23, %v623_v29  ;;  %v690_v52 = vmul.f32 %v2703_v40, %v686_v34  ;;  %v722_v55 = vrot.slane %v2709_v12, %v3565_v50  ;;  %v706_v62 = vmul.f32 %v2704_v46, %v702_v49 }
  0xb1   : > { %v2713_v41 = vpop.permute.xlu1 %2712  ;;  %v790_v20 = vrot.slane %v2710_v7, %v3565_v50 }
  0xb2   : > { %v2725_v42 = vpop.permute.xlu0 %2724  ;;  %v659_v45 = vadd.f32 %v658_v38, %v639_v39  ;;  %2984 = vperm.xlu1 %2982, %v3520_v30   ;;  %v2714_v56 = vunpack.i.l.bf16 %v2713_v41  ;;  %v2715_v1 = vunpack.i.h.bf16 %v2713_v41 }
  0xb3   : > { %v2726_v10 = vunpack.i.l.bf16 %v2725_v42  ;;  %v2727_v28 = vunpack.i.h.bf16 %v2725_v42 }
  0xb4   : > { %2229 = vperm.xlu0 %3125, %v3626_v37   ;;  %v675_v51 = vadd.f32 %v674_v44, %v659_v45  ;;  %v726_v4 = vmul.f32 %v2714_v56, %v722_v55 }
  0xb5   : > { %v2719_v57 = vpop.permute.xlu1 %2718  ;;  %v754_v11 = vrot.slane %v2726_v10, %v3565_v50 }
  0xb6   : > { %v691_v61 = vadd.f32 %v690_v52, %v675_v51  ;;  %v2720_v63 = vunpack.i.l.bf16 %v2719_v57  ;;  %2994 = vrot.lane.b32.xlu1 %v3505_v15, %s3212_s15  ;;  %v2741_v0 = vpop.permute.xlu0 %2740  ;;  %v2721_v25 = vunpack.i.h.bf16 %v2719_v57 }
  0xb7   : > { %3003 = vset.pattern.permute.xlu1 %v3204_v14  ;;  %v2742_v26 = vunpack.i.l.bf16 %v2741_v0  ;;  %v2743_v23 = vunpack.i.h.bf16 %v2741_v0 }
  0xb8   : > { %3158 = vset.pattern.permute.xlu0 %v3201_v2  ;;  %v707_v30 = vadd.f32 %v706_v62, %v691_v61  ;;  %v738_v6 = vrot.slane %v2720_v63, %v3565_v50  ;;  %v806_v35 = vrot.slane %v2721_v25, %v3565_v50 }
  0xb9   : > { %2261 = vperm.xlu0 %3158, %v3626_v37   ;;  %v2730_v24 = vpop.permute.xlu1 %2729  ;;  %v794_v38 = vmul.f32 %v2742_v26, %v790_v20 }
  0xba   : > { %v727_v9 = vadd.f32 %v726_v4, %v707_v30  ;;  %v742_v60 = vmul.f32 %v2715_v1, %v738_v6  ;;  %3005 = vperm.xlu1 %3003, %v3541_v36   ;;  %v2731_v15 = vunpack.i.l.bf16 %v2730_v24  ;;  %v3640_v19 = vpop.permute.xlu0 %2761  ;;  %v2732_v29 = vunpack.i.h.bf16 %v2730_v24 }
  0xbb   : > { %v810_v46 = vmul.f32 %v2743_v23, %v806_v35  ;;  %v2763_v62 = vunpack.i.l.bf16 %v3640_v19  ;;  %v3665_v30 = vpack.i.bf16 %v3430_v54, %v3427_v53 }
  0xbc   : > { %v743_v21 = vadd.f32 %v742_v60, %v727_v9  ;;  %v758_v5 = vmul.f32 %v2731_v15, %v754_v11 }
  0xbd   : > { %2219 = vrot.lane.b32.xlu0 %v3430_v54, %s3210_s10  ;;  %v2736_v16 = vpop.permute.xlu1 %2735 }
  0xbe   : > { %3160 = vset.pattern.permute.xlu0 %v3203_v13  ;;  %v2737_v27 = vunpack.i.l.bf16 %v2736_v16  ;;  %3009 = vset.pattern.permute.xlu1 %v3201_v2  ;;  %v759_v39 = vadd.f32 %v758_v5, %v743_v21  ;;  %v2738_v12 = vunpack.i.h.bf16 %v2736_v16 }
  0xbf   : > { %3011 = vperm.xlu1 %3009, %v3541_v36   ;;  %v2768_v34 = vpop.permute.xlu0 %2767  ;;  %v822_v36 = vrot.slane %v2727_v28, %v3565_v50  ;;  %v2764_v28 = vunpack.i.h.bf16 %v3640_v19 }
  0xc0   : > { %v770_v32 = vrot.slane %v2737_v27, %v3565_v50  ;;  %v2769_v44 = vunpack.i.l.bf16 %v2768_v34  ;;  %v838_v52 = vrot.slane %v2738_v12, %v3565_v50  ;;  %v2770_v24 = vunpack.i.h.bf16 %v2768_v34 }
  0xc1   : > { %2255 = vrot.lane.b32.xlu0 %v3416_v48, %s3212_s15  ;;  %v2746_v33 = vpop.permute.xlu1 %2745 }
  0xc2   : > { %v774_v40 = vmul.f32 %v2732_v29, %v770_v32  ;;  %v2747_v42 = vunpack.i.l.bf16 %v2746_v33  ;;  %v2748_v51 = vunpack.i.h.bf16 %v2746_v33  ;;  %v926_v25 = vrot.slane %v2770_v24, %v3565_v50 }
  0xc3   : > { %3021 = vset.pattern.permute.xlu1 %v3202_v3  ;;  %v858_v3 = vrot.slane %v2769_v44, %v3565_v50  ;;  %v2784_v20 = vpop.permute.xlu0 %2783 }
  0xc4   : > { %v775_v41 = vadd.f32 %v774_v40, %v759_v39  ;;  %3023 = vperm.xlu1 %3021, %v3557_v43   ;;  %v826_v56 = vmul.f32 %v2747_v42, %v822_v36  ;;  %v842_v63 = vmul.f32 %v2748_v51, %v838_v52  ;;  %v2785_v16 = vunpack.i.l.bf16 %v2784_v20 }
  0xc5   : > { %2287 = vrot.lane.b32.xlu0 %v3430_v54, %s3212_s15  ;;  %v2751_v45 = vpop.permute.xlu1 %2750  ;;  %v2786_v33 = vunpack.i.h.bf16 %v2784_v20  ;;  %v958_v36 = vrot.slane %v2764_v28, %v3565_v50 }
  0xc6   : > { %v795_v49 = vadd.f32 %v794_v38, %v775_v41  ;;  %v2752_v57 = vunpack.i.l.bf16 %v2751_v45  ;;  %v2753_v4 = vunpack.i.h.bf16 %v2751_v45  ;;  %v930_v38 = vmul.f32 %v2785_v16, %v926_v25 }
  0xc7   : > { %v2794_v23 = vpop.permute.xlu0 %2793 }
  0xc8   : > { %v811_v55 = vadd.f32 %v810_v46, %v795_v49  ;;  %3028 = vrot.lane.b32.xlu1 %v3594_v22, %s3205_s23  ;;  %v862_v6 = vmul.f32 %v2752_v57, %v858_v3  ;;  %v2795_v12 = vunpack.i.l.bf16 %v2794_v23  ;;  %v2796_v24 = vunpack.i.h.bf16 %v2794_v23 }
  0xc9   : > { %v2757_v61 = vpop.permute.xlu1 %2756  ;;  %3038 = vset.pattern.permute.xlu1 %v3201_v2  ;;  %v890_v2 = vrot.slane %v2763_v62, %v3565_v50 }
  0xca   : > { %v827_v10 = vadd.f32 %v826_v56, %v811_v55  ;;  %v2758_v0 = vunpack.i.l.bf16 %v2757_v61  ;;  %v2759_v26 = vunpack.i.h.bf16 %v2757_v61  ;;  %v994_v51 = vrot.slane %v2795_v12, %v3565_v50 }
  0xcb   : > { %v1064_v25 = vrot.slane %v2796_v24, %v3565_v50 }
  0xcc   : > { %v843_v1 = vadd.f32 %v842_v63, %v827_v10  ;;  %v874_v7 = vrot.slane %v2758_v0, %v3565_v50  ;;  %3040 = vperm.xlu1 %3038, %v3557_v43   ;;  %v942_v35 = vrot.slane %v2759_v26, %v3565_v50  ;;  %v2811_v52 = vpop.permute.xlu0 %2810 }
  0xcd   : > { %v2773_v9 = vpop.permute.xlu1 %2772  ;;  %v2812_v0 = vunpack.i.l.bf16 %v2811_v52  ;;  %v2813_v16 = vunpack.i.h.bf16 %v2811_v52  ;;  %v1069_v23 = vmul.f32 %v3442_v58, %v1064_v25 }
  0xce   : > { %v863_v11 = vadd.f32 %v862_v6, %v843_v1  ;;  %v878_v60 = vmul.f32 %v2753_v4, %v874_v7  ;;  %v2774_v15 = vunpack.i.l.bf16 %v2773_v9  ;;  %v2775_v29 = vunpack.i.h.bf16 %v2773_v9 }
  0xcf   : > { %v946_v45 = vmul.f32 %v2786_v33, %v942_v35  ;;  %v1098_v33 = vrot.slane %v2813_v16, %v3565_v50 }
  0xd0   : > { %3045 = vrot.lane.b32.xlu1 %v3665_v30, %s3205_s23  ;;  %v879_v5 = vadd.f32 %v878_v60, %v863_v11  ;;  %v894_v43 = vmul.f32 %v2774_v15, %v890_v2  ;;  %v1026_v60 = vrot.slane %v2812_v0, %v3565_v50  ;;  %s2538_s23 = sshll.u32 %s3859_s25, 2 }
  0xd1   : > { %v2779_v21 = vpop.permute.xlu1 %2778  ;;  %3076 = vset.pattern.permute.xlu1 %v3204_v14  ;;  %v2828_v15 = vpop.permute.xlu0 %2827 }
  0xd2   : > { %v2780_v27 = vunpack.i.l.bf16 %v2779_v21  ;;  %v895_v39 = vadd.f32 %v894_v43, %v879_v5  ;;  %v2781_v41 = vunpack.i.h.bf16 %v2779_v21 }
  0xd4   : > { %v906_v32 = vrot.slane %v2780_v27, %v3565_v50  ;;  %3056 = vrot.lane.b32.xlu1 %v3594_v22, %s3206_s8  ;;  %v974_v55 = vrot.slane %v2781_v41, %v3565_v50  ;;  %v1103_v41 = vmul.f32 %v3489_v17, %v1098_v33 }
  0xd5   : > { %v2789_v34 = vpop.permute.xlu1 %2788 }
  0xd6   : > { %v910_v40 = vmul.f32 %v2775_v29, %v906_v32  ;;  %v2790_v19 = vunpack.i.l.bf16 %v2789_v34  ;;  %v2791_v49 = vunpack.i.h.bf16 %v2789_v34  ;;  %v2845_v32 = vpop.permute.xlu0 %2844 }
  0xd8   : > { %v911_v42 = vadd.f32 %v910_v40, %v895_v39  ;;  %3061 = vrot.lane.b32.xlu1 %v3665_v30, %s3206_s8  ;;  %v962_v3 = vmul.f32 %v2790_v19, %v958_v36  ;;  %v978_v10 = vmul.f32 %v2791_v49, %v974_v55  ;;  %v2829_v36 = vunpack.i.l.bf16 %v2828_v15  ;;  %s408_s8 = sadd.s32 %s2538_s23, %s3865_s24 }
  0xd9   : > { %v2799_v44 = vpop.permute.xlu1 %2798  ;;  %v2830_v55 = vunpack.i.h.bf16 %v2828_v15  ;;  %s2541_s24 = sshll.u32 %s408_s8, 2 }
  0xda   : > { %v931_v46 = vadd.f32 %v930_v38, %v911_v42  ;;  %v2800_v57 = vunpack.i.l.bf16 %v2799_v44  ;;  %v2801_v4 = vunpack.i.h.bf16 %v2799_v44  ;;  %s418_s9 = scalar_lea.vmem %s3846_s6, %s2541_s24  ;;  %s426_s14 = scalar_lea.vmem %s3847_s7, %s2541_s24 }
  0xdc   : > { %v947_v56 = vadd.f32 %v946_v45, %v931_v46  ;;  %3072 = vrot.lane.b32.xlu1 %v3594_v22, %s3207_s13  ;;  %v998_v6 = vmul.f32 %v2800_v57, %v994_v51  ;;  %v2861_v45 = vpop.permute.xlu0 %2860  ;;  %v2846_v46 = vunpack.i.l.bf16 %v2845_v32  ;;  %v1136_v51 = vrot.slane %v2829_v36, %v3565_v50 }
  0xdd   : > { %v2805_v61 = vpop.permute.xlu1 %2804  ;;  %v2863_v16 = vunpack.i.h.bf16 %v2861_v45 }
  0xde   : > { %v963_v62 = vadd.f32 %v962_v3, %v947_v56  ;;  %v2806_v63 = vunpack.i.l.bf16 %v2805_v61  ;;  %v2807_v26 = vunpack.i.h.bf16 %v2805_v61  ;;  %v1170_v61 = vrot.slane %v2846_v46, %v3565_v50 }
  0xe0   : > { %v979_v1 = vadd.f32 %v978_v10, %v963_v62  ;;  %v1010_v7 = vrot.slane %v2806_v63, %v3565_v50  ;;  %3078 = vperm.xlu1 %3076, %v3475_v8   ;;  %v1081_v35 = vrot.slane %v2807_v26, %v3565_v50  ;;  %v3709_v57 = vpop.permute.xlu0 %2881 }
  0xe1   : > { %v2816_v9 = vpop.permute.xlu1 %2815 }
  0xe2   : > { %v999_v2 = vadd.f32 %v998_v6, %v979_v1  ;;  %v1014_v11 = vmul.f32 %v2801_v4, %v1010_v7  ;;  %v2817_v20 = vunpack.i.l.bf16 %v2816_v9  ;;  %v2818_v28 = vunpack.i.h.bf16 %v2816_v9 }
  0xe3   : > { %v1086_v58 = vmul.f32 %v3445_v59, %v1081_v35  ;;  %v1208_v1 = vrot.slane %v2830_v55, %v3565_v50  ;;  %v2862_v4 = vunpack.i.l.bf16 %v2861_v45 }
  0xe4   : > { %3089 = vrot.lane.b32.xlu1 %v3665_v30, %s3207_s13  ;;  %v1015_v5 = vadd.f32 %v1014_v11, %v999_v2  ;;  %v1030_v43 = vmul.f32 %v2817_v20, %v1026_v60  ;;  %v2847_v2 = vunpack.i.h.bf16 %v2845_v32  ;;  %v2888_v25 = vpop.permute.xlu0 %2887  ;;  %s2539_s13 = sshll.u32 %s408_s8, 1 }
  0xe5   : > { %v2822_v21 = vpop.permute.xlu1 %2821  ;;  %3093 = vset.pattern.permute.xlu1 %v3203_v13 }
  0xe6   : > { %v2823_v27 = vunpack.i.l.bf16 %v2822_v21  ;;  %v1031_v38 = vadd.f32 %v1030_v43, %v1015_v5  ;;  %v2824_v39 = vunpack.i.h.bf16 %v2822_v21  ;;  %v1212_v5 = vmul.f32 %v2862_v4, %v1208_v1 }
  0xe8   : > { %v1042_v29 = vrot.slane %v2823_v27, %v3565_v50  ;;  %3095 = vperm.xlu1 %3093, %v3475_v8   ;;  %v1115_v8 = vrot.slane %v2824_v39, %v3565_v50 }
  0xe9   : > { %v2833_v34 = vpop.permute.xlu1 %2832 }
  0xea   : > { %v1046_v40 = vmul.f32 %v2818_v28, %v1042_v29  ;;  %v2834_v52 = vunpack.i.l.bf16 %v2833_v34  ;;  %v1120_v56 = vmul.f32 %v3492_v18, %v1115_v8  ;;  %v2835_v10 = vunpack.i.h.bf16 %v2833_v34 }
  0xeb   : > { %v2889_v28 = vunpack.i.l.bf16 %v2888_v25  ;;  %v1240_v29 = vrot.slane %v2847_v2, %v3565_v50  ;;  %v2883_v8 = vunpack.i.l.bf16 %v3709_v57 }
  0xec   : > { %v1047_v12 = vadd.f32 %v1046_v40, %v1031_v38  ;;  %3105 = vrot.lane.b32.xlu1 %v3665_v30, %s3208_s19  ;;  %v1141_v63 = vmul.f32 %v2834_v52, %v1136_v51  ;;  %v2890_v52 = vunpack.i.h.bf16 %v2888_v25 }
  0xed   : > { %v2839_v42 = vpop.permute.xlu1 %2838  ;;  %3114 = vset.pattern.permute.xlu1 %v3204_v14  ;;  %v1276_v40 = vrot.slane %v2889_v28, %v3565_v50 }
  0xee   : > { %v1070_v19 = vadd.f32 %v1069_v23, %v1047_v12  ;;  %v2840_v44 = vunpack.i.l.bf16 %v2839_v42  ;;  %v2841_v24 = vunpack.i.h.bf16 %v2839_v42 }
  0xf0   : > { %v1087_v49 = vadd.f32 %v1086_v58, %v1070_v19  ;;  %3110 = vrot.lane.b32.xlu1 %v3594_v22, %s3209_s20  ;;  %v1153_v59 = vrot.slane %v2840_v44, %v3565_v50  ;;  %v1224_v26 = vrot.slane %v2841_v24, %v3565_v50 }
  0xf1   : > { %v2850_v17 = vpop.permute.xlu1 %2849 }
  0xf2   : > { %v1104_v3 = vadd.f32 %v1103_v41, %v1087_v49  ;;  %v2851_v0 = vunpack.i.l.bf16 %v2850_v17  ;;  %v1158_v18 = vmul.f32 %v2835_v10, %v1153_v59  ;;  %v2852_v60 = vunpack.i.h.bf16 %v2850_v17 }
  0xf3   : > { %v1228_v35 = vmul.f32 %v2863_v16, %v1224_v26  ;;  %v1344_v59 = vrot.slane %v2890_v52, %v3565_v50 }
  0xf4   : > { %v1121_v62 = vadd.f32 %v1120_v56, %v1104_v3  ;;  %3116 = vperm.xlu1 %3114, %v3522_v31   ;;  %v1175_v15 = vmul.f32 %v2851_v0, %v1170_v61 }
  0xf5   : > { %v2856_v6 = vpop.permute.xlu1 %2855 }
  0xf6   : > { %v1142_v7 = vadd.f32 %v1141_v63, %v1121_v62  ;;  %v2857_v9 = vunpack.i.l.bf16 %v2856_v6  ;;  %v2858_v32 = vunpack.i.h.bf16 %v2856_v6 }
  0xf8   : > { %v1159_v11 = vadd.f32 %v1158_v18, %v1142_v7  ;;  %v1187_v20 = vrot.slane %v2857_v9, %v3565_v50  ;;  %3132 = vrot.lane.b32.xlu1 %v3665_v30, %s3209_s20  ;;  %v1256_v12 = vrot.slane %v2858_v32, %v3565_v50 }
  0xf9   : > { %v2866_v21 = vpop.permute.xlu1 %2865  ;;  %3136 = vset.pattern.permute.xlu1 %v3203_v13 }
  0xfa   : > { %v1176_v43 = vadd.f32 %v1175_v15, %v1159_v11  ;;  %v1192_v27 = vmul.f32 %v2852_v60, %v1187_v20  ;;  %v2867_v33 = vunpack.i.l.bf16 %v2866_v21  ;;  %v2868_v39 = vunpack.i.h.bf16 %v2866_v21 }
  0xfc   : > { %v1193_v23 = vadd.f32 %v1192_v27, %v1176_v43  ;;  %3138 = vperm.xlu1 %3136, %v3522_v31   ;;  %v1244_v41 = vmul.f32 %v2867_v33, %v1240_v29  ;;  %v1260_v19 = vmul.f32 %v2868_v39, %v1256_v12 }
  0xfd   : > { %v2871_v34 = vpop.permute.xlu1 %2870 }
  0xfe   : > { %v1213_v38 = vadd.f32 %v1212_v5, %v1193_v23  ;;  %v2872_v42 = vunpack.i.l.bf16 %v2871_v34  ;;  %v2873_v46 = vunpack.i.h.bf16 %v2871_v34 }
 0x100   : > { %v1229_v36 = vadd.f32 %v1228_v35, %v1213_v38  ;;  %3148 = vrot.lane.b32.xlu1 %v3665_v30, %s3211_s12  ;;  %v1280_v49 = vmul.f32 %v2872_v42, %v1276_v40  ;;  %v1308_v30 = vrot.slane %v2883_v8, %v3565_v50  ;;  %s410_s12 = scalar_lea.vmem %s3845_s5, %s2539_s13 }
 0x101   : > { %v2877_v58 = vpop.permute.xlu1 %2876  ;;  %3157 = vset.pattern.permute.xlu1 %v3204_v14  ;;  %v2904_v14 = vpop.permute.xlu0 %2903 }
 0x102   : > { %v1245_v31 = vadd.f32 %v1244_v41, %v1229_v36  ;;  %v2878_v44 = vunpack.i.l.bf16 %v2877_v58  ;;  %v2905_v61 = vunpack.i.l.bf16 %v2904_v14  ;;  %v2879_v10 = vunpack.i.h.bf16 %v2877_v58 }
 0x103   : > { %v2906_v24 = vunpack.i.h.bf16 %v2904_v14 }
 0x104   : > { %v1261_v45 = vadd.f32 %v1260_v19, %v1245_v31  ;;  %v1292_v51 = vrot.slane %v2878_v44, %v3565_v50  ;;  %3153 = vrot.lane.b32.xlu1 %v3594_v22, %s3210_s10  ;;  %v2884_v22 = vunpack.i.h.bf16 %v3709_v57  ;;  %v1360_v9 = vrot.slane %v2879_v10, %v3565_v50 }
 0x105   : > { %v2893_v55 = vpop.permute.xlu1 %2892  ;;  %v2914_v4 = vpop.permute.xlu0 %2913  ;;  %v1348_v2 = vmul.f32 %v2905_v61, %v1344_v59 }
 0x106   : > { %v1281_v17 = vadd.f32 %v1280_v49, %v1261_v45  ;;  %v1296_v56 = vmul.f32 %v2873_v46, %v1292_v51  ;;  %v2894_v3 = vunpack.i.l.bf16 %v2893_v55  ;;  %v2895_v6 = vunpack.i.h.bf16 %v2893_v55 }
 0x107   : > { %v2915_v15 = vunpack.i.l.bf16 %v2914_v4  ;;  %v1376_v20 = vrot.slane %v2884_v22, %v3565_v50  ;;  %v1364_v5 = vmul.f32 %v2906_v24, %v1360_v9  ;;  %v2916_v42 = vunpack.i.h.bf16 %v2914_v4 }
 0x108   : > { %2245 = vperm.xlu1 %3157, %v3626_v37   ;;  %v1297_v63 = vadd.f32 %v1296_v56, %v1281_v17  ;;  %v1312_v0 = vmul.f32 %v2894_v3, %v1308_v30 }
 0x109   : > { %v2899_v62 = vpop.permute.xlu1 %2898  ;;  %v2931_v21 = vpop.permute.xlu0 %2930  ;;  %v1480_v46 = vrot.slane %v2916_v42, %v3565_v50 }
 0x10a   : > { %v2900_v1 = vunpack.i.l.bf16 %v2899_v62  ;;  %v1313_v11 = vadd.f32 %v1312_v0, %v1297_v63  ;;  %v2901_v25 = vunpack.i.h.bf16 %v2899_v62  ;;  %v2932_v38 = vunpack.i.l.bf16 %v2931_v21 }
 0x10b   : > { %v2933_v56 = vunpack.i.h.bf16 %v2931_v21 }
 0x10c   : > { %v1324_v7 = vrot.slane %v2900_v1, %v3565_v50  ;;  %2203 = vrot.lane.b32.xlu1 %v3427_v53, %s3210_s10  ;;  %v1392_v28 = vrot.slane %v2901_v25, %v3565_v50  ;;  %v1444_v31 = vrot.slane %v2932_v38, %v3565_v50 }
 0x10d   : > { %v2909_v18 = vpop.permute.xlu1 %2908  ;;  %3159 = vset.pattern.permute.xlu1 %v3203_v13  ;;  %v1412_v13 = vrot.slane %v2915_v15, %v3565_v50  ;;  %v2947_v39 = vpop.permute.xlu0 %2946  ;;  %v1512_v22 = vrot.slane %v2933_v56, %v3565_v50 }
 0x10e   : > { %v1328_v60 = vmul.f32 %v2895_v6, %v1324_v7  ;;  %v2910_v16 = vunpack.i.l.bf16 %v2909_v18  ;;  %v2911_v27 = vunpack.i.h.bf16 %v2909_v18  ;;  %v2948_v49 = vunpack.i.l.bf16 %v2947_v39 }
 0x10f   : > { %v2949_v61 = vunpack.i.h.bf16 %v2947_v39 }
 0x110   : > { %v1329_v57 = vadd.f32 %v1328_v60, %v1313_v11  ;;  %2277 = vperm.xlu1 %3159, %v3626_v37   ;;  %v1380_v32 = vmul.f32 %v2910_v16, %v1376_v20  ;;  %v1396_v35 = vmul.f32 %v2911_v27, %v1392_v28  ;;  %v1484_v63 = vmul.f32 %v2948_v49, %v1480_v46 }
 0x111   : > { %v2919_v26 = vpop.permute.xlu1 %2918  ;;  %v3749_v44 = vpop.permute.xlu0 %2967 }
 0x112   : > { %v1349_v43 = vadd.f32 %v1348_v2, %v1329_v57  ;;  %v2920_v23 = vunpack.i.l.bf16 %v2919_v26  ;;  %v2921_v12 = vunpack.i.h.bf16 %v2919_v26  ;;  %v2969_v21 = vunpack.i.l.bf16 %v3749_v44 }
 0x114   : > { %v1365_v29 = vadd.f32 %v1364_v5, %v1349_v43  ;;  %2239 = vrot.lane.b32.xlu1 %v3413_v47, %s3212_s15  ;;  %v1416_v36 = vmul.f32 %v2920_v23, %v1412_v13 }
 0x115   : > { %v2925_v33 = vpop.permute.xlu1 %2924  ;;  %v2974_v59 = vpop.permute.xlu0 %2973 }
 0x116   : > { %v1381_v34 = vadd.f32 %v1380_v32, %v1365_v29  ;;  %v2926_v37 = vunpack.i.l.bf16 %v2925_v33  ;;  %v2927_v52 = vunpack.i.h.bf16 %v2925_v33  ;;  %v2975_v4 = vunpack.i.l.bf16 %v2974_v59 }
 0x117   : > { %v2976_v32 = vunpack.i.h.bf16 %v2974_v59  ;;  %v1580_v33 = vrot.slane %v2969_v21, %v3565_v50 }
 0x118   : > { %v1397_v40 = vadd.f32 %v1396_v35, %v1381_v34  ;;  %v1428_v41 = vrot.slane %v2926_v37, %v3565_v50  ;;  %2271 = vrot.lane.b32.xlu1 %v3427_v53, %s3212_s15  ;;  %v1496_v10 = vrot.slane %v2927_v52, %v3565_v50  ;;  %v1548_v60 = vrot.slane %v2975_v4, %v3565_v50 }
 0x119   : > { %v2936_v58 = vpop.permute.xlu1 %2935  ;;  %v2990_v38 = vpop.permute.xlu0 %2989  ;;  %v1616_v39 = vrot.slane %v2976_v32, %v3565_v50 }
 0x11a   : > { %v1417_v8 = vadd.f32 %v1416_v36, %v1397_v40  ;;  %v1432_v19 = vmul.f32 %v2921_v12, %v1428_v41  ;;  %v2937_v45 = vunpack.i.l.bf16 %v2936_v58  ;;  %v2938_v14 = vunpack.i.h.bf16 %v2936_v58 }
 0x11b   : > { %v1500_v9 = vmul.f32 %v2949_v61, %v1496_v10  ;;  %v2991_v40 = vunpack.i.l.bf16 %v2990_v38  ;;  %v2992_v46 = vunpack.i.h.bf16 %v2990_v38 }
 0x11c   : > { %v1433_v55 = vadd.f32 %v1432_v19, %v1417_v8  ;;  %v1448_v30 = vmul.f32 %v2937_v45, %v1444_v31  ;;  %v2970_v31 = vunpack.i.h.bf16 %v3749_v44 }
 0x11d   : > { %v2942_v51 = vpop.permute.xlu1 %2941  ;;  %v3000_v8 = vpop.permute.xlu0 %2999 }
 0x11e   : > { %v2943_v17 = vunpack.i.l.bf16 %v2942_v51  ;;  %v1449_v0 = vadd.f32 %v1448_v30, %v1433_v55  ;;  %v2944_v6 = vunpack.i.h.bf16 %v2942_v51  ;;  %v3001_v51 = vunpack.i.l.bf16 %v3000_v8 }
 0x11f   : > { %v1620_v55 = vmul.f32 %v2991_v40, %v1616_v39  ;;  %v1648_v56 = vrot.slane %v2970_v31, %v3565_v50  ;;  %v3002_v21 = vunpack.i.h.bf16 %v3000_v8 }
 0x120   : > { %v1460_v3 = vrot.slane %v2943_v17, %v3565_v50  ;;  %v1528_v15 = vrot.slane %v2944_v6, %v3565_v50 }
 0x121   : > { %v2952_v62 = vpop.permute.xlu1 %2951  ;;  %v3018_v6 = vpop.permute.xlu0 %3017 }
 0x122   : > { %v1464_v1 = vmul.f32 %v2938_v14, %v1460_v3  ;;  %v2953_v24 = vunpack.i.l.bf16 %v2952_v62  ;;  %v2954_v11 = vunpack.i.h.bf16 %v2952_v62  ;;  %v1686_v62 = vrot.slane %v3001_v51, %v3565_v50 }
 0x124   : > { %v1465_v7 = vadd.f32 %v1464_v1, %v1449_v0  ;;  %v1516_v25 = vmul.f32 %v2953_v24, %v1512_v22  ;;  %v1532_v5 = vmul.f32 %v2954_v11, %v1528_v15  ;;  %v3019_v15 = vunpack.i.l.bf16 %v3018_v6 }
 0x125   : > { %v2957_v18 = vpop.permute.xlu1 %2956 }
 0x126   : > { %v1485_v2 = vadd.f32 %v1484_v63, %v1465_v7  ;;  %v2958_v57 = vunpack.i.l.bf16 %v2957_v18  ;;  %v2959_v13 = vunpack.i.h.bf16 %v2957_v18 }
 0x128   : > { %v1501_v20 = vadd.f32 %v1500_v9, %v1485_v2  ;;  %v1552_v28 = vmul.f32 %v2958_v57, %v1548_v60  ;;  %v1691_v9 = vmul.f32 %v3413_v47, %v1686_v62 }
 0x129   : > { %v2963_v16 = vpop.permute.xlu1 %2962 }
 0x12a   : > { %v1517_v26 = vadd.f32 %v1516_v25, %v1501_v20  ;;  %v2964_v43 = vunpack.i.l.bf16 %v2963_v16  ;;  %v2965_v36 = vunpack.i.h.bf16 %v2963_v16 }
 0x12c   : > { %v1533_v27 = vadd.f32 %v1532_v5, %v1517_v26  ;;  %v1564_v29 = vrot.slane %v2964_v43, %v3565_v50  ;;  %v1632_v52 = vrot.slane %v2965_v36, %v3565_v50  ;;  %v1737_v43 = vrot.slane %v3019_v15, %v3565_v50 }
 0x12d   : > { %v2979_v23 = vpop.permute.xlu1 %2978 }
 0x12e   : > { %v1553_v34 = vadd.f32 %v1552_v28, %v1533_v27  ;;  %v1568_v35 = vmul.f32 %v2959_v13, %v1564_v29  ;;  %v2980_v37 = vunpack.i.l.bf16 %v2979_v23  ;;  %v2981_v19 = vunpack.i.h.bf16 %v2979_v23 }
 0x12f   : > { %v1636_v44 = vmul.f32 %v2992_v46, %v1632_v52  ;;  %v1758_v13 = vrot.slane %v3002_v21, %v3565_v50  ;;  %v1742_v28 = vmul.f32 %v3430_v54, %v1737_v43 }
 0x130   : > { %v1569_v41 = vadd.f32 %v1568_v35, %v1553_v34  ;;  %v1584_v42 = vmul.f32 %v2980_v37, %v1580_v33  ;;  %v3035_v33 = vpop.permute.xlu0 %3034  ;;  %v3020_v34 = vunpack.i.h.bf16 %v3018_v6 }
 0x131   : > { %v2985_v12 = vpop.permute.xlu1 %2984 }
 0x132   : > { %v2986_v58 = vunpack.i.l.bf16 %v2985_v12  ;;  %v1585_v30 = vadd.f32 %v1584_v42, %v1569_v41  ;;  %v2987_v14 = vunpack.i.h.bf16 %v2985_v12  ;;  %v1809_v40 = vrot.slane %v3020_v34, %v3565_v50 }
 0x133   : > { %v3036_v41 = vunpack.i.l.bf16 %v3035_v33 }
 0x134   : > { %v1596_v45 = vrot.slane %v2986_v58, %v3565_v50  ;;  %v1664_v1 = vrot.slane %v2987_v14, %v3565_v50  ;;  %v3052_v31 = vpop.permute.xlu0 %3051 }
 0x135   : > { %v2995_v49 = vpop.permute.xlu1 %2994  ;;  %v1846_v51 = vrot.slane %v3036_v41, %v3565_v50 }
 0x136   : > { %v1600_v17 = vmul.f32 %v2981_v19, %v1596_v45  ;;  %v2996_v59 = vunpack.i.l.bf16 %v2995_v49  ;;  %v2997_v10 = vunpack.i.h.bf16 %v2995_v49 }
 0x138   : > { %v1601_v3 = vadd.f32 %v1600_v17, %v1585_v30  ;;  %v1652_v22 = vmul.f32 %v2996_v59, %v1648_v56  ;;  %v1668_v24 = vmul.f32 %v2997_v10, %v1664_v1 }
 0x139   : > { %v3006_v61 = vpop.permute.xlu1 %3005 }
 0x13a   : > { %v1621_v63 = vadd.f32 %v1620_v55, %v1601_v3  ;;  %v3007_v0 = vunpack.i.l.bf16 %v3006_v61  ;;  %v3008_v32 = vunpack.i.h.bf16 %v3006_v61  ;;  %v3053_v55 = vunpack.i.l.bf16 %v3052_v31  ;;  %v3068_v61 = vpop.permute.xlu0 %3067 }
 0x13b   : > { %v3069_v21 = vunpack.i.l.bf16 %v3068_v61 }
 0x13c   : > { %v1637_v4 = vadd.f32 %v1636_v44, %v1621_v63  ;;  %v1703_v18 = vrot.slane %v3007_v0, %v3565_v50  ;;  %v1775_v39 = vrot.slane %v3008_v32, %v3565_v50  ;;  %v1878_v10 = vrot.slane %v3053_v55, %v3565_v50 }
 0x13e   : > { %v1653_v7 = vadd.f32 %v1652_v22, %v1637_v4  ;;  %v3012_v2 = vpop.permute.xlu1 %3011  ;;  %v1708_v25 = vmul.f32 %v3416_v48, %v1703_v18  ;;  %v3085_v15 = vpop.permute.xlu0 %3084 }
 0x13f   : > { %v3013_v11 = vunpack.i.l.bf16 %v3012_v2  ;;  %v3014_v35 = vunpack.i.h.bf16 %v3012_v2 }
 0x140   : > { %v1669_v60 = vadd.f32 %v1668_v24, %v1653_v7  ;;  %v3037_v24 = vunpack.i.h.bf16 %v3035_v33 }
 0x141   : > { %v1720_v20 = vrot.slane %v3013_v11, %v3565_v50  ;;  %v1792_v42 = vrot.slane %v3014_v35, %v3565_v50 }
 0x142   : > { %v1692_v57 = vadd.f32 %v1691_v9, %v1669_v60 }
 0x143   : > { %v3024_v16 = vpop.permute.xlu1 %3023  ;;  %v1725_v5 = vmul.f32 %v3427_v53, %v1720_v20 }
 0x144   : > { %v1709_v26 = vadd.f32 %v1708_v25, %v1692_v57  ;;  %v3025_v12 = vunpack.i.l.bf16 %v3024_v16  ;;  %v3026_v62 = vunpack.i.h.bf16 %v3024_v16  ;;  %v3054_v16 = vunpack.i.h.bf16 %v3052_v31 }
 0x145   : > { %v3070_v31 = vunpack.i.h.bf16 %v3068_v61 }
 0x146   : > { %v1726_v47 = vadd.f32 %v1725_v5, %v1709_v26  ;;  %v1830_v46 = vrot.slane %v3025_v12, %v3565_v50  ;;  %v1898_v9 = vrot.slane %v3026_v62, %v3565_v50  ;;  %v1914_v5 = vrot.slane %v3037_v24, %v3565_v50 }
 0x147   : > { %v3029_v27 = vpop.permute.xlu1 %3028 }
 0x148   : > { %v3030_v29 = vunpack.i.l.bf16 %v3029_v27  ;;  %v3031_v38 = vunpack.i.h.bf16 %v3029_v27  ;;  %v1743_v37 = vadd.f32 %v1742_v28, %v1726_v47  ;;  %v1946_v28 = vrot.slane %v3054_v16, %v3565_v50 }
 0x14a   : > { %v1763_v23 = vmul.f32 %v3030_v29, %v1758_v13  ;;  %v1780_v54 = vmul.f32 %v3031_v38, %v1775_v39  ;;  %v3101_v13 = vpop.permute.xlu0 %3100  ;;  %v1966_v29 = vrot.slane %v3069_v21, %v3565_v50 }
 0x14b   : > { %v3041_v48 = vpop.permute.xlu1 %3040  ;;  %v3102_v32 = vunpack.i.l.bf16 %v3101_v13 }
 0x14c   : > { %v1764_v53 = vadd.f32 %v1763_v23, %v1743_v37  ;;  %v3042_v49 = vunpack.i.l.bf16 %v3041_v48  ;;  %v3043_v57 = vunpack.i.h.bf16 %v3041_v48  ;;  %v3086_v37 = vunpack.i.l.bf16 %v3085_v15 }
 0x14e   : > { %v1781_v19 = vadd.f32 %v1780_v54, %v1764_v53  ;;  %v1862_v44 = vrot.slane %v3042_v49, %v3565_v50  ;;  %v1930_v47 = vrot.slane %v3043_v57, %v3565_v50  ;;  %v3103_v53 = vunpack.i.h.bf16 %v3101_v13 }
 0x14f   : > { %v3046_v36 = vpop.permute.xlu1 %3045  ;;  %v1998_v54 = vrot.slane %v3086_v37, %v3565_v50 }
 0x150   : > { %v3048_v58 = vunpack.i.h.bf16 %v3046_v36  ;;  %v3047_v8 = vunpack.i.l.bf16 %v3046_v36  ;;  %v1970_v36 = vmul.f32 %v3102_v32, %v1966_v29 }
 0x152   : > { %v1797_v45 = vmul.f32 %v3047_v8, %v1792_v42  ;;  %v1814_v30 = vmul.f32 %v3048_v58, %v1809_v40 }
 0x153   : > { %v3057_v52 = vpop.permute.xlu1 %3056 }
 0x154   : > { %v1798_v17 = vadd.f32 %v1797_v45, %v1781_v19  ;;  %v3059_v56 = vunpack.i.h.bf16 %v3057_v52  ;;  %v3058_v14 = vunpack.i.l.bf16 %v3057_v52  ;;  %v3789_v52 = vpop.permute.xlu0 %3121 }
 0x156   : > { %v1815_v3 = vadd.f32 %v1814_v30, %v1798_v17  ;;  %v1834_v59 = vmul.f32 %v3058_v14, %v1830_v46  ;;  %v1850_v0 = vmul.f32 %v3059_v56, %v1846_v51  ;;  %v2034_v14 = vrot.slane %v3070_v31, %v3565_v50 }
 0x157   : > { %v3062_v63 = vpop.permute.xlu1 %3061  ;;  %v3124_v31 = vunpack.i.h.bf16 %v3789_v52 }
 0x158   : > { %v1835_v1 = vadd.f32 %v1834_v59, %v1815_v3  ;;  %v3064_v4 = vunpack.i.h.bf16 %v3062_v63  ;;  %v3063_v22 = vunpack.i.l.bf16 %v3062_v63  ;;  %v3087_v63 = vunpack.i.h.bf16 %v3085_v15 }
 0x15a   : > { %v1851_v6 = vadd.f32 %v1850_v0, %v1835_v1  ;;  %v1866_v7 = vmul.f32 %v3063_v22, %v1862_v44  ;;  %v1882_v2 = vmul.f32 %v3064_v4, %v1878_v10  ;;  %v3128_v0 = vpop.permute.xlu0 %3127 }
 0x15b   : > { %v3073_v18 = vpop.permute.xlu1 %3072  ;;  %v3129_v22 = vunpack.i.l.bf16 %v3128_v0 }
 0x15c   : > { %v1867_v11 = vadd.f32 %v1866_v7, %v1851_v6  ;;  %v3074_v60 = vunpack.i.l.bf16 %v3073_v18  ;;  %v3075_v43 = vunpack.i.h.bf16 %v3073_v18  ;;  %v2066_v18 = vrot.slane %v3087_v63, %v3565_v50 }
 0x15e   : > { %v1883_v20 = vadd.f32 %v1882_v2, %v1867_v11  ;;  %v1902_v25 = vmul.f32 %v3074_v60, %v1898_v9  ;;  %v1918_v33 = vmul.f32 %v3075_v43, %v1914_v5  ;;  %v3144_v57 = vpop.permute.xlu0 %3143  ;;  %v3123_v5 = vunpack.i.l.bf16 %v3789_v52 }
 0x15f   : > { %v3079_v26 = vpop.permute.xlu1 %3078  ;;  %v3145_v21 = vunpack.i.l.bf16 %v3144_v57 }
 0x160   : > { %v1903_v27 = vadd.f32 %v1902_v25, %v1883_v20  ;;  %v3080_v34 = vunpack.i.l.bf16 %v3079_v26  ;;  %v3081_v44 = vunpack.i.h.bf16 %v3079_v26  ;;  %v2102_v25 = vrot.slane %v3129_v22, %v3565_v50 }
 0x162   : > { %v1919_v38 = vadd.f32 %v1918_v33, %v1903_v27  ;;  %v1982_v12 = vrot.slane %v3080_v34, %v3565_v50  ;;  %v2050_v6 = vrot.slane %v3081_v44, %v3565_v50  ;;  %v3146_v27 = vunpack.i.h.bf16 %v3144_v57 }
 0x163   : > { %v3090_v23 = vpop.permute.xlu1 %3089  ;;  %v2106_v29 = vmul.f32 %v3145_v21, %v2102_v25  ;;  %v2134_v33 = vrot.slane %v3123_v5, %v3565_v50  ;;  %v3130_v34 = vunpack.i.h.bf16 %v3128_v0  ;;  %v2570_v21 = vld [vmem:[%s3844_s4] ss:$0 sm:$0xff] }
 0x164   : > { %v3092_v35 = vunpack.i.h.bf16 %v3090_v23  ;;  %v3091_v48 = vunpack.i.l.bf16 %v3090_v23  ;;  %v1986_v45 = vmul.f32 %v3103_v53, %v1982_v12 }
 0x166   : > { %v1934_v39 = vmul.f32 %v3091_v48, %v1930_v47  ;;  %v1950_v41 = vmul.f32 %v3092_v35, %v1946_v28 }
 0x167   : > { %v3096_v40 = vpop.permute.xlu1 %3095 }
 0x168   : > { %v1935_v42 = vadd.f32 %v1934_v39, %v1919_v38  ;;  %v3097_v8 = vunpack.i.l.bf16 %v3096_v40  ;;  %v3098_v7 = vunpack.i.h.bf16 %v3096_v40 }
 0x16a   : > { %v1951_v58 = vadd.f32 %v1950_v41, %v1935_v42  ;;  %v2014_v55 = vrot.slane %v3097_v8, %v3565_v50  ;;  %v2082_v15 = vrot.slane %v3098_v7, %v3565_v50  ;;  %v2170_v42 = vrot.slane %v3130_v34, %v3565_v50 }
 0x16b   : > { %v3106_v19 = vpop.permute.xlu1 %3105 }
 0x16c   : > { %v1971_v46 = vadd.f32 %v1970_v36, %v1951_v58  ;;  %v3108_v49 = vunpack.i.h.bf16 %v3106_v19  ;;  %v3107_v51 = vunpack.i.l.bf16 %v3106_v19  ;;  %v2230_v36 = vpop.permute.xlu0 %2229 }
 0x16d   : > { %v2238_v0 = vrot.slane %v2230_v36, %v3565_v50 }
 0x16e   : > { %v1987_v30 = vadd.f32 %v1986_v45, %v1971_v46  ;;  %v2002_v17 = vmul.f32 %v3107_v51, %v1998_v54  ;;  %v2018_v59 = vmul.f32 %v3108_v49, %v2014_v55 }
 0x16f   : > { %v3111_v56 = vpop.permute.xlu1 %3110 }
 0x170   : > { %v2003_v3 = vadd.f32 %v2002_v17, %v1987_v30  ;;  %v3112_v62 = vunpack.i.l.bf16 %v3111_v56  ;;  %v3113_v4 = vunpack.i.h.bf16 %v3111_v56  ;;  %v2262_v55 = vpop.permute.xlu0 %2261 }
 0x172   : > { %v2019_v10 = vadd.f32 %v2018_v59, %v2003_v3  ;;  %v2038_v61 = vmul.f32 %v3112_v62, %v2034_v14  ;;  %v2054_v2 = vmul.f32 %v3113_v4, %v2050_v6  ;;  %v2202_v14 = vrot.slane %v3124_v31, %v3565_v50 }
 0x173   : > { %v3117_v1 = vpop.permute.xlu1 %3116 }
 0x174   : > { %v2039_v24 = vadd.f32 %v2038_v61, %v2019_v10  ;;  %v3118_v11 = vunpack.i.l.bf16 %v3117_v1  ;;  %v3119_v19 = vunpack.i.h.bf16 %v3117_v1  ;;  %v2220_v10 = vpop.permute.xlu0 %2219 }
 0x176   : > { %v2055_v16 = vadd.f32 %v2054_v2, %v2039_v24  ;;  %v2118_v13 = vrot.slane %v3118_v11, %v3565_v50  ;;  %v2186_v30 = vrot.slane %v3119_v19, %v3565_v50 }
 0x177   : > { %v3133_v9 = vpop.permute.xlu1 %3132 }
 0x178   : > { %v3135_v60 = vunpack.i.h.bf16 %v3133_v9  ;;  %v3134_v20 = vunpack.i.l.bf16 %v3133_v9  ;;  %v2122_v48 = vmul.f32 %v3146_v27, %v2118_v13  ;;  %v2256_v22 = vpop.permute.xlu0 %2255 }
 0x17a   : > { %v2070_v26 = vmul.f32 %v3134_v20, %v2066_v18  ;;  %v2086_v28 = vmul.f32 %v3135_v60, %v2082_v15  ;;  %v2270_v18 = vrot.slane %v2262_v55, %v3565_v50 }
 0x17b   : > { %v3139_v43 = vpop.permute.xlu1 %3138 }
 0x17c   : > { %v2071_v47 = vadd.f32 %v2070_v26, %v2055_v16  ;;  %v3140_v23 = vunpack.i.l.bf16 %v3139_v43  ;;  %v3141_v17 = vunpack.i.h.bf16 %v3139_v43  ;;  %v2288_v60 = vpop.permute.xlu0 %2287 }
 0x17e   : > { %v2087_v32 = vadd.f32 %v2086_v28, %v2071_v47  ;;  %v2150_v53 = vrot.slane %v3140_v23, %v3565_v50  ;;  %v2218_v52 = vrot.slane %v3141_v17, %v3565_v50 }
 0x17f   : > { %v3149_v35 = vpop.permute.xlu1 %3148 }
 0x180   : > { %v2107_v38 = vadd.f32 %v2106_v29, %v2087_v32  ;;  %v3151_v37 = vunpack.i.h.bf16 %v3149_v35  ;;  %v3150_v39 = vunpack.i.l.bf16 %v3149_v35  ;;  %v2222_v1 = vmul.f32 %v2220_v10, %v2218_v52 }
 0x182   : > { %v2123_v40 = vadd.f32 %v2122_v48, %v2107_v38  ;;  %v2138_v12 = vmul.f32 %v3150_v39, %v2134_v33  ;;  %v2154_v58 = vmul.f32 %v3151_v37, %v2150_v53 }
 0x183   : > { %v3154_v41 = vpop.permute.xlu1 %3153 }
 0x184   : > { %v2139_v54 = vadd.f32 %v2138_v12, %v2123_v40  ;;  %v3155_v8 = vunpack.i.l.bf16 %v3154_v41  ;;  %v3156_v51 = vunpack.i.h.bf16 %v3154_v41 }
 0x186   : > { %v2155_v45 = vadd.f32 %v2154_v58, %v2139_v54  ;;  %v2174_v46 = vmul.f32 %v3155_v8, %v2170_v42  ;;  %v2190_v59 = vmul.f32 %v3156_v51, %v2186_v30 }
 0x187   : > { %v2246_v49 = vpop.permute.xlu1 %2245 }
 0x188   : > { %v2175_v56 = vadd.f32 %v2174_v46, %v2155_v45  ;;  %v2254_v4 = vrot.slane %v2246_v49, %v3565_v50 }
 0x18a   : > { %v2191_v44 = vadd.f32 %v2190_v59, %v2175_v56  ;;  %v2258_v9 = vmul.f32 %v2256_v22, %v2254_v4 }
 0x18b   : > { %v2204_v3 = vpop.permute.xlu1 %2203 }
 0x18c   : > { %v2206_v62 = vmul.f32 %v2204_v3, %v2202_v14 }
 0x18e   : > { %v2207_v63 = vadd.f32 %v2206_v62, %v2191_v44 }
 0x18f   : > { %v2278_v61 = vpop.permute.xlu1 %2277 }
 0x190   : > { %v2223_v7 = vadd.f32 %v2222_v1, %v2207_v63  ;;  %v2286_v2 = vrot.slane %v2278_v61, %v3565_v50 }
 0x192   : > { %v2290_v15 = vmul.f32 %v2288_v60, %v2286_v2 }
 0x193   : > { %v2240_v6 = vpop.permute.xlu1 %2239 }
 0x194   : > { %v2242_v24 = vmul.f32 %v2240_v6, %v2238_v0 }
 0x196   : > { %v2243_v11 = vadd.f32 %v2242_v24, %v2223_v7 }
 0x197   : > { %v2272_v20 = vpop.permute.xlu1 %2271 }
 0x198   : > { %v2259_v25 = vadd.f32 %v2258_v9, %v2243_v11  ;;  %v2274_v57 = vmul.f32 %v2272_v20, %v2270_v18 }
 0x19a   : > { %v2275_v16 = vadd.f32 %v2274_v57, %v2259_v25 }
 0x19c   : > { %v2291_v26 = vadd.f32 %v2290_v15, %v2275_v16 }
 0x19e   : > { %v2311_v50 = vpack.c.bf16 %v2291_v26, %v2291_v26  ;;  %v2299_v5 = vmul.f32 %v2570_v21, %v2291_v26 }
 0x1a0   : > { %v2301_v43 = vsel %vm2300_vm0, %v2299_v5, 0.0  ;;  %v2306_v27 = vmul.f32 %v2299_v5, %v2291_v26  ;;  %2313 = vst.msk [vmem:[%s410_s12] sm:$0x3] %vm2312_vm1, %v2311_v50 }
 0x1a1   : > { %2302 = vadd.xlane.f32.xlu1 %v2301_v43 }
 0x1a2   : > { %v2307_v13 = vsel %vm2300_vm0, %v2306_v27, 0.0 }
 0x1a3   : > { %2308 = vadd.xlane.f32.xlu0 %v2307_v13 }
 0x22e   : > { %v2303_v47 = vpop.xlane.xlu1 %2302 }
 0x22f   : > { %2305 = vst.msk [vmem:[%s418_s9] sm:$0xf] %vm2304_vm2, %v2303_v47 }
 0x230   : > { %v2309_v28 = vpop.xlane.xlu0 %2308 }
 0x231   : > { %2310 = vst.msk [vmem:[%s426_s14] sm:$0xf] %vm2304_vm2, %v2309_v28 }
 0x232 PF: > { %s18_s28 = sadd.s32 1, %s3199_s28   ;;  %s3848_s24 = smov %s3191_s26 }
 0x233   : > { %p15_p10 = scmp.ge.s32.totalorder %s18_s28, 10   ;;  %s3849_s25 = smov %s3195_s27 }
 0x234   : > { %s3850_s26 = smov %s3853_s29  ;;  %s3851_s27 = smov %s3857_s30 }
 0x235   :  { %17 = sbr.rel (!%p15_p10) target bundleno = 3 (0x3), region = 126 }

// kernel: _lambda_.22
= control target key start
LH: loop header
LB: loop body
LE: loop exit
PB: predicated region body
PF: predicated region fallthrough
CT: control target
= control target key end

     0   :  { %s2115_s24 = smov 0   ;;  %s2117_s25 = smov 0   ;;  %s2446_s0 = inlined_call_operand.vmem [shape: bf16[2,10,2,110], index: 0, kind: input, shape index: {}, may-alias: {0,1,2}]   ;;  %s2447_s1 = inlined_call_operand.vmem [shape: bf16[2,10,2,110], index: 1, kind: input, shape index: {}, may-alias: {0,1,2}]   ;;  %s2448_s2 = inlined_call_operand.vmem [shape: bf16[2,10,2,110], index: 2, kind: input, shape index: {}, may-alias: {0,1,2}]   ;;  %s2449_s3 = inlined_call_operand.vmem [shape: bf16[27,2,2], index: 3, kind: input, shape index: {}]   ;;  %s2450_s4 = inlined_call_operand.vmem [shape: f32[1,80], index: 4, kind: input, shape index: {}]   ;;  %s2451_s5 = inlined_call_operand.vmem [shape: bf16[2,8,2,80], index: 5, kind: output, shape index: {0}]   ;;  %s2452_s6 = inlined_call_operand.vmem [shape: f32[2,8,2,1], index: 6, kind: output, shape index: {1}]   ;;  %s2453_s7 = inlined_call_operand.vmem [shape: f32[2,8,2,1], index: 7, kind: output, shape index: {2}]  }
   0x1   :  { %s2119_s26 = smov 0   ;;  %s2121_s27 = smov 0  }
   0x2   :  { %s2123_s28 = smov 0  }
   0x3 LB: > { %s27_s29 = sadd.s32 1, %s2053_s26  ;;  %s30_s30 = sadd.s32 1, %s2057_s27  ;;  %s2061_s28 = sphi %s2123_s28, %s18_s28   ;;  %s2057_s27 = sphi %s2121_s27, %s2460_s27   ;;  %s2053_s26 = sphi %s2119_s26, %s2459_s26   ;;  %s2049_s25 = sphi %s2117_s25, %s2458_s25   ;;  %s2045_s24 = sphi %s2115_s24, %s2457_s24  }
   0x4   : > { %p28_p0 = scmp.ge.s32.totalorder %s27_s29, 8  ;;  %p1674_p1 = scmp.ge.s32.totalorder %s2061_s28, 1 }
   0x5   : > { %p300_p2 = scmp.lt.s32.totalorder %s2061_s28, 17 }
   0x6   : > { %s2462_s29 = smov (%p28_p0, %s27_s29), 0  ;;  %s2464_s30 = smov (!%p28_p0, %s30_s30), %s2057_s27 }
   0x7   : > { %p301_p3 = pnand %p1674_p1, %p300_p2  ;;  %p32_p4 = scmp.ge.s32.totalorder %s2464_s30, 2 }
   0x8   : > { %v1681_v0 = vld [vmem:[%s2449_s3 + $0x2] sm:$0x1] (!%p301_p3)  ;;  %v1682_v1 = vld [vmem:[%s2449_s3 + $0x3] sm:$0x1] (!%p301_p3)  ;;  %v428_v2 = vlaneseq (!%p301_p3)  ;;  %v2063_v3 = vmov (!%p301_p3), 0   ;;  %p368_p5 = scmp.lt.s32.totalorder (!%p301_p3), %s2049_s25, 1 }
   0x9   : > { %s2466_s30 = smov (%p32_p4, %s2464_s30), 0  ;;  %304 = sbr.rel (%p301_p3) target bundleno = 437 (0x1b5), region = 40 }
   0xa   : > { %1774 = vset.pattern.permute.xlu1 (!%p301_p3), %v2063_v3  ;;  %1762 = vset.pattern.permute.xlu0 (!%p301_p3), %v2063_v3  ;;  %v509_v4 = vunpack.c.l.bf16 (!%p301_p3), %v1681_v0  ;;  %v545_v5 = vunpack.c.l.bf16 (!%p301_p3), %v1682_v1  ;;  %v417_v6 = vld [vmem:[%s2449_s3] sm:$0x1] (!%p301_p3)  ;;  %v1680_v7 = vld [vmem:[%s2449_s3 + $0x1] sm:$0x1] (!%p301_p3)  ;;  %p370_p6 = scmp.lt.s32.totalorder (!%p301_p3), %s2045_s24, 9  ;;  %v2169_v12 = vshrl.u32 (!%p301_p3), %v428_v2, 7 }
   0xb   : > { %v418_v8 = vunpack.c.l.bf16 (!%p301_p3), %v417_v6  ;;  %v457_v9 = vunpack.c.l.bf16 (!%p301_p3), %v1680_v7  ;;  %v2064_v13 = vmov (!%p301_p3), 1983009808   ;;  %v1683_v19 = vld [vmem:[%s2449_s3 + $0x4] sm:$0x1] (!%p301_p3)  ;;  %v1684_v20 = vld [vmem:[%s2449_s3 + $0x5] sm:$0x1] (!%p301_p3) }
   0xc   : > { %v1775_v10 = vpack.i.bf16 (!%p301_p3), %v545_v5, %v509_v4  ;;  %v472_v14 = vunpack.c.l.s4 (!%p301_p3), %v2064_v13  ;;  %v2179_v16 = vsub.s32 (!%p301_p3), 0, %v2169_v12  ;;  %v2182_v17 = vsub.s32 (!%p301_p3), 1, %v2169_v12  ;;  %s384_s10 = sadd.s32 (!%p301_p3), 2, %s2045_s24  ;;  %s375_s11 = sadd.s32 (!%p301_p3), 1, %s2045_s24  ;;  %v1685_v36 = vld [vmem:[%s2449_s3 + $0x6] sm:$0x1] (!%p301_p3) }
   0xd   : > { %v1763_v11 = vpack.i.bf16 (!%p301_p3), %v457_v9, %v418_v8  ;;  %v2065_v21 = vmov (!%p301_p3), 1   ;;  %p387_p7 = scmp.lt.s32.totalorder (!%p301_p3), %s384_s10, 9  ;;  %v581_v26 = vunpack.c.l.bf16 (!%p301_p3), %v1683_v19  ;;  %v617_v27 = vunpack.c.l.bf16 (!%p301_p3), %v1684_v20  ;;  %p378_p8 = scmp.lt.s32.totalorder (!%p301_p3), %s375_s11, 9  ;;  %v1686_v37 = vld [vmem:[%s2449_s3 + $0x7] sm:$0x1] (!%p301_p3) }
   0xe   : > { %1776 = vperm.xlu1 (!%p301_p3), %1774, %v1775_v10   ;;  %v473_v15 = vunpack.c.0.s8 (!%p301_p3), %v472_v14  ;;  %s2454_s19 = smov (!%p301_p3), 116   ;;  %s2070_s9 = smov (!%p301_p3), 108   ;;  %v1689_v38 = vld [vmem:[%s2449_s3 + $0xa] sm:$0x1] (!%p301_p3)  ;;  %v1690_v39 = vld [vmem:[%s2449_s3 + $0xb] sm:$0x1] (!%p301_p3)  ;;  %v653_v41 = vunpack.c.l.bf16 (!%p301_p3), %v1685_v36  ;;  %v689_v42 = vunpack.c.l.bf16 (!%p301_p3), %v1686_v37 }
   0xf   : > { %1764 = vperm.xlu0 (!%p301_p3), %1762, %v1763_v11   ;;  %v1786_v31 = vpack.i.bf16 (!%p301_p3), %v617_v27, %v581_v26  ;;  %s2072_s22 = smov (!%p301_p3), 107   ;;  %v801_v43 = vunpack.c.l.bf16 (!%p301_p3), %v1689_v38  ;;  %v853_v44 = vunpack.c.l.bf16 (!%p301_p3), %v1690_v39  ;;  %s2073_s23 = smov (!%p301_p3), 106   ;;  %v1687_v50 = vld [vmem:[%s2449_s3 + $0x8] sm:$0x1] (!%p301_p3)  ;;  %v1688_v51 = vld [vmem:[%s2449_s3 + $0x9] sm:$0x1] (!%p301_p3) }
  0x10   : > { %s2468_s25 = smov (!%p368_p5, %s2049_s25), 1  ;;  %v2193_v23 = vsub.s32 %v473_v15, %v2169_v12  ;;  %s2470_s10 = smov (!%p387_p7, %s384_s10), 9  ;;  %v1823_v46 = vpack.i.bf16 %v689_v42, %v653_v41  ;;  %v725_v52 = vunpack.c.l.bf16 %v1687_v50  ;;  %v762_v55 = vunpack.c.l.bf16 %v1688_v51  ;;  %v1691_v58 = vld [vmem:[%s2449_s3 + $0xc] sm:$0x1]  ;;  %v1692_v59 = vld [vmem:[%s2449_s3 + $0xd] sm:$0x1] }
  0x11   : > { %s371_s16 = scalar_select %p370_p6, %s2045_s24, 9  ;;  %v1861_v47 = vpack.i.bf16 %v853_v44, %v801_v43  ;;  %v889_v60 = vunpack.c.l.bf16 %v1691_v58  ;;  %v925_v61 = vunpack.c.l.bf16 %v1692_v59  ;;  %v1693_v63 = vld [vmem:[%s2449_s3 + $0xe] sm:$0x1]  ;;  %v1694_v0 = vld [vmem:[%s2449_s3 + $0xf] sm:$0x1]  ;;  %vm1455_vm0 = vcmask 648192  }
  0x12   : > { %s2172_s17 = smul.u32 10, %s2468_s25  ;;  %1811 = vset.pattern.permute.xlu1 %v2065_v21  ;;  %s2472_s11 = smov (!%p378_p8, %s375_s11), 9  ;;  %v1845_v57 = vpack.i.bf16 %v762_v55, %v725_v52  ;;  %v961_v1 = vunpack.c.l.bf16 %v1693_v63  ;;  %v997_v2 = vunpack.c.l.bf16 %v1694_v0  ;;  %v1699_v4 = vld [vmem:[%s2449_s3 + $0x14] sm:$0x1]  ;;  %v1700_v5 = vld [vmem:[%s2449_s3 + $0x15] sm:$0x1] }
  0x13   : > { %1768 = vset.pattern.permute.xlu0 %v2065_v21  ;;  %v1878_v62 = vpack.i.bf16 %v925_v61, %v889_v60  ;;  %v1197_v7 = vunpack.c.l.bf16 %v1699_v4  ;;  %v1233_v8 = vunpack.c.l.bf16 %v1700_v5  ;;  %v1701_v9 = vld [vmem:[%s2449_s3 + $0x16] sm:$0x1]  ;;  %v1696_v13 = vld [vmem:[%s2449_s3 + $0x11] sm:$0x1]  ;;  %v1697_v27 = vld [vmem:[%s2449_s3 + $0x12] sm:$0x1] }
  0x14   : > { %s373_s18 = sadd.s32 %s2172_s17, %s371_s16  ;;  %1770 = vperm.xlu0 %1768, %v1763_v11   ;;  %s390_s12 = sadd.s32 %s2172_s17, %s2470_s10  ;;  %v1895_v6 = vpack.i.bf16 %v997_v2, %v961_v1  ;;  %v1695_v11 = vld [vmem:[%s2449_s3 + $0x10] sm:$0x1]  ;;  %v1269_v15 = vunpack.c.l.bf16 %v1701_v9  ;;  %v1705_v39 = vld [vmem:[%s2449_s3 + $0x1a] sm:$0x1]  ;;  %v2074_v41 = vmov 269488144  }
  0x15   : > { %s374_s21 = scalar_lea.vmem %s2446_s0, %s373_s18  ;;  %s391_s15 = scalar_lea.vmem %s2448_s2, %s390_s12  ;;  %v1966_v14 = vpack.i.bf16 %v1233_v8, %v1197_v7  ;;  %v426_v42 = vunpack.c.l.s4 %v2074_v41  ;;  %vm1467_vm1 = vcmask 647168   ;;  %vm1459_vm2 = vcmask 1024  }
  0x16   : > { %v416_v18 = vld [vmem:[%s374_s21] sm:$0x1]  ;;  %s2066_s16 = smov 127   ;;  %s2067_s18 = smov 126  }
  0x17   : > { %v419_v22 = vunpack.c.l.bf16 %v416_v18  ;;  %v1103_v32 = vld [vmem:[%s391_s15] sm:$0x1]  ;;  %s381_s20 = sadd.s32 %s2172_s17, %s2472_s11  ;;  %s2069_s21 = smov 118   ;;  %v1069_v18 = vunpack.c.l.bf16 %v1696_v13  ;;  %v427_v43 = vunpack.c.0.s8 %v426_v42 }
  0x18   : > { %1781 = vperm.xlu0 %1768, %v1775_v10   ;;  %v1107_v33 = vunpack.c.l.bf16 %v1103_v32  ;;  %s382_s8 = scalar_lea.vmem %s2447_s1, %s381_s20  ;;  %s2071_s20 = smov 117   ;;  %v1702_v10 = vld [vmem:[%s2449_s3 + $0x17] sm:$0x1]  ;;  %v1703_v32 = vld [vmem:[%s2449_s3 + $0x18] sm:$0x1] }
  0x19   : > { %v2197_v24 = vrot.slane %v419_v22, %v2179_v16  ;;  %v2200_v25 = vrot.slane %v419_v22, %v2182_v17  ;;  %v759_v40 = vld [vmem:[%s382_s8] sm:$0x1]  ;;  %s2456_s11 = smov 116   ;;  %v1341_v36 = vunpack.c.l.bf16 %v1703_v32  ;;  %p395_p9 = scmp.lt.s32.totalorder %s2045_s24, 7 }
  0x1a   : > { %v2214_v34 = vrot.slane %v1107_v33, %v2179_v16  ;;  %v2217_v35 = vrot.slane %v1107_v33, %v2182_v17  ;;  %v763_v45 = vunpack.c.l.bf16 %v759_v40  ;;  %v1704_v33 = vld [vmem:[%s2449_s3 + $0x19] sm:$0x1]  ;;  %v1413_v40 = vunpack.c.l.bf16 %v1705_v39 }
  0x1b   : > { %v477_v28 = vrot.slane %v2197_v24, %v2193_v23  ;;  %v501_v29 = vrot.slane %v2200_v25, %v2193_v23  ;;  %v1377_v37 = vunpack.c.l.bf16 %v1704_v33  ;;  %s2474_s24 = smov (!%p395_p9, %s2045_s24), 7 }
  0x1c   : > { %1785 = vset.pattern.permute.xlu0 %v2063_v3  ;;  %v2243_v48 = vrot.slane %v763_v45, %v2179_v16  ;;  %v2246_v49 = vrot.slane %v763_v45, %v2182_v17  ;;  %v1305_v16 = vunpack.c.l.bf16 %v1702_v10  ;;  %v1033_v17 = vunpack.c.l.bf16 %v1695_v11 }
  0x1d   : > { %v1791_v30 = vpack.i.bf16 %v501_v29, %v477_v28  ;;  %1787 = vperm.xlu0 %1785, %v1786_v31   ;;  %v2307_v22 = vrot.slane %v2214_v34, %v2193_v23  ;;  %v1189_v26 = vrot.slane %v2217_v35, %v2193_v23  ;;  %v1698_v28 = vld [vmem:[%s2449_s3 + $0x13] sm:$0x1]  ;;  %v1999_v38 = vpack.i.bf16 %v1377_v37, %v1341_v36 }
  0x1e   : > { %v821_v53 = vrot.slane %v2243_v48, %v2193_v23  ;;  %v845_v54 = vrot.slane %v2246_v49, %v2193_v23  ;;  %v1977_v19 = vpack.i.bf16 %v1305_v16, %v1269_v15  ;;  %v1917_v20 = vpack.i.bf16 %v1069_v18, %v1033_v17 }
  0x1f   : > { %1792 = vrot.lane.b32.xlu1 %v1791_v30, %s2066_s16  ;;  %v1993_v29 = vpack.i.bf16 %v1189_v26, %v2307_v22 }
  0x20   : > { %v1889_v56 = vpack.i.bf16 %v845_v54, %v821_v53 }
  0x21   : > { %1818 = vrot.lane.b32.xlu0 %v1791_v30, %s2454_s19 }
  0x23   : > { %1797 = vrot.lane.b32.xlu1 %v1791_v30, %s2067_s18 }
  0x25   : > { %1829 = vrot.lane.b32.xlu0 %v1791_v30, %s2070_s9 }
  0x27   : > { %1802 = vrot.lane.b32.xlu1 %v1791_v30, %s2069_s21 }
  0x29   : > { %1840 = vrot.lane.b32.xlu0 %v1791_v30, %s2072_s22 }
  0x2b   : > { %1807 = vrot.lane.b32.xlu1 %v1791_v30, %s2071_s20 }
  0x2d   : > { %1851 = vrot.lane.b32.xlu0 %v1791_v30, %s2073_s23  ;;  %v1106_v30 = vunpack.c.l.bf16 %v1697_v27 }
  0x2f   : > { %1813 = vperm.xlu1 %1811, %v1786_v31   ;;  %v1145_v31 = vunpack.c.l.bf16 %v1698_v28 }
  0x31   : > { %1862 = vperm.xlu0 %1785, %v1861_v47   ;;  %v1939_v23 = vpack.i.bf16 %v1145_v31, %v1106_v30 }
  0x33   : > { %1822 = vset.pattern.permute.xlu1 %v2063_v3 }
  0x34   : > { %1824 = vperm.xlu1 %1822, %v1823_v46  }
  0x35   : > { %1871 = vset.pattern.permute.xlu0 %v2065_v21 }
  0x36   : > { %1873 = vperm.xlu0 %1871, %v1861_v47   ;;  %v2350_v47 = vsub.s32 %v427_v43, %v2169_v12 }
  0x38   : > { %1833 = vset.pattern.permute.xlu1 %v2065_v21 }
  0x39   : > { %1835 = vperm.xlu1 %1833, %v1823_v46  }
  0x3a   : > { %1890 = vrot.lane.b32.xlu0 %v1889_v56, %s2067_s18 }
  0x3d   : > { %1844 = vset.pattern.permute.xlu1 %v2063_v3 }
  0x3e   : > { %1846 = vperm.xlu1 %1844, %v1845_v57   ;;  %1901 = vrot.lane.b32.xlu0 %v1889_v56, %s2069_s21 }
  0x42   : > { %1855 = vset.pattern.permute.xlu1 %v2065_v21  ;;  %1912 = vrot.lane.b32.xlu0 %v1889_v56, %s2071_s20 }
  0x43   : > { %1857 = vperm.xlu1 %1855, %v1845_v57  }
  0x46   : > { %1923 = vrot.lane.b32.xlu0 %v1889_v56, %s2456_s11 }
  0x47   : > { %1867 = vrot.lane.b32.xlu1 %v1889_v56, %s2066_s16 }
  0x48   : > { %1877 = vset.pattern.permute.xlu1 %v2063_v3 }
  0x4a   : > { %1934 = vrot.lane.b32.xlu0 %v1889_v56, %s2070_s9 }
  0x4b   : > { %1879 = vperm.xlu1 %1877, %v1878_v62  }
  0x4e   : > { %1945 = vrot.lane.b32.xlu0 %v1889_v56, %s2072_s22 }
  0x4f   : > { %1883 = vset.pattern.permute.xlu1 %v2065_v21 }
  0x50   : > { %1885 = vperm.xlu1 %1883, %v1878_v62  }
  0x52   : > { %1956 = vrot.lane.b32.xlu0 %v1889_v56, %s2073_s23 }
  0x54   : > { %1894 = vset.pattern.permute.xlu1 %v2063_v3 }
  0x55   : > { %1896 = vperm.xlu1 %1894, %v1895_v6  }
  0x56   : > { %1967 = vperm.xlu0 %1871, %v1966_v14  }
  0x59   : > { %1905 = vset.pattern.permute.xlu1 %v2065_v21 }
  0x5a   : > { %1907 = vperm.xlu1 %1905, %v1895_v6   ;;  %1976 = vset.pattern.permute.xlu0 %v2063_v3 }
  0x5b   : > { %1978 = vperm.xlu0 %1976, %v1977_v19  }
  0x5e   : > { %1916 = vset.pattern.permute.xlu1 %v2063_v3 }
  0x5f   : > { %1918 = vperm.xlu1 %1916, %v1917_v20   ;;  %1994 = vrot.lane.b32.xlu0 %v1993_v29, %s2069_s21 }
  0x60   : > { %2022 = vset.pattern.permute.xlu0 %v2065_v21 }
  0x63   : > { %1927 = vset.pattern.permute.xlu1 %v2065_v21  ;;  %2005 = vrot.lane.b32.xlu0 %v1993_v29, %s2071_s20 }
  0x64   : > { %1929 = vperm.xlu1 %1927, %v1917_v20  }
  0x67   : > { %2016 = vrot.lane.b32.xlu0 %v1993_v29, %s2456_s11 }
  0x68   : > { %1938 = vset.pattern.permute.xlu1 %v2063_v3 }
  0x69   : > { %1940 = vperm.xlu1 %1938, %v1939_v23  }
  0x6b   : > { %1354 = vrot.lane.b32.xlu0 %v2307_v22, %s2070_s9 }
  0x6d   : > { %1949 = vset.pattern.permute.xlu1 %v2065_v21 }
  0x6e   : > { %1951 = vperm.xlu1 %1949, %v1939_v23  }
  0x6f   : > { %1370 = vrot.lane.b32.xlu0 %v1189_v26, %s2070_s9 }
  0x72   : > { %1960 = vset.pattern.permute.xlu1 %v2063_v3 }
  0x73   : > { %1962 = vperm.xlu1 %1960, %v1966_v14   ;;  %1406 = vrot.lane.b32.xlu0 %v1189_v26, %s2072_s22 }
  0x77   : > { %1972 = vrot.lane.b32.xlu1 %v1993_v29, %s2066_s16  ;;  %1442 = vrot.lane.b32.xlu0 %v1189_v26, %s2073_s23 }
  0x78   : > { %1987 = vset.pattern.permute.xlu1 %v2065_v21 }
  0x7b   : > { %1983 = vrot.lane.b32.xlu1 %v1993_v29, %s2067_s18  ;;  %s1675_s18 = sshll.u32 %s2468_s25, 3 }
  0x7f   : > { %1989 = vperm.xlu1 %1987, %v1977_v19  }
  0x83   : > { %1998 = vset.pattern.permute.xlu1 %v2063_v3 }
  0x84   : > { %2000 = vperm.xlu1 %1998, %v1999_v38  }
  0x88   : > { %2009 = vset.pattern.permute.xlu1 %v2065_v21 }
  0x89   : > { %2011 = vperm.xlu1 %2009, %v1999_v38  }
  0x8d   : > { %2020 = vset.pattern.permute.xlu1 %v2063_v3  ;;  %v1777_v44 = vpop.permute.xlu1 %1776 }
  0x8e   : > { %1416 = vperm.xlu1 %2020, %v1413_v40   ;;  %v1765_v45 = vpop.permute.xlu0 %1764  ;;  %v1778_v55 = vunpack.i.l.bf16 %v1777_v44  ;;  %v1779_v11 = vunpack.i.h.bf16 %v1777_v44 }
  0x8f   : > { %v1766_v46 = vunpack.i.l.bf16 %v1765_v45  ;;  %v1767_v51 = vunpack.i.h.bf16 %v1765_v45 }
  0x90   : > { %v521_v62 = vrot.slane %v1778_v55, %v2350_v47  ;;  %v557_v18 = vrot.slane %v1779_v11, %v2350_v47 }
  0x91   : > { %v1793_v50 = vpop.permute.xlu1 %1792  ;;  %v431_v52 = vrot.slane %v1766_v46, %v2350_v47  ;;  %v469_v56 = vrot.slane %v1767_v51, %v2350_v47 }
  0x92   : > { %2021 = vset.pattern.permute.xlu1 %v2065_v21  ;;  %v1794_v57 = vunpack.i.l.bf16 %v1793_v50  ;;  %v1795_v0 = vunpack.i.h.bf16 %v1793_v50 }
  0x93   : > { %1432 = vperm.xlu1 %2021, %v1413_v40   ;;  %v1771_v53 = vpop.permute.xlu0 %1770  ;;  %v436_v21 = vmul.f32 %v2197_v24, %v431_v52 }
  0x94   : > { %v1773_v3 = vunpack.i.h.bf16 %v1771_v53  ;;  %v1772_v54 = vunpack.i.l.bf16 %v1771_v53  ;;  %v481_v1 = vmul.f32 %v1794_v57, %v469_v56 }
  0x95   : > { %v1798_v12 = vpop.permute.xlu1 %1797 }
  0x96   : > { %v448_v58 = vrot.slane %v1772_v54, %v2350_v47  ;;  %v493_v60 = vrot.slane %v1773_v3, %v2350_v47  ;;  %v1799_v4 = vunpack.i.l.bf16 %v1798_v12  ;;  %v1800_v13 = vunpack.i.h.bf16 %v1798_v12 }
  0x97   : > { %1390 = vrot.lane.b32.xlu1 %v2307_v22, %s2072_s22  ;;  %v1782_v59 = vpop.permute.xlu0 %1781  ;;  %s398_s22 = sadd.s32 %s1675_s18, %s2474_s24 }
  0x98   : > { %v453_v61 = vmul.f32 %v2200_v25, %v448_v58  ;;  %v1783_v63 = vunpack.i.l.bf16 %v1782_v59  ;;  %v505_v24 = vmul.f32 %v1795_v0, %v493_v60  ;;  %v525_v9 = vmul.f32 %v1799_v4, %v521_v62  ;;  %s399_s19 = scalar_lea.vmem %s2451_s5, %s398_s22  ;;  %s1677_s24 = sshll.u32 %s398_s22, 1 }
  0x99   : > { %v1803_v10 = vpop.permute.xlu1 %1802  ;;  %v1784_v25 = vunpack.i.h.bf16 %v1782_v59  ;;  %s407_s10 = scalar_lea.vmem %s2452_s6, %s1677_s24  ;;  %s415_s20 = scalar_lea.vmem %s2453_s7, %s1677_s24 }
  0x9a   : > { %v454_v2 = vadd.f32 %v453_v61, %v436_v21  ;;  %v537_v7 = vrot.slane %v1783_v63, %v2350_v47  ;;  %v1804_v17 = vunpack.i.l.bf16 %v1803_v10  ;;  %v1805_v26 = vunpack.i.h.bf16 %v1803_v10 }
  0x9b   : > { %1426 = vrot.lane.b32.xlu1 %v2307_v22, %s2073_s23  ;;  %v573_v22 = vrot.slane %v1784_v25, %v2350_v47 }
  0x9c   : > { %v482_v5 = vadd.f32 %v481_v1, %v454_v2  ;;  %v1788_v6 = vpop.permute.xlu0 %1787  ;;  %v541_v16 = vmul.f32 %v1800_v13, %v537_v7  ;;  %v561_v27 = vmul.f32 %v1804_v17, %v557_v18 }
  0x9d   : > { %v1789_v28 = vunpack.i.l.bf16 %v1788_v6  ;;  %v1790_v29 = vunpack.i.h.bf16 %v1788_v6  ;;  %v1808_v30 = vpop.permute.xlu1 %1807  ;;  %v577_v32 = vmul.f32 %v1805_v26, %v573_v22 }
  0x9e   : > { %v506_v8 = vadd.f32 %v505_v24, %v482_v5  ;;  %v1809_v36 = vunpack.i.l.bf16 %v1808_v30  ;;  %v1810_v44 = vunpack.i.h.bf16 %v1808_v30 }
  0x9f   : > { %v593_v33 = vrot.slane %v1789_v28, %v2350_v47  ;;  %v629_v37 = vrot.slane %v1790_v29, %v2350_v47 }
  0xa0   : > { %v526_v14 = vadd.f32 %v525_v9, %v506_v8  ;;  %v1819_v15 = vpop.permute.xlu0 %1818 }
  0xa1   : > { %v1820_v40 = vunpack.i.l.bf16 %v1819_v15  ;;  %v597_v45 = vmul.f32 %v1809_v36, %v593_v33  ;;  %v1821_v50 = vunpack.i.h.bf16 %v1819_v15 }
  0xa2   : > { %v542_v19 = vadd.f32 %v541_v16, %v526_v14 }
  0xa3   : > { %v633_v52 = vmul.f32 %v1820_v40, %v629_v37 }
  0xa4   : > { %v1830_v20 = vpop.permute.xlu0 %1829  ;;  %v562_v31 = vadd.f32 %v561_v27, %v542_v19 }
  0xa5   : > { %v1831_v56 = vunpack.i.l.bf16 %v1830_v20  ;;  %v1832_v61 = vunpack.i.h.bf16 %v1830_v20 }
  0xa6   : > { %v578_v39 = vadd.f32 %v577_v32, %v562_v31 }
  0xa8   : > { %v1841_v23 = vpop.permute.xlu0 %1840  ;;  %v598_v51 = vadd.f32 %v597_v45, %v578_v39 }
  0xa9   : > { %v1842_v4 = vunpack.i.l.bf16 %v1841_v23  ;;  %v1843_v7 = vunpack.i.h.bf16 %v1841_v23 }
  0xac   : > { %v1852_v43 = vpop.permute.xlu0 %1851 }
  0xad   : > { %v1853_v14 = vunpack.i.l.bf16 %v1852_v43  ;;  %v1854_v30 = vunpack.i.h.bf16 %v1852_v43 }
  0xae   : > { %v1814_v38 = vpop.permute.xlu1 %1813 }
  0xaf   : > { %v1816_v41 = vunpack.i.h.bf16 %v1814_v38  ;;  %v1815_v42 = vunpack.i.l.bf16 %v1814_v38 }
  0xb0   : > { %v1863_v58 = vpop.permute.xlu0 %1862 }
  0xb1   : > { %v609_v46 = vrot.slane %v1815_v42, %v2350_v47  ;;  %v645_v53 = vrot.slane %v1816_v41, %v2350_v47  ;;  %v1864_v32 = vunpack.i.l.bf16 %v1863_v58  ;;  %v1865_v40 = vunpack.i.h.bf16 %v1863_v58 }
  0xb3   : > { %v613_v3 = vmul.f32 %v1810_v44, %v609_v46  ;;  %v1825_v54 = vpop.permute.xlu1 %1824  ;;  %v649_v12 = vmul.f32 %v1821_v50, %v645_v53  ;;  %v813_v43 = vrot.slane %v1864_v32, %v2350_v47 }
  0xb4   : > { %v1826_v55 = vunpack.i.l.bf16 %v1825_v54  ;;  %v1827_v60 = vunpack.i.h.bf16 %v1825_v54  ;;  %v865_v54 = vrot.slane %v1865_v40, %v2350_v47 }
  0xb5   : > { %v614_v21 = vadd.f32 %v613_v3, %v598_v51  ;;  %v1874_v6 = vpop.permute.xlu0 %1873 }
  0xb6   : > { %v665_v57 = vrot.slane %v1826_v55, %v2350_v47  ;;  %v701_v24 = vrot.slane %v1827_v60, %v2350_v47  ;;  %v1875_v36 = vunpack.i.l.bf16 %v1874_v6  ;;  %v1876_v41 = vunpack.i.h.bf16 %v1874_v6 }
  0xb7   : > { %v634_v59 = vadd.f32 %v633_v52, %v614_v21 }
  0xb8   : > { %v1836_v62 = vpop.permute.xlu1 %1835  ;;  %v669_v0 = vmul.f32 %v1831_v56, %v665_v57  ;;  %v705_v15 = vmul.f32 %v1842_v4, %v701_v24  ;;  %v837_v51 = vrot.slane %v1875_v36, %v2350_v47  ;;  %v881_v55 = vrot.slane %v1876_v41, %v2350_v47 }
  0xb9   : > { %v650_v63 = vadd.f32 %v649_v12, %v634_v59  ;;  %v1838_v1 = vunpack.i.h.bf16 %v1836_v62  ;;  %v1837_v2 = vunpack.i.l.bf16 %v1836_v62  ;;  %v1891_v20 = vpop.permute.xlu0 %1890 }
  0xba   : > { %v1893_v56 = vunpack.i.h.bf16 %v1891_v20  ;;  %v1892_v21 = vunpack.i.l.bf16 %v1891_v20 }
  0xbb   : > { %v681_v5 = vrot.slane %v1837_v2, %v2350_v47  ;;  %v670_v8 = vadd.f32 %v669_v0, %v650_v63  ;;  %v717_v9 = vrot.slane %v1838_v1, %v2350_v47 }
  0xbc   : > { %v869_v62 = vmul.f32 %v1892_v21, %v865_v54  ;;  %v885_v63 = vmul.f32 %v1893_v56, %v881_v55 }
  0xbd   : > { %v685_v10 = vmul.f32 %v1832_v61, %v681_v5  ;;  %v1847_v11 = vpop.permute.xlu1 %1846  ;;  %v721_v17 = vmul.f32 %v1843_v7, %v717_v9  ;;  %v1902_v42 = vpop.permute.xlu0 %1901 }
  0xbe   : > { %v1848_v13 = vunpack.i.l.bf16 %v1847_v11  ;;  %v1849_v19 = vunpack.i.h.bf16 %v1847_v11  ;;  %v1903_v1 = vunpack.i.l.bf16 %v1902_v42  ;;  %v1904_v24 = vunpack.i.h.bf16 %v1902_v42 }
  0xbf   : > { %v686_v25 = vadd.f32 %v685_v10, %v670_v8 }
  0xc0   : > { %v737_v16 = vrot.slane %v1848_v13, %v2350_v47  ;;  %v775_v31 = vrot.slane %v1849_v19, %v2350_v47 }
  0xc1   : > { %v706_v18 = vadd.f32 %v705_v15, %v686_v25  ;;  %v1913_v12 = vpop.permute.xlu0 %1912 }
  0xc2   : > { %v1858_v22 = vpop.permute.xlu1 %1857  ;;  %v741_v27 = vmul.f32 %v1853_v14, %v737_v16  ;;  %v780_v44 = vmul.f32 %v2243_v48, %v775_v31  ;;  %v1914_v8 = vunpack.i.l.bf16 %v1913_v12  ;;  %v1915_v25 = vunpack.i.h.bf16 %v1913_v12 }
  0xc3   : > { %v722_v26 = vadd.f32 %v721_v17, %v706_v18  ;;  %v1860_v28 = vunpack.i.h.bf16 %v1858_v22  ;;  %v1859_v29 = vunpack.i.l.bf16 %v1858_v22 }
  0xc5   : > { %v753_v23 = vrot.slane %v1859_v29, %v2350_v47  ;;  %v742_v37 = vadd.f32 %v741_v27, %v722_v26  ;;  %v792_v38 = vrot.slane %v1860_v28, %v2350_v47  ;;  %v1924_v9 = vpop.permute.xlu0 %1923 }
  0xc6   : > { %v1868_v33 = vpop.permute.xlu1 %1867  ;;  %v1925_v19 = vunpack.i.l.bf16 %v1924_v9  ;;  %v1926_v29 = vunpack.i.h.bf16 %v1924_v9 }
  0xc7   : > { %v757_v39 = vmul.f32 %v1854_v30, %v753_v23  ;;  %v1869_v46 = vunpack.i.l.bf16 %v1868_v33  ;;  %v797_v52 = vmul.f32 %v2246_v49, %v792_v38  ;;  %v1870_v53 = vunpack.i.h.bf16 %v1868_v33 }
  0xc9   : > { %v758_v45 = vadd.f32 %v757_v39, %v742_v37  ;;  %v825_v58 = vmul.f32 %v1869_v46, %v813_v43  ;;  %v849_v59 = vmul.f32 %v1870_v53, %v837_v51  ;;  %v1935_v30 = vpop.permute.xlu0 %1934 }
  0xca   : > { %v1880_v50 = vpop.permute.xlu1 %1879  ;;  %v1936_v37 = vunpack.i.l.bf16 %v1935_v30 }
  0xcb   : > { %v781_v3 = vadd.f32 %v780_v44, %v758_v45  ;;  %v1881_v48 = vunpack.i.l.bf16 %v1880_v50  ;;  %v1882_v2 = vunpack.i.h.bf16 %v1880_v50  ;;  %v1937_v44 = vunpack.i.h.bf16 %v1935_v30 }
  0xcd   : > { %v798_v57 = vadd.f32 %v797_v52, %v781_v3  ;;  %v901_v4 = vrot.slane %v1881_v48, %v2350_v47  ;;  %v937_v11 = vrot.slane %v1882_v2, %v2350_v47  ;;  %v1946_v43 = vpop.permute.xlu0 %1945 }
  0xce   : > { %v1947_v51 = vunpack.i.l.bf16 %v1946_v43  ;;  %v1948_v21 = vunpack.i.h.bf16 %v1946_v43 }
  0xcf   : > { %v826_v60 = vadd.f32 %v825_v58, %v798_v57  ;;  %v1886_v61 = vpop.permute.xlu1 %1885  ;;  %v905_v14 = vmul.f32 %v1903_v1, %v901_v4  ;;  %v941_v20 = vmul.f32 %v1914_v8, %v937_v11 }
  0xd0   : > { %v1887_v0 = vunpack.i.l.bf16 %v1886_v61  ;;  %v1888_v6 = vunpack.i.h.bf16 %v1886_v61 }
  0xd1   : > { %v850_v49 = vadd.f32 %v849_v59, %v826_v60  ;;  %v1957_v61 = vpop.permute.xlu0 %1956 }
  0xd2   : > { %v917_v7 = vrot.slane %v1887_v0, %v2350_v47  ;;  %v953_v17 = vrot.slane %v1888_v6, %v2350_v47  ;;  %v1958_v0 = vunpack.i.l.bf16 %v1957_v61 }
  0xd3   : > { %v870_v5 = vadd.f32 %v869_v62, %v850_v49 }
  0xd4   : > { %v1897_v10 = vpop.permute.xlu1 %1896  ;;  %v921_v18 = vmul.f32 %v1904_v24, %v917_v7  ;;  %v957_v23 = vmul.f32 %v1915_v25, %v953_v17  ;;  %v1959_v24 = vunpack.i.h.bf16 %v1957_v61 }
  0xd5   : > { %v886_v13 = vadd.f32 %v885_v63, %v870_v5  ;;  %v1898_v15 = vunpack.i.l.bf16 %v1897_v10  ;;  %v1899_v26 = vunpack.i.h.bf16 %v1897_v10  ;;  %v1968_v8 = vpop.permute.xlu0 %1967 }
  0xd7   : > { %v906_v16 = vadd.f32 %v905_v14, %v886_v13  ;;  %v973_v27 = vrot.slane %v1898_v15, %v2350_v47  ;;  %v1009_v39 = vrot.slane %v1899_v26, %v2350_v47 }
  0xd9   : > { %v922_v22 = vadd.f32 %v921_v18, %v906_v16  ;;  %v1908_v28 = vpop.permute.xlu1 %1907  ;;  %v977_v40 = vmul.f32 %v1925_v19, %v973_v27  ;;  %v1013_v52 = vmul.f32 %v1936_v37, %v1009_v39 }
  0xda   : > { %v1909_v31 = vunpack.i.l.bf16 %v1908_v28  ;;  %v1910_v33 = vunpack.i.h.bf16 %v1908_v28  ;;  %v1979_v18 = vpop.permute.xlu0 %1978 }
  0xdb   : > { %v942_v32 = vadd.f32 %v941_v20, %v922_v22  ;;  %v1980_v37 = vunpack.i.l.bf16 %v1979_v18 }
  0xdc   : > { %v989_v36 = vrot.slane %v1909_v31, %v2350_v47  ;;  %v1025_v46 = vrot.slane %v1910_v33, %v2350_v47  ;;  %v1969_v31 = vunpack.i.l.bf16 %v1968_v8 }
  0xdd   : > { %v958_v38 = vadd.f32 %v957_v23, %v942_v32 }
  0xde   : > { %v993_v41 = vmul.f32 %v1926_v29, %v989_v36  ;;  %v1919_v42 = vpop.permute.xlu1 %1918  ;;  %v1029_v54 = vmul.f32 %v1937_v44, %v1025_v46  ;;  %v1970_v44 = vunpack.i.h.bf16 %v1968_v8 }
  0xdf   : > { %v978_v45 = vadd.f32 %v977_v40, %v958_v38  ;;  %v1920_v50 = vunpack.i.l.bf16 %v1919_v42  ;;  %v1921_v48 = vunpack.i.h.bf16 %v1919_v42  ;;  %v1995_v38 = vpop.permute.xlu0 %1994 }
  0xe0   : > { %v1996_v46 = vunpack.i.l.bf16 %v1995_v38 }
  0xe1   : > { %v994_v53 = vadd.f32 %v993_v41, %v978_v45  ;;  %v1045_v3 = vrot.slane %v1920_v50, %v2350_v47  ;;  %v1081_v1 = vrot.slane %v1921_v48, %v2350_v47  ;;  %v1225_v45 = vrot.slane %v1969_v31, %v2350_v47 }
  0xe2   : > { %v1981_v48 = vunpack.i.h.bf16 %v1979_v18 }
  0xe3   : > { %v1014_v55 = vadd.f32 %v1013_v52, %v994_v53  ;;  %v1930_v56 = vpop.permute.xlu1 %1929  ;;  %v1049_v12 = vmul.f32 %v1947_v51, %v1045_v3  ;;  %v1085_v5 = vmul.f32 %v1958_v0, %v1081_v1  ;;  %v1281_v52 = vrot.slane %v1980_v37, %v2350_v47  ;;  %v2006_v3 = vpop.permute.xlu0 %2005 }
  0xe4   : > { %v1931_v57 = vunpack.i.l.bf16 %v1930_v56  ;;  %v1932_v49 = vunpack.i.h.bf16 %v1930_v56  ;;  %v1997_v53 = vunpack.i.h.bf16 %v1995_v38 }
  0xe5   : > { %v1030_v58 = vadd.f32 %v1029_v54, %v1014_v55 }
  0xe6   : > { %v1061_v59 = vrot.slane %v1931_v57, %v2350_v47  ;;  %v1097_v6 = vrot.slane %v1932_v49, %v2350_v47 }
  0xe7   : > { %v1050_v60 = vadd.f32 %v1049_v12, %v1030_v58  ;;  %v1261_v58 = vrot.slane %v1970_v44, %v2350_v47  ;;  %v2017_v49 = vpop.permute.xlu0 %2016 }
  0xe8   : > { %v1065_v62 = vmul.f32 %v1948_v21, %v1061_v59  ;;  %v1941_v63 = vpop.permute.xlu1 %1940  ;;  %v1101_v13 = vmul.f32 %v1959_v24, %v1097_v6  ;;  %v2007_v21 = vunpack.i.l.bf16 %v2006_v3  ;;  %v2019_v8 = vunpack.i.h.bf16 %v2017_v49 }
  0xe9   : > { %v1942_v4 = vunpack.i.l.bf16 %v1941_v63  ;;  %v1943_v16 = vunpack.i.h.bf16 %v1941_v63 }
  0xea   : > { %v1066_v2 = vadd.f32 %v1065_v62, %v1050_v60  ;;  %v1265_v60 = vmul.f32 %v1997_v53, %v1261_v58  ;;  %v2008_v62 = vunpack.i.h.bf16 %v2006_v3  ;;  %v1285_v63 = vmul.f32 %v2007_v21, %v1281_v52 }
  0xeb   : > { %v1119_v11 = vrot.slane %v1942_v4, %v2350_v47  ;;  %v1157_v27 = vrot.slane %v1943_v16, %v2350_v47 }
  0xec   : > { %v1086_v10 = vadd.f32 %v1085_v5, %v1066_v2  ;;  %v1317_v2 = vrot.slane %v1981_v48, %v2350_v47  ;;  %v2018_v5 = vunpack.i.l.bf16 %v2017_v49 }
  0xed   : > { %v1952_v7 = vpop.permute.xlu1 %1951  ;;  %v1124_v17 = vmul.f32 %v2214_v34, %v1119_v11 }
  0xee   : > { %v1953_v9 = vunpack.i.l.bf16 %v1952_v7  ;;  %v1102_v25 = vadd.f32 %v1101_v13, %v1086_v10  ;;  %v1954_v19 = vunpack.i.h.bf16 %v1952_v7  ;;  %v1321_v13 = vmul.f32 %v2018_v5, %v1317_v2 }
  0xf0   : > { %v1136_v14 = vrot.slane %v1953_v9, %v2350_v47  ;;  %v1125_v28 = vadd.f32 %v1124_v17, %v1102_v25  ;;  %v1181_v23 = vrot.slane %v1954_v19, %v2350_v47 }
  0xf2   : > { %v1963_v15 = vpop.permute.xlu1 %1962  ;;  %v1141_v20 = vmul.f32 %v2217_v35, %v1136_v14 }
  0xf3   : > { %v1964_v22 = vunpack.i.l.bf16 %v1963_v15  ;;  %v1965_v32 = vunpack.i.h.bf16 %v1963_v15  ;;  %v1355_v15 = vpop.permute.xlu0 %1354 }
  0xf4   : > { %v1142_v33 = vadd.f32 %v1141_v20, %v1125_v28 }
  0xf5   : > { %v1209_v34 = vrot.slane %v1964_v22, %v2350_v47  ;;  %v1245_v43 = vrot.slane %v1965_v32, %v2350_v47 }
  0xf6   : > { %v1973_v26 = vpop.permute.xlu1 %1972 }
  0xf7   : > { %v1975_v29 = vunpack.i.h.bf16 %v1973_v26  ;;  %v1974_v30 = vunpack.i.l.bf16 %v1973_v26  ;;  %v1249_v12 = vmul.f32 %v1996_v46, %v1245_v43  ;;  %v1371_v22 = vpop.permute.xlu0 %1370 }
  0xf9   : > { %v1169_v36 = vmul.f32 %v1974_v30, %v1157_v27  ;;  %v1193_v35 = vmul.f32 %v1975_v29, %v1181_v23 }
  0xfa   : > { %v1984_v39 = vpop.permute.xlu1 %1983 }
  0xfb   : > { %v1170_v40 = vadd.f32 %v1169_v36, %v1142_v33  ;;  %v1986_v41 = vunpack.i.h.bf16 %v1984_v39  ;;  %v1985_v42 = vunpack.i.l.bf16 %v1984_v39  ;;  %v1407_v36 = vpop.permute.xlu0 %1406 }
  0xfd   : > { %v1194_v50 = vadd.f32 %v1193_v35, %v1170_v40  ;;  %v1213_v51 = vmul.f32 %v1985_v42, %v1209_v34  ;;  %v1229_v55 = vmul.f32 %v1986_v41, %v1225_v45 }
  0xfe   : > { %v1990_v54 = vpop.permute.xlu1 %1989 }
  0xff   : > { %v1214_v56 = vadd.f32 %v1213_v51, %v1194_v50  ;;  %v1991_v57 = vunpack.i.l.bf16 %v1990_v54  ;;  %v1992_v24 = vunpack.i.h.bf16 %v1990_v54  ;;  %v1443_v42 = vpop.permute.xlu0 %1442  ;;  %v1706_v51 = vld [vmem:[%s2450_s4] ss:$0 sm:$0xff] }
 0x101   : > { %v1230_v59 = vadd.f32 %v1229_v55, %v1214_v56  ;;  %v1297_v0 = vrot.slane %v1991_v57, %v2350_v47  ;;  %v1333_v10 = vrot.slane %v1992_v24, %v2350_v47 }
 0x103   : > { %v1250_v61 = vadd.f32 %v1249_v12, %v1230_v59  ;;  %v2001_v1 = vpop.permute.xlu1 %2000  ;;  %v1301_v7 = vmul.f32 %v2008_v62, %v1297_v0  ;;  %v1337_v16 = vmul.f32 %v2019_v8, %v1333_v10 }
 0x104   : > { %v2002_v14 = vunpack.i.l.bf16 %v2001_v1  ;;  %v2003_v26 = vunpack.i.h.bf16 %v2001_v1 }
 0x105   : > { %v1266_v4 = vadd.f32 %v1265_v60, %v1250_v61 }
 0x106   : > { %v1353_v17 = vrot.slane %v2002_v14, %v2350_v47  ;;  %v1389_v33 = vrot.slane %v2003_v26, %v2350_v47 }
 0x107   : > { %v1286_v6 = vadd.f32 %v1285_v63, %v1266_v4 }
 0x108   : > { %v2012_v9 = vpop.permute.xlu1 %2011  ;;  %v1357_v27 = vmul.f32 %v1355_v15, %v1353_v17 }
 0x109   : > { %v1302_v11 = vadd.f32 %v1301_v7, %v1286_v6  ;;  %v2013_v18 = vunpack.i.l.bf16 %v2012_v9  ;;  %v2014_v28 = vunpack.i.h.bf16 %v2012_v9 }
 0x10b   : > { %v1322_v25 = vadd.f32 %v1321_v13, %v1302_v11  ;;  %v1369_v29 = vrot.slane %v2013_v18, %v2350_v47  ;;  %v1405_v32 = vrot.slane %v2014_v28, %v2350_v47 }
 0x10d   : > { %v1417_v19 = vpop.permute.xlu1 %1416  ;;  %v1338_v20 = vadd.f32 %v1337_v16, %v1322_v25  ;;  %v1373_v23 = vmul.f32 %v1371_v22, %v1369_v29  ;;  %v1409_v39 = vmul.f32 %v1407_v36, %v1405_v32 }
 0x10e   : > { %v1425_v40 = vrot.slane %v1417_v19, %v2350_v47 }
 0x10f   : > { %v1358_v31 = vadd.f32 %v1357_v27, %v1338_v20 }
 0x111   : > { %v1374_v38 = vadd.f32 %v1373_v23, %v1358_v31 }
 0x112   : > { %v1433_v30 = vpop.permute.xlu1 %1432 }
 0x113   : > { %v1441_v35 = vrot.slane %v1433_v30, %v2350_v47 }
 0x115   : > { %v1445_v43 = vmul.f32 %v1443_v42, %v1441_v35 }
 0x116   : > { %v1391_v37 = vpop.permute.xlu1 %1390 }
 0x117   : > { %v1393_v34 = vmul.f32 %v1391_v37, %v1389_v33 }
 0x119   : > { %v1394_v41 = vadd.f32 %v1393_v34, %v1374_v38 }
 0x11a   : > { %v1427_v44 = vpop.permute.xlu1 %1426 }
 0x11b   : > { %v1410_v45 = vadd.f32 %v1409_v39, %v1394_v41  ;;  %v1429_v46 = vmul.f32 %v1427_v44, %v1425_v40 }
 0x11d   : > { %v1430_v50 = vadd.f32 %v1429_v46, %v1410_v45 }
 0x11f   : > { %v1446_v52 = vadd.f32 %v1445_v43, %v1430_v50 }
 0x121   : > { %v1466_v47 = vpack.c.bf16 %v1446_v52, %v1446_v52  ;;  %v1454_v53 = vmul.f32 %v1706_v51, %v1446_v52 }
 0x123   : > { %v1456_v3 = vsel %vm1455_vm0, %v1454_v53, 0.0  ;;  %v1461_v54 = vmul.f32 %v1454_v53, %v1446_v52  ;;  %1468 = vst.msk [vmem:[%s399_s19] sm:$0x1] %vm1467_vm1, %v1466_v47 }
 0x124   : > { %1457 = vadd.xlane.f32.xlu1 %v1456_v3 }
 0x125   : > { %v1462_v55 = vsel %vm1455_vm0, %v1461_v54, 0.0 }
 0x126   : > { %1463 = vadd.xlane.f32.xlu0 %v1462_v55 }
 0x1b1   : > { %v1458_v56 = vpop.xlane.xlu1 %1457 }
 0x1b2   : > { %1460 = vst.msk [vmem:[%s407_s10] sm:$0x3] %vm1459_vm2, %v1458_v56 }
 0x1b3   : > { %v1464_v21 = vpop.xlane.xlu0 %1463 }
 0x1b4   : > { %1465 = vst.msk [vmem:[%s415_s20] sm:$0x3] %vm1459_vm2, %v1464_v21 }
 0x1b5 PF: > { %s18_s28 = sadd.s32 1, %s2061_s28   ;;  %s2457_s24 = smov %s2053_s26 }
 0x1b6   : > { %p15_p10 = scmp.ge.s32.totalorder %s18_s28, 18   ;;  %s2458_s25 = smov %s2057_s27 }
 0x1b7   : > { %s2459_s26 = smov %s2462_s29  ;;  %s2460_s27 = smov %s2466_s30 }
 0x1b8   :  { %17 = sbr.rel (!%p15_p10) target bundleno = 3 (0x3), region = 126 }

// kernel: _lambda_.24
= control target key start
LH: loop header
LB: loop body
LE: loop exit
PB: predicated region body
PF: predicated region fallthrough
CT: control target
= control target key end

     0   :  { %s490_s12 = smov 0   ;;  %s492_s13 = smov 0   ;;  %s547_s0 = inlined_call_operand.vmem [shape: bf16[2,8,10,64], index: 0, kind: input, shape index: {}]   ;;  %s548_s1 = inlined_call_operand.vmem [shape: bf16[8,10], index: 1, kind: input, shape index: {}]   ;;  %s549_s2 = inlined_call_operand.vmem [shape: f32[8,1], index: 2, kind: input, shape index: {}]   ;;  %s550_s3 = inlined_call_operand.vmem [shape: bf16[2,8,8,64], index: 3, kind: output, shape index: {}]  }
   0x1   :  { %s494_s14 = smov 0   ;;  %s496_s15 = smov 0  }
   0x2   :  { %s498_s16 = smov 0  }
   0x3 LB: > { %s22_s17 = sadd.s32 1, %s457_s14  ;;  %s25_s18 = sadd.s32 1, %s461_s15  ;;  %s465_s16 = sphi %s498_s16, %s13_s16   ;;  %s461_s15 = sphi %s496_s15, %s554_s15   ;;  %s457_s14 = sphi %s494_s14, %s553_s14   ;;  %s453_s13 = sphi %s492_s13, %s552_s13   ;;  %s449_s12 = sphi %s490_s12, %s551_s12  }
   0x4   : > { %p23_p0 = scmp.ge.s32.totalorder %s22_s17, 8  ;;  %p364_p1 = scmp.ge.s32.totalorder %s465_s16, 1 }
   0x5   : > { %p157_p2 = scmp.lt.s32.totalorder %s465_s16, 17 }
   0x6   : > { %s556_s17 = smov (%p23_p0, %s22_s17), 0  ;;  %s558_s18 = smov (!%p23_p0, %s25_s18), %s461_s15 }
   0x7   : > { %p158_p3 = pnand %p364_p1, %p157_p2  ;;  %p27_p4 = scmp.ge.s32.totalorder %s558_s18, 2 }
   0x8   : > { %p188_p5 = scmp.lt.s32.totalorder (!%p158_p3), %s453_s13, 1  ;;  %p190_p6 = scmp.lt.s32.totalorder (!%p158_p3), %s449_s12, 7  ;;  %v467_v0 = vmov (!%p158_p3), 0.0   ;;  %vm468_vm0 = vmmov (!%p158_p3), 0   ;;  %v209_v1 = vld [vmem:[%s549_s2] sm:$0xff] (!%p158_p3)  ;;  %v469_v2 = vmov (!%p158_p3), 0  }
   0x9   : > { %s560_s18 = smov (%p27_p4, %s558_s18), 0  ;;  %161 = sbr.rel (%p158_p3) target bundleno = 244 (0xf4), region = 32 }
   0xa   : > { %376 = vmatprep.subr.bf16.mxu0 (!%p158_p3), %v467_v0  ;;  %378 = vmatprep.mubr.msk.bf16.mxu0 (!%p158_p3), %vm468_vm0, %v467_v0  ;;  %vm224_vm1 = vcmask (!%p158_p3), 1044480   ;;  %v206_v5 = vld [vmem:[%s548_s1] sm:$0xf] (!%p158_p3)  ;;  %vm220_vm2 = vcmask (!%p158_p3), 80896   ;;  %vm269_vm3 = vcmask (!%p158_p3), 519168  }
   0xb   : > { %425 = vset.pattern.permute.xlu0 (!%p158_p3), %v469_v2 }
   0xc   : > { %212 = vperm.xlu0 (!%p158_p3), %425, %v209_v1  }
  0x10   : > { %s562_s13 = smov (!%p188_p5, %s453_s13), 1  ;;  %s564_s12 = smov (!%p190_p6, %s449_s12), 7 }
  0x11   : > { %s366_s21 = sshll.u32 %s562_s13, 4  ;;  %s368_s22 = sshll.u32 %s562_s13, 3 }
  0x12   : > { %s365_s23 = sshll.u32 %s564_s12, 1  ;;  %s202_s24 = sadd.s32 %s368_s22, %s564_s12 }
  0x13   : > { %s194_s25 = sadd.s32 %s366_s21, %s365_s23  ;;  %s369_s5 = sshll.u32 %s202_s24, 2 }
  0x14   : > { %s367_s26 = sshll.u32 %s194_s25, 2  ;;  %s204_s8 = scalar_lea.vmem %s550_s3, %s369_s5 }
  0x15   : > { %s196_s29 = scalar_lea.vmem %s547_s0, %s367_s26 }
  0x16   : > { %v426_v3 = vld [vmem:[%s196_s29] sm:$0x1f]  }
  0x17   : > { %v226_v4 = vsel %vm224_vm1, %v426_v3, 0 }
  0x18   : > { %377 = vmatpush3.bf16.msra.mxu0 %v226_v4 }
  0x1b   : > { %379 = vmatmul.mubr.msk.bf16.vlgmr.msra.gmra.mrb[0].mxu0 %vm220_vm2, %v206_v5 }
  0x8b   : > { %v213_v6 = vpop.permute.xlu0 %212 }
  0xee   : > { %v262_v7 = vpop.f32.mrb[0].mxu0 }
  0xef   : > { %v263_v8 = vadd.f32 %v262_v7, %v213_v6  ;;  %v380_v9 = vpop.f32.mrb[1].mxu0 }
  0xf0   : > { %v265_v10 = vpop.f32.mrb[2].mxu0 }
  0xf1   : > { %v268_v11 = vpack.c.bf16 %v263_v8, %v263_v8  ;;  %v381_v12 = vpop.f32.mrb[3].mxu0 }
  0xf3   : > { %270 = vst.msk [vmem:[%s204_s8] sm:$0xf] %vm269_vm3, %v268_v11 }
  0xf4 PF: > { %s13_s16 = sadd.s32 1, %s465_s16   ;;  %s551_s12 = smov %s457_s14 }
  0xf5   : > { %p10_p7 = scmp.ge.s32.totalorder %s13_s16, 18   ;;  %s552_s13 = smov %s461_s15 }
  0xf6   : > { %s553_s14 = smov %s556_s17  ;;  %s554_s15 = smov %s560_s18 }
  0xf7   :  { %12 = sbr.rel (!%p10_p7) target bundleno = 3 (0x3), region = 62 }

// kernel: _lambda_.25
= control target key start
LH: loop header
LB: loop body
LE: loop exit
PB: predicated region body
PF: predicated region fallthrough
CT: control target
= control target key end

     0   :  { %s1554_s24 = smov 0   ;;  %s1556_s25 = smov 0   ;;  %s1866_s0 = inlined_call_operand.vmem [shape: bf16[2,18,1,342], index: 0, kind: input, shape index: {}, may-alias: {0,1,2}]   ;;  %s1867_s1 = inlined_call_operand.vmem [shape: bf16[2,18,1,342], index: 1, kind: input, shape index: {}, may-alias: {0,1,2}]   ;;  %s1868_s2 = inlined_call_operand.vmem [shape: bf16[2,18,1,342], index: 2, kind: input, shape index: {}, may-alias: {0,1,2}]   ;;  %s1869_s3 = inlined_call_operand.vmem [shape: bf16[27,1,1], index: 3, kind: input, shape index: {}]   ;;  %s1870_s4 = inlined_call_operand.vmem [shape: f32[1,288], index: 4, kind: input, shape index: {}]   ;;  %s1871_s5 = inlined_call_operand.vmem [shape: bf16[2,16,1,288], index: 5, kind: output, shape index: {0}]   ;;  %s1872_s6 = inlined_call_operand.vmem [shape: f32[2,16,1,1], index: 6, kind: output, shape index: {1}]   ;;  %s1873_s7 = inlined_call_operand.vmem [shape: f32[2,16,1,1], index: 7, kind: output, shape index: {2}]  }
   0x1   :  { %s1558_s26 = smov 0   ;;  %s1560_s27 = smov 0  }
   0x2   :  { %s1562_s28 = smov 0  }
   0x3 LB: > { %s27_s29 = sadd.s32 1, %s1492_s26  ;;  %s30_s30 = sadd.s32 1, %s1496_s27  ;;  %s1500_s28 = sphi %s1562_s28, %s18_s28   ;;  %s1496_s27 = sphi %s1560_s27, %s1881_s27   ;;  %s1492_s26 = sphi %s1558_s26, %s1880_s26   ;;  %s1488_s25 = sphi %s1556_s25, %s1879_s25   ;;  %s1484_s24 = sphi %s1554_s24, %s1878_s24  }
   0x4   : > { %p28_p0 = scmp.ge.s32.totalorder %s27_s29, 16  ;;  %p1370_p1 = scmp.ge.s32.totalorder %s1500_s28, 1 }
   0x5   : > { %p303_p2 = scmp.lt.s32.totalorder %s1500_s28, 33 }
   0x6   : > { %s1883_s29 = smov (%p28_p0, %s27_s29), 0  ;;  %s1885_s30 = smov (!%p28_p0, %s30_s30), %s1496_s27 }
   0x7   : > { %p304_p3 = pnand %p1370_p1, %p303_p2  ;;  %p32_p4 = scmp.ge.s32.totalorder %s1885_s30, 2 }
   0x8   : > { %v1375_v0 = vld [vmem:[%s1869_s3 + $0x3] sm:$0x1] (!%p304_p3)  ;;  %v1373_v1 = vld [vmem:[%s1869_s3 + $0x1] sm:$0x1] (!%p304_p3)  ;;  %v1502_v2 = vmov (!%p304_p3), 0   ;;  %p373_p5 = scmp.lt.s32.totalorder (!%p304_p3), %s1488_s25, 1  ;;  %v435_v53 = vlaneseq (!%p304_p3) }
   0x9   : > { %s1887_s30 = smov (%p32_p4, %s1885_s30), 0  ;;  %307 = sbr.rel (%p304_p3) target bundleno = 486 (0x1e6), region = 40 }
   0xa   : > { %1461 = vset.pattern.permute.xlu1 (!%p304_p3), %v1502_v2  ;;  %1460 = vset.pattern.permute.xlu0 (!%p304_p3), %v1502_v2  ;;  %v491_v3 = vunpack.c.l.bf16 (!%p304_p3), %v1375_v0  ;;  %v443_v4 = vunpack.c.l.bf16 (!%p304_p3), %v1373_v1  ;;  %v1376_v5 = vld [vmem:[%s1869_s3 + $0x4] sm:$0x1] (!%p304_p3)  ;;  %v1374_v6 = vld [vmem:[%s1869_s3 + $0x2] sm:$0x1] (!%p304_p3)  ;;  %v1378_v9 = vld [vmem:[%s1869_s3 + $0x6] sm:$0x1] (!%p304_p3) }
   0xb   : > { %v515_v7 = vunpack.c.l.bf16 (!%p304_p3), %v1376_v5  ;;  %v467_v8 = vunpack.c.l.bf16 (!%p304_p3), %v1374_v6  ;;  %v1377_v10 = vld [vmem:[%s1869_s3 + $0x5] sm:$0x1] (!%p304_p3)  ;;  %v563_v11 = vunpack.c.l.bf16 (!%p304_p3), %v1378_v9  ;;  %v1380_v13 = vld [vmem:[%s1869_s3 + $0x8] sm:$0x1] (!%p304_p3)  ;;  %v1379_v14 = vld [vmem:[%s1869_s3 + $0x7] sm:$0x1] (!%p304_p3) }
   0xc   : > { %494 = vperm.xlu1 (!%p304_p3), %1461, %v491_v3   ;;  %446 = vperm.xlu0 (!%p304_p3), %1460, %v443_v4   ;;  %v539_v12 = vunpack.c.l.bf16 (!%p304_p3), %v1377_v10  ;;  %v611_v15 = vunpack.c.l.bf16 (!%p304_p3), %v1380_v13  ;;  %v587_v16 = vunpack.c.l.bf16 (!%p304_p3), %v1379_v14  ;;  %v1383_v17 = vld [vmem:[%s1869_s3 + $0xb] sm:$0x1] (!%p304_p3)  ;;  %v1382_v18 = vld [vmem:[%s1869_s3 + $0xa] sm:$0x1] (!%p304_p3)  ;;  %v1385_v21 = vld [vmem:[%s1869_s3 + $0xd] sm:$0x1] (!%p304_p3) }
   0xd   : > { %v677_v19 = vunpack.c.l.bf16 (!%p304_p3), %v1383_v17  ;;  %v654_v20 = vunpack.c.l.bf16 (!%p304_p3), %v1382_v18  ;;  %v1384_v22 = vld [vmem:[%s1869_s3 + $0xc] sm:$0x1] (!%p304_p3)  ;;  %v723_v23 = vunpack.c.l.bf16 (!%p304_p3), %v1385_v21  ;;  %v1387_v25 = vld [vmem:[%s1869_s3 + $0xf] sm:$0x1] (!%p304_p3)  ;;  %v1386_v26 = vld [vmem:[%s1869_s3 + $0xe] sm:$0x1] (!%p304_p3) }
   0xe   : > { %v700_v24 = vunpack.c.l.bf16 (!%p304_p3), %v1384_v22  ;;  %v769_v27 = vunpack.c.l.bf16 (!%p304_p3), %v1387_v25  ;;  %v746_v28 = vunpack.c.l.bf16 (!%p304_p3), %v1386_v26  ;;  %v1389_v29 = vld [vmem:[%s1869_s3 + $0x11] sm:$0x1] (!%p304_p3)  ;;  %v1388_v30 = vld [vmem:[%s1869_s3 + $0x10] sm:$0x1] (!%p304_p3)  ;;  %v1392_v33 = vld [vmem:[%s1869_s3 + $0x14] sm:$0x1] (!%p304_p3) }
   0xf   : > { %v815_v31 = vunpack.c.l.bf16 (!%p304_p3), %v1389_v29  ;;  %v792_v32 = vunpack.c.l.bf16 (!%p304_p3), %v1388_v30  ;;  %v1391_v34 = vld [vmem:[%s1869_s3 + $0x13] sm:$0x1] (!%p304_p3)  ;;  %v880_v35 = vunpack.c.l.bf16 (!%p304_p3), %v1392_v33  ;;  %v1394_v37 = vld [vmem:[%s1869_s3 + $0x16] sm:$0x1] (!%p304_p3)  ;;  %v1393_v38 = vld [vmem:[%s1869_s3 + $0x15] sm:$0x1] (!%p304_p3) }
  0x10   : > { %518 = vperm.xlu1 %1461, %v515_v7   ;;  %470 = vperm.xlu0 %1460, %v467_v8   ;;  %v857_v36 = vunpack.c.l.bf16 %v1391_v34  ;;  %v926_v39 = vunpack.c.l.bf16 %v1394_v37  ;;  %v903_v40 = vunpack.c.l.bf16 %v1393_v38  ;;  %v1396_v41 = vld [vmem:[%s1869_s3 + $0x18] sm:$0x1]  ;;  %v1395_v42 = vld [vmem:[%s1869_s3 + $0x17] sm:$0x1]  ;;  %v1398_v45 = vld [vmem:[%s1869_s3 + $0x1a] sm:$0x1] }
  0x11   : > { %v972_v43 = vunpack.c.l.bf16 %v1396_v41  ;;  %v949_v44 = vunpack.c.l.bf16 %v1395_v42  ;;  %v1397_v46 = vld [vmem:[%s1869_s3 + $0x19] sm:$0x1]  ;;  %v1018_v47 = vunpack.c.l.bf16 %v1398_v45  ;;  %v424_v49 = vld [vmem:[%s1869_s3] sm:$0x1]  ;;  %p375_p6 = scmp.lt.s32.totalorder %s1484_s24, 17  ;;  %s1889_s25 = smov (!%p373_p5, %s1488_s25), 1 }
  0x12   : > { %v995_v48 = vunpack.c.l.bf16 %v1397_v46  ;;  %v425_v50 = vunpack.c.l.bf16 %v424_v49  ;;  %s1670_s11 = smul.u32 54, %s1889_s25  ;;  %v1503_v51 = vmov 269488144   ;;  %v1673_v55 = vshrl.u32 %v435_v53, 7  ;;  %s381_s17 = sadd.s32 1, %s1484_s24 }
  0x13   : > { %s376_s10 = scalar_select %p375_p6, %s1484_s24, 17  ;;  %v433_v52 = vunpack.c.l.s4 %v1503_v51  ;;  %v1381_v9 = vld [vmem:[%s1869_s3 + $0x9] sm:$0x1]  ;;  %vm461_vm0 = vcmask 1039360   ;;  %vm485_vm1 = vcmask 1031168   ;;  %vm509_vm2 = vcmask 900096  }
  0x14   : > { %566 = vperm.xlu1 %1461, %v563_v11   ;;  %542 = vperm.xlu0 %1460, %v539_v12   ;;  %p384_p7 = scmp.lt.s32.totalorder %s381_s17, 17  ;;  %s1504_s18 = smov 127   ;;  %vm533_vm3 = vcmask 891904   ;;  %vm557_vm4 = vcmask 883712   ;;  %vm581_vm5 = vcmask 752640   ;;  %vm605_vm6 = vcmask 744448  }
  0x15   : > { %s1402_s12 = smul.u32 3, %s376_s10  ;;  %v434_v54 = vunpack.c.0.s8 %v433_v52  ;;  %s1505_s20 = smov 126   ;;  %vm629_vm7 = vcmask 736256   ;;  %vm1149_vm8 = vsmask.f32 256  ;;  %vm1151_vm9 = vcmask 1041409  }
  0x16   : > { %s1891_s17 = smov (!%p384_p7, %s381_s17), 17  ;;  %s1506_s21 = smov 110   ;;  %vm1152_vm10 = vsmask.f32 1280  ;;  %vm1066_vm11 = vcmask 1040384   ;;  %vm1155_vm14 = vcmask 256002  }
  0x17   : > { %s379_s13 = sadd.s32 %s1670_s11, %s1402_s12  ;;  %v1680_v57 = vsub.s32 %v434_v54, %v1673_v55  ;;  %s1404_s19 = smul.u32 3, %s1891_s17  ;;  %vm1820_vm12 = vmand %vm1066_vm11, %vm1149_vm8  ;;  %vm1156_vm15 = vsmask.f32 2304 }
  0x18   : > { %614 = vperm.xlu1 %1461, %v611_v15   ;;  %590 = vperm.xlu0 %1460, %v587_v16   ;;  %s380_s16 = scalar_lea.vmem %s1866_s0, %s379_s13  ;;  %s391_s9 = sadd.s32 2, %s1484_s24  ;;  %v636_v15 = vunpack.c.l.bf16 %v1381_v9  ;;  %vm1824_vm13 = vmand %vm1151_vm9, %vm1152_vm10 }
  0x19   : > { %v423_v56 = vld [vmem:[%s380_s16] sm:$0x7]  ;;  %s388_s22 = sadd.s32 %s1404_s19, %s1670_s11  ;;  %s1507_s14 = smov 109  }
  0x1a   : > { %v1682_v58 = vunpack.c.l.bf16 %v423_v56  ;;  %s389_s13 = scalar_lea.vmem %s1867_s1, %s388_s22  ;;  %s1508_s15 = smov 108  }
  0x1b   : > { %p394_p8 = scmp.lt.s32.totalorder %s391_s9, 17  ;;  %s1509_s16 = smov 92  }
  0x1c   : > { %680 = vperm.xlu1 %1461, %v677_v19   ;;  %657 = vperm.xlu0 %1460, %v654_v20   ;;  %v633_v19 = vld [vmem:[%s389_s13] sm:$0x7]  ;;  %s1510_s17 = smov 91   ;;  %s1511_s19 = smov 90  }
  0x1d   : > { %s1893_s9 = smov (!%p394_p8, %s391_s9), 17  ;;  %v1712_v22 = vunpack.c.l.bf16 %v633_v19  ;;  %p403_p9 = scmp.lt.s32.totalorder %s1484_s24, 15 }
  0x1e   : > { %s1405_s22 = smul.u32 3, %s1893_s9 }
  0x1f   : > { %s1895_s24 = smov (!%p403_p9, %s1484_s24), 15 }
  0x20   : > { %726 = vperm.xlu1 %1461, %v723_v23   ;;  %703 = vperm.xlu0 %1460, %v700_v24   ;;  %s398_s23 = sadd.s32 %s1405_s22, %s1670_s11 }
  0x21   : > { %s399_s13 = scalar_lea.vmem %s1868_s2, %s398_s23 }
  0x22   : > { %v836_v45 = vld [vmem:[%s399_s13] sm:$0x7] }
  0x24   : > { %772 = vperm.xlu1 %1461, %v769_v27   ;;  %749 = vperm.xlu0 %1460, %v746_v28  }
  0x28   : > { %818 = vperm.xlu1 %1461, %v815_v31   ;;  %795 = vperm.xlu0 %1460, %v792_v32  }
  0x2c   : > { %883 = vperm.xlu1 %1461, %v880_v35   ;;  %860 = vperm.xlu0 %1460, %v857_v36   ;;  %v1390_v35 = vld [vmem:[%s1869_s3 + $0x12] sm:$0x1] }
  0x2d   : > { %v839_v41 = vunpack.c.l.bf16 %v1390_v35 }
  0x30   : > { %929 = vperm.xlu1 %1461, %v926_v39   ;;  %906 = vperm.xlu0 %1460, %v903_v40  }
  0x34   : > { %975 = vperm.xlu1 %1461, %v972_v43   ;;  %952 = vperm.xlu0 %1460, %v949_v44  }
  0x38   : > { %1021 = vperm.xlu1 %1461, %v1018_v47   ;;  %998 = vperm.xlu0 %1460, %v995_v48   ;;  %v1742_v48 = vunpack.c.l.bf16 %v836_v45 }
  0x3c   : > { %429 = vperm.xlu0 %1460, %v425_v50  }
  0x8b   : > { %v495_v59 = vpop.permute.xlu1 %494  ;;  %v447_v60 = vpop.permute.xlu0 %446 }
  0x8c   : > { %v503_v61 = vrot.slane %v495_v59, %v1680_v57  ;;  %v455_v62 = vrot.slane %v447_v60, %v1680_v57 }
  0x8e   : > { %v456_v63 = vmul.f32 %v455_v62, %v1682_v58  ;;  %v504_v2 = vmul.f32 %v503_v61, %v1682_v58 }
  0x8f   : > { %v519_v0 = vpop.permute.xlu1 %518  ;;  %v471_v1 = vpop.permute.xlu0 %470 }
  0x90   : > { %v479_v3 = vrot.slane %v471_v1, %v1680_v57  ;;  %458 = vrot.lane.b32.xlu1 %v456_v63, %s1504_s18  ;;  %v527_v4 = vrot.slane %v519_v0, %v1680_v57 }
  0x92   : > { %v480_v5 = vmul.f32 %v479_v3, %v1682_v58  ;;  %v528_v10 = vmul.f32 %v527_v4, %v1682_v58 }
  0x93   : > { %v567_v6 = vpop.permute.xlu1 %566  ;;  %v543_v7 = vpop.permute.xlu0 %542 }
  0x94   : > { %v551_v8 = vrot.slane %v543_v7, %v1680_v57  ;;  %482 = vrot.lane.b32.xlu0 %v480_v5, %s1505_s20  ;;  %506 = vrot.lane.b32.xlu1 %v504_v2, %s1506_s21  ;;  %v575_v11 = vrot.slane %v567_v6, %v1680_v57 }
  0x96   : > { %v552_v12 = vmul.f32 %v551_v8, %v1682_v58  ;;  %v576_v16 = vmul.f32 %v575_v11, %v1682_v58 }
  0x97   : > { %v615_v13 = vpop.permute.xlu1 %614  ;;  %v591_v14 = vpop.permute.xlu0 %590 }
  0x98   : > { %530 = vrot.lane.b32.xlu0 %v528_v10, %s1507_s14  ;;  %554 = vrot.lane.b32.xlu1 %v552_v12, %s1508_s15  ;;  %v623_v17 = vrot.slane %v615_v13, %v1680_v57  ;;  %v599_v18 = vrot.slane %v591_v14, %v1680_v57 }
  0x9a   : > { %v624_v23 = vmul.f32 %v623_v17, %v1682_v58  ;;  %v600_v24 = vmul.f32 %v599_v18, %v1682_v58 }
  0x9b   : > { %v681_v20 = vpop.permute.xlu1 %680  ;;  %v658_v21 = vpop.permute.xlu0 %657 }
  0x9c   : > { %640 = vperm.xlu0 %1460, %v636_v15   ;;  %578 = vrot.lane.b32.xlu1 %v576_v16, %s1509_s16  ;;  %v689_v25 = vrot.slane %v681_v20, %v1680_v57  ;;  %v666_v26 = vrot.slane %v658_v21, %v1680_v57 }
  0x9e   : > { %v690_v29 = vmul.f32 %v689_v25, %v1712_v22  ;;  %v667_v30 = vmul.f32 %v666_v26, %v1712_v22 }
  0x9f   : > { %v727_v27 = vpop.permute.xlu1 %726  ;;  %v704_v28 = vpop.permute.xlu0 %703 }
  0xa0   : > { %602 = vrot.lane.b32.xlu0 %v600_v24, %s1510_s17  ;;  %626 = vrot.lane.b32.xlu1 %v624_v23, %s1511_s19  ;;  %v735_v31 = vrot.slane %v727_v27, %v1680_v57  ;;  %v712_v32 = vrot.slane %v704_v28, %v1680_v57 }
  0xa2   : > { %v736_v36 = vmul.f32 %v735_v31, %v1712_v22  ;;  %v713_v37 = vmul.f32 %v712_v32, %v1712_v22 }
  0xa3   : > { %v773_v33 = vpop.permute.xlu1 %772  ;;  %v750_v34 = vpop.permute.xlu0 %749 }
  0xa4   : > { %669 = vrot.lane.b32.xlu0 %v667_v30, %s1504_s18  ;;  %692 = vrot.lane.b32.xlu1 %v690_v29, %s1505_s20  ;;  %v758_v38 = vrot.slane %v750_v34, %v1680_v57  ;;  %v781_v42 = vrot.slane %v773_v33, %v1680_v57 }
  0xa6   : > { %v759_v43 = vmul.f32 %v758_v38, %v1712_v22  ;;  %v782_v49 = vmul.f32 %v781_v42, %v1712_v22 }
  0xa7   : > { %v819_v39 = vpop.permute.xlu1 %818  ;;  %v796_v40 = vpop.permute.xlu0 %795 }
  0xa8   : > { %715 = vrot.lane.b32.xlu0 %v713_v37, %s1506_s21  ;;  %738 = vrot.lane.b32.xlu1 %v736_v36, %s1507_s14  ;;  %v804_v44 = vrot.slane %v796_v40, %v1680_v57  ;;  %v827_v50 = vrot.slane %v819_v39, %v1680_v57 }
  0xaa   : > { %v805_v51 = vmul.f32 %v804_v44, %v1712_v22  ;;  %v828_v56 = vmul.f32 %v827_v50, %v1712_v22 }
  0xab   : > { %v884_v46 = vpop.permute.xlu1 %883  ;;  %v861_v47 = vpop.permute.xlu0 %860 }
  0xac   : > { %761 = vrot.lane.b32.xlu0 %v759_v43, %s1508_s15  ;;  %843 = vperm.xlu1 %1461, %v839_v41   ;;  %v869_v52 = vrot.slane %v861_v47, %v1680_v57  ;;  %v892_v59 = vrot.slane %v884_v46, %v1680_v57 }
  0xae   : > { %v870_v60 = vmul.f32 %v869_v52, %v1742_v48  ;;  %v893_v0 = vmul.f32 %v892_v59, %v1742_v48 }
  0xaf   : > { %v930_v53 = vpop.permute.xlu1 %929  ;;  %v907_v54 = vpop.permute.xlu0 %906 }
  0xb0   : > { %784 = vrot.lane.b32.xlu0 %v782_v49, %s1509_s16  ;;  %807 = vrot.lane.b32.xlu1 %v805_v51, %s1510_s17  ;;  %v915_v61 = vrot.slane %v907_v54, %v1680_v57  ;;  %v938_v1 = vrot.slane %v930_v53, %v1680_v57 }
  0xb2   : > { %v916_v2 = vmul.f32 %v915_v61, %v1742_v48  ;;  %v939_v5 = vmul.f32 %v938_v1, %v1742_v48 }
  0xb3   : > { %v953_v62 = vpop.permute.xlu0 %952  ;;  %v976_v63 = vpop.permute.xlu1 %975 }
  0xb4   : > { %830 = vrot.lane.b32.xlu0 %v828_v56, %s1511_s19  ;;  %872 = vrot.lane.b32.xlu1 %v870_v60, %s1504_s18  ;;  %v961_v3 = vrot.slane %v953_v62, %v1680_v57  ;;  %v984_v6 = vrot.slane %v976_v63, %v1680_v57 }
  0xb6   : > { %v962_v7 = vmul.f32 %v961_v3, %v1742_v48  ;;  %v985_v10 = vmul.f32 %v984_v6, %v1742_v48 }
  0xb7   : > { %v999_v4 = vpop.permute.xlu0 %998  ;;  %v1022_v9 = vpop.permute.xlu1 %1021 }
  0xb8   : > { %895 = vrot.lane.b32.xlu0 %v893_v0, %s1505_s20  ;;  %918 = vrot.lane.b32.xlu1 %v916_v2, %s1506_s21  ;;  %v1007_v8 = vrot.slane %v999_v4, %v1680_v57  ;;  %v1030_v11 = vrot.slane %v1022_v9, %v1680_v57  ;;  %s1406_s20 = smul.u32 3, %s1895_s24 }
  0xb9   : > { %s1407_s21 = smul.u32 48, %s1889_s25 }
  0xba   : > { %v1008_v12 = vmul.f32 %v1007_v8, %v1742_v48  ;;  %v1031_v13 = vmul.f32 %v1030_v11, %v1742_v48 }
  0xbb   : > { %v430_v14 = vpop.permute.xlu0 %429 }
  0xbc   : > { %941 = vrot.lane.b32.xlu0 %v939_v5, %s1507_s14  ;;  %964 = vrot.lane.b32.xlu1 %v962_v7, %s1508_s15  ;;  %v438_v18 = vrot.slane %v430_v14, %v1680_v57  ;;  %s407_s14 = sadd.s32 %s1407_s21, %s1406_s20 }
  0xbe   : > { %v439_v23 = vmul.f32 %v438_v18, %v1682_v58 }
  0xc0   : > { %987 = vrot.lane.b32.xlu0 %v985_v10, %s1509_s16  ;;  %1010 = vrot.lane.b32.xlu1 %v1008_v12, %s1510_s17  ;;  %s408_s17 = scalar_lea.vmem %s1871_s5, %s407_s14 }
  0xc4   : > { %1033 = vrot.lane.b32.xlu0 %v1031_v13, %s1511_s19  ;;  %s1371_s19 = sshll.u32 %s1889_s25, 4 }
  0xc5   : > { %s414_s22 = sadd.s32 %s1371_s19, %s1895_s24 }
  0xc6   : > { %s415_s10 = scalar_lea.vmem %s1872_s6, %s414_s22  ;;  %s422_s13 = scalar_lea.vmem %s1873_s7, %s414_s22 }
 0x102   : > { %v459_v15 = vpop.permute.xlu1 %458 }
 0x103   : > { %v460_v17 = vrot.slane %v459_v15, 2 }
 0x105   : > { %v462_v21 = vsel %vm461_vm0, %v459_v15, %v460_v17 }
 0x106   : > { %v483_v16 = vpop.permute.xlu0 %482  ;;  %v507_v19 = vpop.permute.xlu1 %506  ;;  %v464_v25 = vadd.f32 %v462_v21, %v439_v23 }
 0x107   : > { %v484_v20 = vrot.slane %v483_v16, 2  ;;  %v508_v28 = vrot.slane %v507_v19, 2 }
 0x109   : > { %v486_v24 = vsel %vm485_vm1, %v483_v16, %v484_v20  ;;  %v510_v31 = vsel %vm509_vm2, %v507_v19, %v508_v28 }
 0x10a   : > { %v531_v26 = vpop.permute.xlu0 %530  ;;  %v555_v27 = vpop.permute.xlu1 %554  ;;  %v488_v29 = vadd.f32 %v486_v24, %v464_v25 }
 0x10b   : > { %v532_v30 = vrot.slane %v531_v26, 2  ;;  %v556_v35 = vrot.slane %v555_v27, 2 }
 0x10c   : > { %v512_v32 = vadd.f32 %v510_v31, %v488_v29 }
 0x10d   : > { %v534_v34 = vsel %vm533_vm3, %v531_v26, %v532_v30  ;;  %v558_v39 = vsel %vm557_vm4, %v555_v27, %v556_v35  ;;  %v1512_v35 = vmov 857870592  }
 0x10e   : > { %v579_v33 = vpop.permute.xlu1 %578  ;;  %v536_v36 = vadd.f32 %v534_v34, %v512_v32 }
 0x10f   : > { %v580_v58 = vrot.slane %v579_v33, 2 }
 0x110   : > { %v560_v40 = vadd.f32 %v558_v39, %v536_v36  ;;  %v1042_v36 = vunpack.c.l.s4 %v1512_v35  ;;  %v1159_v35 = vld [vmem:[%s408_s17] sm:$0x7] }
 0x111   : > { %v582_v41 = vsel %vm581_vm5, %v579_v33, %v580_v58 }
 0x112   : > { %v627_v37 = vpop.permute.xlu1 %626  ;;  %v584_v45 = vadd.f32 %v582_v41, %v560_v40 }
 0x113   : > { %v628_v43 = vrot.slane %v627_v37, 2 }
 0x115   : > { %v630_v52 = vsel %vm629_vm7, %v627_v37, %v628_v43  ;;  %v1043_v43 = vunpack.c.0.s8 %v1042_v36 }
 0x116   : > { %v693_v46 = vpop.permute.xlu1 %692 }
 0x117   : > { %v694_v59 = vrot.slane %v693_v46, 2 }
 0x119   : > { %v695_v2 = vsel %vm485_vm1, %v693_v46, %v694_v59 }
 0x11a   : > { %v739_v60 = vpop.permute.xlu1 %738 }
 0x11b   : > { %v641_v38 = vpop.permute.xlu0 %640  ;;  %v740_v3 = vrot.slane %v739_v60, 2 }
 0x11c   : > { %v649_v47 = vrot.slane %v641_v38, %v1680_v57 }
 0x11e   : > { %v650_v54 = vmul.f32 %v649_v47, %v1712_v22  ;;  %v741_v22 = vsel %vm533_vm3, %v739_v60, %v740_v3 }
 0x11f   : > { %v603_v42 = vpop.permute.xlu0 %602 }
 0x120   : > { %v604_v44 = vrot.slane %v603_v42, 2 }
 0x122   : > { %v606_v49 = vsel %vm605_vm6, %v603_v42, %v604_v44 }
 0x123   : > { %v608_v50 = vadd.f32 %v606_v49, %v584_v45  ;;  %v670_v51 = vpop.permute.xlu0 %669 }
 0x124   : > { %v671_v53 = vrot.slane %v670_v51, 2 }
 0x125   : > { %v632_v56 = vadd.f32 %v630_v52, %v608_v50 }
 0x126   : > { %v672_v63 = vsel %vm461_vm0, %v670_v51, %v671_v53  ;;  %v1046_v53 = vsub.s32 %v1043_v43, %v1673_v55 }
 0x127   : > { %v651_v61 = vadd.f32 %v650_v54, %v632_v56  ;;  %v716_v62 = vpop.permute.xlu0 %715  ;;  %v1513_v54 = vmov 1966171168  }
 0x128   : > { %v717_v0 = vrot.slane %v716_v62, 2  ;;  %v1126_v56 = vunpack.c.l.s4 %v1513_v54 }
 0x129   : > { %v674_v1 = vadd.f32 %v672_v63, %v651_v61  ;;  %v1039_v61 = vld [vmem:[%s1870_s4] sm:$0x7] }
 0x12a   : > { %v718_v7 = vsel %vm509_vm2, %v716_v62, %v717_v0  ;;  %v1127_v3 = vunpack.c.0.s8 %v1126_v56 }
 0x12b   : > { %v697_v4 = vadd.f32 %v695_v2, %v674_v1  ;;  %v762_v5 = vpop.permute.xlu0 %761  ;;  %v844_v6 = vpop.permute.xlu1 %843  ;;  %v1047_v2 = vrot.slane %v1039_v61, %v1046_v53 }
 0x12c   : > { %v763_v8 = vrot.slane %v762_v5, 2  ;;  %v852_v18 = vrot.slane %v844_v6, %v1680_v57  ;;  %v1057_v6 = vsub.s32 2, %v1673_v55 }
 0x12d   : > { %v720_v9 = vadd.f32 %v718_v7, %v697_v4  ;;  %v1061_v7 = vsub.s32 4, %v1673_v55 }
 0x12e   : > { %v764_v13 = vsel %vm557_vm4, %v762_v5, %v763_v8  ;;  %v853_v28 = vmul.f32 %v852_v18, %v1742_v48  ;;  %v1053_v5 = vsub.s32 0, %v1673_v55 }
 0x12f   : > { %v743_v10 = vadd.f32 %v741_v22, %v720_v9  ;;  %v785_v11 = vpop.permute.xlu0 %784  ;;  %v808_v12 = vpop.permute.xlu1 %807  ;;  %v1130_v22 = vsub.s32 %v1127_v3, %v1673_v55 }
 0x130   : > { %v786_v14 = vrot.slane %v785_v11, 2  ;;  %v809_v15 = vrot.slane %v808_v12, 2 }
 0x131   : > { %v766_v16 = vadd.f32 %v764_v13, %v743_v10 }
 0x132   : > { %v787_v17 = vsel %vm581_vm5, %v785_v11, %v786_v14  ;;  %v810_v23 = vsel %vm605_vm6, %v808_v12, %v809_v15 }
 0x133   : > { %v789_v19 = vadd.f32 %v787_v17, %v766_v16  ;;  %v831_v20 = vpop.permute.xlu0 %830  ;;  %v873_v21 = vpop.permute.xlu1 %872 }
 0x134   : > { %v832_v24 = vrot.slane %v831_v20, 2  ;;  %v874_v27 = vrot.slane %v873_v21, 2 }
 0x135   : > { %v812_v25 = vadd.f32 %v810_v23, %v789_v19 }
 0x136   : > { %v833_v26 = vsel %vm629_vm7, %v831_v20, %v832_v24  ;;  %v875_v34 = vsel %vm461_vm0, %v873_v21, %v874_v27  ;;  %vm1070_vm0 = vcmask 253952  }
 0x137   : > { %v835_v29 = vadd.f32 %v833_v26, %v812_v25  ;;  %v896_v30 = vpop.permute.xlu0 %895  ;;  %v919_v31 = vpop.permute.xlu1 %918 }
 0x138   : > { %v897_v32 = vrot.slane %v896_v30, 2  ;;  %v920_v57 = vrot.slane %v919_v31, 2 }
 0x139   : > { %v854_v33 = vadd.f32 %v853_v28, %v835_v29 }
 0x13a   : > { %v898_v39 = vsel %vm485_vm1, %v896_v30, %v897_v32  ;;  %v921_v48 = vsel %vm509_vm2, %v919_v31, %v920_v57  ;;  %vm1154_vm1 = vmor %vm1824_vm13, %vm1820_vm12 }
 0x13b   : > { %v877_v58 = vadd.f32 %v875_v34, %v854_v33  ;;  %v942_v37 = vpop.permute.xlu0 %941  ;;  %v965_v38 = vpop.permute.xlu1 %964  ;;  %vm1157_vm2 = vmand %vm1155_vm14, %vm1156_vm15 }
 0x13c   : > { %v943_v40 = vrot.slane %v942_v37, 2  ;;  %v966_v42 = vrot.slane %v965_v38, 2 }
 0x13d   : > { %v900_v41 = vadd.f32 %v898_v39, %v877_v58 }
 0x13e   : > { %v944_v47 = vsel %vm533_vm3, %v942_v37, %v943_v40  ;;  %v967_v51 = vsel %vm557_vm4, %v965_v38, %v966_v42  ;;  %vm1158_vm3 = vmor %vm1157_vm2, %vm1154_vm1  ;;  %vm1075_vm4 = vcmask 0  }
 0x13f   : > { %v923_v44 = vadd.f32 %v921_v48, %v900_v41  ;;  %v988_v45 = vpop.permute.xlu0 %987  ;;  %v1011_v46 = vpop.permute.xlu1 %1010 }
 0x140   : > { %v989_v49 = vrot.slane %v988_v45, 2  ;;  %v1012_v52 = vrot.slane %v1011_v46, 2 }
 0x141   : > { %v946_v50 = vadd.f32 %v944_v47, %v923_v44 }
 0x142   : > { %v990_v62 = vsel %vm581_vm5, %v988_v45, %v989_v49  ;;  %v1013_v1 = vsel %vm605_vm6, %v1011_v46, %v1012_v52 }
 0x143   : > { %v969_v59 = vadd.f32 %v967_v51, %v946_v50  ;;  %v1034_v60 = vpop.permute.xlu0 %1033 }
 0x144   : > { %v1035_v63 = vrot.slane %v1034_v60, 2 }
 0x145   : > { %v992_v0 = vadd.f32 %v990_v62, %v969_v59 }
 0x146   : > { %v1036_v8 = vsel %vm629_vm7, %v1034_v60, %v1035_v63 }
 0x147   : > { %v1015_v4 = vadd.f32 %v1013_v1, %v992_v0 }
 0x149   : > { %v1038_v9 = vadd.f32 %v1036_v8, %v1015_v4 }
 0x14b   : > { %v1049_v10 = vmul.f32 %v1047_v2, %v1038_v9  ;;  %v1106_v11 = vrot.slane %v1038_v9, %v1053_v5  ;;  %v1110_v12 = vrot.slane %v1038_v9, %v1057_v6  ;;  %v1114_v13 = vrot.slane %v1038_v9, %v1061_v7 }
 0x14d   : > { %v1054_v16 = vrot.slane %v1049_v10, %v1053_v5  ;;  %v1058_v17 = vrot.slane %v1049_v10, %v1057_v6  ;;  %v1062_v18 = vrot.slane %v1049_v10, %v1061_v7  ;;  %v1120_v19 = vpack.c.bf16 %v1114_v13, %v1114_v13 }
 0x14e   : > { %v1399_v55 = vpack.c.bf16 %v1110_v12, %v1106_v11  ;;  %v1077_v20 = vmul.f32 %v1049_v10, %v1038_v9 }
 0x14f   : > { %v1067_v21 = vsel %vm1066_vm11, %v1054_v16, 0.0  ;;  %v1068_v23 = vsel %vm1066_vm11, %v1058_v17, 0.0  ;;  %v1138_v24 = vrot.slane %v1120_v19, %v1130_v22  ;;  %v1071_v29 = vsel %vm1070_vm0, %v1062_v18, 0.0 }
 0x150   : > { %v1069_v25 = vadd.f32 %v1068_v23, %v1067_v21  ;;  %v1131_v26 = vrot.slane %v1399_v55, %v1130_v22  ;;  %v1082_v27 = vrot.slane %v1077_v20, %v1053_v5  ;;  %v1086_v28 = vrot.slane %v1077_v20, %v1057_v6 }
 0x151   : > { %v1090_v30 = vrot.slane %v1077_v20, %v1061_v7 }
 0x152   : > { %v1072_v31 = vadd.f32 %v1071_v29, %v1069_v25  ;;  %v1139_v32 = vcombine.low %v1131_v26, %v1138_v24  ;;  %v1094_v33 = vsel %vm1066_vm11, %v1082_v27, 0.0  ;;  %v1095_v34 = vsel %vm1066_vm11, %v1086_v28, 0.0 }
 0x153   : > { %v1096_v57 = vadd.f32 %v1095_v34, %v1094_v33  ;;  %v1097_v36 = vsel %vm1070_vm0, %v1090_v30, 0.0 }
 0x154   : > { %1073 = vadd.xlane.f32.xlu1 %v1072_v31  ;;  %v1146_v58 = vrot.slane %v1139_v32, %v1130_v22 }
 0x155   : > { %v1098_v37 = vadd.f32 %v1097_v36, %v1096_v57 }
 0x156   : > { %v1160_v38 = vsel %vm1158_vm3, %v1146_v58, %v1159_v35 }
 0x157   : > { %1099 = vadd.xlane.f32.xlu0 %v1098_v37  ;;  %1161 = vst [vmem:[%s408_s17] sm:$0x7] %v1160_v38 }
 0x1e1   : > { %v1074_v39 = vpop.xlane.xlu1 %1073 }
 0x1e2   : > { %1076 = vst.msk [vmem:[%s415_s10] sm:$0x1] %vm1075_vm4, %v1074_v39 }
 0x1e4   : > { %v1100_v40 = vpop.xlane.xlu0 %1099 }
 0x1e5   : > { %1101 = vst.msk [vmem:[%s422_s13] sm:$0x1] %vm1075_vm4, %v1100_v40 }
 0x1e6 PF: > { %s18_s28 = sadd.s32 1, %s1500_s28   ;;  %s1878_s24 = smov %s1492_s26 }
 0x1e7   : > { %p15_p10 = scmp.ge.s32.totalorder %s18_s28, 34   ;;  %s1879_s25 = smov %s1496_s27 }
 0x1e8   : > { %s1880_s26 = smov %s1883_s29  ;;  %s1881_s27 = smov %s1887_s30 }
 0x1e9   :  { %17 = sbr.rel (!%p15_p10) target bundleno = 3 (0x3), region = 126 }

// kernel: _lambda_.27
= control target key start
LH: loop header
LB: loop body
LE: loop exit
PB: predicated region body
PF: predicated region fallthrough
CT: control target
= control target key end

     0   :  { %s565_s22 = smov 0   ;;  %s567_s23 = smov 0   ;;  %s630_s0 = inlined_call_operand.vmem [shape: bf16[2,16,1,288], index: 0, kind: input, shape index: {}]   ;;  %s631_s1 = inlined_call_operand.<no memory space> [shape: f32[1,1], index: 1, kind: input, shape index: {}]   ;;  %s632_s3 = inlined_call_operand.vmem [shape: f32[4,1], index: 3, kind: input, shape index: {}]   ;;  %s633_s4 = inlined_call_operand.vmem [shape: f32[4,1], index: 4, kind: input, shape index: {}]   ;;  %s634_s5 = inlined_call_operand.vmem [shape: f32[2,16,4,288], index: 5, kind: output, shape index: {}]   ;;  %s635_s2 = inlined_call_operand.<no memory space> [shape: f32[1,1], index: 2, kind: input, shape index: {}]  }
   0x1   :  { %v10_v0 = vstv %s631_s1  ;;  %v12_v1 = vstv %s635_s2  ;;  %s569_s24 = smov 0   ;;  %s571_s25 = smov 0  }
   0x2   :  { %11 = vst [vmem:[#allocation2] sm:$0x1] %v10_v0  ;;  %13 = vst [vmem:[#allocation3] sm:$0x1] %v12_v1  ;;  %s573_s26 = smov 0  }
   0x3 LB: > { %s28_s1 = sadd.s32 1, %s518_s24  ;;  %s31_s2 = sadd.s32 1, %s522_s25  ;;  %s526_s26 = sphi %s573_s26, %s19_s26   ;;  %s522_s25 = sphi %s571_s25, %s639_s25   ;;  %s518_s24 = sphi %s569_s24, %s638_s24   ;;  %s514_s23 = sphi %s567_s23, %s637_s23   ;;  %s510_s22 = sphi %s565_s22, %s636_s22  }
   0x4   : > { %p29_p0 = scmp.ge.s32.totalorder %s28_s1, 16  ;;  %p439_p1 = scmp.ge.s32.totalorder %s526_s26, 1 }
   0x5   : > { %p210_p2 = scmp.lt.s32.totalorder %s526_s26, 33 }
   0x6   : > { %s641_s1 = smov (%p29_p0, %s28_s1), 0  ;;  %s643_s2 = smov (!%p29_p0, %s31_s2), %s522_s25 }
   0x7   : > { %p211_p3 = pnand %p439_p1, %p210_p2  ;;  %p33_p4 = scmp.ge.s32.totalorder %s643_s2, 2 }
   0x8   : > { %v528_v3 = vmov (!%p211_p3), 0   ;;  %v287_v4 = vld [vmem:[%s632_s3] sm:$0xf] (!%p211_p3)  ;;  %p245_p5 = scmp.lt.s32.totalorder (!%p211_p3), %s514_s23, 1  ;;  %p247_p6 = scmp.lt.s32.totalorder (!%p211_p3), %s510_s22, 15  ;;  %v270_v7 = vlaneseq (!%p211_p3)  ;;  %vm341_vm0 = vcmask (!%p211_p3), 257024  }
   0x9   : > { %s645_s2 = smov (%p33_p4, %s643_s2), 0  ;;  %214 = sbr.rel (%p211_p3) target bundleno = 160 (0xa0), region = 40 }
   0xa   : > { %v264_v2 = vld [vmem:[#allocation2] sm:$0x1] (!%p211_p3)  ;;  %486 = vset.pattern.permute.xlu0 (!%p211_p3), %v528_v3  ;;  %487 = vset.pattern.permute.xlu1 (!%p211_p3), %v528_v3  ;;  %v275_v5 = vld [vmem:[#allocation3] sm:$0x1] (!%p211_p3)  ;;  %v271_v8 = vshrl.u32 (!%p211_p3), %v270_v7, 7 }
   0xb   : > { %267 = vperm.xlu0 (!%p211_p3), %486, %v264_v2   ;;  %290 = vperm.xlu1 (!%p211_p3), %487, %v287_v4   ;;  %v327_v6 = vld [vmem:[%s633_s4] sm:$0xf] (!%p211_p3) }
   0xc   : > { %v272_v9 = vsub.s32 (!%p211_p3), 0, %v271_v8  ;;  %v300_v18 = vsub.s32 (!%p211_p3), 2, %v271_v8  ;;  %v304_v19 = vsub.s32 (!%p211_p3), 4, %v271_v8 }
   0xf   : > { %278 = vperm.xlu0 (!%p211_p3), %486, %v275_v5   ;;  %330 = vperm.xlu1 (!%p211_p3), %487, %v327_v6  }
  0x10   : > { %s647_s23 = smov (!%p245_p5, %s514_s23), 1  ;;  %s649_s22 = smov (!%p247_p6, %s510_s22), 15 }
  0x11   : > { %s444_s6 = smul.u32 48, %s647_s23 }
  0x12   : > { %s443_s7 = smul.u32 3, %s649_s22 }
  0x14   : > { %s605_s8 = sadd.s32 %s444_s6, %s443_s7 }
  0x15   : > { %s252_s11 = scalar_lea.vmem %s630_s0, %s605_s8  ;;  %s440_s12 = sshll.u32 %s605_s8, 2 }
  0x16   : > { %v262_v10 = vld [vmem:[%s252_s11] sm:$0x7]  ;;  %s261_s15 = scalar_lea.vmem %s634_s5, %s440_s12 }
  0x17   : > { %v263_v12 = vunpack.c.l.bf16 %v262_v10 }
  0x8a   : > { %v268_v11 = vpop.permute.xlu0 %267  ;;  %v291_v21 = vpop.permute.xlu1 %290 }
  0x8b   : > { %v273_v13 = vrot.slane %v268_v11, %v272_v9 }
  0x8d   : > { %v274_v15 = vmul.f32 %v273_v13, %v263_v12 }
  0x8e   : > { %v279_v14 = vpop.permute.xlu0 %278  ;;  %v331_v31 = vpop.permute.xlu1 %330 }
  0x8f   : > { %v284_v16 = vrot.slane %v279_v14, %v272_v9 }
  0x91   : > { %v285_v17 = vadd.f32 %v284_v16, %v274_v15 }
  0x93   : > { %v286_v20 = vmax.f32 %v285_v17, 0.0 }
  0x95   : > { %v297_v22 = vrot.slane %v286_v20, %v272_v9  ;;  %v301_v23 = vrot.slane %v286_v20, %v300_v18  ;;  %v305_v24 = vrot.slane %v286_v20, %v304_v19 }
  0x97   : > { %v312_v25 = vrot.slane %v297_v22, %v272_v9  ;;  %v316_v26 = vrot.slane %v301_v23, %v272_v9  ;;  %v320_v27 = vrot.slane %v305_v24, %v272_v9 }
  0x99   : > { %v321_v28 = vmul.f32 %v312_v25, %v291_v21  ;;  %v322_v29 = vmul.f32 %v316_v26, %v291_v21  ;;  %v323_v30 = vmul.f32 %v320_v27, %v291_v21 }
  0x9b   : > { %v333_v32 = vadd.f32 %v331_v31, %v321_v28  ;;  %v334_v33 = vadd.f32 %v331_v31, %v322_v29  ;;  %v335_v34 = vadd.f32 %v331_v31, %v323_v30 }
  0x9d   : > { %v338_v35 = vcombine.low %v333_v32, %v334_v33  ;;  %342 = vst.msk [vmem:[%s261_s15 + $0x8] sm:$0xf] %vm341_vm0, %v335_v34 }
  0x9f   : > { %340 = vst [vmem:[%s261_s15] sm:$0xff] %v338_v35 }
  0xa0 PF: > { %s19_s26 = sadd.s32 1, %s526_s26   ;;  %s636_s22 = smov %s518_s24 }
  0xa1   : > { %p16_p7 = scmp.ge.s32.totalorder %s19_s26, 34   ;;  %s637_s23 = smov %s522_s25 }
  0xa2   : > { %s638_s24 = smov %s641_s1  ;;  %s639_s25 = smov %s645_s2 }
  0xa3   :  { %18 = sbr.rel (!%p16_p7) target bundleno = 3 (0x3), region = 70 }

</bundles_post_ra>
